<compile_context>
chip_gen: v6e
topology: v6e:2x2x1
jax: 0.10.0
libtpu: 0.0.40
codegen_flags: <defaults>
</compile_context>

<pallas_src>
import numpy as np
import jax
import jax.numpy as jnp
from jax import lax
from jax.experimental import pallas as pl
from jax.experimental.pallas import tpu as pltpu

# ----- torchaudio.transforms.MFCC() default hyper-parameters -----------------
SAMPLE_RATE = 16000
N_FFT = 400
HOP_LENGTH = N_FFT // 2               # 200
N_FREQS = N_FFT // 2 + 1              # 201
N_FREQS_PAD = 256                     # 201 padded to a lane-friendly 256
N_MELS = 128
N_MFCC = 40
F_MIN, F_MAX = 0.0, SAMPLE_RATE / 2.0
TOP_DB = 80.0
AMIN = 1e-10
BN_EPS = 1e-5

TIME_TILE = 512                       # lane tile over frames / conv outputs
CONV_COMPUTE_DTYPE = jnp.bfloat16     # MXU operand / DMA dtype (f32 accum & VPU math)
VMEM_LIMIT_BYTES = 48 * 1024 * 1024   # safe on v7x (64 MiB phys), ample on v5e/v6e


# ----------------------------- constant matrices -----------------------------
def _melscale_fbanks():
    """torchaudio.functional.melscale_fbanks (htk, norm=None). (n_freqs, n_mels)."""
    all_freqs = np.linspace(0.0, SAMPLE_RATE // 2, N_FREQS)
    hz2mel = lambda f: 2595.0 * np.log10(1.0 + f / 700.0)
    mel2hz = lambda m: 700.0 * (10.0 ** (m / 2595.0) - 1.0)
    m_pts = np.linspace(hz2mel(F_MIN), hz2mel(F_MAX), N_MELS + 2)
    f_pts = mel2hz(m_pts)
    f_diff = f_pts[1:] - f_pts[:-1]
    slopes = f_pts[None, :] - all_freqs[:, None]
    down = -slopes[:, :-2] / f_diff[:-1]
    up = slopes[:, 2:] / f_diff[1:]
    return np.maximum(0.0, np.minimum(down, up)).astype(np.float32)


def _create_dct():
    """torchaudio.functional.create_dct(n_mfcc, n_mels, 'ortho'). (n_mels, n_mfcc)."""
    n = np.arange(N_MELS, dtype=np.float64)
    k = np.arange(N_MFCC, dtype=np.float64)[:, None]
    dct = np.cos(np.pi / N_MELS * (n + 0.5) * k)
    dct[0] *= 1.0 / np.sqrt(2.0)
    dct *= np.sqrt(2.0 / N_MELS)
    return dct.T.astype(np.float32)


def _dft_window_mat():
    """Concatenated rDFT cos|sin matrix with the periodic Hann window folded in.
    Shape (2*N_FREQS_PAD, N_FFT); rows >= N_FREQS in each half are zero."""
    n = np.arange(N_FFT)
    hann = 0.5 * (1.0 - np.cos(2.0 * np.pi * n / N_FFT))
    ang = 2.0 * np.pi * np.outer(np.arange(N_FREQS), n) / N_FFT
    cs = np.zeros((2 * N_FREQS_PAD, N_FFT), np.float64)
    cs[:N_FREQS] = np.cos(ang) * hann[None, :]
    cs[N_FREQS_PAD:N_FREQS_PAD + N_FREQS] = np.sin(ang) * hann[None, :]
    return cs.astype(np.float32)


# --------------------------- MFCC front-end kernels ---------------------------
def dft_mel_kernel(frames_ref, cs_ref, fbt_ref, mel_ref, mmax_ref):
    """Fused windowed rDFT (1 bf16 matmul) + power + mel matmul + running max."""
    t = pl.program_id(1)
    x = frames_ref[0]                                                   # (N_FFT, TT) bf16
    cs = jnp.dot(cs_ref[...], x, preferred_element_type=jnp.float32)    # (512, TT) f32
    re = cs[:N_FREQS_PAD]
    im = cs[N_FREQS_PAD:]
    power = re * re + im * im                                           # f32 VPU math
    mel = jnp.dot(fbt_ref[...], power.astype(CONV_COMPUTE_DTYPE),
                  preferred_element_type=jnp.float32)                   # (128, TT)
    mel_ref[0] = mel.astype(mel_ref.dtype)                              # bf16 store

    @pl.when(t == 0)
    def _init():
        mmax_ref[...] = jnp.zeros(mmax_ref.shape, mmax_ref.dtype)

    # power >= 0 so zero-padded frame columns never affect the max
    mmax_ref[...] = jnp.maximum(mmax_ref[...], jnp.max(mel))


def mfcc_finalize_kernel(mel_ref, dctt_ref, mmax_ref, out_ref):
    """amplitude_to_DB (power, top_db=80) + DCT matmul (kept f32, tiny)."""
    mel = mel_ref[0].astype(jnp.float32)                                # (128, TT)
    mel_db = 10.0 * jnp.log10(jnp.maximum(mel, AMIN))
    thr = mmax_ref[...][0, :, 0:1] - TOP_DB                             # (1, 1)
    mel_db = jnp.maximum(mel_db, thr)
    out = jnp.dot(dctt_ref[...], mel_db, preferred_element_type=jnp.float32)
    out_ref[0] = out.astype(out_ref.dtype)                              # (40, TT) bf16


def dft_mel_pallas(frames_t, cs_m, fbt):
    B, _, f_pad = frames_t.shape
    nt = f_pad // TIME_TILE
    return pl.pallas_call(
        dft_mel_kernel,
        grid=(B, nt),
        in_specs=[
            pl.BlockSpec((1, N_FFT, TIME_TILE), lambda b, t: (b, 0, t)),
            pl.BlockSpec((2 * N_FREQS_PAD, N_FFT), lambda b, t: (0, 0)),
            pl.BlockSpec((N_MELS, N_FREQS_PAD), lambda b, t: (0, 0)),
        ],
        out_specs=(
            pl.BlockSpec((1, N_MELS, TIME_TILE), lambda b, t: (b, 0, t)),
            pl.BlockSpec((1, 1, 128), lambda b, t: (b, 0, 0)),
        ),
        out_shape=(
            jax.ShapeDtypeStruct((B, N_MELS, f_pad), jnp.bfloat16),
            jax.ShapeDtypeStruct((B, 1, 128), jnp.float32),
        ),
        compiler_params=pltpu.CompilerParams(
            dimension_semantics=("parallel", "arbitrary"),
            vmem_limit_bytes=VMEM_LIMIT_BYTES),
    )(frames_t, cs_m, fbt)


def mfcc_finalize_pallas(mel, dct_t, max_db):
    B, _, f_pad = mel.shape
    nt = f_pad // TIME_TILE
    return pl.pallas_call(
        mfcc_finalize_kernel,
        grid=(B, nt),
        in_specs=[
            pl.BlockSpec((1, N_MELS, TIME_TILE), lambda b, t: (b, 0, t)),
            pl.BlockSpec((N_MFCC, N_MELS), lambda b, t: (0, 0)),
            pl.BlockSpec((1, 1, 128), lambda b, t: (b, 0, 0)),
        ],
        out_specs=pl.BlockSpec((1, N_MFCC, TIME_TILE), lambda b, t: (b, 0, t)),
        out_shape=jax.ShapeDtypeStruct((B, N_MFCC, f_pad), jnp.bfloat16),
        compiler_params=pltpu.CompilerParams(
            dimension_semantics=("parallel", "parallel"),
            vmem_limit_bytes=VMEM_LIMIT_BYTES),
    )(mel, dct_t, max_db)


def mfcc_frontend(params, x):
    """x: (B, T, 1) -> (mfcc (B, N_MFCC, F_pad) bf16, n_frames)."""
    B, T, _ = x.shape
    sig = jnp.pad(x[:, :, 0], ((0, 0), (HOP_LENGTH, HOP_LENGTH)), mode="reflect")
    n_frames = 1 + T // HOP_LENGTH
    f_pad = pl.cdiv(n_frames, TIME_TILE) * TIME_TILE
    # Reshape-based framing (N_FFT == 2*HOP): frame i = hop-block i ++ hop-block i+1.
    # No XLA gather; just two slices + transposes + a concat.
    need = (n_frames + 1) * HOP_LENGTH
    blocks = sig[:, :need].reshape(B, n_frames + 1, HOP_LENGTH)
    lo = jnp.transpose(blocks[:, :n_frames, :], (0, 2, 1))      # (B, HOP, frames)
    hi = jnp.transpose(blocks[:, 1:, :], (0, 2, 1))             # (B, HOP, frames)
    frames_t = jnp.concatenate([lo, hi], axis=1)                # (B, N_FFT, frames)
    frames_t = jnp.pad(frames_t, ((0, 0), (0, 0), (0, f_pad - n_frames)))
    frames_t = frames_t.astype(CONV_COMPUTE_DTYPE)

    mel, mel_max = dft_mel_pallas(frames_t, params["dft_cs"], params["mel_fbt"])
    # per-sample max of the dB mel spectrogram (monotone transform of max power)
    max_db = 10.0 * jnp.log10(jnp.maximum(mel_max, AMIN))       # (B, 1, 128)
    mfcc = mfcc_finalize_pallas(mel, params["dct_t"], max_db)
    return mfcc, n_frames


# -------------------- TDNN layer: Conv1d + BatchNorm + ReLU -------------------
def _make_conv_kernels(taps, tt, c_in, t_out):
    """taps[k] = (phase, offset) of conv tap k in the stride-phase-split input."""
    k_sz = len(taps)

    def conv_tile(body_ref, halo_ref, w_ref, slab_ref):
        # im2col: stack tap-shifted slices along the contraction dim, then ONE
        # matmul with K = k_sz * c_in (vs k_sz matmuls of depth c_in).
        for k in range(k_sz):
            ph, q = taps[k]
            r0 = k * c_in
            if q == 0:
                slab_ref[r0:r0 + c_in, :] = body_ref[0, ph]
            else:
                slab_ref[r0:r0 + c_in, :tt - q] = body_ref[0, ph, :, q:]
                slab_ref[r0:r0 + c_in, tt - q:] = halo_ref[0, 0, ph, :, :q]
        return jnp.dot(w_ref[...], slab_ref[...],
                       preferred_element_type=jnp.float32)       # (C_out, tt) f32

    def stats_kernel(body_ref, halo_ref, w_ref, sum_ref, sq_ref, slab_ref):
        t = pl.program_id(1)
        y = conv_tile(body_ref, halo_ref, w_ref, slab_ref)
        col = lax.broadcasted_iota(jnp.int32, (1, tt), 1) + t * tt
        y = y * (col < t_out).astype(jnp.float32)     # drop padded time columns

        @pl.when(t == 0)
        def _init():
            sum_ref[...] = jnp.zeros(sum_ref.shape, sum_ref.dtype)
            sq_ref[...] = jnp.zeros(sq_ref.shape, sq_ref.dtype)

        sum_ref[0] += y
        sq_ref[0] += y * y

    def bn_relu_kernel(body_ref, halo_ref, w_ref, scale_ref, shift_ref,
                       out_ref, slab_ref):
        y = conv_tile(body_ref, halo_ref, w_ref, slab_ref)
        out_ref[0] = jnp.maximum(y * scale_ref[...] + shift_ref[...],
                                 0.0).astype(out_ref.dtype)

    return stats_kernel, bn_relu_kernel


def tdnn_bn_relu_layer(x, valid_len, weight, gamma, beta,
                       kernel_size, stride, dilation):
    """x: (B, C_in, T_any) with valid data in [:, :, :valid_len].
    Returns ((B, C_out, t_out_pad) bf16 with valid [:, :, :t_out], t_out)."""
    B, c_in, _ = x.shape
    c_out = weight.shape[0]
    k_sz, s, d = kernel_size, stride, dilation
    padding = d * (k_sz - 1) // 2
    t_in = valid_len
    t_out = (t_in + 2 * padding - d * (k_sz - 1) - 1) // s + 1
    tt = TIME_TILE
    nt = pl.cdiv(t_out, tt)
    t_out_pad = nt * tt

    # --- XLA glue (all bf16): zero pad, stride-phase split, tiny halo gather ---
    x = x.astype(CONV_COMPUTE_DTYPE)
    qmax = (d * (k_sz - 1)) // s
    halo_cols = max(qmax, 1)
    t_ph = nt * tt + halo_cols                         # per-phase padded length
    total = s * t_ph
    x_pad = jnp.pad(x[:, :, :t_in],
                    ((0, 0), (0, 0), (padding, total - padding - t_in)))
    # x_ph[b, ph, c, u] = x_pad[b, c, u*s + ph]  -> tap reads become contiguous
    x_ph = jnp.transpose(x_pad.reshape(B, c_in, t_ph, s), (0, 3, 1, 2))
    halo_idx = np.arange(1, nt + 1)[:, None] * tt + np.arange(halo_cols)[None, :]
    halo = jnp.transpose(x_ph[:, :, :, halo_idx], (0, 3, 1, 2, 4))  # (B,nt,s,C_in,halo)

    # NOTE: Conv1d bias is omitted on purpose: BatchNorm (training mode)
    # subtracts the batch mean, so a per-channel bias cancels exactly.
    # w2[:, k*c_in + c] = weight[:, c, k]  (matches im2col slab row ordering)
    w2 = jnp.transpose(weight, (0, 2, 1)).reshape(c_out, k_sz * c_in)
    w2 = w2.astype(CONV_COMPUTE_DTYPE)
    taps = tuple(((k * d) % s, (k * d) // s) for k in range(k_sz))

    stats_kernel, bn_relu_kernel = _make_conv_kernels(taps, tt, c_in, t_out)

    grid = (B, nt)
    body_spec = pl.BlockSpec((1, s, c_in, tt), lambda b, t: (b, 0, 0, t))
    halo_spec = pl.BlockSpec((1, 1, s, c_in, halo_cols), lambda b, t: (b, t, 0, 0, 0))
    w_spec = pl.BlockSpec((c_out, k_sz * c_in), lambda b, t: (0, 0))
    slab = pltpu.VMEM((k_sz * c_in, tt), CONV_COMPUTE_DTYPE)

    # Pass 1: conv + masked per-channel sum / sum-of-squares (BN batch stats).
    # TODO(synk): on v7x with B == 1, split the time axis into a 2-way parallel
    # outer axis so both TensorCores are used for this accumulator pass.
    sum_p, sq_p = pl.pallas_call(
        stats_kernel,
        grid=grid,
        in_specs=[body_spec, halo_spec, w_spec],
        out_specs=(pl.BlockSpec((1, c_out, tt), lambda b, t: (b, 0, 0)),
                   pl.BlockSpec((1, c_out, tt), lambda b, t: (b, 0, 0))),
        out_shape=(jax.ShapeDtypeStruct((B, c_out, tt), jnp.float32),
                   jax.ShapeDtypeStruct((B, c_out, tt), jnp.float32)),
        scratch_shapes=[slab],
        compiler_params=pltpu.CompilerParams(
            dimension_semantics=("parallel", "arbitrary"),
            vmem_limit_bytes=VMEM_LIMIT_BYTES),
    )(x_ph, halo, w2)

    # TODO(synk): E[x^2]-E[x]^2 in f32 can lose precision for large-mean channels
    # (dB-scale c0); a shifted/Welford accumulation would be more robust.
    count = B * t_out
    mean = jnp.sum(sum_p, axis=(0, 2)) / count
    var = jnp.maximum(jnp.sum(sq_p, axis=(0, 2)) / count - mean * mean, 0.0)
    inv = lax.rsqrt(var + BN_EPS)
    scale = (gamma * inv).reshape(c_out, 1).astype(jnp.float32)
    shift = (beta - mean * gamma * inv).reshape(c_out, 1).astype(jnp.float32)

    # Pass 2: recompute conv (cheaper than an HBM round trip of the pre-BN
    # activations) + fused BN affine + ReLU, written bf16 straight to HBM.
    out = pl.pallas_call(
        bn_relu_kernel,
        grid=grid,
        in_specs=[body_spec, halo_spec, w_spec,
                  pl.BlockSpec((c_out, 1), lambda b, t: (0, 0)),
                  pl.BlockSpec((c_out, 1), lambda b, t: (0, 0))],
        out_specs=pl.BlockSpec((1, c_out, tt), lambda b, t: (b, 0, t)),
        out_shape=jax.ShapeDtypeStruct((B, c_out, t_out_pad), CONV_COMPUTE_DTYPE),
        scratch_shapes=[slab],
        compiler_params=pltpu.CompilerParams(
            dimension_semantics=("parallel", "parallel"),
            vmem_limit_bytes=VMEM_LIMIT_BYTES),
    )(x_ph, halo, w2, scale, shift)
    return out, t_out


# -------------------------------- final Linear --------------------------------
def linear_kernel(h_ref, w_ref, b_ref, out_ref):
    # lane-dense output: (O, C) @ (C, TT) -> (O, TT); (B,T,O) transpose is XLA glue
    y = jnp.dot(w_ref[...], h_ref[0], preferred_element_type=jnp.float32)
    out_ref[0] = y + b_ref[...]


def linear_pallas(h, w, bias):
    B, C, t_pad = h.shape
    O = w.shape[0]
    tt = TIME_TILE
    nt = t_pad // tt
    w_b = w.astype(CONV_COMPUTE_DTYPE)
    b2 = bias.reshape(O, 1).astype(jnp.float32)
    return pl.pallas_call(
        linear_kernel,
        grid=(B, nt),
        in_specs=[pl.BlockSpec((1, C, tt), lambda b, t: (b, 0, t)),
                  pl.BlockSpec((O, C), lambda b, t: (0, 0)),
                  pl.BlockSpec((O, 1), lambda b, t: (0, 0))],
        out_specs=pl.BlockSpec((1, O, tt), lambda b, t: (b, 0, t)),
        out_shape=jax.ShapeDtypeStruct((B, O, t_pad), jnp.float32),
        compiler_params=pltpu.CompilerParams(
            dimension_semantics=("parallel", "parallel"),
            vmem_limit_bytes=VMEM_LIMIT_BYTES),
    )(h.astype(CONV_COMPUTE_DTYPE), w_b, b2)


# -------------------------------- parameters ----------------------------------
def init_params(key, in_dim, out_dim, hidden_dims, kernel_sizes):
    fbt = np.zeros((N_MELS, N_FREQS_PAD), np.float32)
    fbt[:, :N_FREQS] = _melscale_fbanks().T
    params = {
        "dft_cs": jnp.asarray(_dft_window_mat()).astype(jnp.bfloat16),
        "mel_fbt": jnp.asarray(fbt).astype(jnp.bfloat16),
        "dct_t": jnp.asarray(_create_dct().T),     # (N_MFCC, N_MELS) f32 (tiny matmul)
        "tdnn": [],
    }
    keys = jax.random.split(key, len(hidden_dims) + 1)
    prev = in_dim
    for i, h in enumerate(hidden_dims):
        fan_in = prev * kernel_sizes[i]
        bound = 1.0 / np.sqrt(fan_in)
        params["tdnn"].append(dict(
            weight=jax.random.uniform(keys[i], (h, prev, kernel_sizes[i]),
                                      minval=-bound, maxval=bound,
                                      dtype=jnp.float32),
            gamma=jnp.ones((h,), jnp.float32),
            beta=jnp.zeros((h,), jnp.float32),
        ))
        prev = h
    kf1, kf2 = jax.random.split(keys[-1])
    bound = 1.0 / np.sqrt(prev)
    params["final_w"] = jax.random.uniform(kf1, (out_dim, prev), minval=-bound,
                                           maxval=bound, dtype=jnp.float32)
    params["final_b"] = jax.random.uniform(kf2, (out_dim,), minval=-bound,
                                           maxval=bound, dtype=jnp.float32)
    return params


# --------------------------------- forward ------------------------------------
def tdnn_out_lengths(lengths, kernel_size, stride, dilation):
    padding = dilation * (kernel_size - 1) // 2
    return (lengths + 2 * padding - dilation * (kernel_size - 1) + stride - 1) // stride


def tdnn_mfcc_forward(params, x, x_lengths, kernel_sizes, strides, dilations):
    h, valid = mfcc_frontend(params, x)                 # (B, N_MFCC, F_pad) bf16
    x_lengths = x_lengths // HOP_LENGTH + 1
    for i, layer in enumerate(params["tdnn"]):
        h, valid = tdnn_bn_relu_layer(h, valid, layer["weight"], layer["gamma"],
                                      layer["beta"], kernel_sizes[i], strides[i],
                                      dilations[i])
        x_lengths = tdnn_out_lengths(x_lengths, kernel_sizes[i], strides[i],
                                     dilations[i])
        # F.dropout with the module default p=0 is the identity.
        # TODO(synk): dropout p>0 in training would need pltpu PRNG masking.
    out = linear_pallas(h, params["final_w"], params["final_b"])  # (B, O, T_pad)
    out = jnp.transpose(out, (0, 2, 1))[:, :valid, :]             # cheap XLA glue
    return out, x_lengths


# ----------------------------------- main --------------------------------------
if __name__ == "__main__":
    B = 2
    T = 800                      # 800 // 200 + 1 = 5 frames
    in_dim = N_MFCC
    out_dim = 10
    hidden_dims = (32, 32)
    kernel_sizes = (3, 3)
    strides = (1, 2)
    dilations = (1, 2)

    key = jax.random.PRNGKey(0)
    kx, _ = jax.random.split(key)
    x = jax.random.normal(kx, (B, T, 1), dtype=jnp.float32)
    x_lengths = jnp.array([800, 600], dtype=jnp.int32)

    params = init_params(jax.random.PRNGKey(42), in_dim, out_dim,
                         hidden_dims, kernel_sizes)

    fwd = jax.jit(tdnn_mfcc_forward,
                  static_argnames=("kernel_sizes", "strides", "dilations"))
    out, out_lengths = fwd(params, x, x_lengths, kernel_sizes=kernel_sizes,
                           strides=strides, dilations=dilations)
    jax.block_until_ready(out)
    jax.block_until_ready(out_lengths)

    assert out.shape == (B, 3, out_dim), out.shape
    print("KERNEL_OK")
</pallas_src>

<mosaic_0001>
module attributes {stable_mosaic.version = 11 : i64} {
  func.func @dft_mel_kernel(%arg0: i32, %arg1: i32, %arg2: memref<1x400x512xbf16, #tpu.memory_space<vmem>>, %arg3: memref<512x400xbf16, #tpu.memory_space<vmem>>, %arg4: memref<128x256xbf16, #tpu.memory_space<vmem>>, %arg5: memref<1x128x512xbf16, #tpu.memory_space<vmem>>, %arg6: memref<1x1x128xf32, #tpu.memory_space<vmem>>) attributes {dimension_semantics = [#tpu.dimension_semantics<parallel>, #tpu.dimension_semantics<arbitrary>], iteration_bounds = array<i64: 2, 1>, scalar_prefetch = 0 : i64, scratch_operands = 0 : i64, tpu.core_type = #tpu.core_type<tc>, window_params = [{transform_indices = @transform_0, window_bounds = array<i64: 1, 400, 512>}, {pipeline_mode = #tpu.pipeline_mode<synchronous>, transform_indices = @transform_1, window_bounds = array<i64: 512, 400>}, {pipeline_mode = #tpu.pipeline_mode<synchronous>, transform_indices = @transform_2, window_bounds = array<i64: 128, 256>}, {transform_indices = @transform_3, window_bounds = array<i64: 1, 128, 512>}, {transform_indices = @transform_4, window_bounds = array<i64: 1, 1, 128>}]} {
    %c0 = arith.constant 0 : index
    %c0_0 = arith.constant 0 : index
    %c0_1 = arith.constant 0 : index
    %0 = vector.load %arg2[%c0, %c0_0, %c0_1] : memref<1x400x512xbf16, #tpu.memory_space<vmem>>, vector<1x400x512xbf16>
    %1 = vector.shape_cast %0 : vector<1x400x512xbf16> to vector<400x512xbf16>
    %c0_2 = arith.constant 0 : index
    %c0_3 = arith.constant 0 : index
    %2 = vector.load %arg3[%c0_2, %c0_3] : memref<512x400xbf16, #tpu.memory_space<vmem>>, vector<512x400xbf16>
    %cst = arith.constant dense<0.000000e+00> : vector<512x512xf32>
    %3 = tpu.matmul %2, %1, %cst {dimension_numbers = #tpu.dot_dimension_numbers<[1], [0], [0], [1], [0, 0, 1, 1], [], []>} : vector<512x400xbf16>, vector<400x512xbf16>, vector<512x512xf32> -> vector<512x512xf32>
    %4 = vector.extract_strided_slice %3 {offsets = [0, 0], sizes = [256, 512], strides = [1, 1]} : vector<512x512xf32> to vector<256x512xf32>
    %5 = vector.extract_strided_slice %3 {offsets = [256, 0], sizes = [256, 512], strides = [1, 1]} : vector<512x512xf32> to vector<256x512xf32>
    %6 = arith.mulf %4, %4 : vector<256x512xf32>
    %7 = arith.mulf %5, %5 : vector<256x512xf32>
    %8 = arith.addf %6, %7 : vector<256x512xf32>
    %c0_4 = arith.constant 0 : index
    %c0_5 = arith.constant 0 : index
    %9 = vector.load %arg4[%c0_4, %c0_5] : memref<128x256xbf16, #tpu.memory_space<vmem>>, vector<128x256xbf16>
    %10 = arith.truncf %8 : vector<256x512xf32> to vector<256x512xbf16>
    %cst_6 = arith.constant dense<0.000000e+00> : vector<128x512xf32>
    %11 = tpu.matmul %9, %10, %cst_6 {dimension_numbers = #tpu.dot_dimension_numbers<[1], [0], [0], [1], [0, 0, 1, 1], [], []>} : vector<128x256xbf16>, vector<256x512xbf16>, vector<128x512xf32> -> vector<128x512xf32>
    %12 = arith.truncf %11 : vector<128x512xf32> to vector<128x512xbf16>
    %c0_7 = arith.constant 0 : index
    %c0_8 = arith.constant 0 : index
    %c0_9 = arith.constant 0 : index
    %13 = vector.load %arg5[%c0_7, %c0_8, %c0_9] : memref<1x128x512xbf16, #tpu.memory_space<vmem>>, vector<1x128x512xbf16>
    %14 = vector.shape_cast %13 : vector<1x128x512xbf16> to vector<128x512xbf16>
    %15 = vector.shape_cast %12 : vector<128x512xbf16> to vector<1x128x512xbf16>
    tpu.vector_store %arg5[%c0_7, %c0_8, %c0_9], %15 {strides = array<i32>} : memref<1x128x512xbf16, #tpu.memory_space<vmem>>, vector<1x128x512xbf16>,
    %c0_i32 = arith.constant 0 : i32
    %16 = arith.cmpi eq, %arg1, %c0_i32 : i32
    %17 = arith.extui %16 : i1 to i32
    %c0_i32_10 = arith.constant 0 : i32
    %18 = arith.cmpi ne, %17, %c0_i32_10 : i32
    scf.if %18 {
      %cst_18 = arith.constant 0.000000e+00 : f32
      %27 = vector.broadcast %cst_18 : f32 to vector<1x1x128xf32>
      %c0_19 = arith.constant 0 : index
      %c0_20 = arith.constant 0 : index
      %c0_21 = arith.constant 0 : index
      %28 = vector.load %arg6[%c0_19, %c0_20, %c0_21] : memref<1x1x128xf32, #tpu.memory_space<vmem>>, vector<1x1x128xf32>
      tpu.vector_store %arg6[%c0_19, %c0_20, %c0_21], %27 {strides = array<i32>} : memref<1x1x128xf32, #tpu.memory_space<vmem>>, vector<1x1x128xf32>,
    } else {
    }
    %c0_11 = arith.constant 0 : index
    %c0_12 = arith.constant 0 : index
    %c0_13 = arith.constant 0 : index
    %19 = vector.load %arg6[%c0_11, %c0_12, %c0_13] : memref<1x1x128xf32, #tpu.memory_space<vmem>>, vector<1x1x128xf32>
    %20 = vector.shape_cast %11 : vector<128x512xf32> to vector<1x128x512xf32>
    %cst_14 = arith.constant dense<0xFF800000> : vector<1xf32>
    %21 = vector.multi_reduction <maximumf>, %20, %cst_14 [1, 2] : vector<1x128x512xf32> to vector<1xf32>
    %22 = vector.shape_cast %21 : vector<1xf32> to vector<1x1x1xf32>
    %23 = vector.extract %22[0, 0, 0] : f32 from vector<1x1x1xf32>
    %24 = vector.broadcast %23 : f32 to vector<1x1x128xf32>
    %25 = arith.maximumf %19, %24 : vector<1x1x128xf32>
    %c0_15 = arith.constant 0 : index
    %c0_16 = arith.constant 0 : index
    %c0_17 = arith.constant 0 : index
    %26 = vector.load %arg6[%c0_15, %c0_16, %c0_17] : memref<1x1x128xf32, #tpu.memory_space<vmem>>, vector<1x1x128xf32>
    tpu.vector_store %arg6[%c0_15, %c0_16, %c0_17], %25 {strides = array<i32>} : memref<1x1x128xf32, #tpu.memory_space<vmem>>, vector<1x1x128xf32>,
    return
  }
  func.func @transform_0(%arg0: i32, %arg1: i32) -> (i32, i32, i32) {
    %c0_i32 = arith.constant 0 : i32
    %c0_i32_0 = arith.constant 0 : i32
    return %arg0, %c0_i32, %arg1 : i32, i32, i32
  }
  func.func @transform_1(%arg0: i32, %arg1: i32) -> (i32, i32) {
    %c0_i32 = arith.constant 0 : i32
    %c0_i32_0 = arith.constant 0 : i32
    %c0_i32_1 = arith.constant 0 : i32
    return %c0_i32, %c0_i32_0 : i32, i32
  }
  func.func @transform_2(%arg0: i32, %arg1: i32) -> (i32, i32) {
    %c0_i32 = arith.constant 0 : i32
    %c0_i32_0 = arith.constant 0 : i32
    %c0_i32_1 = arith.constant 0 : i32
    return %c0_i32, %c0_i32_0 : i32, i32
  }
  func.func @transform_3(%arg0: i32, %arg1: i32) -> (i32, i32, i32) {
    %c0_i32 = arith.constant 0 : i32
    %c0_i32_0 = arith.constant 0 : i32
    return %arg0, %c0_i32, %arg1 : i32, i32, i32
  }
  func.func @transform_4(%arg0: i32, %arg1: i32) -> (i32, i32, i32) {
    %c0_i32 = arith.constant 0 : i32
    %c0_i32_0 = arith.constant 0 : i32
    %c0_i32_1 = arith.constant 0 : i32
    return %arg0, %c0_i32, %c0_i32_0 : i32, i32, i32
  }
}

module attributes {stable_mosaic.version = 11 : i64} {
  func.func @mfcc_finalize_kernel(%arg0: i32, %arg1: i32, %arg2: memref<1x128x512xbf16, #tpu.memory_space<vmem>>, %arg3: memref<40x128xf32, #tpu.memory_space<vmem>>, %arg4: memref<1x1x128xf32, #tpu.memory_space<vmem>>, %arg5: memref<1x40x512xbf16, #tpu.memory_space<vmem>>) attributes {dimension_semantics = [#tpu.dimension_semantics<parallel>, #tpu.dimension_semantics<parallel>], iteration_bounds = array<i64: 2, 1>, scalar_prefetch = 0 : i64, scratch_operands = 0 : i64, tpu.core_type = #tpu.core_type<tc>, window_params = [{transform_indices = @transform_0, window_bounds = array<i64: 1, 128, 512>}, {pipeline_mode = #tpu.pipeline_mode<synchronous>, transform_indices = @transform_1, window_bounds = array<i64: 40, 128>}, {transform_indices = @transform_2, window_bounds = array<i64: 1, 1, 128>}, {transform_indices = @transform_3, window_bounds = array<i64: 1, 40, 512>}]} {
    %c0 = arith.constant 0 : index
    %c0_0 = arith.constant 0 : index
    %c0_1 = arith.constant 0 : index
    %0 = vector.load %arg2[%c0, %c0_0, %c0_1] : memref<1x128x512xbf16, #tpu.memory_space<vmem>>, vector<1x128x512xbf16>
    %1 = vector.shape_cast %0 : vector<1x128x512xbf16> to vector<128x512xbf16>
    %2 = arith.extf %1 : vector<128x512xbf16> to vector<128x512xf32>
    %cst = arith.constant 1.000000e-10 : f32
    %3 = vector.broadcast %cst : f32 to vector<128x512xf32>
    %4 = arith.maximumf %2, %3 : vector<128x512xf32>
    %5 = math.log %4 : vector<128x512xf32>
    %cst_2 = arith.constant 0.434294492 : f32
    %6 = vector.broadcast %cst_2 : f32 to vector<128x512xf32>
    %7 = arith.mulf %5, %6 : vector<128x512xf32>
    %cst_3 = arith.constant 1.000000e+01 : f32
    %8 = vector.broadcast %cst_3 : f32 to vector<128x512xf32>
    %9 = arith.mulf %8, %7 : vector<128x512xf32>
    %c0_4 = arith.constant 0 : index
    %c0_5 = arith.constant 0 : index
    %c0_6 = arith.constant 0 : index
    %10 = vector.load %arg4[%c0_4, %c0_5, %c0_6] : memref<1x1x128xf32, #tpu.memory_space<vmem>>, vector<1x1x128xf32>
    %11 = vector.extract_strided_slice %10 {offsets = [0, 0, 0], sizes = [1, 1, 1], strides = [1, 1, 1]} : vector<1x1x128xf32> to vector<1x1x1xf32>
    %12 = vector.shape_cast %11 : vector<1x1x1xf32> to vector<1x1xf32>
    %cst_7 = arith.constant 8.000000e+01 : f32
    %13 = vector.broadcast %cst_7 : f32 to vector<1x1xf32>
    %14 = arith.subf %12, %13 : vector<1x1xf32>
    %15 = vector.broadcast %14 : vector<1x1xf32> to vector<128x512xf32>
    %16 = arith.maximumf %9, %15 : vector<128x512xf32>
    %c0_8 = arith.constant 0 : index
    %c0_9 = arith.constant 0 : index
    %17 = vector.load %arg3[%c0_8, %c0_9] : memref<40x128xf32, #tpu.memory_space<vmem>>, vector<40x128xf32>
    %cst_10 = arith.constant dense<0.000000e+00> : vector<40x512xf32>
    %18 = tpu.matmul %17, %16, %cst_10 {dimension_numbers = #tpu.dot_dimension_numbers<[1], [0], [0], [1], [0, 0, 1, 1], [], []>} : vector<40x128xf32>, vector<128x512xf32>, vector<40x512xf32> -> vector<40x512xf32>
    %19 = arith.truncf %18 : vector<40x512xf32> to vector<40x512xbf16>
    %c0_11 = arith.constant 0 : index
    %c0_12 = arith.constant 0 : index
    %c0_13 = arith.constant 0 : index
    %20 = vector.load %arg5[%c0_11, %c0_12, %c0_13] : memref<1x40x512xbf16, #tpu.memory_space<vmem>>, vector<1x40x512xbf16>
    %21 = vector.shape_cast %20 : vector<1x40x512xbf16> to vector<40x512xbf16>
    %22 = vector.shape_cast %19 : vector<40x512xbf16> to vector<1x40x512xbf16>
    tpu.vector_store %arg5[%c0_11, %c0_12, %c0_13], %22 {strides = array<i32>} : memref<1x40x512xbf16, #tpu.memory_space<vmem>>, vector<1x40x512xbf16>,
    return
  }
  func.func @transform_0(%arg0: i32, %arg1: i32) -> (i32, i32, i32) {
    %c0_i32 = arith.constant 0 : i32
    %c0_i32_0 = arith.constant 0 : i32
    return %arg0, %c0_i32, %arg1 : i32, i32, i32
  }
  func.func @transform_1(%arg0: i32, %arg1: i32) -> (i32, i32) {
    %c0_i32 = arith.constant 0 : i32
    %c0_i32_0 = arith.constant 0 : i32
    %c0_i32_1 = arith.constant 0 : i32
    return %c0_i32, %c0_i32_0 : i32, i32
  }
  func.func @transform_2(%arg0: i32, %arg1: i32) -> (i32, i32, i32) {
    %c0_i32 = arith.constant 0 : i32
    %c0_i32_0 = arith.constant 0 : i32
    %c0_i32_1 = arith.constant 0 : i32
    return %arg0, %c0_i32, %c0_i32_0 : i32, i32, i32
  }
  func.func @transform_3(%arg0: i32, %arg1: i32) -> (i32, i32, i32) {
    %c0_i32 = arith.constant 0 : i32
    %c0_i32_0 = arith.constant 0 : i32
    return %arg0, %c0_i32, %arg1 : i32, i32, i32
  }
}

module attributes {stable_mosaic.version = 11 : i64} {
  func.func @stats_kernel(%arg0: i32, %arg1: i32, %arg2: memref<1x1x40x512xbf16, #tpu.memory_space<vmem>>, %arg3: memref<1x1x1x40x2xbf16, #tpu.memory_space<vmem>>, %arg4: memref<32x120xbf16, #tpu.memory_space<vmem>>, %arg5: memref<1x32x512xf32, #tpu.memory_space<vmem>>, %arg6: memref<1x32x512xf32, #tpu.memory_space<vmem>>, %arg7: memref<120x512xbf16, #tpu.memory_space<vmem>>) attributes {dimension_semantics = [#tpu.dimension_semantics<parallel>, #tpu.dimension_semantics<arbitrary>], iteration_bounds = array<i64: 2, 1>, scalar_prefetch = 0 : i64, scratch_operands = 1 : i64, tpu.core_type = #tpu.core_type<tc>, window_params = [{transform_indices = @transform_0, window_bounds = array<i64: 1, 1, 40, 512>}, {transform_indices = @transform_1, window_bounds = array<i64: 1, 1, 1, 40, 2>}, {pipeline_mode = #tpu.pipeline_mode<synchronous>, transform_indices = @transform_2, window_bounds = array<i64: 32, 120>}, {transform_indices = @transform_3, window_bounds = array<i64: 1, 32, 512>}, {transform_indices = @transform_4, window_bounds = array<i64: 1, 32, 512>}]} {
    %c0 = arith.constant 0 : index
    %c0_0 = arith.constant 0 : index
    %c0_1 = arith.constant 0 : index
    %c0_2 = arith.constant 0 : index
    %0 = vector.load %arg2[%c0, %c0_0, %c0_1, %c0_2] : memref<1x1x40x512xbf16, #tpu.memory_space<vmem>>, vector<1x1x40x512xbf16>
    %1 = vector.shape_cast %0 : vector<1x1x40x512xbf16> to vector<40x512xbf16>
    %c0_3 = arith.constant 0 : index
    %c0_4 = arith.constant 0 : index
    %2 = vector.load %arg7[%c0_3, %c0_4] : memref<120x512xbf16, #tpu.memory_space<vmem>>, vector<40x512xbf16>
    tpu.vector_store %arg7[%c0_3, %c0_4], %1 {strides = array<i32>} : memref<120x512xbf16, #tpu.memory_space<vmem>>, vector<40x512xbf16>,
    %c0_5 = arith.constant 0 : index
    %c0_6 = arith.constant 0 : index
    %c0_7 = arith.constant 0 : index
    %c1 = arith.constant 1 : index
    %3 = vector.load %arg2[%c0_5, %c0_6, %c0_7, %c1] : memref<1x1x40x512xbf16, #tpu.memory_space<vmem>>, vector<1x1x40x511xbf16>
    %4 = vector.shape_cast %3 : vector<1x1x40x511xbf16> to vector<40x511xbf16>
    %c40 = arith.constant 40 : index
    %c0_8 = arith.constant 0 : index
    %5 = vector.load %arg7[%c40, %c0_8] : memref<120x512xbf16, #tpu.memory_space<vmem>>, vector<40x511xbf16>
    tpu.vector_store %arg7[%c40, %c0_8], %4 {strides = array<i32>} : memref<120x512xbf16, #tpu.memory_space<vmem>>, vector<40x511xbf16>,
    %c0_9 = arith.constant 0 : index
    %c0_10 = arith.constant 0 : index
    %c0_11 = arith.constant 0 : index
    %c0_12 = arith.constant 0 : index
    %c0_13 = arith.constant 0 : index
    %6 = vector.load %arg3[%c0_9, %c0_10, %c0_11, %c0_12, %c0_13] : memref<1x1x1x40x2xbf16, #tpu.memory_space<vmem>>, vector<1x1x1x40x1xbf16>
    %7 = vector.shape_cast %6 : vector<1x1x1x40x1xbf16> to vector<40x1xbf16>
    %c40_14 = arith.constant 40 : index
    %c511 = arith.constant 511 : index
    %8 = vector.load %arg7[%c40_14, %c511] : memref<120x512xbf16, #tpu.memory_space<vmem>>, vector<40x1xbf16>
    tpu.vector_store %arg7[%c40_14, %c511], %7 {strides = array<i32>} : memref<120x512xbf16, #tpu.memory_space<vmem>>, vector<40x1xbf16>,
    %c0_15 = arith.constant 0 : index
    %c0_16 = arith.constant 0 : index
    %c0_17 = arith.constant 0 : index
    %c2 = arith.constant 2 : index
    %9 = vector.load %arg2[%c0_15, %c0_16, %c0_17, %c2] : memref<1x1x40x512xbf16, #tpu.memory_space<vmem>>, vector<1x1x40x510xbf16>
    %10 = vector.shape_cast %9 : vector<1x1x40x510xbf16> to vector<40x510xbf16>
    %c80 = arith.constant 80 : index
    %c0_18 = arith.constant 0 : index
    %11 = vector.load %arg7[%c80, %c0_18] : memref<120x512xbf16, #tpu.memory_space<vmem>>, vector<40x510xbf16>
    tpu.vector_store %arg7[%c80, %c0_18], %10 {strides = array<i32>} : memref<120x512xbf16, #tpu.memory_space<vmem>>, vector<40x510xbf16>,
    %c0_19 = arith.constant 0 : index
    %c0_20 = arith.constant 0 : index
    %c0_21 = arith.constant 0 : index
    %c0_22 = arith.constant 0 : index
    %c0_23 = arith.constant 0 : index
    %12 = vector.load %arg3[%c0_19, %c0_20, %c0_21, %c0_22, %c0_23] : memref<1x1x1x40x2xbf16, #tpu.memory_space<vmem>>, vector<1x1x1x40x2xbf16>
    %13 = vector.shape_cast %12 : vector<1x1x1x40x2xbf16> to vector<40x2xbf16>
    %c80_24 = arith.constant 80 : index
    %c510 = arith.constant 510 : index
    %14 = vector.load %arg7[%c80_24, %c510] : memref<120x512xbf16, #tpu.memory_space<vmem>>, vector<40x2xbf16>
    tpu.vector_store %arg7[%c80_24, %c510], %13 {strides = array<i32>} : memref<120x512xbf16, #tpu.memory_space<vmem>>, vector<40x2xbf16>,
    %c0_25 = arith.constant 0 : index
    %c0_26 = arith.constant 0 : index
    %15 = vector.load %arg4[%c0_25, %c0_26] : memref<32x120xbf16, #tpu.memory_space<vmem>>, vector<32x120xbf16>
    %c0_27 = arith.constant 0 : index
    %c0_28 = arith.constant 0 : index
    %16 = vector.load %arg7[%c0_27, %c0_28] : memref<120x512xbf16, #tpu.memory_space<vmem>>, vector<120x512xbf16>
    %cst = arith.constant dense<0.000000e+00> : vector<32x512xf32>
    %17 = tpu.matmul %15, %16, %cst {dimension_numbers = #tpu.dot_dimension_numbers<[1], [0], [0], [1], [0, 0, 1, 1], [], []>} : vector<32x120xbf16>, vector<120x512xbf16>, vector<32x512xf32> -> vector<32x512xf32>
    %18 = tpu.iota {dimensions = array<i32: 1>} : vector<1x512xi32>
    %c512_i32 = arith.constant 512 : i32
    %19 = arith.muli %arg1, %c512_i32 : i32
    %20 = vector.broadcast %19 : i32 to vector<1x512xi32>
    %21 = arith.addi %18, %20 : vector<1x512xi32>
    %c5_i32 = arith.constant 5 : i32
    %22 = vector.broadcast %c5_i32 : i32 to vector<1x512xi32>
    %23 = arith.cmpi slt, %21, %22 : vector<1x512xi32>
    %24 = arith.extui %23 : vector<1x512xi1> to vector<1x512xi32>
    %25 = arith.sitofp %24 : vector<1x512xi32> to vector<1x512xf32>
    %26 = vector.broadcast %25 : vector<1x512xf32> to vector<32x512xf32>
    %27 = arith.mulf %17, %26 : vector<32x512xf32>
    %c0_i32 = arith.constant 0 : i32
    %28 = arith.cmpi eq, %arg1, %c0_i32 : i32
    %29 = arith.extui %28 : i1 to i32
    %c0_i32_29 = arith.constant 0 : i32
    %30 = arith.cmpi ne, %29, %c0_i32_29 : i32
    scf.if %30 {
      %cst_42 = arith.constant 0.000000e+00 : f32
      %44 = vector.broadcast %cst_42 : f32 to vector<1x32x512xf32>
      %c0_43 = arith.constant 0 : index
      %c0_44 = arith.constant 0 : index
      %c0_45 = arith.constant 0 : index
      %45 = vector.load %arg5[%c0_43, %c0_44, %c0_45] : memref<1x32x512xf32, #tpu.memory_space<vmem>>, vector<1x32x512xf32>
      tpu.vector_store %arg5[%c0_43, %c0_44, %c0_45], %44 {strides = array<i32>} : memref<1x32x512xf32, #tpu.memory_space<vmem>>, vector<1x32x512xf32>,
      %cst_46 = arith.constant 0.000000e+00 : f32
      %46 = vector.broadcast %cst_46 : f32 to vector<1x32x512xf32>
      %c0_47 = arith.constant 0 : index
      %c0_48 = arith.constant 0 : index
      %c0_49 = arith.constant 0 : index
      %47 = vector.load %arg6[%c0_47, %c0_48, %c0_49] : memref<1x32x512xf32, #tpu.memory_space<vmem>>, vector<1x32x512xf32>
      tpu.vector_store %arg6[%c0_47, %c0_48, %c0_49], %46 {strides = array<i32>} : memref<1x32x512xf32, #tpu.memory_space<vmem>>, vector<1x32x512xf32>,
    } else {
    }
    %c0_30 = arith.constant 0 : index
    %c0_31 = arith.constant 0 : index
    %c0_32 = arith.constant 0 : index
    %31 = vector.load %arg5[%c0_30, %c0_31, %c0_32] : memref<1x32x512xf32, #tpu.memory_space<vmem>>, vector<1x32x512xf32>
    %32 = vector.shape_cast %31 : vector<1x32x512xf32> to vector<32x512xf32>
    %33 = arith.addf %32, %27 : vector<32x512xf32>
    %c0_33 = arith.constant 0 : index
    %c0_34 = arith.constant 0 : index
    %c0_35 = arith.constant 0 : index
    %34 = vector.load %arg5[%c0_33, %c0_34, %c0_35] : memref<1x32x512xf32, #tpu.memory_space<vmem>>, vector<1x32x512xf32>
    %35 = vector.shape_cast %34 : vector<1x32x512xf32> to vector<32x512xf32>
    %36 = vector.shape_cast %33 : vector<32x512xf32> to vector<1x32x512xf32>
    tpu.vector_store %arg5[%c0_33, %c0_34, %c0_35], %36 {strides = array<i32>} : memref<1x32x512xf32, #tpu.memory_space<vmem>>, vector<1x32x512xf32>,
    %c0_36 = arith.constant 0 : index
    %c0_37 = arith.constant 0 : index
    %c0_38 = arith.constant 0 : index
    %37 = vector.load %arg6[%c0_36, %c0_37, %c0_38] : memref<1x32x512xf32, #tpu.memory_space<vmem>>, vector<1x32x512xf32>
    %38 = vector.shape_cast %37 : vector<1x32x512xf32> to vector<32x512xf32>
    %39 = arith.mulf %27, %27 : vector<32x512xf32>
    %40 = arith.addf %38, %39 : vector<32x512xf32>
    %c0_39 = arith.constant 0 : index
    %c0_40 = arith.constant 0 : index
    %c0_41 = arith.constant 0 : index
    %41 = vector.load %arg6[%c0_39, %c0_40, %c0_41] : memref<1x32x512xf32, #tpu.memory_space<vmem>>, vector<1x32x512xf32>
    %42 = vector.shape_cast %41 : vector<1x32x512xf32> to vector<32x512xf32>
    %43 = vector.shape_cast %40 : vector<32x512xf32> to vector<1x32x512xf32>
    tpu.vector_store %arg6[%c0_39, %c0_40, %c0_41], %43 {strides = array<i32>} : memref<1x32x512xf32, #tpu.memory_space<vmem>>, vector<1x32x512xf32>,
    return
  }
  func.func @transform_0(%arg0: i32, %arg1: i32) -> (i32, i32, i32, i32) {
    %c0_i32 = arith.constant 0 : i32
    %c0_i32_0 = arith.constant 0 : i32
    %c0_i32_1 = arith.constant 0 : i32
    return %arg0, %c0_i32, %c0_i32_0, %arg1 : i32, i32, i32, i32
  }
  func.func @transform_1(%arg0: i32, %arg1: i32) -> (i32, i32, i32, i32, i32) {
    %c0_i32 = arith.constant 0 : i32
    %c0_i32_0 = arith.constant 0 : i32
    %c0_i32_1 = arith.constant 0 : i32
    %c0_i32_2 = arith.constant 0 : i32
    return %arg0, %arg1, %c0_i32, %c0_i32_0, %c0_i32_1 : i32, i32, i32, i32, i32
  }
  func.func @transform_2(%arg0: i32, %arg1: i32) -> (i32, i32) {
    %c0_i32 = arith.constant 0 : i32
    %c0_i32_0 = arith.constant 0 : i32
    %c0_i32_1 = arith.constant 0 : i32
    return %c0_i32, %c0_i32_0 : i32, i32
  }
  func.func @transform_3(%arg0: i32, %arg1: i32) -> (i32, i32, i32) {
    %c0_i32 = arith.constant 0 : i32
    %c0_i32_0 = arith.constant 0 : i32
    %c0_i32_1 = arith.constant 0 : i32
    return %arg0, %c0_i32, %c0_i32_0 : i32, i32, i32
  }
  func.func @transform_4(%arg0: i32, %arg1: i32) -> (i32, i32, i32) {
    %c0_i32 = arith.constant 0 : i32
    %c0_i32_0 = arith.constant 0 : i32
    %c0_i32_1 = arith.constant 0 : i32
    return %arg0, %c0_i32, %c0_i32_0 : i32, i32, i32
  }
}

module attributes {stable_mosaic.version = 11 : i64} {
  func.func @bn_relu_kernel(%arg0: i32, %arg1: i32, %arg2: memref<1x1x40x512xbf16, #tpu.memory_space<vmem>>, %arg3: memref<1x1x1x40x2xbf16, #tpu.memory_space<vmem>>, %arg4: memref<32x120xbf16, #tpu.memory_space<vmem>>, %arg5: memref<32x1xf32, #tpu.memory_space<vmem>>, %arg6: memref<32x1xf32, #tpu.memory_space<vmem>>, %arg7: memref<1x32x512xbf16, #tpu.memory_space<vmem>>, %arg8: memref<120x512xbf16, #tpu.memory_space<vmem>>) attributes {dimension_semantics = [#tpu.dimension_semantics<parallel>, #tpu.dimension_semantics<parallel>], iteration_bounds = array<i64: 2, 1>, scalar_prefetch = 0 : i64, scratch_operands = 1 : i64, tpu.core_type = #tpu.core_type<tc>, window_params = [{transform_indices = @transform_0, window_bounds = array<i64: 1, 1, 40, 512>}, {transform_indices = @transform_1, window_bounds = array<i64: 1, 1, 1, 40, 2>}, {pipeline_mode = #tpu.pipeline_mode<synchronous>, transform_indices = @transform_2, window_bounds = array<i64: 32, 120>}, {pipeline_mode = #tpu.pipeline_mode<synchronous>, transform_indices = @transform_3, window_bounds = array<i64: 32, 1>}, {pipeline_mode = #tpu.pipeline_mode<synchronous>, transform_indices = @transform_4, window_bounds = array<i64: 32, 1>}, {transform_indices = @transform_5, window_bounds = array<i64: 1, 32, 512>}]} {
    %c0 = arith.constant 0 : index
    %c0_0 = arith.constant 0 : index
    %c0_1 = arith.constant 0 : index
    %c0_2 = arith.constant 0 : index
    %0 = vector.load %arg2[%c0, %c0_0, %c0_1, %c0_2] : memref<1x1x40x512xbf16, #tpu.memory_space<vmem>>, vector<1x1x40x512xbf16>
    %1 = vector.shape_cast %0 : vector<1x1x40x512xbf16> to vector<40x512xbf16>
    %c0_3 = arith.constant 0 : index
    %c0_4 = arith.constant 0 : index
    %2 = vector.load %arg8[%c0_3, %c0_4] : memref<120x512xbf16, #tpu.memory_space<vmem>>, vector<40x512xbf16>
    tpu.vector_store %arg8[%c0_3, %c0_4], %1 {strides = array<i32>} : memref<120x512xbf16, #tpu.memory_space<vmem>>, vector<40x512xbf16>,
    %c0_5 = arith.constant 0 : index
    %c0_6 = arith.constant 0 : index
    %c0_7 = arith.constant 0 : index
    %c1 = arith.constant 1 : index
    %3 = vector.load %arg2[%c0_5, %c0_6, %c0_7, %c1] : memref<1x1x40x512xbf16, #tpu.memory_space<vmem>>, vector<1x1x40x511xbf16>
    %4 = vector.shape_cast %3 : vector<1x1x40x511xbf16> to vector<40x511xbf16>
    %c40 = arith.constant 40 : index
    %c0_8 = arith.constant 0 : index
    %5 = vector.load %arg8[%c40, %c0_8] : memref<120x512xbf16, #tpu.memory_space<vmem>>, vector<40x511xbf16>
    tpu.vector_store %arg8[%c40, %c0_8], %4 {strides = array<i32>} : memref<120x512xbf16, #tpu.memory_space<vmem>>, vector<40x511xbf16>,
    %c0_9 = arith.constant 0 : index
    %c0_10 = arith.constant 0 : index
    %c0_11 = arith.constant 0 : index
    %c0_12 = arith.constant 0 : index
    %c0_13 = arith.constant 0 : index
    %6 = vector.load %arg3[%c0_9, %c0_10, %c0_11, %c0_12, %c0_13] : memref<1x1x1x40x2xbf16, #tpu.memory_space<vmem>>, vector<1x1x1x40x1xbf16>
    %7 = vector.shape_cast %6 : vector<1x1x1x40x1xbf16> to vector<40x1xbf16>
    %c40_14 = arith.constant 40 : index
    %c511 = arith.constant 511 : index
    %8 = vector.load %arg8[%c40_14, %c511] : memref<120x512xbf16, #tpu.memory_space<vmem>>, vector<40x1xbf16>
    tpu.vector_store %arg8[%c40_14, %c511], %7 {strides = array<i32>} : memref<120x512xbf16, #tpu.memory_space<vmem>>, vector<40x1xbf16>,
    %c0_15 = arith.constant 0 : index
    %c0_16 = arith.constant 0 : index
    %c0_17 = arith.constant 0 : index
    %c2 = arith.constant 2 : index
    %9 = vector.load %arg2[%c0_15, %c0_16, %c0_17, %c2] : memref<1x1x40x512xbf16, #tpu.memory_space<vmem>>, vector<1x1x40x510xbf16>
    %10 = vector.shape_cast %9 : vector<1x1x40x510xbf16> to vector<40x510xbf16>
    %c80 = arith.constant 80 : index
    %c0_18 = arith.constant 0 : index
    %11 = vector.load %arg8[%c80, %c0_18] : memref<120x512xbf16, #tpu.memory_space<vmem>>, vector<40x510xbf16>
    tpu.vector_store %arg8[%c80, %c0_18], %10 {strides = array<i32>} : memref<120x512xbf16, #tpu.memory_space<vmem>>, vector<40x510xbf16>,
    %c0_19 = arith.constant 0 : index
    %c0_20 = arith.constant 0 : index
    %c0_21 = arith.constant 0 : index
    %c0_22 = arith.constant 0 : index
    %c0_23 = arith.constant 0 : index
    %12 = vector.load %arg3[%c0_19, %c0_20, %c0_21, %c0_22, %c0_23] : memref<1x1x1x40x2xbf16, #tpu.memory_space<vmem>>, vector<1x1x1x40x2xbf16>
    %13 = vector.shape_cast %12 : vector<1x1x1x40x2xbf16> to vector<40x2xbf16>
    %c80_24 = arith.constant 80 : index
    %c510 = arith.constant 510 : index
    %14 = vector.load %arg8[%c80_24, %c510] : memref<120x512xbf16, #tpu.memory_space<vmem>>, vector<40x2xbf16>
    tpu.vector_store %arg8[%c80_24, %c510], %13 {strides = array<i32>} : memref<120x512xbf16, #tpu.memory_space<vmem>>, vector<40x2xbf16>,
    %c0_25 = arith.constant 0 : index
    %c0_26 = arith.constant 0 : index
    %15 = vector.load %arg4[%c0_25, %c0_26] : memref<32x120xbf16, #tpu.memory_space<vmem>>, vector<32x120xbf16>
    %c0_27 = arith.constant 0 : index
    %c0_28 = arith.constant 0 : index
    %16 = vector.load %arg8[%c0_27, %c0_28] : memref<120x512xbf16, #tpu.memory_space<vmem>>, vector<120x512xbf16>
    %cst = arith.constant dense<0.000000e+00> : vector<32x512xf32>
    %17 = tpu.matmul %15, %16, %cst {dimension_numbers = #tpu.dot_dimension_numbers<[1], [0], [0], [1], [0, 0, 1, 1], [], []>} : vector<32x120xbf16>, vector<120x512xbf16>, vector<32x512xf32> -> vector<32x512xf32>
    %c0_29 = arith.constant 0 : index
    %c0_30 = arith.constant 0 : index
    %18 = vector.load %arg5[%c0_29, %c0_30] : memref<32x1xf32, #tpu.memory_space<vmem>>, vector<32x1xf32>
    %19 = vector.broadcast %18 : vector<32x1xf32> to vector<32x512xf32>
    %20 = arith.mulf %17, %19 : vector<32x512xf32>
    %c0_31 = arith.constant 0 : index
    %c0_32 = arith.constant 0 : index
    %21 = vector.load %arg6[%c0_31, %c0_32] : memref<32x1xf32, #tpu.memory_space<vmem>>, vector<32x1xf32>
    %22 = vector.broadcast %21 : vector<32x1xf32> to vector<32x512xf32>
    %23 = arith.addf %20, %22 : vector<32x512xf32>
    %cst_33 = arith.constant 0.000000e+00 : f32
    %24 = vector.broadcast %cst_33 : f32 to vector<32x512xf32>
    %25 = arith.maximumf %23, %24 : vector<32x512xf32>
    %26 = arith.truncf %25 : vector<32x512xf32> to vector<32x512xbf16>
    %c0_34 = arith.constant 0 : index
    %c0_35 = arith.constant 0 : index
    %c0_36 = arith.constant 0 : index
    %27 = vector.load %arg7[%c0_34, %c0_35, %c0_36] : memref<1x32x512xbf16, #tpu.memory_space<vmem>>, vector<1x32x512xbf16>
    %28 = vector.shape_cast %27 : vector<1x32x512xbf16> to vector<32x512xbf16>
    %29 = vector.shape_cast %26 : vector<32x512xbf16> to vector<1x32x512xbf16>
    tpu.vector_store %arg7[%c0_34, %c0_35, %c0_36], %29 {strides = array<i32>} : memref<1x32x512xbf16, #tpu.memory_space<vmem>>, vector<1x32x512xbf16>,
    return
  }
  func.func @transform_0(%arg0: i32, %arg1: i32) -> (i32, i32, i32, i32) {
    %c0_i32 = arith.constant 0 : i32
    %c0_i32_0 = arith.constant 0 : i32
    %c0_i32_1 = arith.constant 0 : i32
    return %arg0, %c0_i32, %c0_i32_0, %arg1 : i32, i32, i32, i32
  }
  func.func @transform_1(%arg0: i32, %arg1: i32) -> (i32, i32, i32, i32, i32) {
    %c0_i32 = arith.constant 0 : i32
    %c0_i32_0 = arith.constant 0 : i32
    %c0_i32_1 = arith.constant 0 : i32
    %c0_i32_2 = arith.constant 0 : i32
    return %arg0, %arg1, %c0_i32, %c0_i32_0, %c0_i32_1 : i32, i32, i32, i32, i32
  }
  func.func @transform_2(%arg0: i32, %arg1: i32) -> (i32, i32) {
    %c0_i32 = arith.constant 0 : i32
    %c0_i32_0 = arith.constant 0 : i32
    %c0_i32_1 = arith.constant 0 : i32
    return %c0_i32, %c0_i32_0 : i32, i32
  }
  func.func @transform_3(%arg0: i32, %arg1: i32) -> (i32, i32) {
    %c0_i32 = arith.constant 0 : i32
    %c0_i32_0 = arith.constant 0 : i32
    %c0_i32_1 = arith.constant 0 : i32
    return %c0_i32, %c0_i32_0 : i32, i32
  }
  func.func @transform_4(%arg0: i32, %arg1: i32) -> (i32, i32) {
    %c0_i32 = arith.constant 0 : i32
    %c0_i32_0 = arith.constant 0 : i32
    %c0_i32_1 = arith.constant 0 : i32
    return %c0_i32, %c0_i32_0 : i32, i32
  }
  func.func @transform_5(%arg0: i32, %arg1: i32) -> (i32, i32, i32) {
    %c0_i32 = arith.constant 0 : i32
    %c0_i32_0 = arith.constant 0 : i32
    return %arg0, %c0_i32, %arg1 : i32, i32, i32
  }
}

module attributes {stable_mosaic.version = 11 : i64} {
  func.func @stats_kernel(%arg0: i32, %arg1: i32, %arg2: memref<1x2x32x512xbf16, #tpu.memory_space<vmem>>, %arg3: memref<1x1x2x32x2xbf16, #tpu.memory_space<vmem>>, %arg4: memref<32x96xbf16, #tpu.memory_space<vmem>>, %arg5: memref<1x32x512xf32, #tpu.memory_space<vmem>>, %arg6: memref<1x32x512xf32, #tpu.memory_space<vmem>>, %arg7: memref<96x512xbf16, #tpu.memory_space<vmem>>) attributes {dimension_semantics = [#tpu.dimension_semantics<parallel>, #tpu.dimension_semantics<arbitrary>], iteration_bounds = array<i64: 2, 1>, scalar_prefetch = 0 : i64, scratch_operands = 1 : i64, tpu.core_type = #tpu.core_type<tc>, window_params = [{transform_indices = @transform_0, window_bounds = array<i64: 1, 2, 32, 512>}, {transform_indices = @transform_1, window_bounds = array<i64: 1, 1, 2, 32, 2>}, {pipeline_mode = #tpu.pipeline_mode<synchronous>, transform_indices = @transform_2, window_bounds = array<i64: 32, 96>}, {transform_indices = @transform_3, window_bounds = array<i64: 1, 32, 512>}, {transform_indices = @transform_4, window_bounds = array<i64: 1, 32, 512>}]} {
    %c0 = arith.constant 0 : index
    %c0_0 = arith.constant 0 : index
    %c0_1 = arith.constant 0 : index
    %c0_2 = arith.constant 0 : index
    %0 = vector.load %arg2[%c0, %c0_0, %c0_1, %c0_2] : memref<1x2x32x512xbf16, #tpu.memory_space<vmem>>, vector<1x1x32x512xbf16>
    %1 = vector.shape_cast %0 : vector<1x1x32x512xbf16> to vector<32x512xbf16>
    %c0_3 = arith.constant 0 : index
    %c0_4 = arith.constant 0 : index
    %2 = vector.load %arg7[%c0_3, %c0_4] : memref<96x512xbf16, #tpu.memory_space<vmem>>, vector<32x512xbf16>
    tpu.vector_store %arg7[%c0_3, %c0_4], %1 {strides = array<i32>} : memref<96x512xbf16, #tpu.memory_space<vmem>>, vector<32x512xbf16>,
    %c0_5 = arith.constant 0 : index
    %c0_6 = arith.constant 0 : index
    %c0_7 = arith.constant 0 : index
    %c1 = arith.constant 1 : index
    %3 = vector.load %arg2[%c0_5, %c0_6, %c0_7, %c1] : memref<1x2x32x512xbf16, #tpu.memory_space<vmem>>, vector<1x1x32x511xbf16>
    %4 = vector.shape_cast %3 : vector<1x1x32x511xbf16> to vector<32x511xbf16>
    %c32 = arith.constant 32 : index
    %c0_8 = arith.constant 0 : index
    %5 = vector.load %arg7[%c32, %c0_8] : memref<96x512xbf16, #tpu.memory_space<vmem>>, vector<32x511xbf16>
    tpu.vector_store %arg7[%c32, %c0_8], %4 {strides = array<i32>} : memref<96x512xbf16, #tpu.memory_space<vmem>>, vector<32x511xbf16>,
    %c0_9 = arith.constant 0 : index
    %c0_10 = arith.constant 0 : index
    %c0_11 = arith.constant 0 : index
    %c0_12 = arith.constant 0 : index
    %c0_13 = arith.constant 0 : index
    %6 = vector.load %arg3[%c0_9, %c0_10, %c0_11, %c0_12, %c0_13] : memref<1x1x2x32x2xbf16, #tpu.memory_space<vmem>>, vector<1x1x1x32x1xbf16>
    %7 = vector.shape_cast %6 : vector<1x1x1x32x1xbf16> to vector<32x1xbf16>
    %c32_14 = arith.constant 32 : index
    %c511 = arith.constant 511 : index
    %8 = vector.load %arg7[%c32_14, %c511] : memref<96x512xbf16, #tpu.memory_space<vmem>>, vector<32x1xbf16>
    tpu.vector_store %arg7[%c32_14, %c511], %7 {strides = array<i32>} : memref<96x512xbf16, #tpu.memory_space<vmem>>, vector<32x1xbf16>,
    %c0_15 = arith.constant 0 : index
    %c0_16 = arith.constant 0 : index
    %c0_17 = arith.constant 0 : index
    %c2 = arith.constant 2 : index
    %9 = vector.load %arg2[%c0_15, %c0_16, %c0_17, %c2] : memref<1x2x32x512xbf16, #tpu.memory_space<vmem>>, vector<1x1x32x510xbf16>
    %10 = vector.shape_cast %9 : vector<1x1x32x510xbf16> to vector<32x510xbf16>
    %c64 = arith.constant 64 : index
    %c0_18 = arith.constant 0 : index
    %11 = vector.load %arg7[%c64, %c0_18] : memref<96x512xbf16, #tpu.memory_space<vmem>>, vector<32x510xbf16>
    tpu.vector_store %arg7[%c64, %c0_18], %10 {strides = array<i32>} : memref<96x512xbf16, #tpu.memory_space<vmem>>, vector<32x510xbf16>,
    %c0_19 = arith.constant 0 : index
    %c0_20 = arith.constant 0 : index
    %c0_21 = arith.constant 0 : index
    %c0_22 = arith.constant 0 : index
    %c0_23 = arith.constant 0 : index
    %12 = vector.load %arg3[%c0_19, %c0_20, %c0_21, %c0_22, %c0_23] : memref<1x1x2x32x2xbf16, #tpu.memory_space<vmem>>, vector<1x1x1x32x2xbf16>
    %13 = vector.shape_cast %12 : vector<1x1x1x32x2xbf16> to vector<32x2xbf16>
    %c64_24 = arith.constant 64 : index
    %c510 = arith.constant 510 : index
    %14 = vector.load %arg7[%c64_24, %c510] : memref<96x512xbf16, #tpu.memory_space<vmem>>, vector<32x2xbf16>
    tpu.vector_store %arg7[%c64_24, %c510], %13 {strides = array<i32>} : memref<96x512xbf16, #tpu.memory_space<vmem>>, vector<32x2xbf16>,
    %c0_25 = arith.constant 0 : index
    %c0_26 = arith.constant 0 : index
    %15 = vector.load %arg4[%c0_25, %c0_26] : memref<32x96xbf16, #tpu.memory_space<vmem>>, vector<32x96xbf16>
    %c0_27 = arith.constant 0 : index
    %c0_28 = arith.constant 0 : index
    %16 = vector.load %arg7[%c0_27, %c0_28] : memref<96x512xbf16, #tpu.memory_space<vmem>>, vector<96x512xbf16>
    %cst = arith.constant dense<0.000000e+00> : vector<32x512xf32>
    %17 = tpu.matmul %15, %16, %cst {dimension_numbers = #tpu.dot_dimension_numbers<[1], [0], [0], [1], [0, 0, 1, 1], [], []>} : vector<32x96xbf16>, vector<96x512xbf16>, vector<32x512xf32> -> vector<32x512xf32>
    %18 = tpu.iota {dimensions = array<i32: 1>} : vector<1x512xi32>
    %c512_i32 = arith.constant 512 : i32
    %19 = arith.muli %arg1, %c512_i32 : i32
    %20 = vector.broadcast %19 : i32 to vector<1x512xi32>
    %21 = arith.addi %18, %20 : vector<1x512xi32>
    %c3_i32 = arith.constant 3 : i32
    %22 = vector.broadcast %c3_i32 : i32 to vector<1x512xi32>
    %23 = arith.cmpi slt, %21, %22 : vector<1x512xi32>
    %24 = arith.extui %23 : vector<1x512xi1> to vector<1x512xi32>
    %25 = arith.sitofp %24 : vector<1x512xi32> to vector<1x512xf32>
    %26 = vector.broadcast %25 : vector<1x512xf32> to vector<32x512xf32>
    %27 = arith.mulf %17, %26 : vector<32x512xf32>
    %c0_i32 = arith.constant 0 : i32
    %28 = arith.cmpi eq, %arg1, %c0_i32 : i32
    %29 = arith.extui %28 : i1 to i32
    %c0_i32_29 = arith.constant 0 : i32
    %30 = arith.cmpi ne, %29, %c0_i32_29 : i32
    scf.if %30 {
      %cst_42 = arith.constant 0.000000e+00 : f32
      %44 = vector.broadcast %cst_42 : f32 to vector<1x32x512xf32>
      %c0_43 = arith.constant 0 : index
      %c0_44 = arith.constant 0 : index
      %c0_45 = arith.constant 0 : index
      %45 = vector.load %arg5[%c0_43, %c0_44, %c0_45] : memref<1x32x512xf32, #tpu.memory_space<vmem>>, vector<1x32x512xf32>
      tpu.vector_store %arg5[%c0_43, %c0_44, %c0_45], %44 {strides = array<i32>} : memref<1x32x512xf32, #tpu.memory_space<vmem>>, vector<1x32x512xf32>,
      %cst_46 = arith.constant 0.000000e+00 : f32
      %46 = vector.broadcast %cst_46 : f32 to vector<1x32x512xf32>
      %c0_47 = arith.constant 0 : index
      %c0_48 = arith.constant 0 : index
      %c0_49 = arith.constant 0 : index
      %47 = vector.load %arg6[%c0_47, %c0_48, %c0_49] : memref<1x32x512xf32, #tpu.memory_space<vmem>>, vector<1x32x512xf32>
      tpu.vector_store %arg6[%c0_47, %c0_48, %c0_49], %46 {strides = array<i32>} : memref<1x32x512xf32, #tpu.memory_space<vmem>>, vector<1x32x512xf32>,
    } else {
    }
    %c0_30 = arith.constant 0 : index
    %c0_31 = arith.constant 0 : index
    %c0_32 = arith.constant 0 : index
    %31 = vector.load %arg5[%c0_30, %c0_31, %c0_32] : memref<1x32x512xf32, #tpu.memory_space<vmem>>, vector<1x32x512xf32>
    %32 = vector.shape_cast %31 : vector<1x32x512xf32> to vector<32x512xf32>
    %33 = arith.addf %32, %27 : vector<32x512xf32>
    %c0_33 = arith.constant 0 : index
    %c0_34 = arith.constant 0 : index
    %c0_35 = arith.constant 0 : index
    %34 = vector.load %arg5[%c0_33, %c0_34, %c0_35] : memref<1x32x512xf32, #tpu.memory_space<vmem>>, vector<1x32x512xf32>
    %35 = vector.shape_cast %34 : vector<1x32x512xf32> to vector<32x512xf32>
    %36 = vector.shape_cast %33 : vector<32x512xf32> to vector<1x32x512xf32>
    tpu.vector_store %arg5[%c0_33, %c0_34, %c0_35], %36 {strides = array<i32>} : memref<1x32x512xf32, #tpu.memory_space<vmem>>, vector<1x32x512xf32>,
    %c0_36 = arith.constant 0 : index
    %c0_37 = arith.constant 0 : index
    %c0_38 = arith.constant 0 : index
    %37 = vector.load %arg6[%c0_36, %c0_37, %c0_38] : memref<1x32x512xf32, #tpu.memory_space<vmem>>, vector<1x32x512xf32>
    %38 = vector.shape_cast %37 : vector<1x32x512xf32> to vector<32x512xf32>
    %39 = arith.mulf %27, %27 : vector<32x512xf32>
    %40 = arith.addf %38, %39 : vector<32x512xf32>
    %c0_39 = arith.constant 0 : index
    %c0_40 = arith.constant 0 : index
    %c0_41 = arith.constant 0 : index
    %41 = vector.load %arg6[%c0_39, %c0_40, %c0_41] : memref<1x32x512xf32, #tpu.memory_space<vmem>>, vector<1x32x512xf32>
    %42 = vector.shape_cast %41 : vector<1x32x512xf32> to vector<32x512xf32>
    %43 = vector.shape_cast %40 : vector<32x512xf32> to vector<1x32x512xf32>
    tpu.vector_store %arg6[%c0_39, %c0_40, %c0_41], %43 {strides = array<i32>} : memref<1x32x512xf32, #tpu.memory_space<vmem>>, vector<1x32x512xf32>,
    return
  }
  func.func @transform_0(%arg0: i32, %arg1: i32) -> (i32, i32, i32, i32) {
    %c0_i32 = arith.constant 0 : i32
    %c0_i32_0 = arith.constant 0 : i32
    %c0_i32_1 = arith.constant 0 : i32
    return %arg0, %c0_i32, %c0_i32_0, %arg1 : i32, i32, i32, i32
  }
  func.func @transform_1(%arg0: i32, %arg1: i32) -> (i32, i32, i32, i32, i32) {
    %c0_i32 = arith.constant 0 : i32
    %c0_i32_0 = arith.constant 0 : i32
    %c0_i32_1 = arith.constant 0 : i32
    %c0_i32_2 = arith.constant 0 : i32
    return %arg0, %arg1, %c0_i32, %c0_i32_0, %c0_i32_1 : i32, i32, i32, i32, i32
  }
  func.func @transform_2(%arg0: i32, %arg1: i32) -> (i32, i32) {
    %c0_i32 = arith.constant 0 : i32
    %c0_i32_0 = arith.constant 0 : i32
    %c0_i32_1 = arith.constant 0 : i32
    return %c0_i32, %c0_i32_0 : i32, i32
  }
  func.func @transform_3(%arg0: i32, %arg1: i32) -> (i32, i32, i32) {
    %c0_i32 = arith.constant 0 : i32
    %c0_i32_0 = arith.constant 0 : i32
    %c0_i32_1 = arith.constant 0 : i32
    return %arg0, %c0_i32, %c0_i32_0 : i32, i32, i32
  }
  func.func @transform_4(%arg0: i32, %arg1: i32) -> (i32, i32, i32) {
    %c0_i32 = arith.constant 0 : i32
    %c0_i32_0 = arith.constant 0 : i32
    %c0_i32_1 = arith.constant 0 : i32
    return %arg0, %c0_i32, %c0_i32_0 : i32, i32, i32
  }
}

module attributes {stable_mosaic.version = 11 : i64} {
  func.func @bn_relu_kernel(%arg0: i32, %arg1: i32, %arg2: memref<1x2x32x512xbf16, #tpu.memory_space<vmem>>, %arg3: memref<1x1x2x32x2xbf16, #tpu.memory_space<vmem>>, %arg4: memref<32x96xbf16, #tpu.memory_space<vmem>>, %arg5: memref<32x1xf32, #tpu.memory_space<vmem>>, %arg6: memref<32x1xf32, #tpu.memory_space<vmem>>, %arg7: memref<1x32x512xbf16, #tpu.memory_space<vmem>>, %arg8: memref<96x512xbf16, #tpu.memory_space<vmem>>) attributes {dimension_semantics = [#tpu.dimension_semantics<parallel>, #tpu.dimension_semantics<parallel>], iteration_bounds = array<i64: 2, 1>, scalar_prefetch = 0 : i64, scratch_operands = 1 : i64, tpu.core_type = #tpu.core_type<tc>, window_params = [{transform_indices = @transform_0, window_bounds = array<i64: 1, 2, 32, 512>}, {transform_indices = @transform_1, window_bounds = array<i64: 1, 1, 2, 32, 2>}, {pipeline_mode = #tpu.pipeline_mode<synchronous>, transform_indices = @transform_2, window_bounds = array<i64: 32, 96>}, {pipeline_mode = #tpu.pipeline_mode<synchronous>, transform_indices = @transform_3, window_bounds = array<i64: 32, 1>}, {pipeline_mode = #tpu.pipeline_mode<synchronous>, transform_indices = @transform_4, window_bounds = array<i64: 32, 1>}, {transform_indices = @transform_5, window_bounds = array<i64: 1, 32, 512>}]} {
    %c0 = arith.constant 0 : index
    %c0_0 = arith.constant 0 : index
    %c0_1 = arith.constant 0 : index
    %c0_2 = arith.constant 0 : index
    %0 = vector.load %arg2[%c0, %c0_0, %c0_1, %c0_2] : memref<1x2x32x512xbf16, #tpu.memory_space<vmem>>, vector<1x1x32x512xbf16>
    %1 = vector.shape_cast %0 : vector<1x1x32x512xbf16> to vector<32x512xbf16>
    %c0_3 = arith.constant 0 : index
    %c0_4 = arith.constant 0 : index
    %2 = vector.load %arg8[%c0_3, %c0_4] : memref<96x512xbf16, #tpu.memory_space<vmem>>, vector<32x512xbf16>
    tpu.vector_store %arg8[%c0_3, %c0_4], %1 {strides = array<i32>} : memref<96x512xbf16, #tpu.memory_space<vmem>>, vector<32x512xbf16>,
    %c0_5 = arith.constant 0 : index
    %c0_6 = arith.constant 0 : index
    %c0_7 = arith.constant 0 : index
    %c1 = arith.constant 1 : index
    %3 = vector.load %arg2[%c0_5, %c0_6, %c0_7, %c1] : memref<1x2x32x512xbf16, #tpu.memory_space<vmem>>, vector<1x1x32x511xbf16>
    %4 = vector.shape_cast %3 : vector<1x1x32x511xbf16> to vector<32x511xbf16>
    %c32 = arith.constant 32 : index
    %c0_8 = arith.constant 0 : index
    %5 = vector.load %arg8[%c32, %c0_8] : memref<96x512xbf16, #tpu.memory_space<vmem>>, vector<32x511xbf16>
    tpu.vector_store %arg8[%c32, %c0_8], %4 {strides = array<i32>} : memref<96x512xbf16, #tpu.memory_space<vmem>>, vector<32x511xbf16>,
    %c0_9 = arith.constant 0 : index
    %c0_10 = arith.constant 0 : index
    %c0_11 = arith.constant 0 : index
    %c0_12 = arith.constant 0 : index
    %c0_13 = arith.constant 0 : index
    %6 = vector.load %arg3[%c0_9, %c0_10, %c0_11, %c0_12, %c0_13] : memref<1x1x2x32x2xbf16, #tpu.memory_space<vmem>>, vector<1x1x1x32x1xbf16>
    %7 = vector.shape_cast %6 : vector<1x1x1x32x1xbf16> to vector<32x1xbf16>
    %c32_14 = arith.constant 32 : index
    %c511 = arith.constant 511 : index
    %8 = vector.load %arg8[%c32_14, %c511] : memref<96x512xbf16, #tpu.memory_space<vmem>>, vector<32x1xbf16>
    tpu.vector_store %arg8[%c32_14, %c511], %7 {strides = array<i32>} : memref<96x512xbf16, #tpu.memory_space<vmem>>, vector<32x1xbf16>,
    %c0_15 = arith.constant 0 : index
    %c0_16 = arith.constant 0 : index
    %c0_17 = arith.constant 0 : index
    %c2 = arith.constant 2 : index
    %9 = vector.load %arg2[%c0_15, %c0_16, %c0_17, %c2] : memref<1x2x32x512xbf16, #tpu.memory_space<vmem>>, vector<1x1x32x510xbf16>
    %10 = vector.shape_cast %9 : vector<1x1x32x510xbf16> to vector<32x510xbf16>
    %c64 = arith.constant 64 : index
    %c0_18 = arith.constant 0 : index
    %11 = vector.load %arg8[%c64, %c0_18] : memref<96x512xbf16, #tpu.memory_space<vmem>>, vector<32x510xbf16>
    tpu.vector_store %arg8[%c64, %c0_18], %10 {strides = array<i32>} : memref<96x512xbf16, #tpu.memory_space<vmem>>, vector<32x510xbf16>,
    %c0_19 = arith.constant 0 : index
    %c0_20 = arith.constant 0 : index
    %c0_21 = arith.constant 0 : index
    %c0_22 = arith.constant 0 : index
    %c0_23 = arith.constant 0 : index
    %12 = vector.load %arg3[%c0_19, %c0_20, %c0_21, %c0_22, %c0_23] : memref<1x1x2x32x2xbf16, #tpu.memory_space<vmem>>, vector<1x1x1x32x2xbf16>
    %13 = vector.shape_cast %12 : vector<1x1x1x32x2xbf16> to vector<32x2xbf16>
    %c64_24 = arith.constant 64 : index
    %c510 = arith.constant 510 : index
    %14 = vector.load %arg8[%c64_24, %c510] : memref<96x512xbf16, #tpu.memory_space<vmem>>, vector<32x2xbf16>
    tpu.vector_store %arg8[%c64_24, %c510], %13 {strides = array<i32>} : memref<96x512xbf16, #tpu.memory_space<vmem>>, vector<32x2xbf16>,
    %c0_25 = arith.constant 0 : index
    %c0_26 = arith.constant 0 : index
    %15 = vector.load %arg4[%c0_25, %c0_26] : memref<32x96xbf16, #tpu.memory_space<vmem>>, vector<32x96xbf16>
    %c0_27 = arith.constant 0 : index
    %c0_28 = arith.constant 0 : index
    %16 = vector.load %arg8[%c0_27, %c0_28] : memref<96x512xbf16, #tpu.memory_space<vmem>>, vector<96x512xbf16>
    %cst = arith.constant dense<0.000000e+00> : vector<32x512xf32>
    %17 = tpu.matmul %15, %16, %cst {dimension_numbers = #tpu.dot_dimension_numbers<[1], [0], [0], [1], [0, 0, 1, 1], [], []>} : vector<32x96xbf16>, vector<96x512xbf16>, vector<32x512xf32> -> vector<32x512xf32>
    %c0_29 = arith.constant 0 : index
    %c0_30 = arith.constant 0 : index
    %18 = vector.load %arg5[%c0_29, %c0_30] : memref<32x1xf32, #tpu.memory_space<vmem>>, vector<32x1xf32>
    %19 = vector.broadcast %18 : vector<32x1xf32> to vector<32x512xf32>
    %20 = arith.mulf %17, %19 : vector<32x512xf32>
    %c0_31 = arith.constant 0 : index
    %c0_32 = arith.constant 0 : index
    %21 = vector.load %arg6[%c0_31, %c0_32] : memref<32x1xf32, #tpu.memory_space<vmem>>, vector<32x1xf32>
    %22 = vector.broadcast %21 : vector<32x1xf32> to vector<32x512xf32>
    %23 = arith.addf %20, %22 : vector<32x512xf32>
    %cst_33 = arith.constant 0.000000e+00 : f32
    %24 = vector.broadcast %cst_33 : f32 to vector<32x512xf32>
    %25 = arith.maximumf %23, %24 : vector<32x512xf32>
    %26 = arith.truncf %25 : vector<32x512xf32> to vector<32x512xbf16>
    %c0_34 = arith.constant 0 : index
    %c0_35 = arith.constant 0 : index
    %c0_36 = arith.constant 0 : index
    %27 = vector.load %arg7[%c0_34, %c0_35, %c0_36] : memref<1x32x512xbf16, #tpu.memory_space<vmem>>, vector<1x32x512xbf16>
    %28 = vector.shape_cast %27 : vector<1x32x512xbf16> to vector<32x512xbf16>
    %29 = vector.shape_cast %26 : vector<32x512xbf16> to vector<1x32x512xbf16>
    tpu.vector_store %arg7[%c0_34, %c0_35, %c0_36], %29 {strides = array<i32>} : memref<1x32x512xbf16, #tpu.memory_space<vmem>>, vector<1x32x512xbf16>,
    return
  }
  func.func @transform_0(%arg0: i32, %arg1: i32) -> (i32, i32, i32, i32) {
    %c0_i32 = arith.constant 0 : i32
    %c0_i32_0 = arith.constant 0 : i32
    %c0_i32_1 = arith.constant 0 : i32
    return %arg0, %c0_i32, %c0_i32_0, %arg1 : i32, i32, i32, i32
  }
  func.func @transform_1(%arg0: i32, %arg1: i32) -> (i32, i32, i32, i32, i32) {
    %c0_i32 = arith.constant 0 : i32
    %c0_i32_0 = arith.constant 0 : i32
    %c0_i32_1 = arith.constant 0 : i32
    %c0_i32_2 = arith.constant 0 : i32
    return %arg0, %arg1, %c0_i32, %c0_i32_0, %c0_i32_1 : i32, i32, i32, i32, i32
  }
  func.func @transform_2(%arg0: i32, %arg1: i32) -> (i32, i32) {
    %c0_i32 = arith.constant 0 : i32
    %c0_i32_0 = arith.constant 0 : i32
    %c0_i32_1 = arith.constant 0 : i32
    return %c0_i32, %c0_i32_0 : i32, i32
  }
  func.func @transform_3(%arg0: i32, %arg1: i32) -> (i32, i32) {
    %c0_i32 = arith.constant 0 : i32
    %c0_i32_0 = arith.constant 0 : i32
    %c0_i32_1 = arith.constant 0 : i32
    return %c0_i32, %c0_i32_0 : i32, i32
  }
  func.func @transform_4(%arg0: i32, %arg1: i32) -> (i32, i32) {
    %c0_i32 = arith.constant 0 : i32
    %c0_i32_0 = arith.constant 0 : i32
    %c0_i32_1 = arith.constant 0 : i32
    return %c0_i32, %c0_i32_0 : i32, i32
  }
  func.func @transform_5(%arg0: i32, %arg1: i32) -> (i32, i32, i32) {
    %c0_i32 = arith.constant 0 : i32
    %c0_i32_0 = arith.constant 0 : i32
    return %arg0, %c0_i32, %arg1 : i32, i32, i32
  }
}

module attributes {stable_mosaic.version = 11 : i64} {
  func.func @linear_kernel(%arg0: i32, %arg1: i32, %arg2: memref<1x32x512xbf16, #tpu.memory_space<vmem>>, %arg3: memref<10x32xbf16, #tpu.memory_space<vmem>>, %arg4: memref<10x1xf32, #tpu.memory_space<vmem>>, %arg5: memref<1x10x512xf32, #tpu.memory_space<vmem>>) attributes {dimension_semantics = [#tpu.dimension_semantics<parallel>, #tpu.dimension_semantics<parallel>], iteration_bounds = array<i64: 2, 1>, scalar_prefetch = 0 : i64, scratch_operands = 0 : i64, tpu.core_type = #tpu.core_type<tc>, window_params = [{transform_indices = @transform_0, window_bounds = array<i64: 1, 32, 512>}, {pipeline_mode = #tpu.pipeline_mode<synchronous>, transform_indices = @transform_1, window_bounds = array<i64: 10, 32>}, {pipeline_mode = #tpu.pipeline_mode<synchronous>, transform_indices = @transform_2, window_bounds = array<i64: 10, 1>}, {transform_indices = @transform_3, window_bounds = array<i64: 1, 10, 512>}]} {
    %c0 = arith.constant 0 : index
    %c0_0 = arith.constant 0 : index
    %0 = vector.load %arg3[%c0, %c0_0] : memref<10x32xbf16, #tpu.memory_space<vmem>>, vector<10x32xbf16>
    %c0_1 = arith.constant 0 : index
    %c0_2 = arith.constant 0 : index
    %c0_3 = arith.constant 0 : index
    %1 = vector.load %arg2[%c0_1, %c0_2, %c0_3] : memref<1x32x512xbf16, #tpu.memory_space<vmem>>, vector<1x32x512xbf16>
    %2 = vector.shape_cast %1 : vector<1x32x512xbf16> to vector<32x512xbf16>
    %cst = arith.constant dense<0.000000e+00> : vector<10x512xf32>
    %3 = tpu.matmul %0, %2, %cst {dimension_numbers = #tpu.dot_dimension_numbers<[1], [0], [0], [1], [0, 0, 1, 1], [], []>} : vector<10x32xbf16>, vector<32x512xbf16>, vector<10x512xf32> -> vector<10x512xf32>
    %c0_4 = arith.constant 0 : index
    %c0_5 = arith.constant 0 : index
    %4 = vector.load %arg4[%c0_4, %c0_5] : memref<10x1xf32, #tpu.memory_space<vmem>>, vector<10x1xf32>
    %5 = vector.broadcast %4 : vector<10x1xf32> to vector<10x512xf32>
    %6 = arith.addf %3, %5 : vector<10x512xf32>
    %c0_6 = arith.constant 0 : index
    %c0_7 = arith.constant 0 : index
    %c0_8 = arith.constant 0 : index
    %7 = vector.load %arg5[%c0_6, %c0_7, %c0_8] : memref<1x10x512xf32, #tpu.memory_space<vmem>>, vector<1x10x512xf32>
    %8 = vector.shape_cast %7 : vector<1x10x512xf32> to vector<10x512xf32>
    %9 = vector.shape_cast %6 : vector<10x512xf32> to vector<1x10x512xf32>
    tpu.vector_store %arg5[%c0_6, %c0_7, %c0_8], %9 {strides = array<i32>} : memref<1x10x512xf32, #tpu.memory_space<vmem>>, vector<1x10x512xf32>,
    return
  }
  func.func @transform_0(%arg0: i32, %arg1: i32) -> (i32, i32, i32) {
    %c0_i32 = arith.constant 0 : i32
    %c0_i32_0 = arith.constant 0 : i32
    return %arg0, %c0_i32, %arg1 : i32, i32, i32
  }
  func.func @transform_1(%arg0: i32, %arg1: i32) -> (i32, i32) {
    %c0_i32 = arith.constant 0 : i32
    %c0_i32_0 = arith.constant 0 : i32
    %c0_i32_1 = arith.constant 0 : i32
    return %c0_i32, %c0_i32_0 : i32, i32
  }
  func.func @transform_2(%arg0: i32, %arg1: i32) -> (i32, i32) {
    %c0_i32 = arith.constant 0 : i32
    %c0_i32_0 = arith.constant 0 : i32
    %c0_i32_1 = arith.constant 0 : i32
    return %c0_i32, %c0_i32_0 : i32, i32
  }
  func.func @transform_3(%arg0: i32, %arg1: i32) -> (i32, i32, i32) {
    %c0_i32 = arith.constant 0 : i32
    %c0_i32_0 = arith.constant 0 : i32
    return %arg0, %c0_i32, %arg1 : i32, i32, i32
  }
}

</mosaic_0001>

<bundles_post_ra>
// kernel: reverse
= control target key start
LH: loop header
LB: loop body
LE: loop exit
PB: predicated region body
PF: predicated region fallthrough
CT: control target
= control target key end

     0   :  { %v2_v0 = vlaneseq  ;;  %s312_s0 = inlined_call_operand.vmem [shape: bf16[2,256], index: 0, kind: input, shape index: {}]   ;;  %s313_s1 = inlined_call_operand.vmem [shape: bf16[2,256], index: 1, kind: output, shape index: {}]  }
   0x2   :  { %v3_v1 = vsub.s32 127, %v2_v0 }
   0x4   :  { %4 = vset.pattern.permute.xlu0 %v3_v1 }
   0x5   :  { %s272_s6 = smov 0   ;;  %s274_s7 = smov 0  }
   0x6   :  { %s276_s8 = smov 0  }
   0x7 LB: > { %s206_s9 = sadd.s32 4294967295, %s259_s8   ;;  %s19_s10 = sadd.s32 1, %s255_s7  ;;  %s259_s8 = sphi %s276_s8, %s10_s8   ;;  %s255_s7 = sphi %s274_s7, %s315_s7   ;;  %s251_s6 = sphi %s272_s6, %s314_s6  }
   0x8   : > { %p20_p0 = scmp.ge.s32.totalorder %s19_s10, 2  ;;  %p208_p1 = scmp.ge.s32.totalorder %s259_s8, 2 }
   0x9   : > { %s38_s11 = sand.u32 (!%p208_p1), 1, %s259_s8   ;;  %s40_s12 = ssub.s32 (!%p208_p1), 1, %s255_s7 }
   0xa   : > { %s317_s10 = smov (%p20_p0, %s19_s10), 0  ;;  %36 = sbr.rel (%p208_p1) target bundleno = 17 (0x11), region = 16 }
   0xb   : > { %s43_s15 = scalar_lea.vmem (!%p208_p1), %s312_s0, %s40_s12  ;;  %s39_s16 = scalar_lea.vmem (!%p208_p1), [#allocation1], %s38_s11 }
   0xf   : > { %v60_v2 = vld [vmem:[%s43_s15] sm:$0x1] }
  0x10   : > { %61 = vst [vmem:[%s39_s16] sm:$0x1] %v60_v2 }
  0x11 PF: > { %p209_p2 = scmp.ge.s32.totalorder %s259_s8, 1  ;;  %p78_p3 = scmp.lt.s32.totalorder %s259_s8, 3 }
  0x13   : > { %p79_p4 = pnand %p209_p2, %p78_p3 }
  0x14   : > { %s88_s17 = sand.u32 (!%p79_p4), 1, %s206_s9   ;;  %s130_s22 = scalar_lea.vmem (!%p79_p4), %s313_s1, %s251_s6 }
  0x15   : > { %82 = sbr.rel (%p79_p4) target bundleno = 180 (0xb4), region = 50  ;;  %s89_s18 = scalar_lea.vmem (!%p79_p4), [#allocation1], %s88_s17 }
  0x16   : > { %s92_s19 = scalar_lea.vmem (!%p79_p4), [#allocation3], %s88_s17 }
  0x1a   : > { %v106_v3 = vld [vmem:[%s89_s18] sm:$0x1]  ;;  %v261_v8 = vmov 0.0  }
  0x1b   : > { %v107_v4 = vunpack.c.l.bf16 %v106_v3 }
  0x1d   : > { %109 = vst [vmem:[#allocation0] sm:$0x3] %v107_v4 }
  0x24   : > { %v111_v5 = vld [vmem:[#allocation0] sm:$0xff] }
  0x25   : > { %112 = vperm.xlu0 %4, %v111_v5  }
  0xa0   : > { %v113_v6 = vpop.permute.xlu0 %112 }
  0xa1   : > { %114 = vst [vmem:[#allocation2] sm:$0xff] %v113_v6 }
  0xa8   : > { %v120_v7 = vld [vmem:[#allocation2] sm:$0x3] }
  0xa9   : > { %v121_v9 = vpack.c.bf16 %v261_v8, %v120_v7 }
  0xab   : > { %124 = vst [vmem:[%s92_s19] sm:$0x1] %v121_v9 }
  0xb2   : > { %v147_v10 = vld [vmem:[%s92_s19] sm:$0x1] }
  0xb3   : > { %148 = vst [vmem:[%s130_s22] sm:$0x1] %v147_v10 }
  0xb4 PF: > { %s10_s8 = sadd.s32 1, %s259_s8   ;;  %s314_s6 = smov %s255_s7 }
  0xb5   : > { %p7_p5 = scmp.ge.s32.totalorder %s10_s8, 4   ;;  %s315_s7 = smov %s317_s10 }
  0xb7   :  { %9 = sbr.rel (!%p7_p5) target bundleno = 7 (0x7), region = 110 }

// kernel: tdnn_mfcc_forward.8
= control target key start
LH: loop header
LB: loop body
LE: loop exit
PB: predicated region body
PF: predicated region fallthrough
CT: control target
= control target key end

     0   :  { %s1314_s12 = smov 0   ;;  %s1316_s13 = smov 0   ;;  %s1665_s0 = inlined_call_operand.vmem [shape: bf16[2,128,512], index: 0, kind: input, shape index: {}]   ;;  %s1666_s1 = inlined_call_operand.vmem [shape: f32[40,128], index: 1, kind: input, shape index: {}]   ;;  %s1667_s2 = inlined_call_operand.vmem [shape: f32[2,1,128], index: 2, kind: input, shape index: {}]   ;;  %s1668_s3 = inlined_call_operand.vmem [shape: bf16[2,40,512], index: 3, kind: output, shape index: {}]  }
   0x1   :  { %s1318_s14 = smov 0  }
   0x2 LB: > { %s25_s15 = sadd.s32 1, %s1286_s13  ;;  %p1084_p0 = scmp.ge.s32.totalorder %s1290_s14, 1  ;;  %s1290_s14 = sphi %s1318_s14, %s13_s14   ;;  %s1286_s13 = sphi %s1316_s13, %s1687_s13   ;;  %s1282_s12 = sphi %s1314_s12, %s1686_s12  }
   0x3   : > { %p27_p1 = scmp.ge.s32.totalorder %s25_s15, 2  ;;  %p166_p2 = scmp.lt.s32.totalorder %s1290_s14, 3 }
   0x5   : > { %s1689_s15 = smov (%p27_p1, %s25_s15), 0  ;;  %p167_p3 = pnand %p1084_p0, %p166_p2 }
   0x7   : > { %170 = sbr.rel (%p167_p3) target bundleno = 393 (0x189), region = 32 }
   0xc   : > { %p202_p4 = scmp.lt.s32.totalorder %s1282_s12, 1  ;;  %v643_v0 = vlaneseq  ;;  %v1292_v1 = vmov 0  }
   0xd   : > { %1139 = vset.pattern.permute.xlu0 %v1292_v1 }
   0xe   : > { %s1691_s12 = smov (!%p202_p4, %s1282_s12), 1  ;;  %v644_v2 = vshrl.u32 %v643_v0, 7 }
   0xf   : > { %s213_s18 = scalar_lea.vmem %s1667_s2, %s1691_s12  ;;  %s1101_s19 = sshll.u32 %s1691_s12, 8 }
  0x10   : > { %v645_v3 = vsub.s32 0, %v644_v2  ;;  %v640_v4 = vld [vmem:[%s213_s18] sm:$0x1]  ;;  %s1342_s22 = scalar_lea.vmem %s1665_s0, %s1101_s19  ;;  %s1112_s6 = smul.u32 80, %s1691_s12 }
  0x11   : > { %v1088_v5 = vadd.f32 -80.0, %v640_v4  ;;  %v254_v7 = vld [vmem:[%s1342_s22 + $0xf0] sm:$0xff]  ;;  %v255_v8 = vld [vmem:[%s1342_s22 + $0xf8] sm:$0xff]  ;;  %v252_v11 = vld [vmem:[%s1342_s22 + $0xe0] sm:$0xff] }
  0x12   : > { %v317_v9 = vunpack.c.h.bf16 %v254_v7  ;;  %v319_v10 = vunpack.c.h.bf16 %v255_v8  ;;  %v316_v12 = vunpack.c.l.bf16 %v254_v7  ;;  %v253_v13 = vld [vmem:[%s1342_s22 + $0xe8] sm:$0xff]  ;;  %v318_v14 = vunpack.c.l.bf16 %v255_v8  ;;  %v250_v19 = vld [vmem:[%s1342_s22 + $0xd0] sm:$0xff]  ;;  %v251_v22 = vld [vmem:[%s1342_s22 + $0xd8] sm:$0xff]  ;;  %s1644_s9 = scalar_lea.vmem %s1668_s3, %s1112_s6 }
  0x13   : > { %v646_v6 = vrot.slane %v1088_v5, %v645_v3  ;;  %v313_v16 = vunpack.c.h.bf16 %v252_v11  ;;  %v315_v18 = vunpack.c.h.bf16 %v253_v13  ;;  %v312_v21 = vunpack.c.l.bf16 %v252_v11  ;;  %v248_v29 = vld [vmem:[%s1342_s22 + $0xc0] sm:$0xff]  ;;  %v249_v32 = vld [vmem:[%s1342_s22 + $0xc8] sm:$0xff]  ;;  %v246_v39 = vld [vmem:[%s1342_s22 + $0xb0] sm:$0xff] }
  0x14   : > { %v381_v15 = vmax.f32 %v317_v9, 1e-10  ;;  %v383_v17 = vmax.f32 %v319_v10, 1e-10  ;;  %v380_v20 = vmax.f32 %v316_v12, 1e-10  ;;  %v314_v24 = vunpack.c.l.bf16 %v253_v13 }
  0x15   : > { %648 = vperm.xlu0 %1139, %v646_v6   ;;  %v382_v23 = vmax.f32 %v318_v14, 1e-10  ;;  %v377_v25 = vmax.f32 %v313_v16, 1e-10  ;;  %v309_v26 = vunpack.c.h.bf16 %v250_v19  ;;  %v379_v27 = vmax.f32 %v315_v18, 1e-10 }
  0x16   : > { %1140 = vlog2.f32 %v381_v15  ;;  %v311_v28 = vunpack.c.h.bf16 %v251_v22  ;;  %v376_v30 = vmax.f32 %v312_v21, 1e-10  ;;  %v308_v31 = vunpack.c.l.bf16 %v250_v19  ;;  %v247_v42 = vld [vmem:[%s1342_s22 + $0xb8] sm:$0xff]  ;;  %v244_v49 = vld [vmem:[%s1342_s22 + $0xa0] sm:$0xff]  ;;  %v245_v52 = vld [vmem:[%s1342_s22 + $0xa8] sm:$0xff] }
  0x17   : > { %1142 = vlog2.f32 %v383_v17  ;;  %v378_v33 = vmax.f32 %v314_v24, 1e-10  ;;  %v310_v34 = vunpack.c.l.bf16 %v251_v22  ;;  %v373_v35 = vmax.f32 %v309_v26, 1e-10  ;;  %v242_v55 = vld [vmem:[%s1342_s22 + $0x90] sm:$0xff]  ;;  %v243_v58 = vld [vmem:[%s1342_s22 + $0x98] sm:$0xff] }
  0x18   : > { %1144 = vlog2.f32 %v380_v20  ;;  %v305_v36 = vunpack.c.h.bf16 %v248_v29  ;;  %v375_v37 = vmax.f32 %v311_v28, 1e-10  ;;  %v307_v38 = vunpack.c.h.bf16 %v249_v32  ;;  %v240_v3 = vld [vmem:[%s1342_s22 + $0x80] sm:$0xff]  ;;  %v1360_v8 = vld [vmem:[%s1342_s22 + $0x88] sm:$0xff] }
  0x19   : > { %1146 = vlog2.f32 %v382_v23  ;;  %v372_v40 = vmax.f32 %v308_v31, 1e-10  ;;  %v304_v41 = vunpack.c.l.bf16 %v248_v29  ;;  %v374_v43 = vmax.f32 %v310_v34, 1e-10 }
  0x1a   : > { %1148 = vlog2.f32 %v377_v25  ;;  %v306_v44 = vunpack.c.l.bf16 %v249_v32  ;;  %v369_v45 = vmax.f32 %v305_v36, 1e-10  ;;  %v301_v46 = vunpack.c.h.bf16 %v246_v39 }
  0x1b   : > { %1150 = vlog2.f32 %v379_v27  ;;  %v371_v47 = vmax.f32 %v307_v38, 1e-10  ;;  %v303_v48 = vunpack.c.h.bf16 %v247_v42  ;;  %v368_v50 = vmax.f32 %v304_v41, 1e-10 }
  0x1c   : > { %1152 = vlog2.f32 %v376_v30  ;;  %v300_v51 = vunpack.c.l.bf16 %v246_v39  ;;  %v370_v53 = vmax.f32 %v306_v44, 1e-10  ;;  %v302_v54 = vunpack.c.l.bf16 %v247_v42 }
  0x1d   : > { %1154 = vlog2.f32 %v378_v33  ;;  %v365_v56 = vmax.f32 %v301_v46, 1e-10  ;;  %v297_v57 = vunpack.c.h.bf16 %v244_v49  ;;  %v367_v60 = vmax.f32 %v303_v48, 1e-10 }
  0x1e   : > { %1156 = vlog2.f32 %v373_v35  ;;  %v299_v61 = vunpack.c.h.bf16 %v245_v52  ;;  %v296_v62 = vunpack.c.l.bf16 %v244_v49  ;;  %v364_v0 = vmax.f32 %v300_v51, 1e-10 }
  0x1f   : > { %1158 = vlog2.f32 %v375_v37  ;;  %v298_v1 = vunpack.c.l.bf16 %v245_v52  ;;  %v293_v2 = vunpack.c.h.bf16 %v242_v55  ;;  %v366_v5 = vmax.f32 %v302_v54, 1e-10 }
  0x20   : > { %1160 = vlog2.f32 %v372_v40  ;;  %v295_v6 = vunpack.c.h.bf16 %v243_v58  ;;  %v292_v7 = vunpack.c.l.bf16 %v242_v55  ;;  %v361_v10 = vmax.f32 %v297_v57, 1e-10 }
  0x21   : > { %1162 = vlog2.f32 %v374_v43  ;;  %v294_v11 = vunpack.c.l.bf16 %v243_v58  ;;  %v363_v13 = vmax.f32 %v299_v61, 1e-10  ;;  %v360_v14 = vmax.f32 %v296_v62, 1e-10 }
  0x22   : > { %1164 = vlog2.f32 %v369_v45  ;;  %v289_v15 = vunpack.c.h.bf16 %v240_v3  ;;  %v362_v17 = vmax.f32 %v298_v1, 1e-10  ;;  %v357_v18 = vmax.f32 %v293_v2, 1e-10 }
  0x23   : > { %v1141_v59 = vpop.eup %1140  ;;  %1166 = vlog2.f32 %v371_v47  ;;  %v291_v19 = vunpack.c.h.bf16 %v1360_v8  ;;  %v359_v22 = vmax.f32 %v295_v6, 1e-10  ;;  %v356_v23 = vmax.f32 %v292_v7, 1e-10 }
  0x24   : > { %v1143_v63 = vpop.eup %1142  ;;  %1168 = vlog2.f32 %v368_v50  ;;  %v507_v21 = vmul.f32 0.6931472, %v1141_v59  ;;  %v358_v27 = vmax.f32 %v294_v11, 1e-10  ;;  %v353_v30 = vmax.f32 %v289_v15, 1e-10 }
  0x25   : > { %v1145_v4 = vpop.eup %1144  ;;  %1170 = vlog2.f32 %v370_v53  ;;  %v511_v25 = vmul.f32 0.6931472, %v1143_v63  ;;  %v288_v31 = vunpack.c.l.bf16 %v240_v3  ;;  %v355_v35 = vmax.f32 %v291_v19, 1e-10 }
  0x26   : > { %v1147_v9 = vpop.eup %1146  ;;  %1172 = vlog2.f32 %v365_v56  ;;  %v505_v26 = vmul.f32 0.6931472, %v1145_v4  ;;  %v573_v37 = vmul.f32 0.4342945, %v507_v21  ;;  %v1669_v47 = vmov 0.0  }
  0x27   : > { %v1149_v12 = vpop.eup %1148  ;;  %1174 = vlog2.f32 %v367_v60  ;;  %v509_v29 = vmul.f32 0.6931472, %v1147_v9  ;;  %v575_v41 = vmul.f32 0.4342945, %v511_v25  ;;  %784 = vmatprep.mubr.f32.mxu0 %v1669_v47  ;;  %879 = vmatprep.mubr.f32.mxu1 %v1669_v47  ;;  %v352_v51 = vmax.f32 %v288_v31, 1e-10 }
  0x28   : > { %v1151_v16 = vpop.eup %1150  ;;  %1176 = vlog2.f32 %v364_v0  ;;  %v499_v33 = vmul.f32 0.6931472, %v1149_v12  ;;  %v572_v42 = vmul.f32 0.4342945, %v505_v26  ;;  %v1365_v53 = vmul.f32 10.0, %v573_v37  ;;  %v238_v31 = vld [vmem:[%s1342_s22 + $0x70] sm:$0xff] }
  0x29   : > { %v1153_v20 = vpop.eup %1152  ;;  %1178 = vlog2.f32 %v366_v5  ;;  %v503_v34 = vmul.f32 0.6931472, %v1151_v16  ;;  %v574_v44 = vmul.f32 0.4342945, %v509_v29  ;;  %v1367_v57 = vmul.f32 10.0, %v575_v41 }
  0x2a   : > { %v1155_v24 = vpop.eup %1154  ;;  %1180 = vlog2.f32 %v361_v10  ;;  %v497_v38 = vmul.f32 0.6931472, %v1153_v20  ;;  %v569_v49 = vmul.f32 0.4342945, %v499_v33  ;;  %v1369_v61 = vmul.f32 10.0, %v572_v42 }
  0x2b   : > { %v1157_v28 = vpop.eup %1156  ;;  %1182 = vlog2.f32 %v363_v13  ;;  %v501_v39 = vmul.f32 0.6931472, %v1155_v24  ;;  %v571_v50 = vmul.f32 0.4342945, %v503_v34  ;;  %v1371_v62 = vmul.f32 10.0, %v574_v44 }
  0x2c   : > { %v1159_v32 = vpop.eup %1158  ;;  %1184 = vlog2.f32 %v360_v14  ;;  %v491_v45 = vmul.f32 0.6931472, %v1157_v28  ;;  %v568_v54 = vmul.f32 0.4342945, %v497_v38  ;;  %v1373_v2 = vmul.f32 10.0, %v569_v49 }
  0x2d   : > { %v1161_v36 = vpop.eup %1160  ;;  %1186 = vlog2.f32 %v362_v17  ;;  %v495_v46 = vmul.f32 0.6931472, %v1159_v32  ;;  %v570_v55 = vmul.f32 0.4342945, %v501_v39  ;;  %v1375_v3 = vmul.f32 10.0, %v571_v50  ;;  %v239_v32 = vld [vmem:[%s1342_s22 + $0x78] sm:$0xff] }
  0x2e   : > { %v1163_v40 = vpop.eup %1162  ;;  %1188 = vlog2.f32 %v357_v18  ;;  %v489_v58 = vmul.f32 0.6931472, %v1161_v36  ;;  %v565_v63 = vmul.f32 0.4342945, %v491_v45  ;;  %v1377_v7 = vmul.f32 10.0, %v568_v54 }
  0x2f   : > { %v1165_v43 = vpop.eup %1164  ;;  %v493_v59 = vmul.f32 0.6931472, %v1163_v40  ;;  %1190 = vlog2.f32 %v359_v22  ;;  %v567_v0 = vmul.f32 0.4342945, %v495_v46  ;;  %v1379_v9 = vmul.f32 10.0, %v570_v55  ;;  %v236_v46 = vld [vmem:[%s1342_s22 + $0x60] sm:$0xff] }
  0x30   : > { %v1167_v48 = vpop.eup %1166  ;;  %v483_v4 = vmul.f32 0.6931472, %v1165_v43  ;;  %1192 = vlog2.f32 %v356_v23  ;;  %v564_v12 = vmul.f32 0.4342945, %v489_v58  ;;  %v1381_v16 = vmul.f32 10.0, %v565_v63 }
  0x31   : > { %v1169_v52 = vpop.eup %1168  ;;  %v487_v5 = vmul.f32 0.6931472, %v1167_v48  ;;  %v566_v13 = vmul.f32 0.4342945, %v493_v59  ;;  %1194 = vlog2.f32 %v358_v27  ;;  %v1383_v17 = vmul.f32 10.0, %v567_v0 }
  0x32   : > { %v1171_v56 = vpop.eup %1170  ;;  %v481_v10 = vmul.f32 0.6931472, %v1169_v52  ;;  %1196 = vlog2.f32 %v353_v30  ;;  %v561_v20 = vmul.f32 0.4342945, %v483_v4  ;;  %v1385_v28 = vmul.f32 10.0, %v564_v12 }
  0x33   : > { %v1173_v60 = vpop.eup %1172  ;;  %v485_v14 = vmul.f32 0.6931472, %v1171_v56  ;;  %v563_v21 = vmul.f32 0.4342945, %v487_v5  ;;  %1198 = vlog2.f32 %v355_v35  ;;  %v1387_v27 = vmul.f32 10.0, %v566_v13 }
  0x34   : > { %v1175_v1 = vpop.eup %1174  ;;  %v475_v18 = vmul.f32 0.6931472, %v1173_v60  ;;  %v560_v23 = vmul.f32 0.4342945, %v481_v10  ;;  %1200 = vlog2.f32 %v352_v51  ;;  %v290_v37 = vunpack.c.l.bf16 %v1360_v8  ;;  %v237_v8 = vld [vmem:[%s1342_s22 + $0x68] sm:$0xff]  ;;  %v234_v10 = vld [vmem:[%s1342_s22 + $0x50] sm:$0xff] }
  0x35   : > { %v1177_v6 = vpop.eup %1176  ;;  %v479_v22 = vmul.f32 0.6931472, %v1175_v1  ;;  %v562_v29 = vmul.f32 0.4342945, %v485_v14  ;;  %v1392_v38 = vmul.f32 10.0, %v561_v20  ;;  %v1394_v39 = vmul.f32 10.0, %v563_v21 }
  0x36   : > { %v1179_v11 = vpop.eup %1178  ;;  %v473_v25 = vmul.f32 0.6931472, %v1177_v6  ;;  %v557_v30 = vmul.f32 0.4342945, %v475_v18  ;;  %v1396_v42 = vmul.f32 10.0, %v560_v23  ;;  %v285_v45 = vunpack.c.h.bf16 %v238_v31 }
  0x37   : > { %v1181_v15 = vpop.eup %1180  ;;  %v477_v26 = vmul.f32 0.6931472, %v1179_v11  ;;  %v559_v35 = vmul.f32 0.4342945, %v479_v22  ;;  %v1399_v48 = vmul.f32 10.0, %v562_v29  ;;  %v287_v50 = vunpack.c.h.bf16 %v239_v32  ;;  %v235_v11 = vld [vmem:[%s1342_s22 + $0x58] sm:$0xff] }
  0x38   : > { %v1183_v19 = vpop.eup %1182  ;;  %v467_v34 = vmul.f32 0.6931472, %v1181_v15  ;;  %v556_v43 = vmul.f32 0.4342945, %v473_v25  ;;  %v284_v51 = vunpack.c.l.bf16 %v238_v31  ;;  %v1402_v54 = vmul.f32 10.0, %v557_v30 }
  0x39   : > { %v1185_v24 = vpop.eup %1184  ;;  %v471_v36 = vmul.f32 0.6931472, %v1183_v19  ;;  %v558_v44 = vmul.f32 0.4342945, %v477_v26  ;;  %v286_v58 = vunpack.c.l.bf16 %v239_v32  ;;  %v1404_v59 = vmul.f32 10.0, %v559_v35 }
  0x3a   : > { %v1187_v33 = vpop.eup %1186  ;;  %v465_v40 = vmul.f32 0.6931472, %v1185_v24  ;;  %v553_v55 = vmul.f32 0.4342945, %v467_v34  ;;  %v281_v0 = vunpack.c.h.bf16 %v236_v46  ;;  %v1406_v1 = vmul.f32 10.0, %v556_v43 }
  0x3b   : > { %v1189_v41 = vpop.eup %1188  ;;  %v469_v49 = vmul.f32 0.6931472, %v1187_v33  ;;  %v555_v56 = vmul.f32 0.4342945, %v471_v36  ;;  %v1408_v4 = vmul.f32 10.0, %v558_v44  ;;  %v283_v6 = vunpack.c.h.bf16 %v237_v8 }
  0x3c   : > { %v1191_v52 = vpop.eup %1190  ;;  %v552_v60 = vmul.f32 0.4342945, %v465_v40  ;;  %v459_v63 = vmul.f32 0.6931472, %v1189_v41  ;;  %v354_v5 = vmax.f32 %v290_v37, 1e-10  ;;  %v280_v18 = vunpack.c.l.bf16 %v236_v46 }
  0x3d   : > { %v1193_v12 = vpop.eup %1192  ;;  %v554_v13 = vmul.f32 0.4342945, %v469_v49  ;;  %v463_v14 = vmul.f32 0.6931472, %v1191_v52  ;;  %v349_v15 = vmax.f32 %v285_v45, 1e-10  ;;  %v282_v24 = vunpack.c.l.bf16 %v237_v8 }
  0x3e   : > { %v1195_v19 = vpop.eup %1194  ;;  %v1412_v20 = vmul.f32 10.0, %v553_v55  ;;  %v1414_v21 = vmul.f32 10.0, %v555_v56  ;;  %v351_v22 = vmax.f32 %v287_v50, 1e-10  ;;  %v1416_v25 = vmul.f32 10.0, %v552_v60  ;;  %v232_v50 = vld [vmem:[%s1342_s22 + $0x40] sm:$0xff] }
  0x3f   : > { %v1197_v23 = vpop.eup %1196  ;;  %v549_v26 = vmul.f32 0.4342945, %v459_v63  ;;  %v348_v29 = vmax.f32 %v284_v51, 1e-10  ;;  %v277_v31 = vunpack.c.h.bf16 %v234_v10  ;;  %v457_v32 = vmul.f32 0.6931472, %v1193_v12 }
  0x40   : > { %1202 = vlog2.f32 %v354_v5  ;;  %v350_v33 = vmax.f32 %v286_v58, 1e-10  ;;  %v279_v30 = vunpack.c.h.bf16 %v235_v11  ;;  %v1199_v34 = vpop.eup %1198  ;;  %v1418_v36 = vmul.f32 10.0, %v554_v13  ;;  %v233_v55 = vld [vmem:[%s1342_s22 + $0x48] sm:$0xff] }
  0x41   : > { %v551_v37 = vmul.f32 0.4342945, %v463_v14  ;;  %1204 = vlog2.f32 %v349_v15  ;;  %v345_v35 = vmax.f32 %v281_v0, 1e-10  ;;  %v1201_v40 = vpop.eup %1200  ;;  %v461_v41 = vmul.f32 0.6931472, %v1195_v19 }
  0x42   : > { %v451_v43 = vmul.f32 0.6931472, %v1197_v23  ;;  %1206 = vlog2.f32 %v351_v22  ;;  %v347_v44 = vmax.f32 %v283_v6, 1e-10  ;;  %v1420_v45 = vmul.f32 10.0, %v549_v26  ;;  %v230_v15 = vld [vmem:[%s1342_s22 + $0x30] sm:$0xff] }
  0x43   : > { %1208 = vlog2.f32 %v348_v29  ;;  %v344_v46 = vmax.f32 %v280_v18, 1e-10  ;;  %v276_v49 = vunpack.c.l.bf16 %v234_v10  ;;  %v548_v51 = vmul.f32 0.4342945, %v457_v32  ;;  %v231_v18 = vld [vmem:[%s1342_s22 + $0x38] sm:$0xff]  ;;  %v228_v32 = vld [vmem:[%s1342_s22 + $0x20] sm:$0xff] }
  0x44   : > { %1671 = vst [vmem:[#allocation2_spill] sm:$0xff] %v1420_v45  ;;  %1210 = vlog2.f32 %v350_v33  ;;  %v346_v8 = vmax.f32 %v282_v24, 1e-10  ;;  %v278_v52 = vunpack.c.l.bf16 %v235_v11  ;;  %v455_v56 = vmul.f32 0.6931472, %v1199_v34 }
  0x45   : > { %v449_v58 = vmul.f32 0.6931472, %v1201_v40  ;;  %1212 = vlog2.f32 %v345_v35  ;;  %v341_v60 = vmax.f32 %v277_v31, 1e-10  ;;  %v550_v63 = vmul.f32 0.4342945, %v461_v41 }
  0x46   : > { %v545_v0 = vmul.f32 0.4342945, %v451_v43  ;;  %1214 = vlog2.f32 %v347_v44  ;;  %v273_v5 = vunpack.c.h.bf16 %v232_v50  ;;  %v1424_v6 = vmul.f32 10.0, %v551_v37  ;;  %v229_v37 = vld [vmem:[%s1342_s22 + $0x28] sm:$0xff] }
  0x47   : > { %1216 = vlog2.f32 %v344_v46  ;;  %v343_v10 = vmax.f32 %v279_v30, 1e-10  ;;  %v275_v12 = vunpack.c.h.bf16 %v233_v55  ;;  %v1426_v13 = vmul.f32 10.0, %v548_v51 }
  0x48   : > { %1672 = vst [vmem:[#allocation3_spill] sm:$0xff] %v1424_v6  ;;  %1218 = vlog2.f32 %v346_v8  ;;  %v340_v11 = vmax.f32 %v276_v49, 1e-10  ;;  %v272_v14 = vunpack.c.l.bf16 %v232_v50  ;;  %v547_v19 = vmul.f32 0.4342945, %v455_v56  ;;  %v226_v50 = vld [vmem:[%s1342_s22 + $0x10] sm:$0xff] }
  0x49   : > { %1673 = vst [vmem:[#allocation4_spill] sm:$0xff] %v1426_v13  ;;  %v544_v22 = vmul.f32 0.4342945, %v449_v58  ;;  %1220 = vlog2.f32 %v341_v60  ;;  %v342_v24 = vmax.f32 %v278_v52, 1e-10  ;;  %v1430_v23 = vmul.f32 10.0, %v550_v63 }
  0x4a   : > { %v1432_v26 = vmul.f32 10.0, %v545_v0  ;;  %v337_v29 = vmax.f32 %v273_v5, 1e-10  ;;  %v274_v31 = vunpack.c.l.bf16 %v233_v55  ;;  %1222 = vlog2.f32 %v343_v10  ;;  %v227_v56 = vld [vmem:[%s1342_s22 + $0x18] sm:$0xff]  ;;  %v224_v5 = vld [vmem:[%s1342_s22] sm:$0xff] }
  0x4b   : > { %1674 = vst [vmem:[#allocation5_spill] sm:$0xff] %v1430_v23  ;;  %v339_v33 = vmax.f32 %v275_v12, 1e-10  ;;  %v269_v30 = vunpack.c.h.bf16 %v230_v15  ;;  %v271_v34 = vunpack.c.h.bf16 %v231_v18  ;;  %1224 = vlog2.f32 %v340_v11 }
  0x4c   : > { %1675 = vst [vmem:[#allocation6_spill] sm:$0xff] %v1432_v26  ;;  %v336_v35 = vmax.f32 %v272_v14, 1e-10  ;;  %v268_v40 = vunpack.c.l.bf16 %v230_v15  ;;  %v270_v41 = vunpack.c.l.bf16 %v231_v18  ;;  %v1436_v44 = vmul.f32 10.0, %v547_v19 }
  0x4d   : > { %v1203_v43 = vpop.eup %1202  ;;  %v1438_v46 = vmul.f32 10.0, %v544_v22  ;;  %1226 = vlog2.f32 %v342_v24  ;;  %v265_v49 = vunpack.c.h.bf16 %v228_v32  ;;  %v338_v8 = vmax.f32 %v274_v31, 1e-10 }
  0x4e   : > { %1676 = vst [vmem:[#allocation7_spill] sm:$0xff] %v1436_v44  ;;  %v1205_v51 = vpop.eup %1204  ;;  %1228 = vlog2.f32 %v337_v29  ;;  %v267_v52 = vunpack.c.h.bf16 %v229_v37  ;;  %v264_v55 = vunpack.c.l.bf16 %v228_v32  ;;  %v333_v60 = vmax.f32 %v269_v30, 1e-10  ;;  %v1444_v29 = vld [vmem:[%s1342_s22 + $0x8] sm:$0xff] }
  0x4f   : > { %1677 = vst [vmem:[#allocation8_spill] sm:$0xff] %v1438_v46  ;;  %v1207_v58 = vpop.eup %1206  ;;  %1230 = vlog2.f32 %v339_v33  ;;  %v335_v63 = vmax.f32 %v271_v34, 1e-10  ;;  %v266_v0 = vunpack.c.l.bf16 %v229_v37  ;;  %v332_v12 = vmax.f32 %v268_v40, 1e-10 }
  0x50   : > { %v1209_v10 = vpop.eup %1208  ;;  %1232 = vlog2.f32 %v336_v35  ;;  %v334_v11 = vmax.f32 %v270_v41, 1e-10  ;;  %v261_v14 = vunpack.c.h.bf16 %v226_v50  ;;  %v329_v18 = vmax.f32 %v265_v49, 1e-10 }
  0x51   : > { %v1211_v15 = vpop.eup %1210  ;;  %v263_v19 = vunpack.c.h.bf16 %v227_v56  ;;  %v260_v22 = vunpack.c.l.bf16 %v226_v50  ;;  %v262_v24 = vunpack.c.l.bf16 %v227_v56  ;;  %v453_v32 = vmul.f32 0.6931472, %v1203_v43 }
  0x52   : > { %v1213_v31 = vpop.eup %1212  ;;  %v331_v47 = vmax.f32 %v267_v52, 1e-10  ;;  %v328_v33 = vmax.f32 %v264_v55, 1e-10  ;;  %v257_v30 = vunpack.c.h.bf16 %v224_v5  ;;  %v443_v37 = vmul.f32 0.6931472, %v1205_v51 }
  0x53   : > { %v1215_v34 = vpop.eup %1214  ;;  %v447_v46 = vmul.f32 0.6931472, %v1207_v58  ;;  %1234 = vlog2.f32 %v338_v8  ;;  %v330_v35 = vmax.f32 %v266_v0, 1e-10  ;;  %v441_v41 = vmul.f32 0.6931472, %v1209_v10 }
  0x54   : > { %v1217_v40 = vpop.eup %1216  ;;  %v445_v44 = vmul.f32 0.6931472, %v1211_v15  ;;  %1236 = vlog2.f32 %v333_v60  ;;  %v325_v49 = vmax.f32 %v261_v14, 1e-10  ;;  %v327_v50 = vmax.f32 %v263_v19, 1e-10 }
  0x55   : > { %v1219_v26 = vpop.eup %1218  ;;  %v324_v56 = vmax.f32 %v260_v22, 1e-10  ;;  %v326_v23 = vmax.f32 %v262_v24, 1e-10  ;;  %v546_v6 = vmul.f32 0.4342945, %v453_v32  ;;  %v259_v52 = vunpack.c.h.bf16 %v1444_v29 }
  0x56   : > { %v1221_v13 = vpop.eup %1220  ;;  %v321_v43 = vmax.f32 %v257_v30, 1e-10  ;;  %v256_v55 = vunpack.c.l.bf16 %v224_v5  ;;  %v541_v45 = vmul.f32 0.4342945, %v443_v37  ;;  %v543_v51 = vmul.f32 0.4342945, %v447_v46 }
  0x57   : > { %v435_v58 = vmul.f32 0.6931472, %v1213_v31  ;;  %1238 = vlog2.f32 %v335_v63  ;;  %v1223_v8 = vpop.eup %1222  ;;  %v540_v0 = vmul.f32 0.4342945, %v441_v41  ;;  %v542_v10 = vmul.f32 0.4342945, %v445_v44 }
  0x58   : > { %v439_v15 = vmul.f32 0.6931472, %v1215_v34  ;;  %1240 = vlog2.f32 %v332_v12  ;;  %v1225_v60 = vpop.eup %1224  ;;  %v433_v14 = vmul.f32 0.6931472, %v1217_v40  ;;  %v437_v19 = vmul.f32 0.6931472, %v1219_v26 }
  0x59   : > { %v427_v22 = vmul.f32 0.6931472, %v1221_v13  ;;  %1242 = vlog2.f32 %v334_v11  ;;  %v1447_v32 = vmul.f32 10.0, %v546_v6  ;;  %v323_v30 = vmax.f32 %v259_v52, 1e-10 }
  0x5a   : > { %v1227_v24 = vpop.eup %1226  ;;  %1244 = vlog2.f32 %v329_v18  ;;  %v320_v5 = vmax.f32 %v256_v55, 1e-10  ;;  %v1449_v46 = vmul.f32 10.0, %v541_v45  ;;  %v537_v63 = vmul.f32 0.4342945, %v435_v58 }
  0x5b   : > { %v1229_v37 = vpop.eup %1228  ;;  %v431_v31 = vmul.f32 0.6931472, %v1223_v8  ;;  %1246 = vlog2.f32 %v331_v47  ;;  %v1451_v34 = vmul.f32 10.0, %v543_v51  ;;  %v1453_v12 = vmul.f32 10.0, %v540_v0 }
  0x5c   : > { %v1231_v44 = vpop.eup %1230  ;;  %v1455_v26 = vmul.f32 10.0, %v542_v10  ;;  %v539_v13 = vmul.f32 0.4342945, %v439_v15  ;;  %v536_v6 = vmul.f32 0.4342945, %v433_v14  ;;  %1248 = vlog2.f32 %v328_v33 }
  0x5d   : > { %v1233_v11 = vpop.eup %1232  ;;  %v538_v40 = vmul.f32 0.4342945, %v437_v19  ;;  %v533_v18 = vmul.f32 0.4342945, %v427_v22  ;;  %v425_v41 = vmul.f32 0.6931472, %v1225_v60  ;;  %1250 = vlog2.f32 %v330_v35 }
  0x5e   : > { %v429_v52 = vmul.f32 0.6931472, %v1227_v24  ;;  %v419_v45 = vmul.f32 0.6931472, %v1229_v37  ;;  %v1457_v55 = vmul.f32 10.0, %v537_v63  ;;  %1252 = vlog2.f32 %v325_v49 }
  0x5f   : > { %v535_v47 = vmul.f32 0.4342945, %v431_v31  ;;  %v423_v58 = vmul.f32 0.6931472, %v1231_v44  ;;  %v1459_v8 = vmul.f32 10.0, %v539_v13  ;;  %1254 = vlog2.f32 %v327_v50 }
  0x60   : > { %v1235_v51 = vpop.eup %1234  ;;  %v417_v0 = vmul.f32 0.6931472, %v1233_v11  ;;  %v258_v10 = vunpack.c.l.bf16 %v1444_v29  ;;  %v1462_v14 = vmul.f32 10.0, %v536_v6  ;;  %v1464_v33 = vmul.f32 10.0, %v538_v40 }
  0x61   : > { %v1237_v15 = vpop.eup %1236  ;;  %v1466_v60 = vmul.f32 10.0, %v533_v18  ;;  %1256 = vlog2.f32 %v324_v56  ;;  %v532_v35 = vmul.f32 0.4342945, %v425_v41  ;;  %v534_v19 = vmul.f32 0.4342945, %v429_v52 }
  0x62   : > { %v529_v22 = vmul.f32 0.4342945, %v419_v45  ;;  %1258 = vlog2.f32 %v326_v23  ;;  %v1468_v49 = vmul.f32 10.0, %v535_v47  ;;  %v531_v24 = vmul.f32 0.4342945, %v423_v58 }
  0x63   : > { %v421_v37 = vmul.f32 0.6931472, %v1235_v51  ;;  %1260 = vlog2.f32 %v321_v43  ;;  %v528_v29 = vmul.f32 0.4342945, %v417_v0  ;;  %v411_v31 = vmul.f32 0.6931472, %v1237_v15 }
  0x64   : > { %v1239_v50 = vpop.eup %1238  ;;  %1262 = vlog2.f32 %v323_v30  ;;  %v322_v44 = vmax.f32 %v258_v10, 1e-10  ;;  %v1480_v40 = vmul.f32 10.0, %v532_v35  ;;  %v1482_v18 = vmul.f32 10.0, %v534_v19 }
  0x65   : > { %v1241_v13 = vpop.eup %1240  ;;  %v1484_v30 = vmul.f32 10.0, %v529_v22  ;;  %1264 = vlog2.f32 %v320_v5  ;;  %v415_v47 = vmul.f32 0.6931472, %v1239_v50  ;;  %v1500_v58 = vmul.f32 10.0, %v528_v29 }
  0x66   : > { %v1243_v6 = vpop.eup %1242  ;;  %1266 = vlog2.f32 %v322_v44  ;;  %v525_v51 = vmul.f32 0.4342945, %v411_v31  ;;  %v409_v10 = vmul.f32 0.6931472, %v1241_v13 }
  0x67   : > { %v1245_v41 = vpop.eup %1244  ;;  %v413_v15 = vmul.f32 0.6931472, %v1243_v6  ;;  %v527_v50 = vmul.f32 0.4342945, %v415_v47 }
  0x68   : > { %v1247_v52 = vpop.eup %1246  ;;  %v403_v19 = vmul.f32 0.6931472, %v1245_v41  ;;  %v1520_v31 = vmul.f32 10.0, %v525_v51 }
  0x69   : > { %v1249_v0 = vpop.eup %1248  ;;  %v407_v22 = vmul.f32 0.6931472, %v1247_v52  ;;  %v1679_v52 = vld [vmem:[#allocation3_spill] sm:$0xff] }
  0x6a   : > { %v1251_v35 = vpop.eup %1250  ;;  %v401_v44 = vmul.f32 0.6931472, %v1249_v0 }
  0x6b   : > { %v523_v6 = vmul.f32 0.4342945, %v407_v22 }
  0x90   : > { %v1470_v63 = vpop.permute.xlu0 %648 }
  0x91   : > { %v712_v56 = vmax.f32 %v1365_v53, %v1470_v63  ;;  %v714_v11 = vmax.f32 %v1367_v57, %v1470_v63  ;;  %v711_v23 = vmax.f32 %v1369_v61, %v1470_v63  ;;  %v713_v43 = vmax.f32 %v1371_v62, %v1470_v63 }
  0x92   : > { %v708_v53 = vmax.f32 %v1373_v2, %v1470_v63  ;;  %v710_v57 = vmax.f32 %v1375_v3, %v1470_v63  ;;  %v1490_v61 = vmul.f32 10.0, %v531_v24  ;;  %v530_v62 = vmul.f32 0.4342945, %v421_v37  ;;  %v1253_v24 = vpop.eup %1252 }
  0x93   : > { %720 = vmatprep.subr.mxu0 %v712_v56  ;;  %815 = vmatprep.subr.mxu1 %v714_v11  ;;  %v707_v45 = vmax.f32 %v1377_v7, %v1470_v63  ;;  %v709_v5 = vmax.f32 %v1379_v9, %v1470_v63  ;;  %v704_v2 = vmax.f32 %v1381_v16, %v1470_v63  ;;  %v1255_v29 = vpop.eup %1254  ;;  %v524_v56 = vmul.f32 0.4342945, %v409_v10 }
  0x94   : > { %721 = vmatpush1.msra.mxu0 %v711_v23  ;;  %816 = vmatpush1.msra.mxu1 %v713_v43  ;;  %v706_v3 = vmax.f32 %v1383_v17, %v1470_v63  ;;  %v703_v7 = vmax.f32 %v1385_v28, %v1470_v63  ;;  %v705_v9 = vmax.f32 %v1387_v27, %v1470_v63  ;;  %v1514_v37 = vmul.f32 10.0, %v530_v62  ;;  %v1257_v13 = vpop.eup %1256 }
  0x95   : > { %722 = vmatprep.subr.mxu0 %v708_v53  ;;  %817 = vmatprep.subr.mxu1 %v710_v57  ;;  %v700_v16 = vmax.f32 %v1392_v38, %v1470_v63  ;;  %v702_v17 = vmax.f32 %v1394_v39, %v1470_v63  ;;  %v699_v28 = vmax.f32 %v1396_v42, %v1470_v63  ;;  %v526_v11 = vmul.f32 0.4342945, %v413_v15  ;;  %v1259_v23 = vpop.eup %1258  ;;  %v1683_v15 = vld [vmem:[#allocation7_spill] sm:$0xff] }
  0x96   : > { %723 = vmatpush1.msra.mxu0 %v707_v45  ;;  %818 = vmatpush1.msra.mxu1 %v709_v5  ;;  %v701_v27 = vmax.f32 %v1399_v48, %v1470_v63  ;;  %v696_v38 = vmax.f32 %v1402_v54, %v1470_v63  ;;  %v698_v39 = vmax.f32 %v1404_v59, %v1470_v63  ;;  %v521_v43 = vmul.f32 0.4342945, %v403_v19  ;;  %v1261_v41 = vpop.eup %1260  ;;  %v1684_v19 = vld [vmem:[#allocation8_spill] sm:$0xff] }
  0x97   : > { %724 = vmatprep.subr.mxu0 %v704_v2  ;;  %819 = vmatprep.subr.mxu1 %v706_v3  ;;  %v695_v42 = vmax.f32 %v1406_v1, %v1470_v63  ;;  %v697_v48 = vmax.f32 %v1408_v4, %v1470_v63  ;;  %v692_v54 = vmax.f32 %v1412_v20, %v1470_v63  ;;  %v1534_v53 = vmul.f32 10.0, %v527_v50  ;;  %v1263_v62 = vpop.eup %1262  ;;  %v1678_v20 = vld [vmem:[#allocation2_spill] sm:$0xff] }
  0x98   : > { %725 = vmatpush1.msra.mxu0 %v703_v7  ;;  %820 = vmatpush1.msra.mxu1 %v705_v9  ;;  %v694_v59 = vmax.f32 %v1414_v21, %v1470_v63  ;;  %v691_v1 = vmax.f32 %v1416_v25, %v1470_v63  ;;  %v693_v4 = vmax.f32 %v1418_v36, %v1470_v63  ;;  %v405_v57 = vmul.f32 0.6931472, %v1251_v35  ;;  %v1680_v25 = vld [vmem:[#allocation4_spill] sm:$0xff]  ;;  %v1681_v36 = vld [vmem:[#allocation5_spill] sm:$0xff]  ;;  %v1265_v7 = vpop.eup %1264  ;;  %v1682_v9 = vld [vmem:[#allocation6_spill] sm:$0xff] }
  0x99   : > { %726 = vmatprep.subr.mxu0 %v700_v16  ;;  %821 = vmatprep.subr.mxu1 %v702_v17  ;;  %v688_v21 = vmax.f32 %v1678_v20, %v1470_v63  ;;  %v690_v45 = vmax.f32 %v1679_v52, %v1470_v63  ;;  %v520_v5 = vmul.f32 0.4342945, %v401_v44  ;;  %v395_v47 = vmul.f32 0.6931472, %v1253_v24  ;;  %v1267_v50 = vpop.eup %1266 }
  0x9a   : > { %727 = vmatpush1.msra.mxu0 %v699_v28  ;;  %822 = vmatpush1.msra.mxu1 %v701_v27  ;;  %v687_v2 = vmax.f32 %v1680_v25, %v1470_v63  ;;  %v689_v3 = vmax.f32 %v1681_v36, %v1470_v63  ;;  %v1544_v51 = vmul.f32 10.0, %v524_v56  ;;  %v1546_v0 = vmul.f32 10.0, %v526_v11 }
  0x9b   : > { %728 = vmatprep.subr.mxu0 %v696_v38  ;;  %823 = vmatprep.subr.mxu1 %v698_v39  ;;  %v684_v10 = vmax.f32 %v1682_v9, %v1470_v63  ;;  %v686_v35 = vmax.f32 %v1683_v15, %v1470_v63  ;;  %v1552_v16 = vmul.f32 10.0, %v521_v43  ;;  %v1554_v17 = vmul.f32 10.0, %v523_v6 }
  0x9c   : > { %729 = vmatpush1.msra.mxu0 %v695_v42  ;;  %824 = vmatpush1.msra.mxu1 %v697_v48  ;;  %v683_v22 = vmax.f32 %v1684_v19, %v1470_v63  ;;  %v685_v24 = vmax.f32 %v1447_v32, %v1470_v63  ;;  %v522_v28 = vmul.f32 0.4342945, %v405_v57  ;;  %v399_v27 = vmul.f32 0.6931472, %v1255_v29 }
  0x9d   : > { %730 = vmatprep.subr.mxu0 %v692_v54  ;;  %825 = vmatprep.subr.mxu1 %v694_v59  ;;  %v680_v38 = vmax.f32 %v1449_v46, %v1470_v63  ;;  %v682_v39 = vmax.f32 %v1451_v34, %v1470_v63  ;;  %v1564_v44 = vmul.f32 10.0, %v520_v5  ;;  %v517_v42 = vmul.f32 0.4342945, %v395_v47 }
  0x9e   : > { %731 = vmatpush1.msra.mxu0 %v691_v1  ;;  %826 = vmatpush1.msra.mxu1 %v693_v4  ;;  %v679_v48 = vmax.f32 %v1453_v12, %v1470_v63  ;;  %v681_v32 = vmax.f32 %v1455_v26, %v1470_v63  ;;  %v393_v29 = vmul.f32 0.6931472, %v1257_v13  ;;  %v397_v56 = vmul.f32 0.6931472, %v1259_v23 }
  0x9f   : > { %732 = vmatprep.subr.mxu0 %v688_v21  ;;  %827 = vmatprep.subr.mxu1 %v690_v45  ;;  %v676_v46 = vmax.f32 %v1457_v55, %v1470_v63  ;;  %v678_v34 = vmax.f32 %v1459_v8, %v1470_v63  ;;  %v387_v11 = vmul.f32 0.6931472, %v1261_v41  ;;  %v391_v54 = vmul.f32 0.6931472, %v1263_v62 }
  0xa0   : > { %733 = vmatpush1.msra.mxu0 %v687_v2  ;;  %828 = vmatpush1.msra.mxu1 %v689_v3  ;;  %v675_v12 = vmax.f32 %v1462_v14, %v1470_v63  ;;  %v677_v26 = vmax.f32 %v1464_v33, %v1470_v63  ;;  %v385_v13 = vmul.f32 0.6931472, %v1265_v7  ;;  %v389_v23 = vmul.f32 0.6931472, %v1267_v50 }
  0xa1   : > { %734 = vmatprep.subr.mxu0 %v684_v10  ;;  %829 = vmatprep.subr.mxu1 %v686_v35  ;;  %v672_v55 = vmax.f32 %v1466_v60, %v1470_v63  ;;  %v674_v8 = vmax.f32 %v1468_v49, %v1470_v63  ;;  %v586_v59 = vmul.f32 10.0, %v522_v28  ;;  %v519_v43 = vmul.f32 0.4342945, %v399_v27  ;;  %v719_v28 = vld [vmem:[%s1666_s1 + $0x20] sm:$0xff] }
  0xa2   : > { %735 = vmatpush1.msra.mxu0 %v683_v22  ;;  %830 = vmatpush1.msra.mxu1 %v685_v24  ;;  %v671_v14 = vmax.f32 %v1480_v40, %v1470_v63  ;;  %v673_v33 = vmax.f32 %v1482_v18, %v1470_v63  ;;  %v516_v6 = vmul.f32 0.4342945, %v393_v29  ;;  %v518_v41 = vmul.f32 0.4342945, %v397_v56  ;;  %v716_v22 = vld [vmem:[%s1666_s1 + $0x8] sm:$0xff]  ;;  %v718_v24 = vld [vmem:[%s1666_s1 + $0x18] sm:$0xff] }
  0xa3   : > { %736 = vmatprep.subr.mxu0 %v680_v38  ;;  %831 = vmatprep.subr.mxu1 %v682_v39  ;;  %v668_v60 = vmax.f32 %v1484_v30, %v1470_v63  ;;  %v670_v49 = vmax.f32 %v1490_v61, %v1470_v63  ;;  %v513_v1 = vmul.f32 0.4342945, %v387_v11  ;;  %v515_v4 = vmul.f32 0.4342945, %v391_v54 }
  0xa4   : > { %737 = vmatpush1.msra.mxu0 %v679_v48  ;;  %832 = vmatpush1.msra.mxu1 %v681_v32  ;;  %v667_v40 = vmax.f32 %v1500_v58, %v1470_v63  ;;  %v669_v18 = vmax.f32 %v1514_v37, %v1470_v63  ;;  %v512_v57 = vmul.f32 0.4342945, %v385_v13  ;;  %v514_v62 = vmul.f32 0.4342945, %v389_v23 }
  0xa5   : > { %738 = vmatprep.subr.mxu0 %v676_v46  ;;  %833 = vmatprep.subr.mxu1 %v678_v34  ;;  %v664_v30 = vmax.f32 %v1520_v31, %v1470_v63  ;;  %v666_v61 = vmax.f32 %v1534_v53, %v1470_v63  ;;  %v581_v20 = vmul.f32 10.0, %v517_v42  ;;  %v583_v21 = vmul.f32 10.0, %v519_v43 }
  0xa6   : > { %739 = vmatpush1.msra.mxu0 %v675_v12  ;;  %834 = vmatpush1.msra.mxu1 %v677_v26  ;;  %v663_v58 = vmax.f32 %v1544_v51, %v1470_v63  ;;  %v665_v37 = vmax.f32 %v1546_v0, %v1470_v63  ;;  %v580_v52 = vmul.f32 10.0, %v516_v6  ;;  %v582_v45 = vmul.f32 10.0, %v518_v41 }
  0xa7   : > { %740 = vmatprep.subr.mxu0 %v672_v55  ;;  %835 = vmatprep.subr.mxu1 %v674_v8  ;;  %v660_v31 = vmax.f32 %v1552_v16, %v1470_v63  ;;  %v662_v53 = vmax.f32 %v1554_v17, %v1470_v63  ;;  %v577_v5 = vmul.f32 10.0, %v513_v1  ;;  %v579_v47 = vmul.f32 10.0, %v515_v4  ;;  %v715_v17 = vld [vmem:[%s1666_s1] sm:$0xff] }
  0xa8   : > { %741 = vmatpush1.msra.mxu0 %v671_v14  ;;  %836 = vmatpush1.msra.mxu1 %v673_v33  ;;  %v659_v25 = vmax.f32 %v1564_v44, %v1470_v63  ;;  %v661_v2 = vmax.f32 %v586_v59, %v1470_v63  ;;  %v576_v36 = vmul.f32 10.0, %v512_v57  ;;  %v578_v3 = vmul.f32 10.0, %v514_v62 }
  0xa9   : > { %742 = vmatprep.subr.mxu0 %v668_v60  ;;  %837 = vmatprep.subr.mxu1 %v670_v49  ;;  %v656_v51 = vmax.f32 %v581_v20, %v1470_v63  ;;  %v658_v0 = vmax.f32 %v583_v21, %v1470_v63  ;;  %v655_v7 = vmax.f32 %v580_v52, %v1470_v63  ;;  %v1685_v19 = vmov 0.0  }
  0xaa   : > { %743 = vmatpush1.msra.mxu0 %v667_v40  ;;  %838 = vmatpush1.msra.mxu1 %v669_v18  ;;  %v657_v9 = vmax.f32 %v582_v45, %v1470_v63  ;;  %v652_v10 = vmax.f32 %v577_v5, %v1470_v63  ;;  %v654_v15 = vmax.f32 %v579_v47, %v1470_v63 }
  0xab   : > { %744 = vmatprep.subr.mxu0 %v664_v30  ;;  %839 = vmatprep.subr.mxu1 %v666_v61  ;;  %v651_v35 = vmax.f32 %v576_v36, %v1470_v63  ;;  %v653_v16 = vmax.f32 %v578_v3, %v1470_v63  ;;  %v717_v63 = vld [vmem:[%s1666_s1 + $0x10] sm:$0xff] }
  0xac   : > { %745 = vmatpush1.msra.mxu0 %v663_v58  ;;  %840 = vmatpush1.msra.mxu1 %v665_v37 }
  0xad   : > { %746 = vmatprep.subr.mxu0 %v660_v31  ;;  %841 = vmatprep.subr.mxu1 %v662_v53 }
  0xae   : > { %747 = vmatpush1.msra.mxu0 %v659_v25  ;;  %842 = vmatpush1.msra.mxu1 %v661_v2 }
  0xaf   : > { %748 = vmatprep.subr.mxu0 %v656_v51  ;;  %843 = vmatprep.subr.mxu1 %v658_v0 }
  0xb0   : > { %749 = vmatpush1.msra.mxu0 %v655_v7  ;;  %844 = vmatpush1.msra.mxu1 %v657_v9 }
  0xb1   : > { %750 = vmatprep.subr.mxu0 %v652_v10  ;;  %845 = vmatprep.subr.mxu1 %v654_v15 }
  0xb2   : > { %751 = vmatpush1.msra.mxu0 %v651_v35  ;;  %846 = vmatpush1.msra.mxu1 %v653_v16 }
  0xb3   : > { %785 = vmatmul.mubr.f32.vlgmr.msra.gmra.mxu0 %v715_v17  ;;  %880 = vmatmul.mubr.f32.vlgmr.msra.gmra.mxu1 %v715_v17 }
  0xb4   : > { %790 = vmatprep.mubr.f32.mxu0 %v1685_v19  ;;  %885 = vmatprep.mubr.f32.mxu1 %v1685_v19 }
  0xb7   : > { %791 = vmatmul.mubr.f32.gmra.mxu0 %v716_v22  ;;  %886 = vmatmul.mubr.f32.gmra.mxu1 %v716_v22 }
  0xb8   : > { %796 = vmatprep.mubr.f32.mxu0 %v1685_v19  ;;  %891 = vmatprep.mubr.f32.mxu1 %v1685_v19 }
  0xbb   : > { %797 = vmatmul.mubr.f32.gmra.mxu0 %v717_v63  ;;  %892 = vmatmul.mubr.f32.gmra.mxu1 %v717_v63 }
  0xbc   : > { %802 = vmatprep.mubr.f32.mxu0 %v1685_v19  ;;  %897 = vmatprep.mubr.f32.mxu1 %v1685_v19 }
  0xbf   : > { %803 = vmatmul.mubr.f32.gmra.mxu0 %v718_v24  ;;  %898 = vmatmul.mubr.f32.gmra.mxu1 %v718_v24 }
  0xc0   : > { %808 = vmatprep.mubr.f32.mxu0 %v1685_v19  ;;  %903 = vmatprep.mubr.f32.mxu1 %v1685_v19 }
  0xc3   : > { %809 = vmatmul.mubr.f32.gmra.mxu0 %v719_v28  ;;  %904 = vmatmul.mubr.f32.gmra.mxu1 %v719_v28 }
 0x173   : > { %v786_v27 = vpop.f32.mrf.mxu0  ;;  %v881_v50 = vpop.f32.mrf.mxu1 }
 0x175   : > { %v788_v38 = vpop.f32.mrf.mxu0  ;;  %v883_v39 = vpop.f32.mrf.mxu1 }
 0x176   : > { %v1102_v44 = vpack.c.bf16 %v788_v38, %v786_v27  ;;  %v1103_v42 = vpack.c.bf16 %v883_v39, %v881_v50 }
 0x177   : > { %v792_v48 = vpop.f32.mrf.mxu0  ;;  %v887_v32 = vpop.f32.mrf.mxu1 }
 0x178   : > { %974 = vst [vmem:[%s1644_s9] sm:$0xff] %v1102_v44  ;;  %975 = vst [vmem:[%s1644_s9 + $0x8] sm:$0xff] %v1103_v42 }
 0x179   : > { %v794_v29 = vpop.f32.mrf.mxu0  ;;  %v889_v56 = vpop.f32.mrf.mxu1 }
 0x17a   : > { %v1104_v46 = vpack.c.bf16 %v794_v29, %v792_v48  ;;  %v1105_v34 = vpack.c.bf16 %v889_v56, %v887_v32 }
 0x17b   : > { %v798_v11 = vpop.f32.mrf.mxu0  ;;  %v893_v54 = vpop.f32.mrf.mxu1 }
 0x17c   : > { %976 = vst [vmem:[%s1644_s9 + $0x10] sm:$0xff] %v1104_v46  ;;  %977 = vst [vmem:[%s1644_s9 + $0x18] sm:$0xff] %v1105_v34 }
 0x17d   : > { %v800_v12 = vpop.f32.mrf.mxu0  ;;  %v895_v26 = vpop.f32.mrf.mxu1 }
 0x17e   : > { %v1106_v13 = vpack.c.bf16 %v800_v12, %v798_v11  ;;  %v1107_v23 = vpack.c.bf16 %v895_v26, %v893_v54 }
 0x17f   : > { %v804_v55 = vpop.f32.mrf.mxu0  ;;  %v899_v8 = vpop.f32.mrf.mxu1 }
 0x180   : > { %978 = vst [vmem:[%s1644_s9 + $0x20] sm:$0xff] %v1106_v13  ;;  %979 = vst [vmem:[%s1644_s9 + $0x28] sm:$0xff] %v1107_v23 }
 0x181   : > { %v806_v59 = vpop.f32.mrf.mxu0  ;;  %v901_v43 = vpop.f32.mrf.mxu1 }
 0x182   : > { %v1108_v14 = vpack.c.bf16 %v806_v59, %v804_v55  ;;  %v1109_v33 = vpack.c.bf16 %v901_v43, %v899_v8 }
 0x183   : > { %v810_v6 = vpop.f32.mrf.mxu0  ;;  %v905_v41 = vpop.f32.mrf.mxu1 }
 0x184   : > { %980 = vst [vmem:[%s1644_s9 + $0x30] sm:$0xff] %v1108_v14  ;;  %981 = vst [vmem:[%s1644_s9 + $0x38] sm:$0xff] %v1109_v33 }
 0x185   : > { %v812_v60 = vpop.f32.mrf.mxu0  ;;  %v907_v49 = vpop.f32.mrf.mxu1 }
 0x186   : > { %v1110_v1 = vpack.c.bf16 %v812_v60, %v810_v6  ;;  %v1111_v4 = vpack.c.bf16 %v907_v49, %v905_v41 }
 0x188   : > { %982 = vst [vmem:[%s1644_s9 + $0x40] sm:$0xff] %v1110_v1  ;;  %983 = vst [vmem:[%s1644_s9 + $0x48] sm:$0xff] %v1111_v4 }
 0x189 PF: > { %s13_s14 = sadd.s32 1, %s1290_s14   ;;  %s1686_s12 = smov %s1286_s13 }
 0x18a   : > { %p10_p5 = scmp.ge.s32.totalorder %s13_s14, 4   ;;  %s1687_s13 = smov %s1689_s15 }
 0x18c   :  { %12 = sbr.rel (!%p10_p5) target bundleno = 2 (0x2), region = 65 }

// kernel: tdnn_mfcc_forward.7
= control target key start
LH: loop header
LB: loop body
LE: loop exit
PB: predicated region body
PF: predicated region fallthrough
CT: control target
= control target key end

     0   :  { %s5249_s15 = smov 0   ;;  %s5251_s16 = smov 0   ;;  %s7613_s0 = inlined_call_operand.vmem [shape: bf16[2,400,512], index: 0, kind: input, shape index: {}]   ;;  %s7614_s1 = inlined_call_operand.vmem [shape: bf16[512,400], index: 1, kind: input, shape index: {}]   ;;  %s7615_s2 = inlined_call_operand.vmem [shape: bf16[128,256], index: 2, kind: input, shape index: {}]   ;;  %s7616_s3 = inlined_call_operand.vmem [shape: bf16[2,128,512], index: 3, kind: output, shape index: {0}]   ;;  %s7617_s4 = inlined_call_operand.vmem [shape: f32[2,1,128], index: 4, kind: output, shape index: {1}]  }
   0x1   :  { %s5253_s17 = smov 0  }
   0x2 LB: > { %s27_s18 = sadd.s32 1, %s5217_s16  ;;  %p4283_p0 = scmp.ge.s32.totalorder %s5221_s17, 1  ;;  %s5221_s17 = sphi %s5253_s17, %s15_s17   ;;  %s5217_s16 = sphi %s5251_s16, %s7798_s16   ;;  %s5213_s15 = sphi %s5249_s15, %s7797_s15  }
   0x3   : > { %p29_p1 = scmp.ge.s32.totalorder %s27_s18, 2  ;;  %p186_p2 = scmp.lt.s32.totalorder %s5221_s17, 3 }
   0x5   : > { %s7800_s18 = smov (%p29_p1, %s27_s18), 0  ;;  %p187_p3 = pnand %p4283_p0, %p186_p2 }
   0x7   : > { %190 = sbr.rel (%p187_p3) target bundleno = 1287 (0x507), region = 32 }
   0xc   : > { %p224_p4 = scmp.lt.s32.totalorder %s5213_s15, 1  ;;  %vm1583_vm0 = vcmask 130048   ;;  %v4796_v0 = vld [vmem:[%s7614_s1 + $0xc] ss:$16 sps:$4 sm:$0xff]   ;;  %v4802_v1 = vld [vmem:[%s7614_s1 + $0x4] ss:$16 sps:$4 sm:$0xff]  }
   0xd   : > { %4515 = vmatprep.mubr.msk.bf16.mxu1 %vm1583_vm0, %v4796_v0  ;;  %1712 = vmatprep.mubr.bf16.mxu0 %v4802_v1  ;;  %v4794_v43 = vld [vmem:[%s7614_s1 + $0x8] ss:$16 sps:$4 sm:$0xff]   ;;  %v4803_v45 = vld [vmem:[%s7614_s1 + $0x2c] ss:$16 sps:$4 sm:$0xff]   ;;  %v4800_v58 = vld [vmem:[%s7614_s1] ss:$16 sps:$4 sm:$0xff]  }
   0xe   : > { %s7802_s15 = smov (!%p224_p4, %s5213_s15), 1  ;;  %v4805_v49 = vld [vmem:[%s7614_s1 + $0x28] ss:$16 sps:$4 sm:$0xff]   ;;  %v4809_v51 = vld [vmem:[%s7614_s1 + $0x4c] ss:$16 sps:$4 sm:$0xff]  }
   0xf   : > { %s4694_s23 = smul.u32 800, %s7802_s15  ;;  %v4811_v55 = vld [vmem:[%s7614_s1 + $0x48] ss:$16 sps:$4 sm:$0xff]   ;;  %v4815_v57 = vld [vmem:[%s7614_s1 + $0x6c] ss:$16 sps:$4 sm:$0xff]   ;;  %s4629_s27 = sshll.u32 %s7802_s15, 8 }
  0x10   : > { %v4806_v59 = vld [vmem:[%s7614_s1 + $0x24] ss:$16 sps:$4 sm:$0xff]   ;;  %v4817_v60 = vld [vmem:[%s7614_s1 + $0x68] ss:$16 sps:$4 sm:$0xff]   ;;  %v4821_v61 = vld [vmem:[%s7614_s1 + $0x8c] ss:$16 sps:$4 sm:$0xff]   ;;  %s7501_s30 = scalar_lea.vmem %s7616_s3, %s4629_s27  ;;  %s245_s13 = scalar_lea.vmem %s7617_s4, %s7802_s15 }
  0x11   : > { %s5280_s26 = scalar_lea.vmem %s7613_s0, %s4694_s23  ;;  %v4808_v62 = vld [vmem:[%s7614_s1 + $0x20] ss:$16 sps:$4 sm:$0xff]   ;;  %v4812_v63 = vld [vmem:[%s7614_s1 + $0x44] ss:$16 sps:$4 sm:$0xff]   ;;  %v4823_v0 = vld [vmem:[%s7614_s1 + $0x88] ss:$16 sps:$4 sm:$0xff]  }
  0x12   : > { %v4722_v2 = vld [vmem:[%s5280_s26 + $0xe4] ss:$16 sps:$4 sm:$0xff]   ;;  %v4724_v3 = vld [vmem:[%s5280_s26 + $0xe0] ss:$16 sps:$4 sm:$0xff]   ;;  %v4827_v1 = vld [vmem:[%s7614_s1 + $0xac] ss:$16 sps:$4 sm:$0xff]  }
  0x13   : > { %1680 = vmatprep.subr.bf16.mxu0 %v4722_v2  ;;  %v4725_v4 = vld [vmem:[%s5280_s26 + $0xc4] ss:$16 sps:$4 sm:$0xff]   ;;  %v4727_v5 = vld [vmem:[%s5280_s26 + $0xc0] ss:$16 sps:$4 sm:$0xff]  }
  0x14   : > { %1681 = vmatpush1.bf16.msra.mxu0 %v4724_v3  ;;  %v4728_v6 = vld [vmem:[%s5280_s26 + $0xa4] ss:$16 sps:$4 sm:$0xff]   ;;  %v4730_v7 = vld [vmem:[%s5280_s26 + $0xa0] ss:$16 sps:$4 sm:$0xff]  }
  0x15   : > { %1682 = vmatprep.subr.bf16.mxu0 %v4725_v4  ;;  %v4731_v8 = vld [vmem:[%s5280_s26 + $0x84] ss:$16 sps:$4 sm:$0xff]   ;;  %v4742_v10 = vld [vmem:[%s5280_s26 + $0x2e0] ss:$16 sps:$4 sm:$0xff]   ;;  %v4829_v4 = vld [vmem:[%s7614_s1 + $0xa8] ss:$16 sps:$4 sm:$0xff]  }
  0x16   : > { %v4740_v9 = vld [vmem:[%s5280_s26 + $0x2e4] ss:$16 sps:$4 sm:$0xff]   ;;  %v4733_v11 = vld [vmem:[%s5280_s26 + $0x80] ss:$16 sps:$4 sm:$0xff]  }
  0x17   : > { %2033 = vmatprep.subr.bf16.mxu1 %v4740_v9  ;;  %v4746_v12 = vld [vmem:[%s5280_s26 + $0x2c4] ss:$16 sps:$4 sm:$0xff]   ;;  %v4748_v13 = vld [vmem:[%s5280_s26 + $0x2c0] ss:$16 sps:$4 sm:$0xff]   ;;  %v4839_v9 = vld [vmem:[%s7614_s1 + $0xec] ss:$16 sps:$4 sm:$0xff]  }
  0x18   : > { %1683 = vmatpush1.bf16.msra.mxu0 %v4727_v5  ;;  %2034 = vmatpush1.bf16.msra.mxu1 %v4742_v10  ;;  %v4734_v14 = vld [vmem:[%s5280_s26 + $0x64] ss:$16 sps:$4 sm:$0xff]   ;;  %v4736_v15 = vld [vmem:[%s5280_s26 + $0x60] ss:$16 sps:$4 sm:$0xff]   ;;  %v4833_v5 = vld [vmem:[%s7614_s1 + $0xcc] ss:$16 sps:$4 sm:$0xff]  }
  0x19   : > { %1684 = vmatprep.subr.bf16.mxu0 %v4728_v6  ;;  %2035 = vmatprep.subr.bf16.mxu1 %v4746_v12  ;;  %v4752_v16 = vld [vmem:[%s5280_s26 + $0x2a4] ss:$16 sps:$4 sm:$0xff]   ;;  %v4754_v18 = vld [vmem:[%s5280_s26 + $0x2a0] ss:$16 sps:$4 sm:$0xff]   ;;  %v4841_v12 = vld [vmem:[%s7614_s1 + $0xe8] ss:$16 sps:$4 sm:$0xff]  }
  0x1a   : > { %v4737_v17 = vld [vmem:[%s5280_s26 + $0x44] ss:$16 sps:$4 sm:$0xff]   ;;  %v4739_v20 = vld [vmem:[%s5280_s26 + $0x40] ss:$16 sps:$4 sm:$0xff]  }
  0x1b   : > { %v4758_v19 = vld [vmem:[%s5280_s26 + $0x284] ss:$16 sps:$4 sm:$0xff]   ;;  %v4760_v22 = vld [vmem:[%s5280_s26 + $0x280] ss:$16 sps:$4 sm:$0xff]  }
  0x1c   : > { %1685 = vmatpush1.bf16.msra.mxu0 %v4730_v7  ;;  %2036 = vmatpush1.bf16.msra.mxu1 %v4748_v13  ;;  %v4743_v21 = vld [vmem:[%s5280_s26 + $0x24] ss:$16 sps:$4 sm:$0xff]   ;;  %v4745_v24 = vld [vmem:[%s5280_s26 + $0x20] ss:$16 sps:$4 sm:$0xff]   ;;  %v4923_v13 = vld [vmem:[%s5280_s26 + $0xe8] ss:$16 sps:$4 sm:$0xff]  }
  0x1d   : > { %1686 = vmatprep.subr.bf16.mxu0 %v4731_v8  ;;  %2037 = vmatprep.subr.bf16.mxu1 %v4752_v16  ;;  %v4764_v23 = vld [vmem:[%s5280_s26 + $0x264] ss:$16 sps:$4 sm:$0xff]   ;;  %v4766_v26 = vld [vmem:[%s5280_s26 + $0x260] ss:$16 sps:$4 sm:$0xff]   ;;  %v4835_v8 = vld [vmem:[%s7614_s1 + $0xc8] ss:$16 sps:$4 sm:$0xff]  }
  0x1e   : > { %v4749_v25 = vld [vmem:[%s5280_s26 + $0x4] ss:$16 sps:$4 sm:$0xff]   ;;  %v4751_v28 = vld [vmem:[%s5280_s26] ss:$16 sps:$4 sm:$0xff]   ;;  %v4845_v16 = vld [vmem:[%s7614_s1 + $0x10c] ss:$16 sps:$4 sm:$0xff]  }
  0x1f   : > { %v4770_v27 = vld [vmem:[%s5280_s26 + $0x244] ss:$16 sps:$4 sm:$0xff]   ;;  %v4772_v30 = vld [vmem:[%s5280_s26 + $0x240] ss:$16 sps:$4 sm:$0xff]  }
  0x20   : > { %1687 = vmatpush1.bf16.msra.mxu0 %v4733_v11  ;;  %2038 = vmatpush1.bf16.msra.mxu1 %v4754_v18  ;;  %v4755_v29 = vld [vmem:[%s5280_s26 + $0x1e4] ss:$16 sps:$4 sm:$0xff]   ;;  %v4757_v32 = vld [vmem:[%s5280_s26 + $0x1e0] ss:$16 sps:$4 sm:$0xff]  }
  0x21   : > { %1688 = vmatprep.subr.bf16.mxu0 %v4734_v14  ;;  %2039 = vmatprep.subr.bf16.mxu1 %v4758_v19  ;;  %v4776_v31 = vld [vmem:[%s5280_s26 + $0x224] ss:$16 sps:$4 sm:$0xff]   ;;  %v4778_v34 = vld [vmem:[%s5280_s26 + $0x220] ss:$16 sps:$4 sm:$0xff]   ;;  %v4925_v14 = vld [vmem:[%s5280_s26 + $0xec] ss:$16 sps:$4 sm:$0xff]  }
  0x22   : > { %v4761_v33 = vld [vmem:[%s5280_s26 + $0x1c4] ss:$16 sps:$4 sm:$0xff]   ;;  %v4763_v36 = vld [vmem:[%s5280_s26 + $0x1c0] ss:$16 sps:$4 sm:$0xff]  }
  0x23   : > { %v4782_v35 = vld [vmem:[%s5280_s26 + $0x204] ss:$16 sps:$4 sm:$0xff]   ;;  %v4784_v37 = vld [vmem:[%s5280_s26 + $0x200] ss:$16 sps:$4 sm:$0xff]  }
  0x24   : > { %1689 = vmatpush1.bf16.msra.mxu0 %v4736_v15  ;;  %2040 = vmatpush1.bf16.msra.mxu1 %v4760_v22  ;;  %v4767_v38 = vld [vmem:[%s5280_s26 + $0x1a4] ss:$16 sps:$4 sm:$0xff]   ;;  %v4769_v40 = vld [vmem:[%s5280_s26 + $0x1a0] ss:$16 sps:$4 sm:$0xff]   ;;  %v4926_v15 = vld [vmem:[%s5280_s26 + $0x2e8] ss:$16 sps:$4 sm:$0xff]  }
  0x25   : > { %1690 = vmatprep.subr.bf16.mxu0 %v4737_v17  ;;  %2041 = vmatprep.subr.bf16.mxu1 %v4764_v23  ;;  %v4788_v39 = vld [vmem:[%s5280_s26 + $0x304] ss:$16 sps:$4 sm:$0xff]   ;;  %v4790_v41 = vld [vmem:[%s5280_s26 + $0x300] ss:$16 sps:$4 sm:$0xff]   ;;  %v4928_v17 = vld [vmem:[%s5280_s26 + $0x2ec] ss:$16 sps:$4 sm:$0xff]  }
  0x26   : > { %v4773_v42 = vld [vmem:[%s5280_s26 + $0x184] ss:$16 sps:$4 sm:$0xff]   ;;  %v4775_v44 = vld [vmem:[%s5280_s26 + $0x180] ss:$16 sps:$4 sm:$0xff]  }
  0x27   : > { %v4779_v46 = vld [vmem:[%s5280_s26 + $0x164] ss:$16 sps:$4 sm:$0xff]   ;;  %v4781_v47 = vld [vmem:[%s5280_s26 + $0x160] ss:$16 sps:$4 sm:$0xff]  }
  0x28   : > { %1691 = vmatpush1.bf16.msra.mxu0 %v4739_v20  ;;  %2042 = vmatpush1.bf16.msra.mxu1 %v4766_v26  ;;  %v4785_v48 = vld [vmem:[%s5280_s26 + $0x144] ss:$16 sps:$4 sm:$0xff]   ;;  %v4787_v50 = vld [vmem:[%s5280_s26 + $0x140] ss:$16 sps:$4 sm:$0xff]   ;;  %v4847_v20 = vld [vmem:[%s7614_s1 + $0x108] ss:$16 sps:$4 sm:$0xff]  }
  0x29   : > { %1692 = vmatprep.subr.bf16.mxu0 %v4743_v21  ;;  %2043 = vmatprep.subr.bf16.mxu1 %v4770_v27  ;;  %v4791_v52 = vld [vmem:[%s5280_s26 + $0x124] ss:$16 sps:$4 sm:$0xff]   ;;  %v4793_v53 = vld [vmem:[%s5280_s26 + $0x120] ss:$16 sps:$4 sm:$0xff]   ;;  %v4851_v21 = vld [vmem:[%s7614_s1 + $0x12c] ss:$16 sps:$4 sm:$0xff]  }
  0x2a   : > { %v4797_v54 = vld [vmem:[%s5280_s26 + $0x104] ss:$16 sps:$4 sm:$0xff]   ;;  %v4799_v56 = vld [vmem:[%s5280_s26 + $0x100] ss:$16 sps:$4 sm:$0xff]   ;;  %v4943_v26 = vld [vmem:[%s5280_s26 + $0xcc] ss:$16 sps:$4 sm:$0xff]  }
  0x2b   : > { %v4814_v2 = vld [vmem:[%s7614_s1 + $0x40] ss:$16 sps:$4 sm:$0xff]   ;;  %v4818_v3 = vld [vmem:[%s7614_s1 + $0x64] ss:$16 sps:$4 sm:$0xff]   ;;  %v4857_v27 = vld [vmem:[%s7614_s1 + $0x14c] ss:$16 sps:$4 sm:$0xff]  }
  0x2c   : > { %1693 = vmatpush1.bf16.msra.mxu0 %v4745_v24  ;;  %2044 = vmatpush1.bf16.msra.mxu1 %v4772_v30  ;;  %v4820_v6 = vld [vmem:[%s7614_s1 + $0x60] ss:$16 sps:$4 sm:$0xff]   ;;  %v4824_v7 = vld [vmem:[%s7614_s1 + $0x84] ss:$16 sps:$4 sm:$0xff]   ;;  %v4853_v24 = vld [vmem:[%s7614_s1 + $0x128] ss:$16 sps:$4 sm:$0xff]  }
  0x2d   : > { %1694 = vmatprep.subr.bf16.mxu0 %v4749_v25  ;;  %2045 = vmatprep.subr.bf16.mxu1 %v4776_v31  ;;  %v4826_v10 = vld [vmem:[%s7614_s1 + $0x80] ss:$16 sps:$4 sm:$0xff]   ;;  %v4830_v11 = vld [vmem:[%s7614_s1 + $0xa4] ss:$16 sps:$4 sm:$0xff]   ;;  %v4941_v25 = vld [vmem:[%s5280_s26 + $0xc8] ss:$16 sps:$4 sm:$0xff]  }
  0x2e   : > { %v4832_v18 = vld [vmem:[%s7614_s1 + $0xa0] ss:$16 sps:$4 sm:$0xff]   ;;  %v4836_v19 = vld [vmem:[%s7614_s1 + $0xc4] ss:$16 sps:$4 sm:$0xff]   ;;  %v4859_v30 = vld [vmem:[%s7614_s1 + $0x148] ss:$16 sps:$4 sm:$0xff]  }
  0x2f   : > { %v5437_v22 = vld [vmem:[%s7614_s1 + $0xc0] ss:$16 sps:$4 sm:$0xff]   ;;  %v5442_v23 = vld [vmem:[%s7614_s1 + $0xe4] ss:$16 sps:$4 sm:$0xff]   ;;  %v4953_v31 = vld [vmem:[%s5280_s26 + $0x2c8] ss:$16 sps:$4 sm:$0xff]  }
  0x30   : > { %1695 = vmatpush1.bf16.msra.mxu0 %v4751_v28  ;;  %2046 = vmatpush1.bf16.msra.mxu1 %v4778_v34  ;;  %v5458_v28 = vld [vmem:[%s7614_s1 + $0xe0] ss:$16 sps:$4 sm:$0xff]  }
  0x31   : > { %1696 = vmatprep.subr.bf16.mxu0 %v4755_v29  ;;  %2047 = vmatprep.subr.bf16.mxu1 %v4782_v35  ;;  %v5463_v29 = vld [vmem:[%s7614_s1 + $0x104] ss:$16 sps:$4 sm:$0xff]   ;;  %v5479_v34 = vld [vmem:[%s7614_s1 + $0x100] ss:$16 sps:$4 sm:$0xff]  }
  0x32   : > { %v5484_v35 = vld [vmem:[%s7614_s1 + $0x124] ss:$16 sps:$4 sm:$0xff]  }
  0x34   : > { %1697 = vmatpush2.bf16.msra.mxu0 %v4757_v32  ;;  %2048 = vmatpush1.bf16.msra.mxu1 %v4784_v37  ;;  %v4955_v32 = vld [vmem:[%s5280_s26 + $0x2cc] ss:$16 sps:$4 sm:$0xff]  }
  0x35   : > { %1698 = vmatprep.subr.bf16.mxu0 %v4761_v33  ;;  %2063 = vmatprep.subr.bf16.mxu1 %v4788_v39  ;;  %v4863_v33 = vld [vmem:[%s7614_s1 + $0x16c] ss:$16 sps:$4 sm:$0xff]   ;;  %v4959_v39 = vld [vmem:[%s5280_s26 + $0xa8] ss:$16 sps:$4 sm:$0xff]  }
  0x36   : > { %v4961_v37 = vld [vmem:[%s5280_s26 + $0xac] ss:$16 sps:$4 sm:$0xff]  }
  0x38   : > { %1699 = vmatpush2.bf16.msra.mxu0 %v4763_v36  ;;  %2064 = vmatpush2.bf16.msra.mxu1 %v4790_v41  ;;  %v4865_v36 = vld [vmem:[%s7614_s1 + $0x168] ss:$16 sps:$4 sm:$0xff]   ;;  %v4967_v41 = vld [vmem:[%s5280_s26 + $0x8c] ss:$16 sps:$4 sm:$0xff]  }
  0x39   : > { %1700 = vmatprep.subr.bf16.mxu0 %v4767_v38  ;;  %2386 = vmatprep.subr.bf16.mxu1 %v4925_v14  ;;  %v4869_v38 = vld [vmem:[%s7614_s1 + $0x18c] ss:$16 sps:$4 sm:$0xff]  }
  0x3a   : > { %v5024_v14 = vld [vmem:[%s5280_s26 + $0x28c] ss:$16 sps:$4 sm:$0xff]  }
  0x3b   : > { %2066 = vmatmul.mubr.bf16.vlgmr.msra.gmra.mxu1 %v4794_v43  ;;  %v4965_v43 = vld [vmem:[%s5280_s26 + $0x88] ss:$16 sps:$4 sm:$0xff]  }
  0x3c   : > { %1701 = vmatpush2.bf16.msra.mxu0 %v4769_v40  ;;  %4516 = vmatprep.mubr.msk.bf16.mxu1 %vm1583_vm0, %v4803_v45  ;;  %v5500_v40 = vld [vmem:[%s7614_s1 + $0x120] ss:$16 sps:$4 sm:$0xff]   ;;  %v4976_v45 = vld [vmem:[%s5280_s26 + $0x6c] ss:$16 sps:$4 sm:$0xff]  }
  0x3d   : > { %1702 = vmatprep.subr.bf16.mxu0 %v4773_v42  ;;  %2387 = vmatpush1.bf16.msra.mxu1 %v4923_v13  ;;  %v5506_v42 = vld [vmem:[%s7614_s1 + $0x144] ss:$16 sps:$4 sm:$0xff]   ;;  %v5016_v13 = vld [vmem:[%s5280_s26 + $0x188] ss:$16 sps:$4 sm:$0xff]  }
  0x3e   : > { %2388 = vmatprep.subr.bf16.mxu1 %v4943_v26  ;;  %v5627_v26 = vld [vmem:[%s7614_s1 + $0x1e4] ss:$16 sps:$4 sm:$0xff]  }
  0x40   : > { %1703 = vmatpush2.bf16.msra.mxu0 %v4775_v44  ;;  %v4871_v44 = vld [vmem:[%s7614_s1 + $0x188] ss:$16 sps:$4 sm:$0xff]  }
  0x41   : > { %1704 = vmatprep.subr.bf16.mxu0 %v4779_v46  ;;  %2389 = vmatpush1.bf16.msra.mxu1 %v4941_v25  ;;  %v4875_v46 = vld [vmem:[%s7614_s1 + $0x1ac] ss:$16 sps:$4 sm:$0xff]  }
  0x42   : > { %2390 = vmatprep.subr.bf16.mxu1 %v4961_v37  ;;  %v5036_v25 = vld [vmem:[%s5280_s26 + $0x14c] ss:$16 sps:$4 sm:$0xff]   ;;  %v5046_v37 = vld [vmem:[%s5280_s26 + $0x128] ss:$16 sps:$4 sm:$0xff]  }
  0x43   : > { %2076 = vmatmul.mubr.bf16.gmra.mxu1 %v4805_v49  ;;  %v4979_v49 = vld [vmem:[%s5280_s26 + $0x4c] ss:$16 sps:$4 sm:$0xff]  }
  0x44   : > { %1705 = vmatpush2.bf16.msra.mxu0 %v4781_v47  ;;  %4517 = vmatprep.mubr.msk.bf16.mxu1 %vm1583_vm0, %v4809_v51  ;;  %v4974_v47 = vld [vmem:[%s5280_s26 + $0x68] ss:$16 sps:$4 sm:$0xff]  }
  0x45   : > { %1706 = vmatprep.subr.bf16.mxu0 %v4785_v48  ;;  %2391 = vmatpush1.bf16.msra.mxu1 %v4959_v39  ;;  %v5523_v48 = vld [vmem:[%s7614_s1 + $0x140] ss:$16 sps:$4 sm:$0xff]   ;;  %v4977_v51 = vld [vmem:[%s5280_s26 + $0x48] ss:$16 sps:$4 sm:$0xff]  }
  0x46   : > { %2392 = vmatprep.subr.bf16.mxu1 %v4967_v41  ;;  %v5049_v39 = vld [vmem:[%s5280_s26 + $0x228] ss:$16 sps:$4 sm:$0xff]   ;;  %v5648_v41 = vld [vmem:[%s7614_s1 + $0x1e0] ss:$16 sps:$4 sm:$0xff]  }
  0x48   : > { %1707 = vmatpush2.bf16.msra.mxu0 %v4787_v50  ;;  %v5529_v50 = vld [vmem:[%s7614_s1 + $0x164] ss:$16 sps:$4 sm:$0xff]  }
  0x49   : > { %1708 = vmatprep.subr.bf16.mxu0 %v4791_v52  ;;  %2393 = vmatpush1.bf16.msra.mxu1 %v4965_v43  ;;  %v4877_v52 = vld [vmem:[%s7614_s1 + $0x1a8] ss:$16 sps:$4 sm:$0xff]   ;;  %v5054_v43 = vld [vmem:[%s5280_s26 + $0x10c] ss:$16 sps:$4 sm:$0xff]  }
  0x4a   : > { %2394 = vmatprep.subr.bf16.mxu1 %v4976_v45  ;;  %v5052_v45 = vld [vmem:[%s5280_s26 + $0x108] ss:$16 sps:$4 sm:$0xff]  }
  0x4b   : > { %2086 = vmatmul.mubr.bf16.gmra.mxu1 %v4811_v55  ;;  %v4986_v55 = vld [vmem:[%s5280_s26 + $0x28] ss:$16 sps:$4 sm:$0xff]  }
  0x4c   : > { %1709 = vmatpush2.bf16.msra.mxu0 %v4793_v53  ;;  %4518 = vmatprep.mubr.msk.bf16.mxu1 %vm1583_vm0, %v4815_v57  ;;  %v4988_v53 = vld [vmem:[%s5280_s26 + $0x2c] ss:$16 sps:$4 sm:$0xff]  }
  0x4d   : > { %1710 = vmatprep.subr.bf16.mxu0 %v4797_v54  ;;  %2395 = vmatpush1.bf16.msra.mxu1 %v4974_v47  ;;  %v4881_v54 = vld [vmem:[%s7614_s1 + $0x1cc] ss:$16 sps:$4 sm:$0xff]   ;;  %v5058_v47 = vld [vmem:[%s5280_s26 + $0x208] ss:$16 sps:$4 sm:$0xff]  }
  0x4e   : > { %2396 = vmatprep.subr.bf16.mxu1 %v4979_v49  ;;  %v4991_v57 = vld [vmem:[%s5280_s26 + $0xc] ss:$16 sps:$4 sm:$0xff]   ;;  %v4907_v49 = vld [vmem:[%s7614_s1 + $0x248] ss:$16 sps:$4 sm:$0xff]  }
  0x50   : > { %1711 = vmatpush2.bf16.msra.mxu0 %v4799_v56  ;;  %v5546_v56 = vld [vmem:[%s7614_s1 + $0x160] ss:$16 sps:$4 sm:$0xff]  }
  0x51   : > { %2739 = vmatprep.subr.bf16.mxu0 %v4928_v17  ;;  %2397 = vmatpush1.bf16.msra.mxu1 %v4977_v51  ;;  %v5030_v17 = vld [vmem:[%s5280_s26 + $0x16c] ss:$16 sps:$4 sm:$0xff]  }
  0x52   : > { %2398 = vmatprep.subr.bf16.mxu1 %v4988_v53  ;;  %v4911_v51 = vld [vmem:[%s7614_s1 + $0x26c] ss:$16 sps:$4 sm:$0xff]   ;;  %v5061_v53 = vld [vmem:[%s5280_s26 + $0x308] ss:$16 sps:$4 sm:$0xff]  }
  0x53   : > { %1713 = vmatmul.mubr.bf16.vlgmr.msra.gmra.mxu0 %v4800_v58  ;;  %2096 = vmatmul.mubr.bf16.gmra.mxu1 %v4817_v60  ;;  %v5552_v58 = vld [vmem:[%s7614_s1 + $0x184] ss:$16 sps:$4 sm:$0xff]   ;;  %v4883_v60 = vld [vmem:[%s7614_s1 + $0x1c8] ss:$16 sps:$4 sm:$0xff]  }
  0x54   : > { %1722 = vmatprep.mubr.bf16.mxu0 %v4806_v59  ;;  %4519 = vmatprep.mubr.msk.bf16.mxu1 %vm1583_vm0, %v4821_v61  ;;  %v4989_v59 = vld [vmem:[%s5280_s26 + $0x8] ss:$16 sps:$4 sm:$0xff]   ;;  %v5003_v61 = vld [vmem:[%s5280_s26 + $0x1ec] ss:$16 sps:$4 sm:$0xff]  }
  0x55   : > { %2740 = vmatpush1.bf16.msra.mxu0 %v4926_v15  ;;  %2399 = vmatpush1.bf16.msra.mxu1 %v4986_v55  ;;  %v5022_v15 = vld [vmem:[%s5280_s26 + $0x288] ss:$16 sps:$4 sm:$0xff]   ;;  %v4902_v55 = vld [vmem:[%s7614_s1 + $0x224] ss:$16 sps:$4 sm:$0xff]  }
  0x56   : > { %2741 = vmatprep.subr.bf16.mxu0 %v4955_v32  ;;  %2400 = vmatprep.subr.bf16.mxu1 %v4991_v57  ;;  %v4901_v32 = vld [vmem:[%s7614_s1 + $0x228] ss:$16 sps:$4 sm:$0xff]  }
  0x57   : > { %v4913_v57 = vld [vmem:[%s7614_s1 + $0x268] ss:$16 sps:$4 sm:$0xff]  }
  0x59   : > { %2742 = vmatpush1.bf16.msra.mxu0 %v4953_v31  ;;  %2401 = vmatpush1.bf16.msra.mxu1 %v4989_v59  ;;  %v5040_v31 = vld [vmem:[%s5280_s26 + $0x248] ss:$16 sps:$4 sm:$0xff]   ;;  %v4917_v59 = vld [vmem:[%s7614_s1 + $0x28c] ss:$16 sps:$4 sm:$0xff]  }
  0x5a   : > { %2402 = vmatprep.subr.bf16.mxu1 %v5003_v61  ;;  %v4908_v61 = vld [vmem:[%s7614_s1 + $0x244] ss:$16 sps:$4 sm:$0xff]  }
  0x5b   : > { %1723 = vmatmul.mubr.bf16.gmra.mxu0 %v4808_v62  ;;  %2106 = vmatmul.mubr.bf16.gmra.mxu1 %v4823_v0  ;;  %v4887_v62 = vld [vmem:[%s7614_s1 + $0x1ec] ss:$16 sps:$4 sm:$0xff]   ;;  %v4997_v0 = vld [vmem:[%s5280_s26 + $0x2a8] ss:$16 sps:$4 sm:$0xff]  }
  0x5c   : > { %1732 = vmatprep.mubr.bf16.mxu0 %v4812_v63  ;;  %4520 = vmatprep.mubr.msk.bf16.mxu1 %vm1583_vm0, %v4827_v1  ;;  %v5001_v63 = vld [vmem:[%s5280_s26 + $0x1e8] ss:$16 sps:$4 sm:$0xff]   ;;  %v4999_v1 = vld [vmem:[%s5280_s26 + $0x2ac] ss:$16 sps:$4 sm:$0xff]  }
  0x5d   : > { %2403 = vmatpush2.bf16.msra.mxu1 %v5001_v63  ;;  %2743 = vmatprep.subr.bf16.mxu0 %v4999_v1  ;;  %v4929_v63 = vld [vmem:[%s7614_s1 + $0x2ac] ss:$16 sps:$4 sm:$0xff]   ;;  %v4914_v1 = vld [vmem:[%s7614_s1 + $0x264] ss:$16 sps:$4 sm:$0xff]  }
  0x5e   : > { %2744 = vmatpush1.bf16.msra.mxu0 %v4997_v0  ;;  %v4910_v0 = vld [vmem:[%s7614_s1 + $0x240] ss:$16 sps:$4 sm:$0xff]  }
  0x5f   : > { %2745 = vmatprep.subr.bf16.mxu0 %v5024_v14  ;;  %v4946_v14 = vld [vmem:[%s7614_s1 + $0x2e8] ss:$16 sps:$4 sm:$0xff]  }
  0x62   : > { %2746 = vmatpush1.bf16.msra.mxu0 %v5022_v15  ;;  %v4950_v15 = vld [vmem:[%s7614_s1 + $0x30c] ss:$16 sps:$4 sm:$0xff]  }
  0x63   : > { %1733 = vmatmul.mubr.bf16.gmra.mxu0 %v4814_v2  ;;  %2116 = vmatmul.mubr.bf16.gmra.mxu1 %v4829_v4  ;;  %v5571_v2 = vld [vmem:[%s7614_s1 + $0x180] ss:$16 sps:$4 sm:$0xff]   ;;  %v5577_v4 = vld [vmem:[%s7614_s1 + $0x1a4] ss:$16 sps:$4 sm:$0xff]  }
  0x64   : > { %1742 = vmatprep.mubr.bf16.mxu0 %v4818_v3  ;;  %4521 = vmatprep.mubr.msk.bf16.mxu1 %vm1583_vm0, %v4833_v5  ;;  %v5006_v3 = vld [vmem:[%s5280_s26 + $0x1cc] ss:$16 sps:$4 sm:$0xff]   ;;  %v5004_v5 = vld [vmem:[%s5280_s26 + $0x1c8] ss:$16 sps:$4 sm:$0xff]  }
  0x65   : > { %2404 = vmatprep.subr.bf16.mxu1 %v5006_v3  ;;  %v4931_v3 = vld [vmem:[%s7614_s1 + $0x2a8] ss:$16 sps:$4 sm:$0xff]  }
  0x66   : > { %2405 = vmatpush2.bf16.msra.mxu1 %v5004_v5  ;;  %v4935_v5 = vld [vmem:[%s7614_s1 + $0x2cc] ss:$16 sps:$4 sm:$0xff]  }
  0x6b   : > { %1743 = vmatmul.mubr.bf16.gmra.mxu0 %v4820_v6  ;;  %2126 = vmatmul.mubr.bf16.gmra.mxu1 %v4835_v8  ;;  %v4889_v6 = vld [vmem:[%s7614_s1 + $0x1e8] ss:$16 sps:$4 sm:$0xff]   ;;  %v4893_v8 = vld [vmem:[%s7614_s1 + $0x20c] ss:$16 sps:$4 sm:$0xff]  }
  0x6c   : > { %1752 = vmatprep.mubr.bf16.mxu0 %v4824_v7  ;;  %4522 = vmatprep.mubr.msk.bf16.mxu1 %vm1583_vm0, %v4839_v9  ;;  %v5015_v7 = vld [vmem:[%s5280_s26 + $0x1ac] ss:$16 sps:$4 sm:$0xff]   ;;  %v5013_v9 = vld [vmem:[%s5280_s26 + $0x1a8] ss:$16 sps:$4 sm:$0xff]  }
  0x6d   : > { %2406 = vmatprep.subr.bf16.mxu1 %v5015_v7  ;;  %v4920_v7 = vld [vmem:[%s7614_s1 + $0x284] ss:$16 sps:$4 sm:$0xff]  }
  0x6e   : > { %2407 = vmatpush2.bf16.msra.mxu1 %v5013_v9  ;;  %v4944_v9 = vld [vmem:[%s7614_s1 + $0x2ec] ss:$16 sps:$4 sm:$0xff]  }
  0x73   : > { %1753 = vmatmul.mubr.bf16.gmra.mxu0 %v4826_v10  ;;  %2136 = vmatmul.mubr.bf16.gmra.mxu1 %v4841_v12  ;;  %v5594_v10 = vld [vmem:[%s7614_s1 + $0x1a0] ss:$16 sps:$4 sm:$0xff]   ;;  %v5600_v12 = vld [vmem:[%s7614_s1 + $0x1c4] ss:$16 sps:$4 sm:$0xff]  }
  0x74   : > { %1762 = vmatprep.mubr.bf16.mxu0 %v4830_v11  ;;  %4523 = vmatprep.mubr.msk.bf16.mxu1 %vm1583_vm0, %v4845_v16  ;;  %v5018_v11 = vld [vmem:[%s5280_s26 + $0x18c] ss:$16 sps:$4 sm:$0xff]   ;;  %v4895_v16 = vld [vmem:[%s7614_s1 + $0x208] ss:$16 sps:$4 sm:$0xff]  }
  0x75   : > { %2408 = vmatprep.subr.bf16.mxu1 %v5018_v11  ;;  %v4922_v11 = vld [vmem:[%s7614_s1 + $0x280] ss:$16 sps:$4 sm:$0xff]  }
  0x76   : > { %2409 = vmatpush2.bf16.msra.mxu1 %v5016_v13  ;;  %v4932_v13 = vld [vmem:[%s7614_s1 + $0x2a4] ss:$16 sps:$4 sm:$0xff]  }
  0x77   : > { %2410 = vmatprep.subr.bf16.mxu1 %v5030_v17  ;;  %v4938_v17 = vld [vmem:[%s7614_s1 + $0x2c4] ss:$16 sps:$4 sm:$0xff]  }
  0x7b   : > { %1763 = vmatmul.mubr.bf16.gmra.mxu0 %v4832_v18  ;;  %2146 = vmatmul.mubr.bf16.gmra.mxu1 %v4847_v20  ;;  %v4899_v18 = vld [vmem:[%s7614_s1 + $0x22c] ss:$16 sps:$4 sm:$0xff]  }
  0x7c   : > { %1772 = vmatprep.mubr.bf16.mxu0 %v4836_v19  ;;  %4524 = vmatprep.mubr.msk.bf16.mxu1 %vm1583_vm0, %v4851_v21  ;;  %v5028_v19 = vld [vmem:[%s5280_s26 + $0x168] ss:$16 sps:$4 sm:$0xff]   ;;  %v5033_v20 = vld [vmem:[%s5280_s26 + $0x26c] ss:$16 sps:$4 sm:$0xff]  }
  0x7d   : > { %2411 = vmatpush2.bf16.msra.mxu1 %v5028_v19  ;;  %v5031_v21 = vld [vmem:[%s5280_s26 + $0x268] ss:$16 sps:$4 sm:$0xff]   ;;  %2747 = vmatprep.subr.bf16.mxu0 %v5033_v20  ;;  %v4962_v19 = vld [vmem:[%s7614_s1 + $0x32c] ss:$16 sps:$4 sm:$0xff]   ;;  %v4940_v20 = vld [vmem:[%s7614_s1 + $0x2c0] ss:$16 sps:$4 sm:$0xff]  }
  0x7e   : > { %2748 = vmatpush1.bf16.msra.mxu0 %v5031_v21  ;;  %2412 = vmatprep.subr.bf16.mxu1 %v5036_v25  ;;  %v4947_v25 = vld [vmem:[%s7614_s1 + $0x2e4] ss:$16 sps:$4 sm:$0xff]  }
  0x83   : > { %1773 = vmatmul.mubr.bf16.gmra.mxu0 %v5437_v22  ;;  %2156 = vmatmul.mubr.bf16.gmra.mxu1 %v4853_v24  ;;  %v5621_v24 = vld [vmem:[%s7614_s1 + $0x1c0] ss:$16 sps:$4 sm:$0xff]  }
  0x84   : > { %1782 = vmatprep.mubr.bf16.mxu0 %v5442_v23  ;;  %4525 = vmatprep.mubr.msk.bf16.mxu1 %vm1583_vm0, %v4857_v27  ;;  %v5034_v27 = vld [vmem:[%s5280_s26 + $0x148] ss:$16 sps:$4 sm:$0xff]  }
  0x85   : > { %2413 = vmatpush2.bf16.msra.mxu1 %v5034_v27 }
  0x8b   : > { %1783 = vmatmul.mubr.bf16.gmra.mxu0 %v5458_v28  ;;  %2166 = vmatmul.mubr.bf16.gmra.mxu1 %v4859_v30  ;;  %v5042_v30 = vld [vmem:[%s5280_s26 + $0x24c] ss:$16 sps:$4 sm:$0xff]  }
  0x8c   : > { %1792 = vmatprep.mubr.bf16.mxu0 %v5463_v29  ;;  %4526 = vmatprep.mubr.msk.bf16.mxu1 %vm1583_vm0, %v4863_v33  ;;  %v5048_v33 = vld [vmem:[%s5280_s26 + $0x12c] ss:$16 sps:$4 sm:$0xff]  }
  0x8d   : > { %2749 = vmatprep.subr.bf16.mxu0 %v5042_v30  ;;  %2414 = vmatprep.subr.bf16.mxu1 %v5048_v33 }
  0x8e   : > { %2750 = vmatpush1.bf16.msra.mxu0 %v5040_v31  ;;  %2415 = vmatpush2.bf16.msra.mxu1 %v5046_v37  ;;  %v4964_v31 = vld [vmem:[%s7614_s1 + $0x328] ss:$16 sps:$4 sm:$0xff]  }
  0x8f   : > { %2416 = vmatprep.subr.bf16.mxu1 %v5054_v43 }
  0x92   : > { %2417 = vmatpush2.bf16.msra.mxu1 %v5052_v45  ;;  %v4973_v45 = vld [vmem:[%s7614_s1 + $0x348] ss:$16 sps:$4 sm:$0xff]  }
  0x93   : > { %1793 = vmatmul.mubr.bf16.gmra.mxu0 %v5479_v34  ;;  %2176 = vmatmul.mubr.bf16.gmra.mxu1 %v4865_v36  ;;  %v4905_v36 = vld [vmem:[%s7614_s1 + $0x24c] ss:$16 sps:$4 sm:$0xff]  }
  0x94   : > { %1802 = vmatprep.mubr.bf16.mxu0 %v5484_v35  ;;  %4527 = vmatprep.mubr.msk.bf16.mxu1 %vm1583_vm0, %v4869_v38  ;;  %v5051_v38 = vld [vmem:[%s5280_s26 + $0x22c] ss:$16 sps:$4 sm:$0xff]  }
  0x95   : > { %2751 = vmatprep.subr.bf16.mxu0 %v5051_v38  ;;  %v4956_v38 = vld [vmem:[%s7614_s1 + $0x304] ss:$16 sps:$4 sm:$0xff]  }
  0x96   : > { %2752 = vmatpush1.bf16.msra.mxu0 %v5049_v39 }
  0x9b   : > { %1803 = vmatmul.mubr.bf16.gmra.mxu0 %v5500_v40  ;;  %2186 = vmatmul.mubr.bf16.gmra.mxu1 %v4871_v44  ;;  %v5654_v44 = vld [vmem:[%s7614_s1 + $0x204] ss:$16 sps:$4 sm:$0xff]  }
  0x9c   : > { %1812 = vmatprep.mubr.bf16.mxu0 %v5506_v42  ;;  %4528 = vmatprep.mubr.msk.bf16.mxu1 %vm1583_vm0, %v4875_v46  ;;  %v5060_v46 = vld [vmem:[%s5280_s26 + $0x20c] ss:$16 sps:$4 sm:$0xff]  }
  0x9d   : > { %2753 = vmatprep.subr.bf16.mxu0 %v5060_v46  ;;  %v4983_v46 = vld [vmem:[%s7614_s1 + $0x36c] ss:$16 sps:$4 sm:$0xff]  }
  0x9e   : > { %2754 = vmatpush1.bf16.msra.mxu0 %v5058_v47 }
  0xa3   : > { %1813 = vmatmul.mubr.bf16.gmra.mxu0 %v5523_v48  ;;  %2196 = vmatmul.mubr.bf16.gmra.mxu1 %v4877_v52  ;;  %v5063_v52 = vld [vmem:[%s5280_s26 + $0x30c] ss:$16 sps:$4 sm:$0xff]  }
  0xa4   : > { %1822 = vmatprep.mubr.bf16.mxu0 %v5529_v50  ;;  %4529 = vmatprep.mubr.msk.bf16.mxu1 %vm1583_vm0, %v4881_v54  ;;  %v4898_v54 = vld [vmem:[%s7614_s1 + $0x200] ss:$16 sps:$4 sm:$0xff]  }
  0xa5   : > { %2769 = vmatprep.subr.bf16.mxu0 %v5063_v52  ;;  %v4968_v52 = vld [vmem:[%s7614_s1 + $0x324] ss:$16 sps:$4 sm:$0xff]  }
  0xa6   : > { %2770 = vmatpush2.bf16.msra.mxu0 %v5061_v53 }
  0xab   : > { %1823 = vmatmul.mubr.bf16.gmra.mxu0 %v5546_v56  ;;  %2206 = vmatmul.mubr.bf16.gmra.mxu1 %v4883_v60  ;;  %v4904_v60 = vld [vmem:[%s7614_s1 + $0x220] ss:$16 sps:$4 sm:$0xff]  }
  0xac   : > { %1832 = vmatprep.mubr.bf16.mxu0 %v5552_v58  ;;  %4530 = vmatprep.mubr.msk.bf16.mxu1 %vm1583_vm0, %v4887_v62  ;;  %v4919_v62 = vld [vmem:[%s7614_s1 + $0x288] ss:$16 sps:$4 sm:$0xff]  }
  0xb3   : > { %1833 = vmatmul.mubr.bf16.gmra.mxu0 %v5571_v2  ;;  %2216 = vmatmul.mubr.bf16.gmra.mxu1 %v4889_v6  ;;  %v4916_v6 = vld [vmem:[%s7614_s1 + $0x260] ss:$16 sps:$4 sm:$0xff]  }
  0xb4   : > { %1842 = vmatprep.mubr.bf16.mxu0 %v5577_v4  ;;  %4531 = vmatprep.mubr.msk.bf16.mxu1 %vm1583_vm0, %v4893_v8  ;;  %v4937_v8 = vld [vmem:[%s7614_s1 + $0x2c8] ss:$16 sps:$4 sm:$0xff]  }
  0xbb   : > { %1843 = vmatmul.mubr.bf16.gmra.mxu0 %v5594_v10  ;;  %2226 = vmatmul.mubr.bf16.gmra.mxu1 %v4895_v16  ;;  %v4934_v16 = vld [vmem:[%s7614_s1 + $0x2a0] ss:$16 sps:$4 sm:$0xff]  }
  0xbc   : > { %1852 = vmatprep.mubr.bf16.mxu0 %v5600_v12  ;;  %4532 = vmatprep.mubr.msk.bf16.mxu1 %vm1583_vm0, %v4899_v18  ;;  %v4952_v18 = vld [vmem:[%s7614_s1 + $0x308] ss:$16 sps:$4 sm:$0xff]  }
  0xc3   : > { %1853 = vmatmul.mubr.bf16.gmra.mxu0 %v5621_v24  ;;  %2236 = vmatmul.mubr.bf16.gmra.mxu1 %v4901_v32  ;;  %v4971_v32 = vld [vmem:[%s7614_s1 + $0x34c] ss:$16 sps:$4 sm:$0xff]  }
  0xc4   : > { %1862 = vmatprep.mubr.bf16.mxu0 %v5627_v26  ;;  %4533 = vmatprep.mubr.msk.bf16.mxu1 %vm1583_vm0, %v4905_v36  ;;  %v4949_v36 = vld [vmem:[%s7614_s1 + $0x2e0] ss:$16 sps:$4 sm:$0xff]  }
  0xcb   : > { %1863 = vmatmul.mubr.bf16.gmra.mxu0 %v5648_v41  ;;  %2246 = vmatmul.mubr.bf16.gmra.mxu1 %v4907_v49  ;;  %v4958_v49 = vld [vmem:[%s7614_s1 + $0x300] ss:$16 sps:$4 sm:$0xff]  }
  0xcc   : > { %1872 = vmatprep.mubr.bf16.mxu0 %v5654_v44  ;;  %4534 = vmatprep.mubr.msk.bf16.mxu1 %vm1583_vm0, %v4911_v51 }
  0xd3   : > { %1873 = vmatmul.mubr.bf16.gmra.mxu0 %v4898_v54  ;;  %2256 = vmatmul.mubr.bf16.gmra.mxu1 %v4913_v57  ;;  %v4985_v57 = vld [vmem:[%s7614_s1 + $0x368] ss:$16 sps:$4 sm:$0xff]  }
  0xd4   : > { %1882 = vmatprep.mubr.bf16.mxu0 %v4902_v55  ;;  %4535 = vmatprep.mubr.msk.bf16.mxu1 %vm1583_vm0, %v4917_v59 }
  0xdb   : > { %1883 = vmatmul.mubr.bf16.gmra.mxu0 %v4904_v60  ;;  %2266 = vmatmul.mubr.bf16.gmra.mxu1 %v4919_v62  ;;  %v4995_v60 = vld [vmem:[%s7614_s1 + $0x38c] ss:$16 sps:$4 sm:$0xff]  }
  0xdc   : > { %1892 = vmatprep.mubr.bf16.mxu0 %v4908_v61  ;;  %4536 = vmatprep.mubr.msk.bf16.mxu1 %vm1583_vm0, %v4929_v63 }
  0xe3   : > { %1893 = vmatmul.mubr.bf16.gmra.mxu0 %v4910_v0  ;;  %2276 = vmatmul.mubr.bf16.gmra.mxu1 %v4931_v3 }
  0xe4   : > { %1902 = vmatprep.mubr.bf16.mxu0 %v4914_v1  ;;  %4537 = vmatprep.mubr.msk.bf16.mxu1 %vm1583_vm0, %v4935_v5  ;;  %v4970_v1 = vld [vmem:[%s7614_s1 + $0x320] ss:$16 sps:$4 sm:$0xff]  }
  0xeb   : > { %1903 = vmatmul.mubr.bf16.gmra.mxu0 %v4916_v6  ;;  %2286 = vmatmul.mubr.bf16.gmra.mxu1 %v4937_v8  ;;  %v4980_v6 = vld [vmem:[%s7614_s1 + $0x344] ss:$16 sps:$4 sm:$0xff]  }
  0xec   : > { %1912 = vmatprep.mubr.bf16.mxu0 %v4920_v7  ;;  %4538 = vmatprep.mubr.msk.bf16.mxu1 %vm1583_vm0, %v4944_v9 }
  0xf3   : > { %1913 = vmatmul.mubr.bf16.gmra.mxu0 %v4922_v11  ;;  %2296 = vmatmul.mubr.bf16.gmra.mxu1 %v4946_v14  ;;  %v5000_v14 = vld [vmem:[%s7614_s1 + $0x388] ss:$16 sps:$4 sm:$0xff]  }
  0xf4   : > { %1922 = vmatprep.mubr.bf16.mxu0 %v4932_v13  ;;  %4539 = vmatprep.mubr.msk.bf16.mxu1 %vm1583_vm0, %v4950_v15 }
  0xfb   : > { %1923 = vmatmul.mubr.bf16.gmra.mxu0 %v4934_v16  ;;  %v2067_v21 = vpop.f32.mrf.mxu1  ;;  %2306 = vmatmul.mubr.bf16.gmra.mxu1 %v4952_v18  ;;  %v5010_v16 = vld [vmem:[%s7614_s1 + $0x3ac] ss:$16 sps:$4 sm:$0xff]  }
  0xfc   : > { %1932 = vmatprep.mubr.bf16.mxu0 %v4938_v17  ;;  %4540 = vmatprep.mubr.msk.bf16.mxu1 %vm1583_vm0, %v4962_v19 }
  0xfd   : > { %v2069_v27 = vpop.f32.mrf.mxu1 }
  0xff   : > { %v2071_v30 = vpop.f32.mrf.mxu1 }
 0x101   : > { %v2073_v33 = vpop.f32.mrf.mxu1 }
 0x103   : > { %1933 = vmatmul.mubr.bf16.gmra.mxu0 %v4940_v20  ;;  %v2077_v37 = vpop.f32.mrf.mxu1  ;;  %2316 = vmatmul.mubr.bf16.gmra.mxu1 %v4964_v31 }
 0x104   : > { %1942 = vmatprep.mubr.bf16.mxu0 %v4947_v25  ;;  %4541 = vmatprep.mubr.msk.bf16.mxu1 %vm1583_vm0, %v4971_v32 }
 0x105   : > { %v2079_v39 = vpop.f32.mrf.mxu1 }
 0x107   : > { %v2081_v43 = vpop.f32.mrf.mxu1 }
 0x109   : > { %v2083_v47 = vpop.f32.mrf.mxu1 }
 0x10b   : > { %1943 = vmatmul.mubr.bf16.gmra.mxu0 %v4949_v36  ;;  %v2087_v51 = vpop.f32.mrf.mxu1  ;;  %2326 = vmatmul.mubr.bf16.gmra.mxu1 %v4973_v45 }
 0x10c   : > { %1952 = vmatprep.mubr.bf16.mxu0 %v4956_v38  ;;  %4542 = vmatprep.mubr.msk.bf16.mxu1 %vm1583_vm0, %v4983_v46  ;;  %v5012_v38 = vld [vmem:[%s7614_s1 + $0x3a8] ss:$16 sps:$4 sm:$0xff]  }
 0x10d   : > { %v2089_v53 = vpop.f32.mrf.mxu1 }
 0x10f   : > { %v2091_v55 = vpop.f32.mrf.mxu1 }
 0x111   : > { %v2093_v62 = vpop.f32.mrf.mxu1 }
 0x113   : > { %v1714_v54 = vpop.f32.mrf.mxu0  ;;  %1953 = vmatmul.mubr.bf16.gmra.mxu0 %v4958_v49  ;;  %v2097_v3 = vpop.f32.mrf.mxu1  ;;  %2336 = vmatmul.mubr.bf16.gmra.mxu1 %v4985_v57 }
 0x114   : > { %v5784_v59 = vadd.f32 %v2067_v21, %v1714_v54  ;;  %1962 = vmatprep.mubr.bf16.mxu0 %v4968_v52  ;;  %4543 = vmatprep.mubr.msk.bf16.mxu1 %vm1583_vm0, %v4995_v60  ;;  %v4982_v21 = vld [vmem:[%s7614_s1 + $0x340] ss:$16 sps:$4 sm:$0xff]  }
 0x115   : > { %v1716_v61 = vpop.f32.mrf.mxu0  ;;  %v2099_v8 = vpop.f32.mrf.mxu1  ;;  %v4994_v52 = vld [vmem:[%s7614_s1 + $0x360] ss:$16 sps:$4 sm:$0xff]  }
 0x116   : > { %v5789_v63 = vadd.f32 %v2069_v27, %v1716_v61 }
 0x117   : > { %v1718_v0 = vpop.f32.mrf.mxu0  ;;  %v2101_v13 = vpop.f32.mrf.mxu1 }
 0x118   : > { %v5794_v5 = vadd.f32 %v2071_v30, %v1718_v0  ;;  %v4992_v30 = vld [vmem:[%s7614_s1 + $0x364] ss:$16 sps:$4 sm:$0xff]  }
 0x119   : > { %v1720_v7 = vpop.f32.mrf.mxu0  ;;  %v2103_v18 = vpop.f32.mrf.mxu1 }
 0x11a   : > { %v5800_v9 = vadd.f32 %v2073_v33, %v1720_v7 }
 0x11b   : > { %v1724_v11 = vpop.f32.mrf.mxu0  ;;  %1963 = vmatmul.mubr.bf16.gmra.mxu0 %v4970_v1  ;;  %v2107_v25 = vpop.f32.mrf.mxu1  ;;  %2346 = vmatmul.mubr.bf16.gmra.mxu1 %v5000_v14 }
 0x11c   : > { %v5805_v15 = vadd.f32 %v2077_v37, %v1724_v11  ;;  %1972 = vmatprep.mubr.bf16.mxu0 %v4980_v6  ;;  %4544 = vmatprep.mubr.msk.bf16.mxu1 %vm1583_vm0, %v5010_v16  ;;  %v5027_v6 = vld [vmem:[%s7614_s1 + $0x3c8] ss:$16 sps:$4 sm:$0xff]  }
 0x11d   : > { %v1726_v17 = vpop.f32.mrf.mxu0  ;;  %v2109_v32 = vpop.f32.mrf.mxu1 }
 0x11e   : > { %v5810_v19 = vadd.f32 %v2079_v39, %v1726_v17  ;;  %v5007_v17 = vld [vmem:[%s7614_s1 + $0x380] ss:$16 sps:$4 sm:$0xff]  }
 0x11f   : > { %v1728_v20 = vpop.f32.mrf.mxu0  ;;  %v2111_v37 = vpop.f32.mrf.mxu1 }
 0x120   : > { %v5815_v27 = vadd.f32 %v2081_v43, %v1728_v20  ;;  %v5025_v43 = vld [vmem:[%s7614_s1 + $0x3cc] ss:$16 sps:$4 sm:$0xff]  }
 0x121   : > { %v1730_v31 = vpop.f32.mrf.mxu0  ;;  %v2113_v46 = vpop.f32.mrf.mxu1 }
 0x122   : > { %v5821_v33 = vadd.f32 %v2083_v47, %v1730_v31 }
 0x123   : > { %v1734_v36 = vpop.f32.mrf.mxu0  ;;  %1973 = vmatmul.mubr.bf16.gmra.mxu0 %v4982_v21  ;;  %v2117_v54 = vpop.f32.mrf.mxu1  ;;  %2356 = vmatmul.mubr.bf16.gmra.mxu1 %v5012_v38 }
 0x124   : > { %v5826_v39 = vadd.f32 %v2087_v51, %v1734_v36  ;;  %1982 = vmatprep.mubr.bf16.mxu0 %v4992_v30  ;;  %v5009_v51 = vld [vmem:[%s7614_s1 + $0x384] ss:$16 sps:$4 sm:$0xff]   ;;  %4545 = vmatprep.mubr.msk.bf16.mxu1 %vm1583_vm0, %v5025_v43  ;;  %v5045_v43 = vld [vmem:[%s7614_s1 + $0x3e8] ss:$16 sps:$4 sm:$0xff]  }
 0x125   : > { %v1736_v45 = vpop.f32.mrf.mxu0  ;;  %v2119_v61 = vpop.f32.mrf.mxu1 }
 0x126   : > { %v5831_v49 = vadd.f32 %v2089_v53, %v1736_v45 }
 0x127   : > { %v1738_v47 = vpop.f32.mrf.mxu0  ;;  %v2121_v1 = vpop.f32.mrf.mxu1 }
 0x128   : > { %v5836_v57 = vadd.f32 %v2091_v55, %v1738_v47  ;;  %v5043_v55 = vld [vmem:[%s7614_s1 + $0x3ec] ss:$16 sps:$4 sm:$0xff]  }
 0x129   : > { %v1740_v60 = vpop.f32.mrf.mxu0  ;;  %v2123_v14 = vpop.f32.mrf.mxu1 }
 0x12a   : > { %v5842_v0 = vadd.f32 %v2093_v62, %v1740_v60 }
 0x12b   : > { %v1744_v53 = vpop.f32.mrf.mxu0  ;;  %1983 = vmatmul.mubr.bf16.gmra.mxu0 %v4994_v52  ;;  %v2127_v20 = vpop.f32.mrf.mxu1  ;;  %2366 = vmatmul.mubr.bf16.gmra.mxu1 %v5027_v6  ;;  %v5039_v6 = vld [vmem:[%s7614_s1 + $0x3c4] ss:$16 sps:$4 sm:$0xff]  }
 0x12c   : > { %v5847_v7 = vadd.f32 %v2097_v3, %v1744_v53  ;;  %1992 = vmatprep.mubr.bf16.mxu0 %v5009_v51  ;;  %v5021_v3 = vld [vmem:[%s7614_s1 + $0x3a4] ss:$16 sps:$4 sm:$0xff]   ;;  %4546 = vmatprep.mubr.msk.bf16.mxu1 %vm1583_vm0, %v5043_v55 }
 0x12d   : > { %v1746_v11 = vpop.f32.mrf.mxu0  ;;  %v2129_v31 = vpop.f32.mrf.mxu1 }
 0x12e   : > { %v5852_v16 = vadd.f32 %v2099_v8, %v1746_v11 }
 0x12f   : > { %v1748_v62 = vpop.f32.mrf.mxu0  ;;  %v2131_v38 = vpop.f32.mrf.mxu1 }
 0x130   : > { %v5857_v21 = vadd.f32 %v2101_v13, %v1748_v62 }
 0x131   : > { %v1750_v30 = vpop.f32.mrf.mxu0  ;;  %v2133_v47 = vpop.f32.mrf.mxu1 }
 0x132   : > { %v5863_v36 = vadd.f32 %v2103_v18, %v1750_v30  ;;  %v5019_v18 = vld [vmem:[%s7614_s1 + $0x3a0] ss:$16 sps:$4 sm:$0xff]  }
 0x133   : > { %v1754_v8 = vpop.f32.mrf.mxu0  ;;  %1993 = vmatmul.mubr.bf16.gmra.mxu0 %v5007_v17  ;;  %v2137_v60 = vpop.f32.mrf.mxu1  ;;  %2376 = vmatmul.mubr.bf16.gmra.mxu1 %v5045_v43 }
 0x134   : > { %v5868_v45 = vadd.f32 %v2107_v25, %v1754_v8  ;;  %2002 = vmatprep.mubr.bf16.mxu0 %v5021_v3  ;;  %v5088_v25 = vld [vmem:[%s7614_s1 + $0x4] ss:$16 sps:$4 sm:$0xff]  }
 0x135   : > { %v1756_v13 = vpop.f32.mrf.mxu0  ;;  %2418 = vmatprep.mubr.bf16.mxu1 %v5088_v25  ;;  %v2139_v55 = vpop.f32.mrf.mxu1 }
 0x136   : > { %v5870_v52 = vadd.f32 %v2109_v32, %v1756_v13  ;;  %v5037_v13 = vld [vmem:[%s7614_s1 + $0x3c0] ss:$16 sps:$4 sm:$0xff]  }
 0x137   : > { %v1758_v51 = vpop.f32.mrf.mxu0  ;;  %v2141_v17 = vpop.f32.mrf.mxu1 }
 0x138   : > { %v5875_v53 = vadd.f32 %v2111_v37, %v1758_v51 }
 0x139   : > { %v1760_v32 = vpop.f32.mrf.mxu0  ;;  %v2143_v30 = vpop.f32.mrf.mxu1 }
 0x13a   : > { %v5883_v11 = vadd.f32 %v2113_v46, %v1760_v32  ;;  %v5089_v46 = vld [vmem:[%s7614_s1] ss:$16 sps:$4 sm:$0xff]  }
 0x13b   : > { %v1764_v62 = vpop.f32.mrf.mxu0  ;;  %2003 = vmatmul.mubr.bf16.gmra.mxu0 %v5019_v18  ;;  %v2147_v51 = vpop.f32.mrf.mxu1  ;;  %2419 = vmatmul.mubr.bf16.vlgmr.msra.gmra.mxu1 %v5089_v46 }
 0x13c   : > { %v5885_v3 = vadd.f32 %v2117_v54, %v1764_v62  ;;  %2012 = vmatprep.mubr.bf16.mxu0 %v5039_v6  ;;  %v5057_v54 = vld [vmem:[%s7614_s1 + $0x3e4] ss:$16 sps:$4 sm:$0xff]  }
 0x13d   : > { %v1766_v37 = vpop.f32.mrf.mxu0  ;;  %v2149_v25 = vpop.f32.mrf.mxu1 }
 0x13e   : > { %7623 = vst [vmem:[#allocation2_spill] sm:$0xff] %v5885_v3  ;;  %v5887_v8 = vadd.f32 %v2119_v61, %v1766_v37  ;;  %v5090_v61 = vld [vmem:[%s7614_s1 + $0x24] ss:$16 sps:$4 sm:$0xff]   ;;  %v5055_v3 = vld [vmem:[%s7614_s1 + $0x3e0] ss:$16 sps:$4 sm:$0xff]  }
 0x13f   : > { %v1768_v43 = vpop.f32.mrf.mxu0  ;;  %2428 = vmatprep.mubr.bf16.mxu1 %v5090_v61  ;;  %v2151_v37 = vpop.f32.mrf.mxu1 }
 0x140   : > { %7624 = vst [vmem:[#allocation3_spill] sm:$0xff] %v5887_v8  ;;  %v5895_v18 = vadd.f32 %v2121_v1, %v1768_v43 }
 0x141   : > { %v1770_v6 = vpop.f32.mrf.mxu0  ;;  %v2153_v43 = vpop.f32.mrf.mxu1 }
 0x142   : > { %7625 = vst [vmem:[#allocation4_spill] sm:$0xff] %v5895_v18  ;;  %v5903_v32 = vadd.f32 %v2123_v14, %v1770_v6  ;;  %v5091_v14 = vld [vmem:[%s7614_s1 + $0x20] ss:$16 sps:$4 sm:$0xff]  }
 0x143   : > { %v1774_v62 = vpop.f32.mrf.mxu0  ;;  %2013 = vmatmul.mubr.bf16.gmra.mxu0 %v5037_v13  ;;  %v2157_v61 = vpop.f32.mrf.mxu1  ;;  %2429 = vmatmul.mubr.bf16.gmra.mxu1 %v5091_v14  ;;  %v5093_v14 = vld [vmem:[%s7614_s1 + $0xc] ss:$16 sps:$4 sm:$0xff]  }
 0x144   : > { %v5905_v8 = vadd.f32 %v2127_v20, %v1774_v62  ;;  %2022 = vmatprep.mubr.bf16.mxu0 %v5057_v54  ;;  %v5092_v20 = vld [vmem:[%s7614_s1 + $0x44] ss:$16 sps:$4 sm:$0xff]  }
 0x145   : > { %v1776_v1 = vpop.f32.mrf.mxu0  ;;  %2438 = vmatprep.mubr.bf16.mxu1 %v5092_v20  ;;  %v2159_v54 = vpop.f32.mrf.mxu1 }
 0x146   : > { %7626 = vst [vmem:[#allocation5_spill] sm:$0xff] %v5905_v8  ;;  %v5907_v46 = vadd.f32 %v2129_v31, %v1776_v1 }
 0x147   : > { %v1778_v18 = vpop.f32.mrf.mxu0  ;;  %v2161_v1 = vpop.f32.mrf.mxu1 }
 0x148   : > { %7627 = vst [vmem:[#allocation6_spill] sm:$0xff] %v5907_v46  ;;  %v5915_v13 = vadd.f32 %v2131_v38, %v1778_v18 }
 0x149   : > { %v1780_v31 = vpop.f32.mrf.mxu0  ;;  %v2163_v18 = vpop.f32.mrf.mxu1 }
 0x14a   : > { %7628 = vst [vmem:[#allocation7_spill] sm:$0xff] %v5915_v13  ;;  %v5920_v6 = vadd.f32 %v2133_v47, %v1780_v31  ;;  %v5094_v47 = vld [vmem:[%s7614_s1 + $0x40] ss:$16 sps:$4 sm:$0xff]  }
 0x14b   : > { %v1784_v62 = vpop.f32.mrf.mxu0  ;;  %2023 = vmatmul.mubr.bf16.gmra.mxu0 %v5055_v3  ;;  %v2167_v8 = vpop.f32.mrf.mxu1  ;;  %2439 = vmatmul.mubr.bf16.gmra.mxu1 %v5094_v47 }
 0x14c   : > { %v5922_v46 = vadd.f32 %v2137_v60, %v1784_v62  ;;  %4547 = vmatprep.mubr.msk.bf16.mxu0 %vm1583_vm0, %v5093_v14  ;;  %v5095_v60 = vld [vmem:[%s7614_s1 + $0x64] ss:$16 sps:$4 sm:$0xff]  }
 0x14d   : > { %v1786_v38 = vpop.f32.mrf.mxu0  ;;  %2448 = vmatprep.mubr.bf16.mxu1 %v5095_v60  ;;  %v2169_v62 = vpop.f32.mrf.mxu1 }
 0x14e   : > { %7629 = vst [vmem:[#allocation8_spill] sm:$0xff] %v5922_v46  ;;  %v5928_v13 = vadd.f32 %v2139_v55, %v1786_v38  ;;  %v5096_v38 = vld [vmem:[%s7614_s1 + $0x8] ss:$16 sps:$4 sm:$0xff]  }
 0x14f   : > { %v1788_v20 = vpop.f32.mrf.mxu0 }
 0x150   : > { %7630 = vst [vmem:[#allocation9_spill] sm:$0xff] %v5928_v13  ;;  %v5933_v3 = vadd.f32 %v2141_v17, %v1788_v20  ;;  %v2171_v13 = vpop.f32.mrf.mxu1  ;;  %v5097_v17 = vld [vmem:[%s7614_s1 + $0x2c] ss:$16 sps:$4 sm:$0xff]  }
 0x151   : > { %v1790_v31 = vpop.f32.mrf.mxu0 }
 0x152   : > { %7631 = vst [vmem:[#allocation10_spill] sm:$0xff] %v5933_v3  ;;  %v5938_v14 = vadd.f32 %v2143_v30, %v1790_v31  ;;  %v2173_v47 = vpop.f32.mrf.mxu1 }
 0x153   : > { %v1794_v55 = vpop.f32.mrf.mxu0  ;;  %2772 = vmatmul.mubr.bf16.vlgmr.msra.gmra.mxu0 %v5096_v38 }
 0x154   : > { %7632 = vst [vmem:[#allocation11_spill] sm:$0xff] %v5938_v14  ;;  %v5943_v46 = vadd.f32 %v2147_v51, %v1794_v55  ;;  %4548 = vmatprep.mubr.msk.bf16.mxu0 %vm1583_vm0, %v5097_v17  ;;  %v2177_v31 = vpop.f32.mrf.mxu1  ;;  %v5098_v14 = vld [vmem:[%s7614_s1 + $0x60] ss:$16 sps:$4 sm:$0xff]   ;;  %v5099_v51 = vld [vmem:[%s7614_s1 + $0x84] ss:$16 sps:$4 sm:$0xff]  }
 0x155   : > { %v1796_v20 = vpop.f32.mrf.mxu0  ;;  %2449 = vmatmul.mubr.bf16.gmra.mxu1 %v5098_v14 }
 0x156   : > { %7633 = vst [vmem:[#allocation12_spill] sm:$0xff] %v5943_v46  ;;  %v5949_v60 = vadd.f32 %v2149_v25, %v1796_v20  ;;  %2458 = vmatprep.mubr.bf16.mxu1 %v5099_v51  ;;  %v2179_v17 = vpop.f32.mrf.mxu1  ;;  %v5100_v20 = vld [vmem:[%s7614_s1 + $0x28] ss:$16 sps:$4 sm:$0xff]  }
 0x157   : > { %v1798_v30 = vpop.f32.mrf.mxu0 }
 0x158   : > { %7634 = vst [vmem:[#allocation13_spill] sm:$0xff] %v5949_v60  ;;  %v5954_v38 = vadd.f32 %v2151_v37, %v1798_v30  ;;  %v2181_v60 = vpop.f32.mrf.mxu1  ;;  %v5101_v37 = vld [vmem:[%s7614_s1 + $0x4c] ss:$16 sps:$4 sm:$0xff]  }
 0x159   : > { %v1800_v55 = vpop.f32.mrf.mxu0 }
 0x15a   : > { %7635 = vst [vmem:[#allocation14_spill] sm:$0xff] %v5954_v38  ;;  %v5959_v46 = vadd.f32 %v2153_v43, %v1800_v55  ;;  %v2183_v30 = vpop.f32.mrf.mxu1 }
 0x15b   : > { %v1804_v25 = vpop.f32.mrf.mxu0  ;;  %2782 = vmatmul.mubr.bf16.gmra.mxu0 %v5100_v20 }
 0x15c   : > { %7636 = vst [vmem:[#allocation15_spill] sm:$0xff] %v5959_v46  ;;  %v5964_v3 = vadd.f32 %v2157_v61, %v1804_v25  ;;  %4549 = vmatprep.mubr.msk.bf16.mxu0 %vm1583_vm0, %v5101_v37  ;;  %v2187_v55 = vpop.f32.mrf.mxu1  ;;  %v5102_v46 = vld [vmem:[%s7614_s1 + $0x80] ss:$16 sps:$4 sm:$0xff]   ;;  %v5103_v61 = vld [vmem:[%s7614_s1 + $0xa4] ss:$16 sps:$4 sm:$0xff]  }
 0x15d   : > { %v1806_v14 = vpop.f32.mrf.mxu0  ;;  %2459 = vmatmul.mubr.bf16.gmra.mxu1 %v5102_v46  ;;  %v5105_v46 = vld [vmem:[%s7614_s1 + $0x6c] ss:$16 sps:$4 sm:$0xff]  }
 0x15e   : > { %7637 = vst [vmem:[#allocation16_spill] sm:$0xff] %v5964_v3  ;;  %v5970_v51 = vadd.f32 %v2159_v54, %v1806_v14  ;;  %2468 = vmatprep.mubr.bf16.mxu1 %v5103_v61  ;;  %v2189_v37 = vpop.f32.mrf.mxu1  ;;  %v5104_v14 = vld [vmem:[%s7614_s1 + $0x48] ss:$16 sps:$4 sm:$0xff]  }
 0x15f   : > { %v1808_v43 = vpop.f32.mrf.mxu0 }
 0x160   : > { %7638 = vst [vmem:[#allocation17_spill] sm:$0xff] %v5970_v51  ;;  %v5975_v20 = vadd.f32 %v2161_v1, %v1808_v43  ;;  %v2191_v51 = vpop.f32.mrf.mxu1 }
 0x161   : > { %v1810_v25 = vpop.f32.mrf.mxu0 }
 0x162   : > { %7639 = vst [vmem:[#allocation18_spill] sm:$0xff] %v5975_v20  ;;  %v5980_v3 = vadd.f32 %v2163_v18, %v1810_v25  ;;  %v2193_v43 = vpop.f32.mrf.mxu1 }
 0x163   : > { %v1814_v54 = vpop.f32.mrf.mxu0  ;;  %2792 = vmatmul.mubr.bf16.gmra.mxu0 %v5104_v14 }
 0x164   : > { %7640 = vst [vmem:[#allocation19_spill] sm:$0xff] %v5980_v3  ;;  %v5985_v38 = vadd.f32 %v2167_v8, %v1814_v54  ;;  %4550 = vmatprep.mubr.msk.bf16.mxu0 %vm1583_vm0, %v5105_v46  ;;  %v2197_v25 = vpop.f32.mrf.mxu1  ;;  %v5106_v3 = vld [vmem:[%s7614_s1 + $0xa0] ss:$16 sps:$4 sm:$0xff]   ;;  %v5107_v8 = vld [vmem:[%s7614_s1 + $0xc4] ss:$16 sps:$4 sm:$0xff]  }
 0x165   : > { %v1816_v1 = vpop.f32.mrf.mxu0  ;;  %2469 = vmatmul.mubr.bf16.gmra.mxu1 %v5106_v3 }
 0x166   : > { %7641 = vst [vmem:[#allocation20_spill] sm:$0xff] %v5985_v38  ;;  %v5991_v61 = vadd.f32 %v2169_v62, %v1816_v1  ;;  %2478 = vmatprep.mubr.bf16.mxu1 %v5107_v8  ;;  %v2199_v46 = vpop.f32.mrf.mxu1  ;;  %v5108_v1 = vld [vmem:[%s7614_s1 + $0x68] ss:$16 sps:$4 sm:$0xff]  }
 0x167   : > { %v1818_v18 = vpop.f32.mrf.mxu0 }
 0x168   : > { %7642 = vst [vmem:[#allocation21_spill] sm:$0xff] %v5991_v61  ;;  %v5996_v14 = vadd.f32 %v2171_v13, %v1818_v18  ;;  %v2201_v61 = vpop.f32.mrf.mxu1  ;;  %v5109_v13 = vld [vmem:[%s7614_s1 + $0x8c] ss:$16 sps:$4 sm:$0xff]  }
 0x169   : > { %v1820_v54 = vpop.f32.mrf.mxu0 }
 0x16a   : > { %v6001_v38 = vadd.f32 %v2173_v47, %v1820_v54  ;;  %v2203_v18 = vpop.f32.mrf.mxu1 }
 0x16b   : > { %v1824_v62 = vpop.f32.mrf.mxu0  ;;  %2802 = vmatmul.mubr.bf16.gmra.mxu0 %v5108_v1 }
 0x16c   : > { %7643 = vst [vmem:[#allocation22_spill] sm:$0xff] %v6001_v38  ;;  %v6006_v20 = vadd.f32 %v2177_v31, %v1824_v62  ;;  %4551 = vmatprep.mubr.msk.bf16.mxu0 %vm1583_vm0, %v5109_v13  ;;  %v2207_v54 = vpop.f32.mrf.mxu1  ;;  %v5110_v13 = vld [vmem:[%s7614_s1 + $0x88] ss:$16 sps:$4 sm:$0xff]  }
 0x16d   : > { %v1826_v3 = vpop.f32.mrf.mxu0  ;;  %2479 = vmatmul.mubr.bf16.gmra.mxu1 %v5437_v22  ;;  %v5111_v22 = vld [vmem:[%s7614_s1 + $0xac] ss:$16 sps:$4 sm:$0xff]  }
 0x16e   : > { %7644 = vst [vmem:[#allocation23_spill] sm:$0xff] %v6006_v20  ;;  %v6012_v8 = vadd.f32 %v2179_v17, %v1826_v3  ;;  %2488 = vmatprep.mubr.bf16.mxu1 %v5442_v23  ;;  %v2209_v62 = vpop.f32.mrf.mxu1 }
 0x16f   : > { %v1828_v47 = vpop.f32.mrf.mxu0 }
 0x170   : > { %v6015_v38 = vadd.f32 %v2181_v60, %v1828_v47  ;;  %v2211_v17 = vpop.f32.mrf.mxu1 }
 0x171   : > { %v1830_v31 = vpop.f32.mrf.mxu0 }
 0x172   : > { %v6018_v1 = vadd.f32 %v2183_v30, %v1830_v31  ;;  %v2213_v60 = vpop.f32.mrf.mxu1 }
 0x173   : > { %v1834_v20 = vpop.f32.mrf.mxu0  ;;  %2812 = vmatmul.mubr.bf16.gmra.mxu0 %v5110_v13 }
 0x174   : > { %7645 = vst [vmem:[#allocation24_spill] sm:$0xff] %v6018_v1  ;;  %v6023_v3 = vadd.f32 %v2187_v55, %v1834_v20  ;;  %4552 = vmatprep.mubr.msk.bf16.mxu0 %vm1583_vm0, %v5111_v22  ;;  %v2217_v31 = vpop.f32.mrf.mxu1  ;;  %v5112_v22 = vld [vmem:[%s7614_s1 + $0xa8] ss:$16 sps:$4 sm:$0xff]  }
 0x175   : > { %v1836_v23 = vpop.f32.mrf.mxu0  ;;  %2489 = vmatmul.mubr.bf16.gmra.mxu1 %v5458_v28  ;;  %v5113_v28 = vld [vmem:[%s7614_s1 + $0xcc] ss:$16 sps:$4 sm:$0xff]  }
 0x176   : > { %7646 = vst [vmem:[#allocation25_spill] sm:$0xff] %v6023_v3  ;;  %v6029_v47 = vadd.f32 %v2189_v37, %v1836_v23  ;;  %2498 = vmatprep.mubr.bf16.mxu1 %v5463_v29  ;;  %v2219_v20 = vpop.f32.mrf.mxu1 }
 0x177   : > { %v1838_v30 = vpop.f32.mrf.mxu0 }
 0x178   : > { %v6032_v1 = vadd.f32 %v2191_v51, %v1838_v30  ;;  %v2221_v37 = vpop.f32.mrf.mxu1 }
 0x179   : > { %v1840_v55 = vpop.f32.mrf.mxu0 }
 0x17a   : > { %v6035_v13 = vadd.f32 %v2193_v43, %v1840_v55  ;;  %v2223_v51 = vpop.f32.mrf.mxu1 }
 0x17b   : > { %v1844_v3 = vpop.f32.mrf.mxu0  ;;  %2822 = vmatmul.mubr.bf16.gmra.mxu0 %v5112_v22 }
 0x17c   : > { %7647 = vst [vmem:[#allocation26_spill] sm:$0xff] %v6035_v13  ;;  %v6040_v23 = vadd.f32 %v2197_v25, %v1844_v3  ;;  %4553 = vmatprep.mubr.msk.bf16.mxu0 %vm1583_vm0, %v5113_v28  ;;  %v2227_v55 = vpop.f32.mrf.mxu1  ;;  %v5114_v28 = vld [vmem:[%s7614_s1 + $0xc8] ss:$16 sps:$4 sm:$0xff]  }
 0x17d   : > { %v1846_v29 = vpop.f32.mrf.mxu0  ;;  %2499 = vmatmul.mubr.bf16.gmra.mxu1 %v5479_v34  ;;  %v5115_v34 = vld [vmem:[%s7614_s1 + $0xec] ss:$16 sps:$4 sm:$0xff]  }
 0x17e   : > { %7648 = vst [vmem:[#allocation27_spill] sm:$0xff] %v6040_v23  ;;  %v6046_v30 = vadd.f32 %v2199_v46, %v1846_v29  ;;  %2508 = vmatprep.mubr.bf16.mxu1 %v5484_v35  ;;  %v2229_v3 = vpop.f32.mrf.mxu1 }
 0x17f   : > { %v1848_v43 = vpop.f32.mrf.mxu0 }
 0x180   : > { %7649 = vst [vmem:[#allocation28_spill] sm:$0xff] %v6046_v30  ;;  %v6049_v13 = vadd.f32 %v2201_v61, %v1848_v43  ;;  %v2231_v46 = vpop.f32.mrf.mxu1 }
 0x181   : > { %v1850_v25 = vpop.f32.mrf.mxu0 }
 0x182   : > { %7650 = vst [vmem:[#allocation29_spill] sm:$0xff] %v6049_v13  ;;  %v6052_v22 = vadd.f32 %v2203_v18, %v1850_v25  ;;  %v2233_v61 = vpop.f32.mrf.mxu1 }
 0x183   : > { %v1854_v23 = vpop.f32.mrf.mxu0  ;;  %2832 = vmatmul.mubr.bf16.gmra.mxu0 %v5114_v28 }
 0x184   : > { %7651 = vst [vmem:[#allocation30_spill] sm:$0xff] %v6052_v22  ;;  %v6057_v29 = vadd.f32 %v2207_v54, %v1854_v23  ;;  %4554 = vmatprep.mubr.msk.bf16.mxu0 %vm1583_vm0, %v5115_v34  ;;  %v2237_v25 = vpop.f32.mrf.mxu1  ;;  %v5116_v34 = vld [vmem:[%s7614_s1 + $0xe8] ss:$16 sps:$4 sm:$0xff]  }
 0x185   : > { %v1856_v35 = vpop.f32.mrf.mxu0  ;;  %2509 = vmatmul.mubr.bf16.gmra.mxu1 %v5500_v40  ;;  %v5117_v40 = vld [vmem:[%s7614_s1 + $0x10c] ss:$16 sps:$4 sm:$0xff]  }
 0x186   : > { %7652 = vst [vmem:[#allocation31_spill] sm:$0xff] %v6057_v29  ;;  %v6063_v43 = vadd.f32 %v2209_v62, %v1856_v35  ;;  %2518 = vmatprep.mubr.bf16.mxu1 %v5506_v42  ;;  %v2239_v23 = vpop.f32.mrf.mxu1 }
 0x187   : > { %v1858_v18 = vpop.f32.mrf.mxu0 }
 0x188   : > { %7653 = vst [vmem:[#allocation32_spill] sm:$0xff] %v6063_v43  ;;  %v6066_v22 = vadd.f32 %v2211_v17, %v1858_v18  ;;  %v6074_v62 = vpop.f32.mrf.mxu1 }
 0x189   : > { %v1860_v54 = vpop.f32.mrf.mxu0 }
 0x18a   : > { %7654 = vst [vmem:[#allocation33_spill] sm:$0xff] %v6066_v22  ;;  %v6069_v28 = vadd.f32 %v2213_v60, %v1860_v54  ;;  %v6082_v17 = vpop.f32.mrf.mxu1 }
 0x18b   : > { %v1864_v29 = vpop.f32.mrf.mxu0  ;;  %2842 = vmatmul.mubr.bf16.gmra.mxu0 %v5116_v34 }
 0x18c   : > { %7655 = vst [vmem:[#allocation34_spill] sm:$0xff] %v6069_v28  ;;  %v6076_v35 = vadd.f32 %v2217_v31, %v1864_v29  ;;  %4555 = vmatprep.mubr.msk.bf16.mxu0 %vm1583_vm0, %v5117_v40  ;;  %v6086_v54 = vpop.f32.mrf.mxu1 }
 0x18d   : > { %v1866_v42 = vpop.f32.mrf.mxu0  ;;  %2519 = vmatmul.mubr.bf16.gmra.mxu1 %v5523_v48  ;;  %v5119_v48 = vld [vmem:[%s7614_s1 + $0x12c] ss:$16 sps:$4 sm:$0xff]  }
 0x18e   : > { %7656 = vst [vmem:[#allocation35_spill] sm:$0xff] %v6076_v35  ;;  %v6084_v60 = vadd.f32 %v2219_v20, %v1866_v42  ;;  %2528 = vmatprep.mubr.bf16.mxu1 %v5529_v50  ;;  %v6092_v29 = vpop.f32.mrf.mxu1  ;;  %v5118_v20 = vld [vmem:[%s7614_s1 + $0x108] ss:$16 sps:$4 sm:$0xff]  }
 0x18f   : > { %v1868_v18 = vpop.f32.mrf.mxu0 }
 0x190   : > { %7657 = vst [vmem:[#allocation36_spill] sm:$0xff] %v6084_v60  ;;  %v6089_v34 = vadd.f32 %v2221_v37, %v1868_v18  ;;  %v6099_v42 = vpop.f32.mrf.mxu1 }
 0x191   : > { %v1870_v31 = vpop.f32.mrf.mxu0 }
 0x192   : > { %7658 = vst [vmem:[#allocation37_spill] sm:$0xff] %v6089_v34  ;;  %v6094_v35 = vadd.f32 %v2223_v51, %v1870_v31  ;;  %v6105_v37 = vpop.f32.mrf.mxu1  ;;  %v3092_v51 = vmul.f32 %v5784_v59, %v5784_v59  ;;  %v3096_v59 = vmul.f32 %v5794_v5, %v5794_v5  ;;  %v5121_v5 = vld [vmem:[%s7614_s1 + $0x14c] ss:$16 sps:$4 sm:$0xff]  }
 0x193   : > { %v1874_v40 = vpop.f32.mrf.mxu0  ;;  %2852 = vmatmul.mubr.bf16.gmra.mxu0 %v5118_v20 }
 0x194   : > { %7659 = vst [vmem:[#allocation38_spill] sm:$0xff] %v6094_v35  ;;  %v2228_v60 = vadd.f32 %v2227_v55, %v1874_v40  ;;  %4556 = vmatprep.mubr.msk.bf16.mxu0 %vm1583_vm0, %v5119_v48  ;;  %v6109_v34 = vpop.f32.mrf.mxu1  ;;  %v3093_v55 = vmul.f32 %v5789_v63, %v5789_v63  ;;  %v5120_v63 = vld [vmem:[%s7614_s1 + $0x128] ss:$16 sps:$4 sm:$0xff]  }
 0x195   : > { %v1876_v50 = vpop.f32.mrf.mxu0  ;;  %2529 = vmatmul.mubr.bf16.gmra.mxu1 %v5546_v56 }
 0x196   : > { %v3220_v18 = vmul.f32 %v2228_v60, %v2228_v60  ;;  %v2230_v31 = vadd.f32 %v2229_v3, %v1876_v50  ;;  %2538 = vmatprep.mubr.bf16.mxu1 %v5552_v58  ;;  %v6117_v43 = vpop.f32.mrf.mxu1  ;;  %v3097_v58 = vmul.f32 %v5800_v9, %v5800_v9 }
 0x197   : > { %v1878_v35 = vpop.f32.mrf.mxu0 }
 0x198   : > { %v6114_v40 = vadd.f32 %v3220_v18, %v3092_v51  ;;  %v3221_v20 = vmul.f32 %v2230_v31, %v2230_v31  ;;  %v2232_v48 = vadd.f32 %v2231_v46, %v1878_v35  ;;  %v6126_v51 = vpop.f32.mrf.mxu1 }
 0x199   : > { %v1880_v28 = vpop.f32.mrf.mxu0 }
 0x19a   : > { %v6121_v3 = vadd.f32 %v3221_v20, %v3093_v55  ;;  %v3224_v60 = vmul.f32 %v2232_v48, %v2232_v48  ;;  %v2234_v50 = vadd.f32 %v2233_v61, %v1880_v28  ;;  %v3100_v61 = vmul.f32 %v5805_v15, %v5805_v15  ;;  %v6138_v31 = vpop.f32.mrf.mxu1 }
 0x19b   : > { %v1884_v56 = vpop.f32.mrf.mxu0  ;;  %2862 = vmatmul.mubr.bf16.gmra.mxu0 %v5120_v63 }
 0x19c   : > { %v6130_v46 = vadd.f32 %v3224_v60, %v3096_v59  ;;  %v3225_v35 = vmul.f32 %v2234_v50, %v2234_v50  ;;  %v2238_v18 = vadd.f32 %v2237_v25, %v1884_v56  ;;  %4557 = vmatprep.mubr.msk.bf16.mxu0 %vm1583_vm0, %v5121_v5  ;;  %v3101_v25 = vmul.f32 %v5810_v19, %v5810_v19  ;;  %v6146_v60 = vpop.f32.mrf.mxu1 }
 0x19d   : > { %v1886_v28 = vpop.f32.mrf.mxu0  ;;  %2539 = vmatmul.mubr.bf16.gmra.mxu1 %v5571_v2  ;;  %v3104_v19 = vmul.f32 %v5815_v27, %v5815_v27 }
 0x19e   : > { %v6142_v9 = vadd.f32 %v3225_v35, %v3097_v58  ;;  %v3228_v20 = vmul.f32 %v2238_v18, %v2238_v18  ;;  %v2240_v48 = vadd.f32 %v2239_v23, %v1886_v28  ;;  %2548 = vmatprep.mubr.bf16.mxu1 %v5577_v4  ;;  %v6155_v23 = vpop.f32.mrf.mxu1 }
 0x19f   : > { %v1888_v59 = vpop.f32.mrf.mxu0 }
 0x1a0   : > { %v6149_v50 = vadd.f32 %v3228_v20, %v3100_v61  ;;  %v3229_v15 = vmul.f32 %v2240_v48, %v2240_v48  ;;  %v2242_v56 = vadd.f32 %v6074_v62, %v1888_v59  ;;  %v5122_v62 = vld [vmem:[%s7614_s1 + $0x148] ss:$16 sps:$4 sm:$0xff]   ;;  %v6165_v4 = vpop.f32.mrf.mxu1  ;;  %v3105_v61 = vmul.f32 %v5821_v33, %v5821_v33 }
 0x1a1   : > { %v1890_v58 = vpop.f32.mrf.mxu0  ;;  %v3108_v48 = vmul.f32 %v5826_v39, %v5826_v39 }
 0x1a2   : > { %v6159_v35 = vadd.f32 %v3229_v15, %v3101_v25  ;;  %v3232_v18 = vmul.f32 %v2242_v56, %v2242_v56  ;;  %v2244_v2 = vadd.f32 %v6082_v17, %v1890_v58  ;;  %v5123_v17 = vld [vmem:[%s7614_s1 + $0x16c] ss:$16 sps:$4 sm:$0xff]   ;;  %v6178_v59 = vpop.f32.mrf.mxu1 }
 0x1a3   : > { %v1894_v5 = vpop.f32.mrf.mxu0  ;;  %2872 = vmatmul.mubr.bf16.gmra.mxu0 %v5122_v62 }
 0x1a4   : > { %v6169_v28 = vadd.f32 %v3232_v18, %v3104_v19  ;;  %v3233_v20 = vmul.f32 %v2244_v2, %v2244_v2  ;;  %v2248_v27 = vadd.f32 %v6086_v54, %v1894_v5  ;;  %4558 = vmatprep.mubr.msk.bf16.mxu0 %vm1583_vm0, %v5123_v17  ;;  %v6185_v19 = vpop.f32.mrf.mxu1 }
 0x1a5   : > { %v1896_v25 = vpop.f32.mrf.mxu0  ;;  %2549 = vmatmul.mubr.bf16.gmra.mxu1 %v5594_v10  ;;  %v3109_v10 = vmul.f32 %v5831_v49, %v5831_v49  ;;  %v5125_v49 = vld [vmem:[%s7614_s1 + $0x18c] ss:$16 sps:$4 sm:$0xff]  }
 0x1a6   : > { %v6182_v15 = vadd.f32 %v3233_v20, %v3105_v61  ;;  %v3236_v56 = vmul.f32 %v2248_v27, %v2248_v27  ;;  %v2250_v54 = vadd.f32 %v6092_v29, %v1896_v25  ;;  %2558 = vmatprep.mubr.bf16.mxu1 %v5600_v12  ;;  %v6194_v62 = vpop.f32.mrf.mxu1  ;;  %v3112_v29 = vmul.f32 %v5836_v57, %v5836_v57  ;;  %v5124_v12 = vld [vmem:[%s7614_s1 + $0x168] ss:$16 sps:$4 sm:$0xff]  }
 0x1a7   : > { %v1898_v58 = vpop.f32.mrf.mxu0 }
 0x1a8   : > { %v6188_v18 = vadd.f32 %v3236_v56, %v3108_v48  ;;  %v2252_v39 = vadd.f32 %v6099_v42, %v1898_v58  ;;  %v3237_v61 = vmul.f32 %v2250_v54, %v2250_v54  ;;  %v6204_v42 = vpop.f32.mrf.mxu1  ;;  %v3113_v48 = vmul.f32 %v5842_v0, %v5842_v0 }
 0x1a9   : > { %v1900_v5 = vpop.f32.mrf.mxu0 }
 0x1aa   : > { %v3240_v20 = vmul.f32 %v2252_v39, %v2252_v39  ;;  %v2254_v27 = vadd.f32 %v6105_v37, %v1900_v5  ;;  %v6215_v54 = vpop.f32.mrf.mxu1  ;;  %v6217_v58 = vadd.f32 %v3237_v61, %v3109_v10  ;;  %v3116_v10 = vmul.f32 %v5847_v7, %v5847_v7  ;;  %v5126_v7 = vld [vmem:[%s7614_s1 + $0x188] ss:$16 sps:$4 sm:$0xff]  }
 0x1ab   : > { %v1904_v17 = vpop.f32.mrf.mxu0  ;;  %2882 = vmatmul.mubr.bf16.gmra.mxu0 %v5124_v12 }
 0x1ac   : > { %v6208_v25 = vadd.f32 %v3240_v20, %v3112_v29  ;;  %v3241_v57 = vmul.f32 %v2254_v27, %v2254_v27  ;;  %v2258_v56 = vadd.f32 %v6109_v34, %v1904_v17  ;;  %4559 = vmatprep.mubr.msk.bf16.mxu0 %vm1583_vm0, %v5125_v49  ;;  %v6224_v34 = vpop.f32.mrf.mxu1 }
 0x1ad   : > { %v1906_v37 = vpop.f32.mrf.mxu0  ;;  %2559 = vmatmul.mubr.bf16.gmra.mxu1 %v5621_v24 }
 0x1ae   : > { %v6221_v0 = vadd.f32 %v3241_v57, %v3113_v48  ;;  %v2260_v5 = vadd.f32 %v6117_v43, %v1906_v37  ;;  %v3244_v20 = vmul.f32 %v2258_v56, %v2258_v56  ;;  %2568 = vmatprep.mubr.bf16.mxu1 %v5627_v26  ;;  %v6233_v12 = vpop.f32.mrf.mxu1  ;;  %v3120_v43 = vmul.f32 %v5857_v21, %v5857_v21 }
 0x1af   : > { %v1908_v29 = vpop.f32.mrf.mxu0  ;;  %v3121_v26 = vmul.f32 %v5863_v36, %v5863_v36 }
 0x1b0   : > { %v2262_v27 = vadd.f32 %v6126_v51, %v1908_v29  ;;  %v3245_v48 = vmul.f32 %v2260_v5, %v2260_v5  ;;  %v3117_v51 = vmul.f32 %v5852_v16, %v5852_v16  ;;  %v6245_v49 = vpop.f32.mrf.mxu1  ;;  %v6247_v37 = vadd.f32 %v3244_v20, %v3116_v10  ;;  %v5127_v16 = vld [vmem:[%s7614_s1 + $0x1ac] ss:$16 sps:$4 sm:$0xff]  }
 0x1b1   : > { %v1910_v17 = vpop.f32.mrf.mxu0 }
 0x1b2   : > { %v3248_v57 = vmul.f32 %v2262_v27, %v2262_v27  ;;  %v2264_v24 = vadd.f32 %v6138_v31, %v1910_v17  ;;  %v6256_v29 = vpop.f32.mrf.mxu1  ;;  %v6258_v27 = vadd.f32 %v3245_v48, %v3117_v51  ;;  %v3124_v51 = vmul.f32 %v5868_v45, %v5868_v45  ;;  %v5128_v45 = vld [vmem:[%s7614_s1 + $0x1a8] ss:$16 sps:$4 sm:$0xff]  }
 0x1b3   : > { %v1914_v56 = vpop.f32.mrf.mxu0  ;;  %2892 = vmatmul.mubr.bf16.gmra.mxu0 %v5126_v7 }
 0x1b4   : > { %v6249_v21 = vadd.f32 %v3248_v57, %v3120_v43  ;;  %v3249_v5 = vmul.f32 %v2264_v24, %v2264_v24  ;;  %v2268_v31 = vadd.f32 %v6146_v60, %v1914_v56  ;;  %4560 = vmatprep.mubr.msk.bf16.mxu0 %vm1583_vm0, %v5127_v16  ;;  %v6265_v60 = vpop.f32.mrf.mxu1 }
 0x1b5   : > { %v1916_v36 = vpop.f32.mrf.mxu0  ;;  %2569 = vmatmul.mubr.bf16.gmra.mxu1 %v5648_v41 }
 0x1b6   : > { %v6262_v10 = vadd.f32 %v3249_v5, %v3121_v26  ;;  %v2270_v17 = vadd.f32 %v6155_v23, %v1916_v36  ;;  %v3252_v57 = vmul.f32 %v2268_v31, %v2268_v31  ;;  %2578 = vmatprep.mubr.bf16.mxu1 %v5654_v44  ;;  %v6274_v56 = vpop.f32.mrf.mxu1  ;;  %v3128_v23 = vmul.f32 %v5875_v53, %v5875_v53 }
 0x1b7   : > { %v1918_v43 = vpop.f32.mrf.mxu0  ;;  %v3129_v44 = vmul.f32 %v5883_v11, %v5883_v11 }
 0x1b8   : > { %v2272_v24 = vadd.f32 %v6165_v4, %v1918_v43  ;;  %v3253_v7 = vmul.f32 %v2270_v17, %v2270_v17  ;;  %v3125_v4 = vmul.f32 %v5870_v52, %v5870_v52  ;;  %v6286_v16 = vpop.f32.mrf.mxu1  ;;  %v6288_v36 = vadd.f32 %v3252_v57, %v3124_v51  ;;  %v5129_v52 = vld [vmem:[%s7614_s1 + $0x1cc] ss:$16 sps:$4 sm:$0xff]  }
 0x1b9   : > { %v1920_v26 = vpop.f32.mrf.mxu0 }
 0x1ba   : > { %v3256_v5 = vmul.f32 %v2272_v24, %v2272_v24  ;;  %v2274_v41 = vadd.f32 %v6178_v59, %v1920_v26  ;;  %v6297_v43 = vpop.f32.mrf.mxu1  ;;  %v6299_v24 = vadd.f32 %v3253_v7, %v3125_v4  ;;  %v5131_v7 = vld [vmem:[%s7614_s1 + $0x224] ss:$16 sps:$4 sm:$0xff]  }
 0x1bb   : > { %v1924_v31 = vpop.f32.mrf.mxu0  ;;  %2902 = vmatmul.mubr.bf16.gmra.mxu0 %v5128_v45  ;;  %v7667_v4 = vld [vmem:[#allocation10_spill] sm:$0xff] }
 0x1bc   : > { %v6290_v53 = vadd.f32 %v3256_v5, %v3128_v23  ;;  %v3257_v17 = vmul.f32 %v2274_v41, %v2274_v41  ;;  %v2278_v59 = vadd.f32 %v6185_v19, %v1924_v31  ;;  %4561 = vmatprep.mubr.msk.bf16.mxu0 %vm1583_vm0, %v5129_v52  ;;  %v6306_v19 = vpop.f32.mrf.mxu1  ;;  %v5130_v5 = vld [vmem:[%s7614_s1 + $0x200] ss:$16 sps:$4 sm:$0xff]  }
 0x1bd   : > { %v1926_v11 = vpop.f32.mrf.mxu0  ;;  %2579 = vmatmul.mubr.bf16.gmra.mxu1 %v5130_v5  ;;  %v7661_v52 = vld [vmem:[#allocation4_spill] sm:$0xff] }
 0x1be   : > { %v6303_v51 = vadd.f32 %v3257_v17, %v3129_v44  ;;  %v2280_v26 = vadd.f32 %v6194_v62, %v1926_v11  ;;  %v3260_v41 = vmul.f32 %v2278_v59, %v2278_v59  ;;  %2588 = vmatprep.mubr.bf16.mxu1 %v5131_v7  ;;  %v7660_v62 = vld [vmem:[#allocation2_spill] sm:$0xff]  ;;  %v6319_v17 = vpop.f32.mrf.mxu1  ;;  %v3136_v11 = vmul.f32 %v7661_v52, %v7661_v52 }
 0x1bf   : > { %v1928_v23 = vpop.f32.mrf.mxu0  ;;  %v3132_v44 = vmul.f32 %v7660_v62, %v7660_v62  ;;  %v3137_v7 = vmul.f32 %v5903_v32, %v5903_v32  ;;  %v5132_v62 = vld [vmem:[%s7614_s1 + $0x1c8] ss:$16 sps:$4 sm:$0xff]  }
 0x1c0   : > { %v2282_v31 = vadd.f32 %v6204_v42, %v1928_v23  ;;  %v3261_v59 = vmul.f32 %v2280_v26, %v2280_v26  ;;  %v7662_v23 = vld [vmem:[#allocation3_spill] sm:$0xff]  ;;  %v6331_v33 = vpop.f32.mrf.mxu1 }
 0x1c1   : > { %v1930_v45 = vpop.f32.mrf.mxu0  ;;  %v3133_v55 = vmul.f32 %v7662_v23, %v7662_v23  ;;  %v6333_v2 = vadd.f32 %v3260_v41, %v3132_v44 }
 0x1c2   : > { %v3264_v5 = vmul.f32 %v2282_v31, %v2282_v31  ;;  %v2284_v42 = vadd.f32 %v6215_v54, %v1930_v45  ;;  %v5133_v45 = vld [vmem:[%s7614_s1 + $0x1ec] ss:$16 sps:$4 sm:$0xff]   ;;  %v6342_v52 = vpop.f32.mrf.mxu1 }
 0x1c3   : > { %v1934_v63 = vpop.f32.mrf.mxu0  ;;  %2912 = vmatmul.mubr.bf16.gmra.mxu0 %v5132_v62  ;;  %v6344_v23 = vadd.f32 %v3261_v59, %v3133_v55  ;;  %v5135_v55 = vld [vmem:[%s7614_s1 + $0x244] ss:$16 sps:$4 sm:$0xff]  }
 0x1c4   : > { %v6335_v26 = vadd.f32 %v3264_v5, %v3136_v11  ;;  %v3265_v31 = vmul.f32 %v2284_v42, %v2284_v42  ;;  %v2288_v54 = vadd.f32 %v6224_v34, %v1934_v63  ;;  %4562 = vmatprep.mubr.msk.bf16.mxu0 %vm1583_vm0, %v5133_v45  ;;  %v6351_v63 = vpop.f32.mrf.mxu1  ;;  %v5134_v34 = vld [vmem:[%s7614_s1 + $0x220] ss:$16 sps:$4 sm:$0xff]  }
 0x1c5   : > { %v1936_v32 = vpop.f32.mrf.mxu0  ;;  %2589 = vmatmul.mubr.bf16.gmra.mxu1 %v5134_v34 }
 0x1c6   : > { %v6348_v44 = vadd.f32 %v3265_v31, %v3137_v7  ;;  %v2290_v11 = vadd.f32 %v6233_v12, %v1936_v32  ;;  %v3268_v42 = vmul.f32 %v2288_v54, %v2288_v54  ;;  %2598 = vmatprep.mubr.bf16.mxu1 %v5135_v55  ;;  %v7663_v12 = vld [vmem:[#allocation5_spill] sm:$0xff]  ;;  %v6364_v45 = vpop.f32.mrf.mxu1  ;;  %v7664_v32 = vld [vmem:[#allocation7_spill] sm:$0xff]  ;;  %v3145_v55 = vmul.f32 %v5920_v6, %v5920_v6 }
 0x1c7   : > { %v1938_v5 = vpop.f32.mrf.mxu0  ;;  %v3140_v7 = vmul.f32 %v7663_v12, %v7663_v12  ;;  %v3144_v34 = vmul.f32 %v7664_v32, %v7664_v32  ;;  %v5136_v12 = vld [vmem:[%s7614_s1 + $0x1e8] ss:$16 sps:$4 sm:$0xff]  }
 0x1c8   : > { %v2292_v62 = vadd.f32 %v6245_v49, %v1938_v5  ;;  %v3269_v54 = vmul.f32 %v2290_v11, %v2290_v11  ;;  %v7665_v5 = vld [vmem:[#allocation6_spill] sm:$0xff]  ;;  %v6376_v48 = vpop.f32.mrf.mxu1 }
 0x1c9   : > { %v1940_v31 = vpop.f32.mrf.mxu0  ;;  %v3141_v61 = vmul.f32 %v7665_v5, %v7665_v5  ;;  %v6378_v57 = vadd.f32 %v3268_v42, %v3140_v7 }
 0x1ca   : > { %v3272_v39 = vmul.f32 %v2292_v62, %v2292_v62  ;;  %v2294_v49 = vadd.f32 %v6256_v29, %v1940_v31  ;;  %v5137_v31 = vld [vmem:[%s7614_s1 + $0x20c] ss:$16 sps:$4 sm:$0xff]   ;;  %v6387_v32 = vpop.f32.mrf.mxu1 }
 0x1cb   : > { %v1944_v20 = vpop.f32.mrf.mxu0  ;;  %2922 = vmatmul.mubr.bf16.gmra.mxu0 %v5136_v12  ;;  %v6389_v5 = vadd.f32 %v3269_v54, %v3141_v61  ;;  %v5139_v54 = vld [vmem:[%s7614_s1 + $0x264] ss:$16 sps:$4 sm:$0xff]  }
 0x1cc   : > { %v6380_v11 = vadd.f32 %v3272_v39, %v3144_v34  ;;  %v3273_v62 = vmul.f32 %v2294_v49, %v2294_v49  ;;  %v2298_v29 = vadd.f32 %v6265_v60, %v1944_v20  ;;  %4563 = vmatprep.mubr.msk.bf16.mxu0 %vm1583_vm0, %v5137_v31  ;;  %v6396_v20 = vpop.f32.mrf.mxu1  ;;  %v5138_v60 = vld [vmem:[%s7614_s1 + $0x240] ss:$16 sps:$4 sm:$0xff]  }
 0x1cd   : > { %v1946_v6 = vpop.f32.mrf.mxu0  ;;  %2599 = vmatmul.mubr.bf16.gmra.mxu1 %v5138_v60  ;;  %v7666_v31 = vld [vmem:[#allocation8_spill] sm:$0xff] }
 0x1ce   : > { %v6393_v7 = vadd.f32 %v3273_v62, %v3145_v55  ;;  %v2300_v39 = vadd.f32 %v6274_v56, %v1946_v6  ;;  %v3276_v49 = vmul.f32 %v2298_v29, %v2298_v29  ;;  %2608 = vmatprep.mubr.bf16.mxu1 %v5139_v54  ;;  %v6407_v62 = vpop.f32.mrf.mxu1  ;;  %v3148_v6 = vmul.f32 %v7666_v31, %v7666_v31 }
 0x1cf   : > { %v1948_v34 = vpop.f32.mrf.mxu0  ;;  %v3152_v29 = vmul.f32 %v7667_v4, %v7667_v4 }
 0x1d0   : > { %v2302_v12 = vadd.f32 %v6286_v16, %v1948_v34  ;;  %v3517_v61 = vpack.c.bf16 %v6393_v7, %v6389_v5  ;;  %v3277_v56 = vmul.f32 %v2300_v39, %v2300_v39  ;;  %v7668_v34 = vld [vmem:[#allocation9_spill] sm:$0xff]  ;;  %v7669_v7 = vld [vmem:[#allocation11_spill] sm:$0xff]  ;;  %v6421_v59 = vpop.f32.mrf.mxu1  ;;  %v3404_v31 = vadd.f32 %v3276_v49, %v3148_v6 }
 0x1d1   : > { %v1950_v55 = vpop.f32.mrf.mxu0  ;;  %v3149_v5 = vmul.f32 %v7668_v34, %v7668_v34  ;;  %v3153_v41 = vmul.f32 %v7669_v7, %v7669_v7  ;;  %v5140_v39 = vld [vmem:[%s7614_s1 + $0x208] ss:$16 sps:$4 sm:$0xff]  }
 0x1d2   : > { %v3280_v60 = vmul.f32 %v2302_v12, %v2302_v12  ;;  %v2304_v16 = vadd.f32 %v6297_v43, %v1950_v55  ;;  %v5141_v43 = vld [vmem:[%s7614_s1 + $0x22c] ss:$16 sps:$4 sm:$0xff]   ;;  %v7670_v55 = vld [vmem:[#allocation12_spill] sm:$0xff]  ;;  %v6430_v30 = vpop.f32.mrf.mxu1 }
 0x1d3   : > { %v1954_v54 = vpop.f32.mrf.mxu0  ;;  %2932 = vmatmul.mubr.bf16.gmra.mxu0 %v5140_v39  ;;  %v3156_v34 = vmul.f32 %v7670_v55, %v7670_v55  ;;  %v3405_v7 = vadd.f32 %v3277_v56, %v3149_v5 }
 0x1d4   : > { %v3408_v42 = vadd.f32 %v3280_v60, %v3152_v29  ;;  %v3281_v4 = vmul.f32 %v2304_v16, %v2304_v16  ;;  %v2308_v12 = vadd.f32 %v6306_v19, %v1954_v54  ;;  %4564 = vmatprep.mubr.msk.bf16.mxu0 %vm1583_vm0, %v5141_v43  ;;  %v7671_v29 = vld [vmem:[#allocation13_spill] sm:$0xff]  ;;  %v6435_v16 = vpop.f32.mrf.mxu1  ;;  %v5142_v54 = vld [vmem:[%s7614_s1 + $0x260] ss:$16 sps:$4 sm:$0xff]  }
 0x1d5   : > { %v1956_v22 = vpop.f32.mrf.mxu0  ;;  %v3157_v19 = vmul.f32 %v7671_v29, %v7671_v29  ;;  %2609 = vmatmul.mubr.bf16.gmra.mxu1 %v5142_v54  ;;  %v7674_v54 = vld [vmem:[#allocation16_spill] sm:$0xff] }
 0x1d6   : > { %v3520_v39 = vpack.c.bf16 %v3408_v42, %v3404_v31  ;;  %v3409_v13 = vadd.f32 %v3281_v4, %v3153_v41  ;;  %v3284_v49 = vmul.f32 %v2308_v12, %v2308_v12  ;;  %v2310_v6 = vadd.f32 %v6319_v17, %v1956_v22  ;;  %v5143_v22 = vld [vmem:[%s7614_s1 + $0x284] ss:$16 sps:$4 sm:$0xff]   ;;  %v6446_v31 = vpop.f32.mrf.mxu1 }
 0x1d7   : > { %v1958_v60 = vpop.f32.mrf.mxu0  ;;  %2618 = vmatprep.mubr.bf16.mxu1 %v5143_v22  ;;  %v7672_v4 = vld [vmem:[#allocation14_spill] sm:$0xff] }
 0x1d8   : > { %v6440_v56 = vadd.f32 %v3284_v49, %v3156_v34  ;;  %v3285_v5 = vmul.f32 %v2310_v6, %v2310_v6  ;;  %v2312_v42 = vadd.f32 %v6331_v33, %v1958_v60  ;;  %v3521_v41 = vpack.c.bf16 %v3409_v13, %v3405_v7  ;;  %v7673_v49 = vld [vmem:[#allocation15_spill] sm:$0xff]  ;;  %v6458_v6 = vpop.f32.mrf.mxu1 }
 0x1d9   : > { %v1960_v17 = vpop.f32.mrf.mxu0  ;;  %v3160_v12 = vmul.f32 %v7672_v4, %v7672_v4  ;;  %v3161_v13 = vmul.f32 %v7673_v49, %v7673_v49  ;;  %v5144_v7 = vld [vmem:[%s7614_s1 + $0x228] ss:$16 sps:$4 sm:$0xff]  }
 0x1da   : > { %v6450_v43 = vadd.f32 %v3285_v5, %v3157_v19  ;;  %v3288_v55 = vmul.f32 %v2312_v42, %v2312_v42  ;;  %v2314_v34 = vadd.f32 %v6342_v52, %v1960_v17  ;;  %3636 = vmatprep.subr.bf16.mxu1 %v3521_v41  ;;  %v5145_v52 = vld [vmem:[%s7614_s1 + $0x24c] ss:$16 sps:$4 sm:$0xff]   ;;  %v3164_v5 = vmul.f32 %v7674_v54, %v7674_v54  ;;  %v6469_v41 = vpop.f32.mrf.mxu1 }
 0x1db   : > { %v1964_v33 = vpop.f32.mrf.mxu0  ;;  %2942 = vmatmul.mubr.bf16.gmra.mxu0 %v5144_v7  ;;  %3637 = vmatpush1.bf16.msra.mxu1 %v3520_v39 }
 0x1dc   : > { %v6460_v29 = vadd.f32 %v3288_v55, %v3160_v12  ;;  %v3289_v19 = vmul.f32 %v2314_v34, %v2314_v34  ;;  %v2318_v60 = vadd.f32 %v6351_v63, %v1964_v33  ;;  %3638 = vmatprep.subr.bf16.mxu1 %v3517_v61  ;;  %4565 = vmatprep.mubr.msk.bf16.mxu0 %vm1583_vm0, %v5145_v52  ;;  %v7675_v61 = vld [vmem:[#allocation17_spill] sm:$0xff]  ;;  %v6481_v34 = vpop.f32.mrf.mxu1 }
 0x1dd   : > { %v1966_v42 = vpop.f32.mrf.mxu0  ;;  %v3165_v4 = vmul.f32 %v7675_v61, %v7675_v61  ;;  %v7676_v55 = vpack.c.bf16 %v6380_v11, %v6378_v57  ;;  %v5147_v57 = vld [vmem:[%s7614_s1 + $0x2a4] ss:$16 sps:$4 sm:$0xff]   ;;  %v7680_v61 = vpack.c.bf16 %v6335_v26, %v6333_v2 }
 0x1de   : > { %v6473_v22 = vadd.f32 %v3289_v19, %v3161_v13  ;;  %v3292_v17 = vmul.f32 %v2318_v60, %v2318_v60  ;;  %v2320_v63 = vadd.f32 %v6364_v45, %v1966_v42  ;;  %v7677_v13 = vpack.c.bf16 %v6348_v44, %v6344_v23  ;;  %v5146_v45 = vld [vmem:[%s7614_s1 + $0x280] ss:$16 sps:$4 sm:$0xff]   ;;  %v6492_v60 = vpop.f32.mrf.mxu1 }
 0x1df   : > { %v1968_v12 = vpop.f32.mrf.mxu0  ;;  %3639 = vmatpush1.bf16.msra.mxu1 %v7676_v55  ;;  %v7678_v11 = vld [vmem:[#allocation18_spill] sm:$0xff]  ;;  %v7682_v26 = vld [vmem:[#allocation20_spill] sm:$0xff] }
 0x1e0   : > { %v6483_v49 = vadd.f32 %v3292_v17, %v3164_v5  ;;  %v3293_v33 = vmul.f32 %v2320_v63, %v2320_v63  ;;  %v2322_v7 = vadd.f32 %v6376_v48, %v1968_v12  ;;  %3640 = vmatprep.subr.bf16.mxu1 %v7677_v13  ;;  %2619 = vmatmul.mubr.bf16.gmra.mxu1 %v5146_v45  ;;  %v7679_v5 = vld [vmem:[#allocation19_spill] sm:$0xff]  ;;  %v6512_v12 = vpop.f32.mrf.mxu1 }
 0x1e1   : > { %v1970_v19 = vpop.f32.mrf.mxu0  ;;  %2628 = vmatprep.mubr.bf16.mxu1 %v5147_v57  ;;  %v3168_v23 = vmul.f32 %v7678_v11, %v7678_v11  ;;  %v3169_v42 = vmul.f32 %v7679_v5, %v7679_v5  ;;  %v5148_v63 = vld [vmem:[%s7614_s1 + $0x248] ss:$16 sps:$4 sm:$0xff]   ;;  %v3172_v45 = vmul.f32 %v7682_v26, %v7682_v26  ;;  %v7683_v11 = vpack.c.bf16 %v6290_v53, %v6288_v36  ;;  %v5151_v36 = vld [vmem:[%s7614_s1 + $0x2c4] ss:$16 sps:$4 sm:$0xff]  }
 0x1e2   : > { %v6501_v44 = vadd.f32 %v3293_v33, %v3165_v4  ;;  %v3296_v52 = vmul.f32 %v2322_v7, %v2322_v7  ;;  %v2324_v54 = vadd.f32 %v6387_v32, %v1970_v19  ;;  %v7681_v33 = vpack.c.bf16 %v6303_v51, %v6299_v24  ;;  %v5149_v7 = vld [vmem:[%s7614_s1 + $0x26c] ss:$16 sps:$4 sm:$0xff]   ;;  %v6524_v2 = vpop.f32.mrf.mxu1 }
 0x1e3   : > { %v1974_v17 = vpop.f32.mrf.mxu0  ;;  %2952 = vmatmul.mubr.bf16.gmra.mxu0 %v5148_v63  ;;  %3641 = vmatpush1.bf16.msra.mxu1 %v7680_v61  ;;  %v7684_v5 = vpack.c.bf16 %v6262_v10, %v6258_v27  ;;  %v3176_v27 = vmul.f32 %v5996_v14, %v5996_v14  ;;  %v7685_v63 = vld [vmem:[#allocation22_spill] sm:$0xff]  ;;  %v7706_v48 = vld [vmem:[#allocation35_spill] sm:$0xff] }
 0x1e4   : > { %v6514_v4 = vadd.f32 %v3296_v52, %v3168_v23  ;;  %v3297_v55 = vmul.f32 %v2324_v54, %v2324_v54  ;;  %v2328_v32 = vadd.f32 %v6396_v20, %v1974_v17  ;;  %3642 = vmatprep.subr.bf16.mxu1 %v7681_v33  ;;  %4566 = vmatprep.mubr.msk.bf16.mxu0 %vm1583_vm0, %v5149_v7  ;;  %v6536_v23 = vpop.f32.mrf.mxu1  ;;  %v5152_v33 = vld [vmem:[%s7614_s1 + $0x268] ss:$16 sps:$4 sm:$0xff]  }
 0x1e5   : > { %v1976_v13 = vpop.f32.mrf.mxu0  ;;  %v3177_v61 = vmul.f32 %v7685_v63, %v7685_v63  ;;  %v7686_v7 = vpack.c.bf16 %v6249_v21, %v6247_v37 }
 0x1e6   : > { %v6530_v20 = vadd.f32 %v3297_v55, %v3169_v42  ;;  %v3300_v57 = vmul.f32 %v2328_v32, %v2328_v32  ;;  %v2330_v24 = vadd.f32 %v6407_v62, %v1976_v13  ;;  %v5150_v42 = vld [vmem:[%s7614_s1 + $0x2a0] ss:$16 sps:$4 sm:$0xff]   ;;  %v6547_v17 = vpop.f32.mrf.mxu1 }
 0x1e7   : > { %v1978_v51 = vpop.f32.mrf.mxu0  ;;  %3643 = vmatpush1.bf16.msra.mxu1 %v7683_v11 }
 0x1e8   : > { %v6538_v52 = vadd.f32 %v3300_v57, %v3172_v45  ;;  %v2332_v54 = vadd.f32 %v6421_v59, %v1978_v51  ;;  %3644 = vmatprep.subr.bf16.mxu1 %v7684_v5  ;;  %2629 = vmatmul.mubr.bf16.gmra.mxu1 %v5150_v42  ;;  %v3301_v55 = vmul.f32 %v2330_v24, %v2330_v24  ;;  %v6565_v13 = vpop.f32.mrf.mxu1  ;;  %v5153_v57 = vld [vmem:[%s7614_s1 + $0x28c] ss:$16 sps:$4 sm:$0xff]  }
 0x1e9   : > { %v1980_v62 = vpop.f32.mrf.mxu0  ;;  %2638 = vmatprep.mubr.bf16.mxu1 %v5151_v36  ;;  %v7687_v45 = vpack.c.bf16 %v6221_v0, %v6217_v58  ;;  %v7688_v24 = vld [vmem:[#allocation21_spill] sm:$0xff]  ;;  %v7689_v42 = vpack.c.bf16 %v6208_v25, %v6188_v18  ;;  %v5155_v18 = vld [vmem:[%s7614_s1 + $0x2e4] ss:$16 sps:$4 sm:$0xff]  }
 0x1ea   : > { %v3304_v10 = vmul.f32 %v2332_v54, %v2332_v54  ;;  %v2334_v59 = vadd.f32 %v6430_v30, %v1980_v62  ;;  %v3173_v37 = vmul.f32 %v7688_v24, %v7688_v24  ;;  %v6579_v51 = vpop.f32.mrf.mxu1 }
 0x1eb   : > { %v1984_v32 = vpop.f32.mrf.mxu0  ;;  %2962 = vmatmul.mubr.bf16.gmra.mxu0 %v5152_v33  ;;  %3645 = vmatpush1.bf16.msra.mxu1 %v7686_v7  ;;  %v7692_v33 = vld [vmem:[#allocation24_spill] sm:$0xff] }
 0x1ec   : > { %v6567_v14 = vadd.f32 %v3304_v10, %v3176_v27  ;;  %v3305_v26 = vmul.f32 %v2334_v59, %v2334_v59  ;;  %v2338_v30 = vadd.f32 %v6435_v16, %v1984_v32  ;;  %3646 = vmatprep.subr.bf16.mxu1 %v7687_v45  ;;  %4567 = vmatprep.mubr.msk.bf16.mxu0 %vm1583_vm0, %v5153_v57  ;;  %v6591_v62 = vpop.f32.mrf.mxu1  ;;  %v7691_v10 = vld [vmem:[#allocation23_spill] sm:$0xff] }
 0x1ed   : > { %v1986_v21 = vpop.f32.mrf.mxu0  ;;  %v6586_v0 = vadd.f32 %v3301_v55, %v3173_v37  ;;  %v7690_v27 = vpack.c.bf16 %v6182_v15, %v6159_v35  ;;  %v3180_v59 = vmul.f32 %v7691_v10, %v7691_v10  ;;  %v3184_v15 = vmul.f32 %v6015_v38, %v6015_v38  ;;  %v5156_v45 = vld [vmem:[%s7614_s1 + $0x288] ss:$16 sps:$4 sm:$0xff]  }
 0x1ee   : > { %v6583_v16 = vadd.f32 %v3305_v26, %v3177_v61  ;;  %v2340_v58 = vadd.f32 %v6446_v31, %v1986_v21  ;;  %v3308_v54 = vmul.f32 %v2338_v30, %v2338_v30  ;;  %v5154_v31 = vld [vmem:[%s7614_s1 + $0x2c0] ss:$16 sps:$4 sm:$0xff]   ;;  %v6602_v61 = vpop.f32.mrf.mxu1  ;;  %v3181_v32 = vmul.f32 %v6012_v8, %v6012_v8  ;;  %v5157_v21 = vld [vmem:[%s7614_s1 + $0x2ac] ss:$16 sps:$4 sm:$0xff]  }
 0x1ef   : > { %v1988_v5 = vpop.f32.mrf.mxu0  ;;  %3647 = vmatpush1.bf16.msra.mxu1 %v7689_v42  ;;  %v3185_v7 = vmul.f32 %v7692_v33, %v7692_v33  ;;  %v7693_v38 = vpack.c.bf16 %v6169_v28, %v6149_v50  ;;  %v7694_v37 = vpack.c.bf16 %v6142_v9, %v6121_v3  ;;  %v7695_v9 = vpack.c.bf16 %v6130_v46, %v6114_v40  ;;  %v5159_v40 = vld [vmem:[%s7614_s1 + $0x304] ss:$16 sps:$4 sm:$0xff]  }
 0x1f0   : > { %v2342_v36 = vadd.f32 %v6458_v6, %v1988_v5  ;;  %3648 = vmatprep.subr.bf16.mxu1 %v7690_v27  ;;  %2639 = vmatmul.mubr.bf16.gmra.mxu1 %v5154_v31  ;;  %v3533_v35 = vpack.c.bf16 %v6583_v16, %v6586_v0  ;;  %v3309_v25 = vmul.f32 %v2340_v58, %v2340_v58  ;;  %v6624_v57 = vpop.f32.mrf.mxu1  ;;  %v5158_v31 = vld [vmem:[%s7614_s1 + $0x2e0] ss:$16 sps:$4 sm:$0xff]  }
 0x1f1   : > { %v1990_v63 = vpop.f32.mrf.mxu0  ;;  %2648 = vmatprep.mubr.bf16.mxu1 %v5155_v18  ;;  %v6616_v26 = vadd.f32 %v3308_v54, %v3180_v59  ;;  %v7696_v59 = vld [vmem:[#allocation25_spill] sm:$0xff]  ;;  %v3192_v46 = vmul.f32 %v6032_v1, %v6032_v1  ;;  %v7711_v0 = vpack.c.bf16 %v6530_v20, %v6501_v44  ;;  %v7712_v20 = vpack.c.bf16 %v6514_v4, %v6483_v49 }
 0x1f2   : > { %v3312_v6 = vmul.f32 %v2342_v36, %v2342_v36  ;;  %v2344_v55 = vadd.f32 %v6469_v41, %v1990_v63  ;;  %v6636_v50 = vpop.f32.mrf.mxu1  ;;  %v6638_v28 = vadd.f32 %v3309_v25, %v3181_v32  ;;  %v5188_v44 = vld [vmem:[%s7614_s1 + $0x388] ss:$16 sps:$4 sm:$0xff]  }
 0x1f3   : > { %v1994_v30 = vpop.f32.mrf.mxu0  ;;  %2972 = vmatmul.mubr.bf16.gmra.mxu0 %v5156_v45  ;;  %3649 = vmatpush1.bf16.msra.mxu1 %v7693_v38 }
 0x1f4   : > { %v6626_v41 = vadd.f32 %v3312_v6, %v3184_v15  ;;  %v3313_v8 = vmul.f32 %v2344_v55, %v2344_v55  ;;  %v2348_v24 = vadd.f32 %v6481_v34, %v1994_v30  ;;  %3650 = vmatprep.subr.bf16.mxu1 %v7694_v37  ;;  %4568 = vmatprep.mubr.msk.bf16.mxu0 %vm1583_vm0, %v5157_v21  ;;  %v6648_v42 = vpop.f32.mrf.mxu1  ;;  %v7697_v55 = vld [vmem:[#allocation26_spill] sm:$0xff] }
 0x1f5   : > { %v1996_v58 = vpop.f32.mrf.mxu0  ;;  %v3189_v6 = vmul.f32 %v6029_v47, %v6029_v47  ;;  %v3193_v32 = vmul.f32 %v7697_v55, %v7697_v55  ;;  %v5161_v47 = vld [vmem:[%s7614_s1 + $0x2cc] ss:$16 sps:$4 sm:$0xff]  }
 0x1f6   : > { %v3536_v54 = vpack.c.bf16 %v6626_v41, %v6616_v26  ;;  %v6642_v5 = vadd.f32 %v3313_v8, %v3185_v7  ;;  %v2350_v34 = vadd.f32 %v6492_v60, %v1996_v58  ;;  %v3316_v36 = vmul.f32 %v2348_v24, %v2348_v24  ;;  %v6658_v18 = vpop.f32.mrf.mxu1  ;;  %v5160_v7 = vld [vmem:[%s7614_s1 + $0x2a8] ss:$16 sps:$4 sm:$0xff]  }
 0x1f7   : > { %v1998_v3 = vpop.f32.mrf.mxu0  ;;  %3651 = vmatpush1.bf16.msra.mxu1 %v7695_v9  ;;  %v3188_v60 = vmul.f32 %v7696_v59, %v7696_v59  ;;  %v7698_v59 = vld [vmem:[#allocation27_spill] sm:$0xff] }
 0x1f8   : > { %v2352_v27 = vadd.f32 %v6512_v12, %v1998_v3  ;;  %2649 = vmatmul.mubr.bf16.gmra.mxu1 %v5158_v31  ;;  %v3537_v10 = vpack.c.bf16 %v6642_v5, %v6638_v28  ;;  %v3317_v12 = vmul.f32 %v2350_v34, %v2350_v34  ;;  %v6673_v30 = vpop.f32.mrf.mxu1  ;;  %v5184_v28 = vld [vmem:[%s7614_s1 + $0x368] ss:$16 sps:$4 sm:$0xff]  }
 0x1f9   : > { %v2000_v63 = vpop.f32.mrf.mxu0  ;;  %2658 = vmatprep.mubr.bf16.mxu1 %v5159_v40  ;;  %v6675_v45 = vadd.f32 %v3316_v36, %v3188_v60  ;;  %v3196_v60 = vmul.f32 %v7698_v59, %v7698_v59 }
 0x1fa   : > { %v3320_v15 = vmul.f32 %v2352_v27, %v2352_v27  ;;  %v2354_v25 = vadd.f32 %v6524_v2, %v2000_v63  ;;  %v6684_v24 = vpop.f32.mrf.mxu1  ;;  %v6686_v37 = vadd.f32 %v3317_v12, %v3189_v6  ;;  %v5162_v27 = vld [vmem:[%s7614_s1 + $0x300] ss:$16 sps:$4 sm:$0xff]  }
 0x1fb   : > { %v2004_v33 = vpop.f32.mrf.mxu0  ;;  %2982 = vmatmul.mubr.bf16.gmra.mxu0 %v5160_v7  ;;  %v7700_v6 = vld [vmem:[#allocation28_spill] sm:$0xff] }
 0x1fc   : > { %v6677_v1 = vadd.f32 %v3320_v15, %v3192_v46  ;;  %v3321_v38 = vmul.f32 %v2354_v25, %v2354_v25  ;;  %v2358_v2 = vadd.f32 %v6536_v23, %v2004_v33  ;;  %4569 = vmatprep.mubr.msk.bf16.mxu0 %vm1583_vm0, %v5161_v47  ;;  %v6693_v23 = vpop.f32.mrf.mxu1  ;;  %v3197_v55 = vmul.f32 %v7700_v6, %v7700_v6 }
 0x1fd   : > { %v2006_v8 = vpop.f32.mrf.mxu0 }
 0x1fe   : > { %v3540_v21 = vpack.c.bf16 %v6677_v1, %v6675_v45  ;;  %v6690_v58 = vadd.f32 %v3321_v38, %v3193_v32  ;;  %v2360_v34 = vadd.f32 %v6547_v17, %v2006_v8  ;;  %v3324_v9 = vmul.f32 %v2358_v2, %v2358_v2  ;;  %v6703_v40 = vpop.f32.mrf.mxu1  ;;  %v5163_v17 = vld [vmem:[%s7614_s1 + $0x324] ss:$16 sps:$4 sm:$0xff]   ;;  %v5164_v38 = vld [vmem:[%s7614_s1 + $0x2c8] ss:$16 sps:$4 sm:$0xff]  }
 0x1ff   : > { %v2008_v3 = vpop.f32.mrf.mxu0  ;;  %v7701_v32 = vld [vmem:[#allocation30_spill] sm:$0xff] }
 0x200   : > { %v2362_v36 = vadd.f32 %v6565_v13, %v2008_v3  ;;  %2659 = vmatmul.mubr.bf16.gmra.mxu1 %v5162_v27  ;;  %v3541_v31 = vpack.c.bf16 %v6690_v58, %v6686_v37  ;;  %v7699_v13 = vld [vmem:[#allocation29_spill] sm:$0xff]  ;;  %v3325_v12 = vmul.f32 %v2360_v34, %v2360_v34  ;;  %v3201_v33 = vmul.f32 %v7701_v32, %v7701_v32  ;;  %v6718_v2 = vpop.f32.mrf.mxu1  ;;  %v5182_v58 = vld [vmem:[%s7614_s1 + $0x3a0] ss:$16 sps:$4 sm:$0xff]   ;;  %v5183_v45 = vld [vmem:[%s7614_s1 + $0x3c4] ss:$16 sps:$4 sm:$0xff]  }
 0x201   : > { %v2010_v63 = vpop.f32.mrf.mxu0  ;;  %2668 = vmatprep.mubr.bf16.mxu1 %v5163_v17  ;;  %v3200_v46 = vmul.f32 %v7699_v13, %v7699_v13  ;;  %v6720_v47 = vadd.f32 %v3324_v9, %v3196_v60  ;;  %v5165_v3 = vld [vmem:[%s7614_s1 + $0x2ec] ss:$16 sps:$4 sm:$0xff]  }
 0x202   : > { %v3328_v15 = vmul.f32 %v2362_v36, %v2362_v36  ;;  %v2364_v25 = vadd.f32 %v6579_v51, %v2010_v63  ;;  %v6729_v27 = vpop.f32.mrf.mxu1  ;;  %v6731_v59 = vadd.f32 %v3325_v12, %v3197_v55 }
 0x203   : > { %v2014_v7 = vpop.f32.mrf.mxu0  ;;  %2992 = vmatmul.mubr.bf16.gmra.mxu0 %v5164_v38 }
 0x204   : > { %v6722_v8 = vadd.f32 %v3328_v15, %v3200_v46  ;;  %v3329_v34 = vmul.f32 %v2364_v25, %v2364_v25  ;;  %v2368_v51 = vadd.f32 %v6591_v62, %v2014_v7  ;;  %4570 = vmatprep.mubr.msk.bf16.mxu0 %vm1583_vm0, %v5165_v3  ;;  %v6738_v62 = vpop.f32.mrf.mxu1  ;;  %v5166_v15 = vld [vmem:[%s7614_s1 + $0x320] ss:$16 sps:$4 sm:$0xff]   ;;  %v7702_v25 = vld [vmem:[#allocation31_spill] sm:$0xff] }
 0x205   : > { %v2016_v36 = vpop.f32.mrf.mxu0  ;;  %v3204_v6 = vmul.f32 %v7702_v25, %v7702_v25  ;;  %v5168_v25 = vld [vmem:[%s7614_s1 + $0x2e8] ss:$16 sps:$4 sm:$0xff]  }
 0x206   : > { %v3544_v9 = vpack.c.bf16 %v6722_v8, %v6720_v47  ;;  %v6735_v60 = vadd.f32 %v3329_v34, %v3201_v33  ;;  %v2370_v63 = vadd.f32 %v6602_v61, %v2016_v36  ;;  %v3332_v13 = vmul.f32 %v2368_v51, %v2368_v51  ;;  %v6748_v32 = vpop.f32.mrf.mxu1  ;;  %v5167_v61 = vld [vmem:[%s7614_s1 + $0x344] ss:$16 sps:$4 sm:$0xff]  }
 0x207   : > { %v2018_v17 = vpop.f32.mrf.mxu0  ;;  %v7704_v51 = vld [vmem:[#allocation32_spill] sm:$0xff]  ;;  %v7705_v36 = vld [vmem:[#allocation34_spill] sm:$0xff] }
 0x208   : > { %v2372_v46 = vadd.f32 %v6624_v57, %v2018_v17  ;;  %2669 = vmatmul.mubr.bf16.gmra.mxu1 %v5166_v15  ;;  %v3545_v12 = vpack.c.bf16 %v6735_v60, %v6731_v59  ;;  %v7703_v57 = vld [vmem:[#allocation33_spill] sm:$0xff]  ;;  %v3333_v7 = vmul.f32 %v2370_v63, %v2370_v63  ;;  %v3205_v3 = vmul.f32 %v7704_v51, %v7704_v51 }
 0x209   : > { %v2020_v55 = vpop.f32.mrf.mxu0  ;;  %2678 = vmatprep.mubr.bf16.mxu1 %v5167_v61  ;;  %v3208_v33 = vmul.f32 %v7703_v57, %v7703_v57  ;;  %v3209_v17 = vmul.f32 %v7705_v36, %v7705_v36  ;;  %v6763_v61 = vpop.f32.mrf.mxu1  ;;  %v6765_v39 = vadd.f32 %v3332_v13, %v3204_v6  ;;  %v5180_v59 = vld [vmem:[%s7614_s1 + $0x348] ss:$16 sps:$4 sm:$0xff]  }
 0x20a   : > { %v3336_v38 = vmul.f32 %v2372_v46, %v2372_v46  ;;  %v2374_v34 = vadd.f32 %v6636_v50, %v2020_v55  ;;  %v5169_v55 = vld [vmem:[%s7614_s1 + $0x30c] ss:$16 sps:$4 sm:$0xff]   ;;  %v3461_v36 = vadd.f32 %v3333_v7, %v3205_v3  ;;  %v3212_v7 = vmul.f32 %v7706_v48, %v7706_v48 }
 0x20b   : > { %v2024_v15 = vpop.f32.mrf.mxu0  ;;  %3002 = vmatmul.mubr.bf16.gmra.mxu0 %v5168_v25  ;;  %v6774_v51 = vpop.f32.mrf.mxu1 }
 0x20c   : > { %v6767_v63 = vadd.f32 %v3336_v38, %v3208_v33  ;;  %v3337_v46 = vmul.f32 %v2374_v34, %v2374_v34  ;;  %v2378_v50 = vadd.f32 %v6648_v42, %v2024_v15  ;;  %4571 = vmatprep.mubr.msk.bf16.mxu0 %vm1583_vm0, %v5169_v55  ;;  %v5170_v55 = vld [vmem:[%s7614_s1 + $0x340] ss:$16 sps:$4 sm:$0xff]  }
 0x20d   : > { %v2026_v57 = vpop.f32.mrf.mxu0  ;;  %v6779_v38 = vpop.f32.mrf.mxu1 }
 0x20e   : > { %v3548_v25 = vpack.c.bf16 %v6767_v63, %v6765_v39  ;;  %v3465_v13 = vadd.f32 %v3337_v46, %v3209_v17  ;;  %v2380_v6 = vadd.f32 %v6658_v18, %v2026_v57  ;;  %v3340_v42 = vmul.f32 %v2378_v50, %v2378_v50  ;;  %v5171_v18 = vld [vmem:[%s7614_s1 + $0x364] ss:$16 sps:$4 sm:$0xff]   ;;  %v7707_v17 = vld [vmem:[#allocation37_spill] sm:$0xff] }
 0x20f   : > { %v2028_v33 = vpop.f32.mrf.mxu0  ;;  %v6787_v39 = vpop.f32.mrf.mxu1  ;;  %v7708_v57 = vld [vmem:[#allocation36_spill] sm:$0xff] }
 0x210   : > { %v2382_v34 = vadd.f32 %v6673_v30, %v2028_v33  ;;  %v3549_v15 = vpack.c.bf16 %v3465_v13, %v3461_v36  ;;  %2679 = vmatmul.mubr.bf16.gmra.mxu1 %v5170_v55  ;;  %v3216_v30 = vmul.f32 %v7707_v17, %v7707_v17  ;;  %v3341_v63 = vmul.f32 %v2380_v6, %v2380_v6  ;;  %v7709_v13 = vld [vmem:[#allocation38_spill] sm:$0xff]  ;;  %v5172_v55 = vld [vmem:[%s7614_s1 + $0x308] ss:$16 sps:$4 sm:$0xff]  }
 0x211   : > { %v2030_v3 = vpop.f32.mrf.mxu0  ;;  %2688 = vmatprep.mubr.bf16.mxu1 %v5171_v18  ;;  %v3213_v36 = vmul.f32 %v7708_v57, %v7708_v57  ;;  %v3217_v48 = vmul.f32 %v7709_v13, %v7709_v13  ;;  %v6802_v18 = vpop.f32.mrf.mxu1  ;;  %v3468_v19 = vadd.f32 %v3340_v42, %v3212_v7 }
 0x212   : > { %v3344_v46 = vmul.f32 %v2382_v34, %v2382_v34  ;;  %v2384_v50 = vadd.f32 %v6684_v24, %v2030_v3  ;;  %v5173_v24 = vld [vmem:[%s7614_s1 + $0x32c] ss:$16 sps:$4 sm:$0xff]  }
 0x213   : > { %v2773_v33 = vpop.f32.mrf.mxu0  ;;  %3012 = vmatmul.mubr.bf16.gmra.mxu0 %v5172_v55  ;;  %v6811_v57 = vpop.f32.mrf.mxu1  ;;  %v3469_v13 = vadd.f32 %v3341_v63, %v3213_v36  ;;  %v5176_v63 = vld [vmem:[%s7614_s1 + $0x328] ss:$16 sps:$4 sm:$0xff]  }
 0x214   : > { %v3472_v17 = vadd.f32 %v3344_v46, %v3216_v30  ;;  %v3345_v6 = vmul.f32 %v2384_v50, %v2384_v50  ;;  %v6805_v34 = vadd.f32 %v2773_v33, %v6693_v23  ;;  %4572 = vmatprep.mubr.msk.bf16.mxu0 %vm1583_vm0, %v5173_v24  ;;  %v5174_v46 = vld [vmem:[%s7614_s1 + $0x360] ss:$16 sps:$4 sm:$0xff]  }
 0x215   : > { %v2775_v3 = vpop.f32.mrf.mxu0  ;;  %v6816_v7 = vpop.f32.mrf.mxu1 }
 0x216   : > { %v3552_v53 = vpack.c.bf16 %v3472_v17, %v3468_v19  ;;  %v3473_v55 = vadd.f32 %v3345_v6, %v3217_v48  ;;  %v6814_v11 = vadd.f32 %v2775_v3, %v6703_v40  ;;  %v5175_v19 = vld [vmem:[%s7614_s1 + $0x384] ss:$16 sps:$4 sm:$0xff]   ;;  %v5177_v17 = vld [vmem:[%s7614_s1 + $0x34c] ss:$16 sps:$4 sm:$0xff]  }
 0x217   : > { %v2777_v42 = vpop.f32.mrf.mxu0  ;;  %v6824_v33 = vpop.f32.mrf.mxu1 }
 0x218   : > { %v6819_v23 = vadd.f32 %v2777_v42, %v6718_v2  ;;  %v3553_v30 = vpack.c.bf16 %v3473_v55, %v3469_v13  ;;  %2689 = vmatmul.mubr.bf16.gmra.mxu1 %v5174_v46 }
 0x219   : > { %v2779_v50 = vpop.f32.mrf.mxu0  ;;  %2698 = vmatprep.mubr.bf16.mxu1 %v5175_v19  ;;  %v2454_v36 = vpop.f32.mrf.mxu1 }
 0x21a   : > { %v6830_v40 = vadd.f32 %v2779_v50, %v6729_v27  ;;  %3652 = vmatprep.subr.bf16.mxu1 %v3553_v30 }
 0x21b   : > { %v2783_v2 = vpop.f32.mrf.mxu0  ;;  %3022 = vmatmul.mubr.bf16.gmra.mxu0 %v5176_v63  ;;  %3653 = vmatpush2.bf16.msra.mxu1 %v3552_v53  ;;  %v2456_v6 = vpop.f32.mrf.mxu1  ;;  %v7713_v63 = vpack.c.bf16 %v6473_v22, %v6450_v43  ;;  %v5190_v22 = vld [vmem:[%s7614_s1 + $0x3e0] ss:$16 sps:$4 sm:$0xff]  }
 0x21c   : > { %v6836_v48 = vadd.f32 %v2783_v2, %v6738_v62  ;;  %3654 = vmatprep.subr.bf16.mxu1 %v3549_v15  ;;  %4573 = vmatprep.mubr.msk.bf16.mxu0 %vm1583_vm0, %v5177_v17  ;;  %v5178_v62 = vld [vmem:[%s7614_s1 + $0x380] ss:$16 sps:$4 sm:$0xff]  }
 0x21d   : > { %v2785_v27 = vpop.f32.mrf.mxu0  ;;  %v6845_v13 = vpop.f32.mrf.mxu1 }
 0x21e   : > { %v6843_v24 = vadd.f32 %v2785_v27, %v6748_v32  ;;  %v5179_v32 = vld [vmem:[%s7614_s1 + $0x3a4] ss:$16 sps:$4 sm:$0xff]  }
 0x21f   : > { %v2787_v3 = vpop.f32.mrf.mxu0  ;;  %3655 = vmatpush2.bf16.msra.mxu1 %v3548_v25  ;;  %v6856_v55 = vpop.f32.mrf.mxu1 }
 0x220   : > { %v6848_v53 = vadd.f32 %v2787_v3, %v6763_v61  ;;  %3656 = vmatprep.subr.bf16.mxu1 %v3545_v12  ;;  %2699 = vmatmul.mubr.bf16.gmra.mxu1 %v5178_v62 }
 0x221   : > { %v2789_v15 = vpop.f32.mrf.mxu0  ;;  %2708 = vmatprep.mubr.bf16.mxu1 %v5179_v32  ;;  %v2464_v60 = vpop.f32.mrf.mxu1 }
 0x222   : > { %v6862_v61 = vadd.f32 %v2789_v15, %v6774_v51  ;;  %v5181_v51 = vld [vmem:[%s7614_s1 + $0x36c] ss:$16 sps:$4 sm:$0xff]  }
 0x223   : > { %v2793_v25 = vpop.f32.mrf.mxu0  ;;  %3032 = vmatmul.mubr.bf16.gmra.mxu0 %v5180_v59  ;;  %3657 = vmatpush2.bf16.msra.mxu1 %v3544_v9  ;;  %v6880_v30 = vpop.f32.mrf.mxu1 }
 0x224   : > { %v6871_v12 = vadd.f32 %v2793_v25, %v6779_v38  ;;  %3658 = vmatprep.subr.bf16.mxu1 %v3541_v31  ;;  %4574 = vmatprep.mubr.msk.bf16.mxu0 %vm1583_vm0, %v5181_v51 }
 0x225   : > { %v2795_v42 = vpop.f32.mrf.mxu0  ;;  %v2470_v9 = vpop.f32.mrf.mxu1 }
 0x226   : > { %v6883_v47 = vadd.f32 %v2795_v42, %v6787_v39  ;;  %v5185_v39 = vld [vmem:[%s7614_s1 + $0x38c] ss:$16 sps:$4 sm:$0xff]  }
 0x227   : > { %v2797_v8 = vpop.f32.mrf.mxu0  ;;  %3659 = vmatpush2.bf16.msra.mxu1 %v3540_v21  ;;  %v2472_v38 = vpop.f32.mrf.mxu1 }
 0x228   : > { %v6889_v37 = vadd.f32 %v2797_v8, %v6802_v18  ;;  %3660 = vmatprep.subr.bf16.mxu1 %v3537_v10  ;;  %2709 = vmatmul.mubr.bf16.gmra.mxu1 %v5182_v58 }
 0x229   : > { %v2799_v31 = vpop.f32.mrf.mxu0  ;;  %2718 = vmatprep.mubr.bf16.mxu1 %v5183_v45  ;;  %v2474_v5 = vpop.f32.mrf.mxu1  ;;  %v5193_v45 = vld [vmem:[%s7614_s1 + $0x3c8] ss:$16 sps:$4 sm:$0xff]  }
 0x22a   : > { %v6901_v1 = vadd.f32 %v2799_v31, %v6811_v57 }
 0x22b   : > { %v2803_v21 = vpop.f32.mrf.mxu0  ;;  %3042 = vmatmul.mubr.bf16.gmra.mxu0 %v5184_v28  ;;  %3661 = vmatpush2.bf16.msra.mxu1 %v3536_v54  ;;  %v6919_v57 = vpop.f32.mrf.mxu1  ;;  %v7710_v54 = vpack.c.bf16 %v6567_v14, %v6538_v52 }
 0x22c   : > { %v6910_v10 = vadd.f32 %v2803_v21, %v6816_v7  ;;  %3662 = vmatprep.subr.bf16.mxu1 %v3533_v35  ;;  %4575 = vmatprep.mubr.msk.bf16.mxu0 %vm1583_vm0, %v5185_v39  ;;  %v5186_v35 = vld [vmem:[%s7614_s1 + $0x3c0] ss:$16 sps:$4 sm:$0xff]  }
 0x22d   : > { %v2805_v18 = vpop.f32.mrf.mxu0  ;;  %v2480_v7 = vpop.f32.mrf.mxu1 }
 0x22e   : > { %v6922_v26 = vadd.f32 %v2805_v18, %v6824_v33  ;;  %v5187_v33 = vld [vmem:[%s7614_s1 + $0x3e4] ss:$16 sps:$4 sm:$0xff]  }
 0x22f   : > { %v2807_v41 = vpop.f32.mrf.mxu0  ;;  %3663 = vmatpush2.bf16.msra.mxu1 %v7710_v54  ;;  %v2482_v50 = vpop.f32.mrf.mxu1 }
 0x230   : > { %v6927_v16 = vadd.f32 %v2807_v41, %v2454_v36  ;;  %3664 = vmatprep.subr.bf16.mxu1 %v7711_v0  ;;  %2719 = vmatmul.mubr.bf16.gmra.mxu1 %v5186_v35  ;;  %v5189_v36 = vld [vmem:[%s7614_s1 + $0x3ac] ss:$16 sps:$4 sm:$0xff]  }
 0x231   : > { %v2809_v46 = vpop.f32.mrf.mxu0  ;;  %2728 = vmatprep.mubr.bf16.mxu1 %v5187_v33  ;;  %v2484_v19 = vpop.f32.mrf.mxu1  ;;  %v5195_v33 = vld [vmem:[%s7614_s1 + $0x3e8] ss:$16 sps:$4 sm:$0xff]  }
 0x232   : > { %v6938_v52 = vadd.f32 %v2809_v46, %v2456_v6  ;;  %v7714_v6 = vpack.c.bf16 %v6460_v29, %v6440_v56  ;;  %v5192_v29 = vld [vmem:[%s7614_s1 + $0x3cc] ss:$16 sps:$4 sm:$0xff]  }
 0x233   : > { %v2813_v14 = vpop.f32.mrf.mxu0  ;;  %3052 = vmatmul.mubr.bf16.gmra.mxu0 %v5188_v44  ;;  %3665 = vmatpush2.bf16.msra.mxu1 %v7712_v20  ;;  %v6956_v27 = vpop.f32.mrf.mxu1 }
 0x234   : > { %v6947_v2 = vadd.f32 %v2813_v14, %v6845_v13  ;;  %3666 = vmatprep.subr.bf16.mxu1 %v7713_v63  ;;  %4576 = vmatprep.mubr.msk.bf16.mxu0 %vm1583_vm0, %v5189_v36 }
 0x235   : > { %v2815_v17 = vpop.f32.mrf.mxu0  ;;  %v2490_v3 = vpop.f32.mrf.mxu1 }
 0x236   : > { %v6959_v49 = vadd.f32 %v2815_v17, %v6856_v55  ;;  %v5191_v55 = vld [vmem:[%s7614_s1 + $0x3a8] ss:$16 sps:$4 sm:$0xff]  }
 0x237   : > { %v2817_v4 = vpop.f32.mrf.mxu0  ;;  %3667 = vmatpush2.bf16.msra.mxu1 %v7714_v6  ;;  %v2492_v62 = vpop.f32.mrf.mxu1 }
 0x238   : > { %v6964_v43 = vadd.f32 %v2817_v4, %v2464_v60  ;;  %2729 = vmatmul.mubr.bf16.gmra.mxu1 %v5190_v22 }
 0x239   : > { %v6969_v13 = vpop.f32.mrf.mxu0  ;;  %v2494_v32 = vpop.f32.mrf.mxu1 }
 0x23b   : > { %v2823_v15 = vpop.f32.mrf.mxu0  ;;  %3062 = vmatmul.mubr.bf16.gmra.mxu0 %v5191_v55  ;;  %v6980_v59 = vpop.f32.mrf.mxu1 }
 0x23c   : > { %v6974_v56 = vadd.f32 %v2823_v15, %v2470_v9  ;;  %4577 = vmatprep.mubr.msk.bf16.mxu0 %vm1583_vm0, %v5192_v29 }
 0x23d   : > { %v2825_v25 = vpop.f32.mrf.mxu0  ;;  %v2500_v42 = vpop.f32.mrf.mxu1 }
 0x23e   : > { %v6982_v60 = vadd.f32 %v2825_v25, %v2472_v38  ;;  %v5194_v38 = vld [vmem:[%s7614_s1 + $0x3ec] ss:$16 sps:$4 sm:$0xff]  }
 0x23f   : > { %v2827_v51 = vpop.f32.mrf.mxu0  ;;  %v2502_v31 = vpop.f32.mrf.mxu1 }
 0x240   : > { %7715 = vst [vmem:[#allocation2_spill] sm:$0xff] %v6982_v60  ;;  %v6984_v8 = vadd.f32 %v2827_v51, %v2474_v5 }
 0x241   : > { %v6986_v58 = vpop.f32.mrf.mxu0  ;;  %v2504_v21 = vpop.f32.mrf.mxu1 }
 0x243   : > { %v2833_v9 = vpop.f32.mrf.mxu0  ;;  %3072 = vmatmul.mubr.bf16.gmra.mxu0 %v5193_v45  ;;  %v6997_v39 = vpop.f32.mrf.mxu1 }
 0x244   : > { %v6991_v28 = vadd.f32 %v2833_v9, %v2480_v7  ;;  %4578 = vmatprep.mubr.msk.bf16.mxu0 %vm1583_vm0, %v5194_v38  ;;  %7716 = vst [vmem:[#allocation4_spill] sm:$0xff] %v6997_v39  ;;  %v5066_v38 = vld [vmem:[%s7615_s2 + $0x4] ss:$8 sps:$4 sm:$0xff]  }
 0x245   : > { %v2835_v5 = vpop.f32.mrf.mxu0  ;;  %v2510_v54 = vpop.f32.mrf.mxu1  ;;  %3668 = vmatprep.mubr.bf16.mxu1 %v5066_v38 }
 0x246   : > { %v6999_v18 = vadd.f32 %v2835_v5, %v2482_v50 }
 0x247   : > { %v2837_v41 = vpop.f32.mrf.mxu0  ;;  %v2512_v46 = vpop.f32.mrf.mxu1 }
 0x248   : > { %v7001_v0 = vadd.f32 %v2837_v41, %v2484_v19 }
 0x249   : > { %v7003_v35 = vpop.f32.mrf.mxu0  ;;  %v2514_v14 = vpop.f32.mrf.mxu1 }
 0x24b   : > { %v2843_v7 = vpop.f32.mrf.mxu0  ;;  %3082 = vmatmul.mubr.bf16.gmra.mxu0 %v5195_v33  ;;  %v7010_v63 = vpop.f32.mrf.mxu1 }
 0x24c   : > { %v7008_v44 = vadd.f32 %v2843_v7, %v2490_v3  ;;  %7717 = vst [vmem:[#allocation3_spill] sm:$0xff] %v7010_v63  ;;  %3781 = vmatprep.mubr.bf16.mxu0 %v5066_v38 }
 0x24d   : > { %v2845_v20 = vpop.f32.mrf.mxu0  ;;  %v2520_v19 = vpop.f32.mrf.mxu1 }
 0x24e   : > { %v7012_v50 = vadd.f32 %v2845_v20, %v2492_v62 }
 0x24f   : > { %v2847_v36 = vpop.f32.mrf.mxu0  ;;  %v2522_v6 = vpop.f32.mrf.mxu1 }
 0x250   : > { %v7014_v17 = vadd.f32 %v2847_v36, %v2494_v32 }
 0x251   : > { %v7016_v4 = vpop.f32.mrf.mxu0  ;;  %v2524_v15 = vpop.f32.mrf.mxu1 }
 0x253   : > { %v2853_v22 = vpop.f32.mrf.mxu0  ;;  %v7020_v25 = vpop.f32.mrf.mxu1 }
 0x254   : > { %v7018_v55 = vadd.f32 %v2853_v22, %v2500_v42  ;;  %7718 = vst [vmem:[#allocation5_spill] sm:$0xff] %v7020_v25  ;;  %v5064_v42 = vld [vmem:[%s7615_s2] ss:$8 sps:$4 sm:$0xff]  }
 0x255   : > { %v2855_v29 = vpop.f32.mrf.mxu0  ;;  %v2530_v9 = vpop.f32.mrf.mxu1  ;;  %3669 = vmatmul.mubr.bf16.vlgmr.msra.gmra.mxu1 %v5064_v42 }
 0x256   : > { %v7022_v3 = vadd.f32 %v2855_v29, %v2502_v31 }
 0x257   : > { %v2857_v51 = vpop.f32.mrf.mxu0  ;;  %v2532_v32 = vpop.f32.mrf.mxu1 }
 0x258   : > { %v7024_v62 = vadd.f32 %v2857_v51, %v2504_v21 }
 0x259   : > { %v7026_v45 = vpop.f32.mrf.mxu0  ;;  %v2534_v41 = vpop.f32.mrf.mxu1 }
 0x25a   : > { %7719 = vst [vmem:[#allocation7_spill] sm:$0xff] %v7024_v62  ;;  %7720 = vst [vmem:[#allocation6_spill] sm:$0xff] %v7026_v45 }
 0x25b   : > { %v2863_v5 = vpop.f32.mrf.mxu0  ;;  %v7036_v7 = vpop.f32.mrf.mxu1 }
 0x25c   : > { %v7034_v31 = vadd.f32 %v2863_v5, %v2510_v54  ;;  %7722 = vst [vmem:[#allocation10_spill] sm:$0xff] %v7036_v7 }
 0x25d   : > { %v2865_v21 = vpop.f32.mrf.mxu0  ;;  %v2540_v36 = vpop.f32.mrf.mxu1 }
 0x25e   : > { %7721 = vst [vmem:[#allocation8_spill] sm:$0xff] %v7034_v31  ;;  %v7038_v33 = vadd.f32 %v2865_v21, %v2512_v46 }
 0x25f   : > { %v2867_v20 = vpop.f32.mrf.mxu0  ;;  %v2542_v51 = vpop.f32.mrf.mxu1 }
 0x260   : > { %7723 = vst [vmem:[#allocation9_spill] sm:$0xff] %v7038_v33  ;;  %v7040_v22 = vadd.f32 %v2867_v20, %v2514_v14 }
 0x261   : > { %v7042_v29 = vpop.f32.mrf.mxu0  ;;  %v2544_v63 = vpop.f32.mrf.mxu1 }
 0x262   : > { %7724 = vst [vmem:[#allocation11_spill] sm:$0xff] %v7040_v22  ;;  %7725 = vst [vmem:[#allocation12_spill] sm:$0xff] %v7042_v29 }
 0x263   : > { %v2873_v25 = vpop.f32.mrf.mxu0  ;;  %v7046_v54 = vpop.f32.mrf.mxu1 }
 0x264   : > { %v7044_v62 = vadd.f32 %v2873_v25, %v2520_v19  ;;  %7727 = vst [vmem:[#allocation14_spill] sm:$0xff] %v7046_v54 }
 0x265   : > { %v2875_v38 = vpop.f32.mrf.mxu0  ;;  %v2550_v7 = vpop.f32.mrf.mxu1 }
 0x266   : > { %7726 = vst [vmem:[#allocation13_spill] sm:$0xff] %v7044_v62  ;;  %v7048_v42 = vadd.f32 %v2875_v38, %v2522_v6 }
 0x267   : > { %v2877_v5 = vpop.f32.mrf.mxu0  ;;  %v2552_v14 = vpop.f32.mrf.mxu1 }
 0x268   : > { %7728 = vst [vmem:[#allocation15_spill] sm:$0xff] %v7048_v42  ;;  %v7050_v46 = vadd.f32 %v2877_v5, %v2524_v15 }
 0x269   : > { %v7052_v21 = vpop.f32.mrf.mxu0  ;;  %v2554_v22 = vpop.f32.mrf.mxu1 }
 0x26a   : > { %7729 = vst [vmem:[#allocation16_spill] sm:$0xff] %v7050_v46  ;;  %7730 = vst [vmem:[#allocation17_spill] sm:$0xff] %v7052_v21 }
 0x26b   : > { %v2883_v20 = vpop.f32.mrf.mxu0  ;;  %v2556_v31 = vpop.f32.mrf.mxu1 }
 0x26c   : > { %v7054_v29 = vadd.f32 %v2883_v20, %v2530_v9 }
 0x26d   : > { %v2885_v33 = vpop.f32.mrf.mxu0  ;;  %v2560_v62 = vpop.f32.mrf.mxu1 }
 0x26e   : > { %7731 = vst [vmem:[#allocation18_spill] sm:$0xff] %v7054_v29  ;;  %v7056_v19 = vadd.f32 %v2885_v33, %v2532_v32 }
 0x26f   : > { %v2887_v25 = vpop.f32.mrf.mxu0  ;;  %v2562_v38 = vpop.f32.mrf.mxu1 }
 0x270   : > { %7732 = vst [vmem:[#allocation19_spill] sm:$0xff] %v7056_v19  ;;  %v7058_v54 = vadd.f32 %v2887_v25, %v2534_v41 }
 0x271   : > { %v7060_v6 = vpop.f32.mrf.mxu0  ;;  %v2564_v5 = vpop.f32.mrf.mxu1 }
 0x272   : > { %7733 = vst [vmem:[#allocation20_spill] sm:$0xff] %v7058_v54  ;;  %7734 = vst [vmem:[#allocation22_spill] sm:$0xff] %v7060_v6 }
 0x273   : > { %v2893_v15 = vpop.f32.mrf.mxu0  ;;  %v2566_v46 = vpop.f32.mrf.mxu1 }
 0x274   : > { %v7062_v42 = vadd.f32 %v2893_v15, %v2540_v36 }
 0x275   : > { %v2895_v21 = vpop.f32.mrf.mxu0  ;;  %v2570_v20 = vpop.f32.mrf.mxu1 }
 0x276   : > { %7735 = vst [vmem:[#allocation21_spill] sm:$0xff] %v7062_v42  ;;  %v7064_v60 = vadd.f32 %v2895_v21, %v2542_v51 }
 0x277   : > { %v2897_v9 = vpop.f32.mrf.mxu0  ;;  %v2572_v33 = vpop.f32.mrf.mxu1 }
 0x278   : > { %7736 = vst [vmem:[#allocation23_spill] sm:$0xff] %v7064_v60  ;;  %v7066_v29 = vadd.f32 %v2897_v9, %v2544_v63 }
 0x279   : > { %v7068_v32 = vpop.f32.mrf.mxu0  ;;  %v2574_v25 = vpop.f32.mrf.mxu1 }
 0x27a   : > { %7737 = vst [vmem:[#allocation24_spill] sm:$0xff] %v7066_v29  ;;  %7738 = vst [vmem:[#allocation25_spill] sm:$0xff] %v7068_v32 }
 0x27b   : > { %v2903_v41 = vpop.f32.mrf.mxu0  ;;  %v2576_v6 = vpop.f32.mrf.mxu1 }
 0x27c   : > { %v7070_v19 = vadd.f32 %v2903_v41, %v2550_v7 }
 0x27d   : > { %v2905_v54 = vpop.f32.mrf.mxu0  ;;  %v2580_v15 = vpop.f32.mrf.mxu1 }
 0x27e   : > { %7739 = vst [vmem:[#allocation26_spill] sm:$0xff] %v7070_v19  ;;  %v7072_v45 = vadd.f32 %v2905_v54, %v2552_v14 }
 0x27f   : > { %v2907_v36 = vpop.f32.mrf.mxu0  ;;  %v2582_v21 = vpop.f32.mrf.mxu1 }
 0x280   : > { %7740 = vst [vmem:[#allocation27_spill] sm:$0xff] %v7072_v45  ;;  %v7074_v42 = vadd.f32 %v2907_v36, %v2554_v22 }
 0x281   : > { %v2909_v51 = vpop.f32.mrf.mxu0  ;;  %v2584_v9 = vpop.f32.mrf.mxu1 }
 0x282   : > { %7741 = vst [vmem:[#allocation29_spill] sm:$0xff] %v7074_v42  ;;  %v7076_v60 = vadd.f32 %v2909_v51, %v2556_v31 }
 0x283   : > { %v2913_v63 = vpop.f32.mrf.mxu0  ;;  %v2586_v39 = vpop.f32.mrf.mxu1 }
 0x284   : > { %7742 = vst [vmem:[#allocation28_spill] sm:$0xff] %v7076_v60  ;;  %v7078_v29 = vadd.f32 %v2913_v63, %v2560_v62 }
 0x285   : > { %v2915_v32 = vpop.f32.mrf.mxu0  ;;  %v2590_v19 = vpop.f32.mrf.mxu1 }
 0x286   : > { %7743 = vst [vmem:[#allocation30_spill] sm:$0xff] %v7078_v29  ;;  %v7080_v7 = vadd.f32 %v2915_v32, %v2562_v38 }
 0x287   : > { %v2917_v41 = vpop.f32.mrf.mxu0  ;;  %v2592_v45 = vpop.f32.mrf.mxu1 }
 0x288   : > { %7744 = vst [vmem:[#allocation31_spill] sm:$0xff] %v7080_v7  ;;  %v7082_v54 = vadd.f32 %v2917_v41, %v2564_v5 }
 0x289   : > { %v2919_v14 = vpop.f32.mrf.mxu0  ;;  %v2594_v42 = vpop.f32.mrf.mxu1 }
 0x28a   : > { %7745 = vst [vmem:[#allocation33_spill] sm:$0xff] %v7082_v54  ;;  %v7084_v22 = vadd.f32 %v2919_v14, %v2566_v46  ;;  %v5069_v46 = vld [vmem:[%s7615_s2 + $0x14] ss:$8 sps:$4 sm:$0xff]  }
 0x28b   : > { %v2923_v36 = vpop.f32.mrf.mxu0  ;;  %v2596_v60 = vpop.f32.mrf.mxu1  ;;  %3678 = vmatprep.mubr.bf16.mxu1 %v5069_v46 }
 0x28c   : > { %7746 = vst [vmem:[#allocation32_spill] sm:$0xff] %v7084_v22  ;;  %v7086_v31 = vadd.f32 %v2923_v36, %v2570_v20 }
 0x28d   : > { %v2925_v51 = vpop.f32.mrf.mxu0  ;;  %v7090_v29 = vpop.f32.mrf.mxu1 }
 0x28e   : > { %7747 = vst [vmem:[#allocation34_spill] sm:$0xff] %v7086_v31  ;;  %v7088_v62 = vadd.f32 %v2925_v51, %v2572_v33  ;;  %v5067_v33 = vld [vmem:[%s7615_s2 + $0x10] ss:$8 sps:$4 sm:$0xff]  }
 0x28f   : > { %v2927_v63 = vpop.f32.mrf.mxu0  ;;  %v7094_v5 = vpop.f32.mrf.mxu1  ;;  %3679 = vmatmul.mubr.bf16.gmra.mxu1 %v5067_v33 }
 0x290   : > { %7748 = vst [vmem:[#allocation35_spill] sm:$0xff] %v7088_v62  ;;  %v7092_v38 = vadd.f32 %v2927_v63, %v2574_v25 }
 0x291   : > { %v2929_v32 = vpop.f32.mrf.mxu0  ;;  %v7101_v14 = vpop.f32.mrf.mxu1 }
 0x292   : > { %7749 = vst [vmem:[#allocation37_spill] sm:$0xff] %v7092_v38  ;;  %v7096_v41 = vadd.f32 %v2929_v32, %v2576_v6  ;;  %v3094_v6 = vmul.f32 %v6805_v34, %v6805_v34  ;;  %v3095_v38 = vmul.f32 %v6814_v11, %v6814_v11  ;;  %v7128_v11 = vld [vmem:[%s7615_s2 + $0x20] ss:$8 sps:$4 sm:$0xff]  }
 0x293   : > { %v2933_v20 = vpop.f32.mrf.mxu0  ;;  %v7106_v51 = vpop.f32.mrf.mxu1  ;;  %7752 = vst [vmem:[#allocation39_spill] sm:$0xff] %v7128_v11 }
 0x294   : > { %7750 = vst [vmem:[#allocation36_spill] sm:$0xff] %v7096_v41  ;;  %v2934_v36 = vadd.f32 %v2933_v20, %v2580_v15  ;;  %v3098_v20 = vmul.f32 %v6819_v23, %v6819_v23 }
 0x295   : > { %v2935_v25 = vpop.f32.mrf.mxu0  ;;  %v7110_v62 = vpop.f32.mrf.mxu1 }
 0x296   : > { %v3222_v63 = vmul.f32 %v2934_v36, %v2934_v36  ;;  %v2936_v32 = vadd.f32 %v2935_v25, %v2582_v21  ;;  %v7121_v21 = vld [vmem:[%s7615_s2 + $0x24] ss:$8 sps:$4 sm:$0xff]  }
 0x297   : > { %v2937_v41 = vpop.f32.mrf.mxu0  ;;  %v7114_v46 = vpop.f32.mrf.mxu1  ;;  %7751 = vst [vmem:[#allocation38_spill] sm:$0xff] %v7121_v21  ;;  %3688 = vmatprep.mubr.bf16.mxu1 %v7121_v21 }
 0x298   : > { %v3350_v31 = vadd.f32 %v3222_v63, %v3094_v6  ;;  %v3223_v22 = vmul.f32 %v2936_v32, %v2936_v32  ;;  %v2938_v7 = vadd.f32 %v2937_v41, %v2584_v9  ;;  %v3099_v9 = vmul.f32 %v6830_v40, %v6830_v40  ;;  %3689 = vmatmul.mubr.bf16.gmra.mxu1 %v7128_v11 }
 0x299   : > { %v2939_v15 = vpop.f32.mrf.mxu0  ;;  %v7123_v25 = vpop.f32.mrf.mxu1  ;;  %v3103_v40 = vmul.f32 %v6843_v24, %v6843_v24  ;;  %v3106_v11 = vmul.f32 %v6848_v53, %v6848_v53  ;;  %v7153_v24 = vld [vmem:[%s7615_s2 + $0x34] ss:$8 sps:$4 sm:$0xff]  }
 0x29a   : > { %v3351_v33 = vadd.f32 %v3223_v22, %v3095_v38  ;;  %v3226_v54 = vmul.f32 %v2938_v7, %v2938_v7  ;;  %v2940_v34 = vadd.f32 %v2939_v15, %v2586_v39  ;;  %v3102_v39 = vmul.f32 %v6836_v48, %v6836_v48  ;;  %3698 = vmatprep.mubr.bf16.mxu1 %v7153_v24 }
 0x29b   : > { %v2943_v36 = vpop.f32.mrf.mxu0  ;;  %v7135_v41 = vpop.f32.mrf.mxu1 }
 0x29c   : > { %v3354_v23 = vadd.f32 %v3226_v54, %v3098_v20  ;;  %v3227_v22 = vmul.f32 %v2940_v34, %v2940_v34  ;;  %v2944_v7 = vadd.f32 %v2943_v36, %v2590_v19 }
 0x29d   : > { %v2945_v38 = vpop.f32.mrf.mxu0 }
 0x29e   : > { %v7138_v6 = vpack.c.bf16 %v3354_v23, %v3350_v31  ;;  %v3355_v63 = vadd.f32 %v3227_v22, %v3099_v9  ;;  %v3230_v32 = vmul.f32 %v2944_v7, %v2944_v7  ;;  %v2946_v15 = vadd.f32 %v2945_v38, %v2592_v45 }
 0x29f   : > { %v2947_v54 = vpop.f32.mrf.mxu0 }
 0x2a0   : > { %v3358_v19 = vadd.f32 %v3230_v32, %v3102_v39  ;;  %v3231_v20 = vmul.f32 %v2946_v15, %v2946_v15  ;;  %v2948_v34 = vadd.f32 %v2947_v54, %v2594_v42  ;;  %v7142_v36 = vpop.f32.mrf.mxu1  ;;  %v7144_v48 = vpack.c.bf16 %v3355_v63, %v3351_v33  ;;  %v7158_v42 = vld [vmem:[%s7615_s2 + $0x30] ss:$8 sps:$4 sm:$0xff]  }
 0x2a1   : > { %v2949_v21 = vpop.f32.mrf.mxu0  ;;  %v3107_v33 = vmul.f32 %v6862_v61, %v6862_v61  ;;  %v3110_v39 = vmul.f32 %v6871_v12, %v6871_v12  ;;  %3699 = vmatmul.mubr.bf16.gmra.mxu1 %v7158_v42 }
 0x2a2   : > { %v3359_v31 = vadd.f32 %v3231_v20, %v3103_v40  ;;  %v3234_v23 = vmul.f32 %v2948_v34, %v2948_v34  ;;  %v2950_v9 = vadd.f32 %v2949_v21, %v2596_v60  ;;  %v7148_v22 = vpop.f32.mrf.mxu1 }
 0x2a3   : > { %v2953_v45 = vpop.f32.mrf.mxu0 }
 0x2a4   : > { %v3362_v53 = vadd.f32 %v3234_v23, %v3106_v11  ;;  %v3235_v7 = vmul.f32 %v2950_v9, %v2950_v9  ;;  %v2954_v60 = vadd.f32 %v2953_v45, %v7090_v29  ;;  %v7163_v21 = vpop.f32.mrf.mxu1  ;;  %v3114_v23 = vmul.f32 %v6889_v37, %v6889_v37 }
 0x2a5   : > { %v2955_v38 = vpop.f32.mrf.mxu0  ;;  %v3115_v37 = vmul.f32 %v6901_v1, %v6901_v1 }
 0x2a6   : > { %v7169_v63 = vpack.c.bf16 %v3362_v53, %v3358_v19  ;;  %v3363_v32 = vadd.f32 %v3235_v7, %v3107_v33  ;;  %v3238_v15 = vmul.f32 %v2954_v60, %v2954_v60  ;;  %v2956_v61 = vadd.f32 %v2955_v38, %v7094_v5  ;;  %v7172_v11 = vpop.f32.mrf.mxu1  ;;  %v7187_v5 = vld [vmem:[%s7615_s2 + $0x44] ss:$8 sps:$4 sm:$0xff]   ;;  %v7194_v53 = vld [vmem:[%s7615_s2 + $0x40] ss:$8 sps:$4 sm:$0xff]  }
 0x2a7   : > { %v2957_v40 = vpop.f32.mrf.mxu0  ;;  %3708 = vmatprep.mubr.bf16.mxu1 %v7187_v5 }
 0x2a8   : > { %v3366_v29 = vadd.f32 %v3238_v15, %v3110_v39  ;;  %v2958_v54 = vadd.f32 %v2957_v40, %v7101_v14  ;;  %v7175_v20 = vpop.f32.mrf.mxu1  ;;  %v7177_v34 = vpack.c.bf16 %v3363_v32, %v3359_v31  ;;  %v3239_v19 = vmul.f32 %v2956_v61, %v2956_v61 }
 0x2a9   : > { %v2959_v12 = vpop.f32.mrf.mxu0  ;;  %v3111_v14 = vmul.f32 %v6883_v47, %v6883_v47  ;;  %3709 = vmatmul.mubr.bf16.gmra.mxu1 %v7194_v53 }
 0x2aa   : > { %v3242_v9 = vmul.f32 %v2958_v54, %v2958_v54  ;;  %v2960_v45 = vadd.f32 %v2959_v12, %v7106_v51  ;;  %v7182_v33 = vpop.f32.mrf.mxu1 }
 0x2ab   : > { %v2963_v31 = vpop.f32.mrf.mxu0  ;;  %v3367_v47 = vadd.f32 %v3239_v19, %v3111_v14 }
 0x2ac   : > { %v3370_v51 = vadd.f32 %v3242_v9, %v3114_v23  ;;  %v3243_v7 = vmul.f32 %v2960_v45, %v2960_v45  ;;  %v2964_v60 = vadd.f32 %v2963_v31, %v7110_v62  ;;  %v7199_v39 = vpop.f32.mrf.mxu1  ;;  %v3118_v9 = vmul.f32 %v6910_v10, %v6910_v10 }
 0x2ad   : > { %v2965_v38 = vpop.f32.mrf.mxu0  ;;  %v3123_v10 = vmul.f32 %v6938_v52, %v6938_v52 }
 0x2ae   : > { %v7203_v32 = vpack.c.bf16 %v3370_v51, %v3366_v29  ;;  %v3371_v15 = vadd.f32 %v3243_v7, %v3115_v37  ;;  %v2966_v61 = vadd.f32 %v2965_v38, %v7114_v46  ;;  %v7206_v40 = vpop.f32.mrf.mxu1  ;;  %v3246_v54 = vmul.f32 %v2964_v60, %v2964_v60 }
 0x2af   : > { %v2967_v1 = vpop.f32.mrf.mxu0  ;;  %v3122_v29 = vmul.f32 %v6927_v16, %v6927_v16  ;;  %v3119_v37 = vmul.f32 %v6922_v26, %v6922_v26  ;;  %v7232_v16 = vld [vmem:[%s7615_s2 + $0x50] ss:$8 sps:$4 sm:$0xff]  }
 0x2b0   : > { %v2968_v12 = vadd.f32 %v2967_v1, %v7123_v25  ;;  %v7209_v62 = vpop.f32.mrf.mxu1  ;;  %v7211_v23 = vpack.c.bf16 %v3371_v15, %v3367_v47  ;;  %v3247_v19 = vmul.f32 %v2966_v61, %v2966_v61  ;;  %v7223_v25 = vld [vmem:[%s7615_s2 + $0x54] ss:$8 sps:$4 sm:$0xff]   ;;  %7753 = vst [vmem:[#allocation40_spill] sm:$0xff] %v7232_v16 }
 0x2b1   : > { %v2969_v45 = vpop.f32.mrf.mxu0  ;;  %3718 = vmatprep.mubr.bf16.mxu1 %v7223_v25 }
 0x2b2   : > { %v3250_v14 = vmul.f32 %v2968_v12, %v2968_v12  ;;  %v2970_v46 = vadd.f32 %v2969_v45, %v7135_v41  ;;  %v7218_v31 = vpop.f32.mrf.mxu1  ;;  %v3374_v41 = vadd.f32 %v3246_v54, %v3118_v9  ;;  %3719 = vmatmul.mubr.bf16.gmra.mxu1 %v7232_v16  ;;  %v3375_v26 = vadd.f32 %v3247_v19, %v3119_v37 }
 0x2b3   : > { %v2973_v51 = vpop.f32.mrf.mxu0  ;;  %v2820_v54 = vadd.f32 %v6969_v13, %v6880_v30  ;;  %v3126_v19 = vmul.f32 %v6947_v2, %v6947_v2  ;;  %v3130_v37 = vmul.f32 %v6964_v43, %v6964_v43  ;;  %v7257_v30 = vld [vmem:[%s7615_s2 + $0x64] ss:$8 sps:$4 sm:$0xff]   ;;  %v3127_v13 = vmul.f32 %v6959_v49, %v6959_v49  ;;  %v7264_v2 = vld [vmem:[%s7615_s2 + $0x60] ss:$8 sps:$4 sm:$0xff]  }
 0x2b4   : > { %v3378_v7 = vadd.f32 %v3250_v14, %v3122_v29  ;;  %v3251_v60 = vmul.f32 %v2970_v46, %v2970_v46  ;;  %v2974_v38 = vadd.f32 %v2973_v51, %v7142_v36  ;;  %v7235_v47 = vpop.f32.mrf.mxu1  ;;  %7754 = vst [vmem:[#allocation41_spill] sm:$0xff] %v7257_v30  ;;  %7755 = vst [vmem:[#allocation42_spill] sm:$0xff] %v7264_v2  ;;  %3728 = vmatprep.mubr.bf16.mxu1 %v7257_v30 }
 0x2b5   : > { %v2975_v15 = vpop.f32.mrf.mxu0  ;;  %v2850_v16 = vadd.f32 %v7016_v4, %v6980_v59  ;;  %v3150_v59 = vmul.f32 %v7008_v44, %v7008_v44  ;;  %v3154_v4 = vmul.f32 %v7014_v17, %v7014_v17  ;;  %v3158_v17 = vmul.f32 %v7018_v55, %v7018_v55 }
 0x2b6   : > { %v7239_v52 = vpack.c.bf16 %v3378_v7, %v3374_v41  ;;  %v3379_v61 = vadd.f32 %v3251_v60, %v3123_v10  ;;  %v2976_v1 = vadd.f32 %v2975_v15, %v7148_v22  ;;  %v7242_v12 = vpop.f32.mrf.mxu1  ;;  %v3254_v36 = vmul.f32 %v2974_v38, %v2974_v38 }
 0x2b7   : > { %v2977_v9 = vpop.f32.mrf.mxu0 }
 0x2b8   : > { %v2978_v45 = vadd.f32 %v2977_v9, %v7163_v21  ;;  %v2650_v29 = vpop.f32.mrf.mxu1  ;;  %v7247_v14 = vpack.c.bf16 %v3379_v61, %v3375_v26  ;;  %v3255_v22 = vmul.f32 %v2976_v1, %v2976_v1  ;;  %v3131_v21 = vmul.f32 %v2820_v54, %v2820_v54 }
 0x2b9   : > { %v2979_v46 = vpop.f32.mrf.mxu0  ;;  %v3382_v43 = vadd.f32 %v3254_v36, %v3126_v19 }
 0x2ba   : > { %v3258_v10 = vmul.f32 %v2978_v45, %v2978_v45  ;;  %v2980_v51 = vadd.f32 %v2979_v46, %v7172_v11  ;;  %v2652_v41 = vpop.f32.mrf.mxu1  ;;  %3729 = vmatmul.mubr.bf16.gmra.mxu1 %v7264_v2  ;;  %v3383_v49 = vadd.f32 %v3255_v22, %v3127_v13  ;;  %v5087_v13 = vld [vmem:[%s7615_s2 + $0x74] ss:$8 sps:$4 sm:$0xff]  }
 0x2bb   : > { %v2983_v7 = vpop.f32.mrf.mxu0  ;;  %3738 = vmatprep.mubr.bf16.mxu1 %v5087_v13 }
 0x2bc   : > { %v3386_v60 = vadd.f32 %v3258_v10, %v3130_v37  ;;  %v3259_v38 = vmul.f32 %v2980_v51, %v2980_v51  ;;  %v2984_v11 = vadd.f32 %v2983_v7, %v7175_v20  ;;  %v2654_v15 = vpop.f32.mrf.mxu1  ;;  %v3134_v37 = vmul.f32 %v6974_v56, %v6974_v56 }
 0x2bd   : > { %v7268_v26 = vpop.f32.mrf.mxu0  ;;  %v3138_v10 = vmul.f32 %v6984_v8, %v6984_v8 }
 0x2be   : > { %v7271_v61 = vpack.c.bf16 %v3386_v60, %v3382_v43  ;;  %v3387_v1 = vadd.f32 %v3259_v38, %v3131_v21  ;;  %v2656_v54 = vpop.f32.mrf.mxu1  ;;  %v3262_v45 = vmul.f32 %v2984_v11, %v2984_v11 }
 0x2bf   : > { %v2987_v9 = vpop.f32.mrf.mxu0 }
 0x2c0   : > { %v2988_v36 = vadd.f32 %v2987_v9, %v7199_v39  ;;  %v7274_v19 = vpop.f32.mrf.mxu1  ;;  %v7276_v46 = vpack.c.bf16 %v3387_v1, %v3383_v49  ;;  %v7290_v39 = vld [vmem:[%s7615_s2 + $0x70] ss:$8 sps:$4 sm:$0xff]   ;;  %v3390_v7 = vadd.f32 %v3262_v45, %v3134_v37  ;;  %v3146_v37 = vmul.f32 %v7001_v0, %v7001_v0 }
 0x2c1   : > { %v2989_v20 = vpop.f32.mrf.mxu0 }
 0x2c2   : > { %v3266_v22 = vmul.f32 %v2988_v36, %v2988_v36  ;;  %v7282_v51 = vpop.f32.mrf.mxu1  ;;  %3739 = vmatmul.mubr.bf16.gmra.mxu1 %v7290_v39 }
 0x2c3   : > { %v2993_v21 = vpop.f32.mrf.mxu0  ;;  %3851 = vmatprep.mubr.bf16.mxu1 %v5087_v13  ;;  %v2830_v13 = vadd.f32 %v6986_v58, %v6919_v57 }
 0x2c4   : > { %v3394_v43 = vadd.f32 %v3266_v22, %v3138_v10  ;;  %v2994_v56 = vadd.f32 %v2993_v21, %v7209_v62  ;;  %v7293_v60 = vpop.f32.mrf.mxu1  ;;  %v3142_v62 = vmul.f32 %v6991_v28, %v6991_v28 }
 0x2c5   : > { %v2995_v8 = vpop.f32.mrf.mxu0 }
 0x2c6   : > { %v7296_v38 = vpack.c.bf16 %v3394_v43, %v3390_v7  ;;  %v7298_v11 = vpop.f32.mrf.mxu1  ;;  %v3270_v1 = vmul.f32 %v2994_v56, %v2994_v56  ;;  %v2996_v57 = vadd.f32 %v2995_v8, %v7218_v31 }
 0x2c7   : > { %v2997_v49 = vpop.f32.mrf.mxu0 }
 0x2c8   : > { %v2998_v9 = vadd.f32 %v2997_v49, %v7235_v47  ;;  %v7301_v36 = vpop.f32.mrf.mxu1  ;;  %v3398_v7 = vadd.f32 %v3270_v1, %v3142_v62  ;;  %v2840_v49 = vadd.f32 %v7003_v35, %v6956_v27  ;;  %v3143_v1 = vmul.f32 %v6999_v18, %v6999_v18 }
 0x2c9   : > { %v2999_v45 = vpop.f32.mrf.mxu0  ;;  %v3151_v18 = vmul.f32 %v7012_v50, %v7012_v50 }
 0x2ca   : > { %v3274_v10 = vmul.f32 %v2998_v9, %v2998_v9  ;;  %v7307_v22 = vpop.f32.mrf.mxu1  ;;  %v3000_v28 = vadd.f32 %v2999_v45, %v7242_v12  ;;  %v3147_v12 = vmul.f32 %v2840_v49, %v2840_v49  ;;  %v2990_v45 = vadd.f32 %v2989_v20, %v7206_v40 }
 0x2cb   : > { %v3003_v21 = vpop.f32.mrf.mxu0  ;;  %v2986_v40 = vadd.f32 %v7268_v26, %v7182_v33  ;;  %v3271_v20 = vmul.f32 %v2996_v57, %v2996_v57  ;;  %v3159_v57 = vmul.f32 %v7022_v3, %v7022_v3 }
 0x2cc   : > { %v3402_v43 = vadd.f32 %v3274_v10, %v3146_v37  ;;  %v3004_v56 = vadd.f32 %v3003_v21, %v2650_v29  ;;  %v7311_v47 = vpop.f32.mrf.mxu1  ;;  %v3139_v29 = vmul.f32 %v2830_v13, %v2830_v13 }
 0x2cd   : > { %v3005_v2 = vpop.f32.mrf.mxu0 }
 0x2ce   : > { %v7316_v30 = vpack.c.bf16 %v3402_v43, %v3398_v7  ;;  %v3006_v0 = vadd.f32 %v3005_v2, %v2652_v41  ;;  %v7318_v9 = vpop.f32.mrf.mxu1  ;;  %v3278_v62 = vmul.f32 %v3004_v56, %v3004_v56  ;;  %v3275_v41 = vmul.f32 %v3000_v28, %v3000_v28 }
 0x2cf   : > { %v3007_v58 = vpop.f32.mrf.mxu0 }
 0x2d0   : > { %v3008_v27 = vadd.f32 %v3007_v58, %v2654_v15  ;;  %v7325_v35 = vpop.f32.mrf.mxu1  ;;  %v3279_v2 = vmul.f32 %v3006_v0, %v3006_v0  ;;  %v3155_v15 = vmul.f32 %v2850_v16, %v2850_v16  ;;  %v3406_v13 = vadd.f32 %v3278_v62, %v3150_v59  ;;  %v7757_v62 = vld [vmem:[#allocation6_spill] sm:$0xff] }
 0x2d1   : > { %v3009_v37 = vpop.f32.mrf.mxu0  ;;  %v3403_v49 = vadd.f32 %v3275_v41, %v3147_v12  ;;  %v3399_v59 = vadd.f32 %v3271_v20, %v3143_v1 }
 0x2d2   : > { %v3282_v31 = vmul.f32 %v3008_v27, %v3008_v27  ;;  %v3010_v8 = vadd.f32 %v3009_v37, %v2656_v54  ;;  %v7332_v10 = vpop.f32.mrf.mxu1  ;;  %v3267_v54 = vmul.f32 %v2990_v45, %v2990_v45  ;;  %v3407_v28 = vadd.f32 %v3279_v2, %v3151_v18 }
 0x2d3   : > { %v3013_v21 = vpop.f32.mrf.mxu0  ;;  %v3263_v37 = vmul.f32 %v2986_v40, %v2986_v40 }
 0x2d4   : > { %v3410_v7 = vadd.f32 %v3282_v31, %v3154_v4  ;;  %v3283_v43 = vmul.f32 %v3010_v8, %v3010_v8  ;;  %v3014_v44 = vadd.f32 %v3013_v21, %v7274_v19  ;;  %v7339_v56 = vpop.f32.mrf.mxu1  ;;  %v7756_v19 = vld [vmem:[#allocation4_spill] sm:$0xff]  ;;  %v7758_v31 = vld [vmem:[#allocation2_spill] sm:$0xff]  ;;  %v7759_v8 = vld [vmem:[#allocation7_spill] sm:$0xff]  ;;  %v3395_v3 = vadd.f32 %v3267_v54, %v3139_v29 }
 0x2d5   : > { %v3015_v50 = vpop.f32.mrf.mxu0  ;;  %v2860_v27 = vadd.f32 %v7757_v62, %v7756_v19  ;;  %v3162_v18 = vmul.f32 %v7759_v8, %v7759_v8  ;;  %v3519_v21 = vpack.c.bf16 %v3403_v49, %v3399_v59  ;;  %v7760_v54 = vld [vmem:[#allocation8_spill] sm:$0xff]  ;;  %v7761_v19 = vld [vmem:[#allocation9_spill] sm:$0xff]  ;;  %v7762_v62 = vld [vmem:[#allocation3_spill] sm:$0xff] }
 0x2d6   : > { %v3522_v16 = vpack.c.bf16 %v3410_v7, %v3406_v13  ;;  %v3411_v0 = vadd.f32 %v3283_v43, %v3155_v15  ;;  %v3286_v58 = vmul.f32 %v3014_v44, %v3014_v44  ;;  %v3016_v33 = vadd.f32 %v3015_v50, %v7282_v51  ;;  %v7344_v26 = vpop.f32.mrf.mxu1 }
 0x2d7   : > { %v3017_v55 = vpop.f32.mrf.mxu0  ;;  %v3135_v51 = vmul.f32 %v7758_v31, %v7758_v31  ;;  %v7764_v31 = vld [vmem:[#allocation11_spill] sm:$0xff] }
 0x2d8   : > { %v3414_v45 = vadd.f32 %v3286_v58, %v3158_v17  ;;  %v3287_v12 = vmul.f32 %v3016_v33, %v3016_v33  ;;  %v3018_v41 = vadd.f32 %v3017_v55, %v7293_v60  ;;  %v3523_v2 = vpack.c.bf16 %v3411_v0, %v3407_v28  ;;  %v7351_v4 = vpop.f32.mrf.mxu1 }
 0x2d9   : > { %v3019_v15 = vpop.f32.mrf.mxu0  ;;  %v3163_v60 = vmul.f32 %v2860_v27, %v2860_v27  ;;  %v3391_v7 = vadd.f32 %v3263_v37, %v3135_v51  ;;  %v7763_v27 = vld [vmem:[#allocation12_spill] sm:$0xff]  ;;  %v3170_v51 = vmul.f32 %v7764_v31, %v7764_v31 }
 0x2da   : > { %v3415_v13 = vadd.f32 %v3287_v12, %v3159_v57  ;;  %v3290_v40 = vmul.f32 %v3018_v41, %v3018_v41  ;;  %v3020_v1 = vadd.f32 %v3019_v15, %v7298_v11  ;;  %3749 = vmatprep.subr.bf16.mxu0 %v3523_v2  ;;  %4662 = vmatprep.subr.bf16.mxu1 %v3523_v2  ;;  %v7358_v20 = vpop.f32.mrf.mxu1  ;;  %v7770_v31 = vld [vmem:[#allocation20_spill] sm:$0xff] }
 0x2db   : > { %v3023_v43 = vpop.f32.mrf.mxu0  ;;  %3750 = vmatpush1.bf16.msra.mxu0 %v3522_v16  ;;  %4678 = vmatpush1.bf16.msra.mxu1 %v3522_v16  ;;  %v3166_v11 = vmul.f32 %v7760_v54, %v7760_v54  ;;  %v3515_v50 = vpack.c.bf16 %v3395_v3, %v3391_v7  ;;  %v2870_v37 = vadd.f32 %v7763_v27, %v7762_v62 }
 0x2dc   : > { %v3418_v44 = vadd.f32 %v3290_v40, %v3162_v18  ;;  %v3291_v17 = vmul.f32 %v3020_v1, %v3020_v1  ;;  %v3024_v28 = vadd.f32 %v3023_v43, %v7301_v36  ;;  %3751 = vmatprep.subr.bf16.mxu0 %v3519_v21  ;;  %4663 = vmatprep.subr.bf16.mxu1 %v3519_v21  ;;  %v7361_v29 = vpop.f32.mrf.mxu1 }
 0x2dd   : > { %v3025_v49 = vpop.f32.mrf.mxu0  ;;  %v3167_v36 = vmul.f32 %v7761_v19, %v7761_v19 }
 0x2de   : > { %v7365_v0 = vpack.c.bf16 %v3418_v44, %v3414_v45  ;;  %v3419_v58 = vadd.f32 %v3291_v17, %v3163_v60  ;;  %v3294_v33 = vmul.f32 %v3024_v28, %v3024_v28  ;;  %v3026_v57 = vadd.f32 %v3025_v49, %v7307_v22  ;;  %v7368_v16 = vpop.f32.mrf.mxu1 }
 0x2df   : > { %v3027_v59 = vpop.f32.mrf.mxu0  ;;  %3752 = vmatpush1.bf16.msra.mxu0 %v7316_v30  ;;  %4679 = vmatpush1.bf16.msra.mxu1 %v7316_v30  ;;  %v3171_v30 = vmul.f32 %v2870_v37, %v2870_v37  ;;  %v7767_v37 = vld [vmem:[#allocation10_spill] sm:$0xff] }
 0x2e0   : > { %v3422_v55 = vadd.f32 %v3294_v33, %v3166_v11  ;;  %v3295_v45 = vmul.f32 %v3026_v57, %v3026_v57  ;;  %v3028_v12 = vadd.f32 %v3027_v59, %v7311_v47  ;;  %3753 = vmatprep.subr.bf16.mxu0 %v3515_v50  ;;  %4664 = vmatprep.subr.bf16.mxu1 %v3515_v50  ;;  %v7377_v22 = vpop.f32.mrf.mxu1  ;;  %v7766_v50 = vld [vmem:[#allocation16_spill] sm:$0xff]  ;;  %v7768_v59 = vld [vmem:[#allocation22_spill] sm:$0xff] }
 0x2e1   : > { %v3029_v41 = vpop.f32.mrf.mxu0  ;;  %v7379_v2 = vpack.c.bf16 %v3419_v58, %v3415_v13  ;;  %v3178_v58 = vmul.f32 %v7766_v50, %v7766_v50 }
 0x2e2   : > { %v3423_v8 = vadd.f32 %v3295_v45, %v3167_v36  ;;  %v3298_v18 = vmul.f32 %v3028_v12, %v3028_v12  ;;  %v3030_v3 = vadd.f32 %v3029_v41, %v7318_v9  ;;  %v7384_v15 = vpop.f32.mrf.mxu1  ;;  %v7765_v9 = vld [vmem:[#allocation13_spill] sm:$0xff] }
 0x2e3   : > { %v3033_v21 = vpop.f32.mrf.mxu0  ;;  %3754 = vmatpush1.bf16.msra.mxu0 %v7296_v38  ;;  %4680 = vmatpush1.bf16.msra.mxu1 %v7296_v38  ;;  %v3174_v7 = vmul.f32 %v7765_v9, %v7765_v9 }
 0x2e4   : > { %v3426_v47 = vadd.f32 %v3298_v18, %v3170_v51  ;;  %v3299_v40 = vmul.f32 %v3030_v3, %v3030_v3  ;;  %v3034_v13 = vadd.f32 %v3033_v21, %v7325_v35  ;;  %3755 = vmatprep.subr.bf16.mxu0 %v7276_v46  ;;  %4665 = vmatprep.subr.bf16.mxu1 %v7276_v46  ;;  %v7391_v1 = vpop.f32.mrf.mxu1 }
 0x2e5   : > { %v7393_v60 = vpop.f32.mrf.mxu0  ;;  %v3186_v51 = vmul.f32 %v7770_v31, %v7770_v31 }
 0x2e6   : > { %v7397_v43 = vpack.c.bf16 %v3426_v47, %v3422_v55  ;;  %v3427_v44 = vadd.f32 %v3299_v40, %v3171_v30  ;;  %v3302_v17 = vmul.f32 %v3034_v13, %v3034_v13  ;;  %v7399_v38 = vpop.f32.mrf.mxu1  ;;  %v2890_v55 = vadd.f32 %v7768_v59, %v7767_v37  ;;  %v7771_v30 = vld [vmem:[#allocation19_spill] sm:$0xff] }
 0x2e7   : > { %v3037_v28 = vpop.f32.mrf.mxu0  ;;  %3756 = vmatpush1.bf16.msra.mxu0 %v7271_v61  ;;  %4681 = vmatpush1.bf16.msra.mxu1 %v7271_v61 }
 0x2e8   : > { %v3430_v35 = vadd.f32 %v3302_v17, %v3174_v7  ;;  %v3038_v46 = vadd.f32 %v3037_v28, %v7339_v56  ;;  %3757 = vmatprep.subr.bf16.mxu0 %v7247_v14  ;;  %4666 = vmatprep.subr.bf16.mxu1 %v7247_v14  ;;  %v7406_v54 = vpop.f32.mrf.mxu1  ;;  %v7410_v49 = vpack.c.bf16 %v3427_v44, %v3423_v8 }
 0x2e9   : > { %v7408_v11 = vpop.f32.mrf.mxu0 }
 0x2ea   : > { %v3306_v33 = vmul.f32 %v3038_v46, %v3038_v46  ;;  %v7414_v57 = vpop.f32.mrf.mxu1  ;;  %v7773_v46 = vld [vmem:[#allocation25_spill] sm:$0xff] }
 0x2eb   : > { %v3043_v61 = vpop.f32.mrf.mxu0  ;;  %3758 = vmatpush1.bf16.msra.mxu0 %v7239_v52  ;;  %4682 = vmatpush1.bf16.msra.mxu1 %v7239_v52 }
 0x2ec   : > { %v3434_v56 = vadd.f32 %v3306_v33, %v3178_v58  ;;  %v3044_v14 = vadd.f32 %v3043_v61, %v7351_v4  ;;  %3759 = vmatprep.subr.bf16.mxu0 %v7211_v23  ;;  %4667 = vmatprep.subr.bf16.mxu1 %v7211_v23  ;;  %v7421_v36 = vpop.f32.mrf.mxu1  ;;  %v7769_v23 = vld [vmem:[#allocation18_spill] sm:$0xff]  ;;  %v7774_v33 = vld [vmem:[#allocation21_spill] sm:$0xff] }
 0x2ed   : > { %v3045_v19 = vpop.f32.mrf.mxu0  ;;  %v3182_v4 = vmul.f32 %v7769_v23, %v7769_v23  ;;  %v3190_v61 = vmul.f32 %v7774_v33, %v7774_v33 }
 0x2ee   : > { %v7423_v62 = vpack.c.bf16 %v3434_v56, %v3430_v35  ;;  %v3046_v27 = vadd.f32 %v3045_v19, %v7358_v20  ;;  %v3310_v45 = vmul.f32 %v3044_v14, %v3044_v14  ;;  %v2716_v20 = vpop.f32.mrf.mxu1  ;;  %v7772_v35 = vld [vmem:[#allocation14_spill] sm:$0xff]  ;;  %v7775_v19 = vld [vmem:[#allocation24_spill] sm:$0xff] }
 0x2ef   : > { %v3047_v12 = vpop.f32.mrf.mxu0  ;;  %3760 = vmatpush1.bf16.msra.mxu0 %v7203_v32  ;;  %4683 = vmatpush1.bf16.msra.mxu1 %v7203_v32  ;;  %v3183_v32 = vmul.f32 %v7771_v30, %v7771_v30  ;;  %v2900_v50 = vadd.f32 %v7773_v46, %v7772_v35  ;;  %v7780_v35 = vld [vmem:[#allocation28_spill] sm:$0xff] }
 0x2f0   : > { %v3048_v52 = vadd.f32 %v3047_v12, %v7361_v29  ;;  %3761 = vmatprep.subr.bf16.mxu0 %v7177_v34  ;;  %4668 = vmatprep.subr.bf16.mxu1 %v7177_v34  ;;  %v3311_v8 = vmul.f32 %v3046_v27, %v3046_v27  ;;  %v3187_v29 = vmul.f32 %v2890_v55, %v2890_v55  ;;  %v7776_v55 = vld [vmem:[#allocation23_spill] sm:$0xff] }
 0x2f1   : > { %v3049_v41 = vpop.f32.mrf.mxu0  ;;  %v3438_v21 = vadd.f32 %v3310_v45, %v3182_v4  ;;  %v3195_v45 = vmul.f32 %v2900_v50, %v2900_v50  ;;  %v3203_v46 = vmul.f32 %v7780_v35, %v7780_v35  ;;  %v7785_v35 = vld [vmem:[#allocation34_spill] sm:$0xff] }
 0x2f2   : > { %v3314_v18 = vmul.f32 %v3048_v52, %v3048_v52  ;;  %v3050_v3 = vadd.f32 %v3049_v41, %v7368_v16  ;;  %v2720_v16 = vpop.f32.mrf.mxu1  ;;  %v3439_v7 = vadd.f32 %v3311_v8, %v3183_v32 }
 0x2f3   : > { %v3053_v47 = vpop.f32.mrf.mxu0  ;;  %3762 = vmatpush1.bf16.msra.mxu0 %v7169_v63  ;;  %4684 = vmatpush1.bf16.msra.mxu1 %v7169_v63 }
 0x2f4   : > { %v3442_v34 = vadd.f32 %v3314_v18, %v3186_v51  ;;  %v3315_v40 = vmul.f32 %v3050_v3, %v3050_v3  ;;  %v3054_v13 = vadd.f32 %v3053_v47, %v7377_v22  ;;  %3763 = vmatprep.subr.bf16.mxu0 %v7144_v48  ;;  %4669 = vmatprep.subr.bf16.mxu1 %v7144_v48  ;;  %v2722_v14 = vpop.f32.mrf.mxu1 }
 0x2f5   : > { %v3055_v9 = vpop.f32.mrf.mxu0 }
 0x2f6   : > { %v7445_v44 = vpack.c.bf16 %v3442_v34, %v3438_v21  ;;  %v3443_v17 = vadd.f32 %v3315_v40, %v3187_v29  ;;  %v3056_v28 = vadd.f32 %v3055_v9, %v7384_v15  ;;  %v3318_v22 = vmul.f32 %v3054_v13, %v3054_v13  ;;  %v2724_v31 = vpop.f32.mrf.mxu1  ;;  %v7777_v21 = vld [vmem:[#allocation26_spill] sm:$0xff] }
 0x2f7   : > { %v3057_v63 = vpop.f32.mrf.mxu0  ;;  %3764 = vmatpush1.bf16.msra.mxu0 %v7138_v6  ;;  %4685 = vmatpush1.bf16.msra.mxu1 %v7138_v6  ;;  %v3194_v15 = vmul.f32 %v7775_v19, %v7775_v19  ;;  %v3191_v6 = vmul.f32 %v7776_v55, %v7776_v55  ;;  %v3198_v47 = vmul.f32 %v7777_v21, %v7777_v21 }
 0x2f8   : > { %v3058_v58 = vadd.f32 %v3057_v63, %v7391_v1  ;;  %v7453_v48 = vpack.c.bf16 %v3443_v17, %v3439_v7  ;;  %v3319_v27 = vmul.f32 %v3056_v28, %v3056_v28  ;;  %v3446_v1 = vadd.f32 %v3318_v22, %v3190_v61  ;;  %v2726_v40 = vpop.f32.mrf.mxu1  ;;  %v7779_v28 = vld [vmem:[#allocation27_spill] sm:$0xff] }
 0x2f9   : > { %v3059_v56 = vpop.f32.mrf.mxu0 }
 0x2fa   : > { %v3322_v37 = vmul.f32 %v3058_v58, %v3058_v58  ;;  %v3060_v59 = vadd.f32 %v3059_v56, %v7399_v38  ;;  %v3447_v51 = vadd.f32 %v3319_v27, %v3191_v6  ;;  %v2730_v61 = vpop.f32.mrf.mxu1  ;;  %v7781_v6 = vld [vmem:[#allocation30_spill] sm:$0xff] }
 0x2fb   : > { %v3063_v12 = vpop.f32.mrf.mxu0 }
 0x2fc   : > { %v3450_v52 = vadd.f32 %v3322_v37, %v3194_v15  ;;  %v3323_v23 = vmul.f32 %v3060_v59, %v3060_v59  ;;  %v3064_v4 = vadd.f32 %v3063_v12, %v7406_v54  ;;  %v7778_v54 = vld [vmem:[#allocation29_spill] sm:$0xff] }
 0x2fd   : > { %v3065_v41 = vpop.f32.mrf.mxu0  ;;  %v3202_v13 = vmul.f32 %v7778_v54, %v7778_v54 }
 0x2fe   : > { %v7463_v8 = vpack.c.bf16 %v3450_v52, %v3446_v1  ;;  %v3451_v18 = vadd.f32 %v3323_v23, %v3195_v45  ;;  %v3066_v3 = vadd.f32 %v3065_v41, %v7414_v57  ;;  %v3326_v38 = vmul.f32 %v3064_v4, %v3064_v4  ;;  %v2732_v1 = vpop.f32.mrf.mxu1  ;;  %v7782_v52 = vld [vmem:[#allocation33_spill] sm:$0xff] }
 0x2ff   : > { %v3067_v30 = vpop.f32.mrf.mxu0  ;;  %v3199_v57 = vmul.f32 %v7779_v28, %v7779_v28  ;;  %v3206_v45 = vmul.f32 %v7781_v6, %v7781_v6  ;;  %v3210_v23 = vmul.f32 %v7782_v52, %v7782_v52 }
 0x300   : > { %v3068_v32 = vadd.f32 %v3067_v30, %v7421_v36  ;;  %v7467_v29 = vpack.c.bf16 %v3451_v18, %v3447_v51  ;;  %v3327_v9 = vmul.f32 %v3066_v3, %v3066_v3  ;;  %v3454_v50 = vadd.f32 %v3326_v38, %v3198_v47  ;;  %v7783_v51 = vld [vmem:[#allocation31_spill] sm:$0xff]  ;;  %v7784_v3 = vld [vmem:[#allocation32_spill] sm:$0xff] }
 0x301   : > { %v3069_v34 = vpop.f32.mrf.mxu0  ;;  %v3207_v18 = vmul.f32 %v7783_v51, %v7783_v51  ;;  %v7789_v51 = vld [vmem:[#allocation5_spill] sm:$0xff] }
 0x302   : > { %v3330_v7 = vmul.f32 %v3068_v32, %v3068_v32  ;;  %v3070_v17 = vadd.f32 %v3069_v34, %v2716_v20  ;;  %v3455_v56 = vadd.f32 %v3327_v9, %v3199_v57  ;;  %v2734_v34 = vpop.f32.mrf.mxu1 }
 0x303   : > { %v3073_v36 = vpop.f32.mrf.mxu0 }
 0x304   : > { %v3458_v63 = vadd.f32 %v3330_v7, %v3202_v13  ;;  %v3331_v22 = vmul.f32 %v3070_v17, %v3070_v17  ;;  %v3074_v58 = vadd.f32 %v3073_v36, %v2720_v16  ;;  %v2736_v36 = vpop.f32.mrf.mxu1 }
 0x305   : > { %v3075_v33 = vpop.f32.mrf.mxu0 }
 0x306   : > { %v7477_v19 = vpack.c.bf16 %v3458_v63, %v3454_v50  ;;  %v3459_v15 = vadd.f32 %v3331_v22, %v3203_v46  ;;  %v3076_v27 = vadd.f32 %v3075_v33, %v2722_v14  ;;  %v3334_v20 = vmul.f32 %v3074_v58, %v3074_v58  ;;  %v7786_v63 = vld [vmem:[#allocation37_spill] sm:$0xff] }
 0x307   : > { %v3077_v37 = vpop.f32.mrf.mxu0  ;;  %v3211_v14 = vmul.f32 %v7784_v3, %v7784_v3  ;;  %v3214_v46 = vmul.f32 %v7785_v35, %v7785_v35  ;;  %v3218_v22 = vmul.f32 %v7786_v63, %v7786_v63 }
 0x308   : > { %v3078_v59 = vadd.f32 %v3077_v37, %v2724_v31  ;;  %v3547_v55 = vpack.c.bf16 %v3459_v15, %v3455_v56  ;;  %v3335_v16 = vmul.f32 %v3076_v27, %v3076_v27  ;;  %v3462_v31 = vadd.f32 %v3334_v20, %v3206_v45  ;;  %v7787_v56 = vld [vmem:[#allocation35_spill] sm:$0xff]  ;;  %v7788_v27 = vld [vmem:[#allocation36_spill] sm:$0xff] }
 0x309   : > { %v3079_v12 = vpop.f32.mrf.mxu0  ;;  %v3215_v15 = vmul.f32 %v7787_v56, %v7787_v56  ;;  %v3219_v37 = vmul.f32 %v7788_v27, %v7788_v27 }
 0x30a   : > { %v3338_v4 = vmul.f32 %v3078_v59, %v3078_v59  ;;  %v3080_v41 = vadd.f32 %v3079_v12, %v2726_v40  ;;  %v3463_v54 = vadd.f32 %v3335_v16, %v3207_v18  ;;  %v3040_v16 = vadd.f32 %v7408_v11, %v7344_v26  ;;  %v7790_v18 = vld [vmem:[#allocation17_spill] sm:$0xff] }
 0x30b   : > { %v3083_v30 = vpop.f32.mrf.mxu0  ;;  %v2880_v3 = vadd.f32 %v7790_v18, %v7789_v51 }
 0x30c   : > { %v3466_v38 = vadd.f32 %v3338_v4, %v3210_v23  ;;  %v3339_v32 = vmul.f32 %v3080_v41, %v3080_v41  ;;  %v3084_v21 = vadd.f32 %v3083_v30, %v2730_v61  ;;  %v3307_v30 = vmul.f32 %v3040_v16, %v3040_v16 }
 0x30d   : > { %v3085_v47 = vpop.f32.mrf.mxu0 }
 0x30e   : > { %v3550_v13 = vpack.c.bf16 %v3466_v38, %v3462_v31  ;;  %v3467_v9 = vadd.f32 %v3339_v32, %v3211_v14  ;;  %v3086_v7 = vadd.f32 %v3085_v47, %v2732_v1  ;;  %v3342_v28 = vmul.f32 %v3084_v21, %v3084_v21 }
 0x30f   : > { %v3087_v17 = vpop.f32.mrf.mxu0  ;;  %v3036_v14 = vadd.f32 %v7393_v60, %v7332_v10  ;;  %v3179_v21 = vmul.f32 %v2880_v3, %v2880_v3  ;;  %v7791_v10 = vld [vmem:[#allocation15_spill] sm:$0xff] }
 0x310   : > { %v3088_v40 = vadd.f32 %v3087_v17, %v2734_v34  ;;  %v3551_v57 = vpack.c.bf16 %v3467_v9, %v3463_v54  ;;  %v3343_v58 = vmul.f32 %v3086_v7, %v3086_v7  ;;  %v3470_v20 = vadd.f32 %v3342_v28, %v3214_v46  ;;  %v7794_v28 = vld [vmem:[#allocation40_spill] sm:$0xff]  ;;  %v7796_v46 = vld [vmem:[#allocation42_spill] sm:$0xff] }
 0x311   : > { %v3089_v50 = vpop.f32.mrf.mxu0  ;;  %v3303_v47 = vmul.f32 %v3036_v14, %v3036_v14  ;;  %v3175_v60 = vmul.f32 %v7791_v10, %v7791_v10 }
 0x312   : > { %v3346_v33 = vmul.f32 %v3088_v40, %v3088_v40  ;;  %v3090_v61 = vadd.f32 %v3089_v50, %v2736_v36  ;;  %v3471_v45 = vadd.f32 %v3343_v58, %v3215_v15 }
 0x313   : > { %v3431_v34 = vadd.f32 %v3303_v47, %v3175_v60 }
 0x314   : > { %v3474_v59 = vadd.f32 %v3346_v33, %v3218_v22  ;;  %v3347_v6 = vmul.f32 %v3090_v61, %v3090_v61 }
 0x315   : > { %v3670_v23 = vpop.f32.mrf.mxu1 }
 0x316   : > { %v3554_v12 = vpack.c.bf16 %v3474_v59, %v3470_v20  ;;  %v3475_v1 = vadd.f32 %v3347_v6, %v3219_v37 }
 0x317   : > { %v3672_v4 = vpop.f32.mrf.mxu1 }
 0x318   : > { %v3555_v52 = vpack.c.bf16 %v3475_v1, %v3471_v45  ;;  %v4630_v41 = vpack.c.bf16 %v3672_v4, %v3670_v23 }
 0x319   : > { %v3674_v26 = vpop.f32.mrf.mxu1 }
 0x31a   : > { %3765 = vmatprep.subr.bf16.mxu0 %v3555_v52  ;;  %4670 = vmatprep.subr.bf16.mxu1 %v3555_v52  ;;  %4054 = vst [vmem:[%s7501_s30] sm:$0xff] %v4630_v41  ;;  %v4092_v11 = vmax.f32 %v3670_v23, %v3674_v26 }
 0x31b   : > { %3766 = vmatpush2.bf16.msra.mxu0 %v3554_v12  ;;  %4686 = vmatpush2.bf16.msra.mxu1 %v3554_v12  ;;  %v3676_v31 = vpop.f32.mrf.mxu1 }
 0x31c   : > { %3767 = vmatprep.subr.bf16.mxu0 %v3551_v57  ;;  %4671 = vmatprep.subr.bf16.mxu1 %v3551_v57  ;;  %v4632_v38 = vpack.c.bf16 %v3676_v31, %v3674_v26  ;;  %v4093_v32 = vmax.f32 %v3672_v4, %v3676_v31 }
 0x31e   : > { %4056 = vst [vmem:[%s7501_s30 + $0x10] sm:$0xff] %v4632_v38 }
 0x31f   : > { %3768 = vmatpush2.bf16.msra.mxu0 %v3550_v13  ;;  %4687 = vmatpush2.bf16.msra.mxu1 %v3550_v13 }
 0x320   : > { %3769 = vmatprep.subr.bf16.mxu0 %v3547_v55  ;;  %4672 = vmatprep.subr.bf16.mxu1 %v3547_v55  ;;  %v3435_v55 = vadd.f32 %v3307_v30, %v3179_v21 }
 0x323   : > { %3770 = vmatpush2.bf16.msra.mxu0 %v7477_v19  ;;  %4688 = vmatpush2.bf16.msra.mxu1 %v7477_v19  ;;  %v3535_v19 = vpack.c.bf16 %v3435_v55, %v3431_v34 }
 0x324   : > { %3771 = vmatprep.subr.bf16.mxu0 %v7467_v29  ;;  %4673 = vmatprep.subr.bf16.mxu1 %v7467_v29 }
 0x327   : > { %3772 = vmatpush2.bf16.msra.mxu0 %v7463_v8  ;;  %4689 = vmatpush2.bf16.msra.mxu1 %v7463_v8 }
 0x328   : > { %3773 = vmatprep.subr.bf16.mxu0 %v7453_v48  ;;  %4674 = vmatprep.subr.bf16.mxu1 %v7453_v48 }
 0x32b   : > { %3774 = vmatpush2.bf16.msra.mxu0 %v7445_v44  ;;  %4690 = vmatpush2.bf16.msra.mxu1 %v7445_v44 }
 0x32c   : > { %3775 = vmatprep.subr.bf16.mxu0 %v3535_v19  ;;  %4675 = vmatprep.subr.bf16.mxu1 %v3535_v19 }
 0x32f   : > { %3776 = vmatpush2.bf16.msra.mxu0 %v7423_v62  ;;  %4691 = vmatpush2.bf16.msra.mxu1 %v7423_v62  ;;  %v5196_v62 = vld [vmem:[%s7615_s2] ss:$8 sps:$4 sm:$0xff]  }
 0x330   : > { %3777 = vmatprep.subr.bf16.mxu0 %v7410_v49  ;;  %4676 = vmatprep.subr.bf16.mxu1 %v7410_v49  ;;  %v5197_v49 = vld [vmem:[%s7615_s2 + $0x14] ss:$8 sps:$4 sm:$0xff]  }
 0x333   : > { %3778 = vmatpush2.bf16.msra.mxu0 %v7397_v43  ;;  %4692 = vmatpush2.bf16.msra.mxu1 %v7397_v43  ;;  %v7792_v43 = vld [vmem:[#allocation38_spill] sm:$0xff] }
 0x334   : > { %3779 = vmatprep.subr.bf16.mxu0 %v7379_v2  ;;  %4677 = vmatprep.subr.bf16.mxu1 %v7379_v2  ;;  %v5198_v2 = vld [vmem:[%s7615_s2 + $0x10] ss:$8 sps:$4 sm:$0xff]  }
 0x337   : > { %3780 = vmatpush2.bf16.msra.mxu0 %v7365_v0  ;;  %4693 = vmatpush2.bf16.msra.mxu1 %v7365_v0  ;;  %v7793_v0 = vld [vmem:[#allocation39_spill] sm:$0xff] }
 0x33a   : > { %3782 = vmatmul.mubr.bf16.vlgmr.msra.gmra.mxu0 %v5196_v62  ;;  %3852 = vmatmul.mubr.bf16.vlgmr.msra.gmra.mxu1 %v7290_v39 }
 0x33b   : > { %3791 = vmatprep.mubr.bf16.mxu0 %v5197_v49 }
 0x342   : > { %3792 = vmatmul.mubr.bf16.gmra.mxu0 %v5198_v2 }
 0x343   : > { %3801 = vmatprep.mubr.bf16.mxu0 %v7792_v43 }
 0x34a   : > { %3802 = vmatmul.mubr.bf16.gmra.mxu0 %v7793_v0 }
 0x34b   : > { %3811 = vmatprep.mubr.bf16.mxu0 %v7153_v24 }
 0x34f   : > { %v3680_v39 = vpop.f32.mrf.mxu1 }
 0x350   : > { %v4096_v44 = vmax.f32 %v4092_v11, %v3680_v39 }
 0x351   : > { %v3682_v48 = vpop.f32.mrf.mxu1 }
 0x352   : > { %3812 = vmatmul.mubr.bf16.gmra.mxu0 %v7158_v42  ;;  %v4634_v8 = vpack.c.bf16 %v3682_v48, %v3680_v39  ;;  %v4097_v29 = vmax.f32 %v4093_v32, %v3682_v48  ;;  %v7795_v42 = vld [vmem:[#allocation41_spill] sm:$0xff] }
 0x353   : > { %3821 = vmatprep.mubr.bf16.mxu0 %v7187_v5  ;;  %v3684_v54 = vpop.f32.mrf.mxu1 }
 0x354   : > { %4058 = vst [vmem:[%s7501_s30 + $0x20] sm:$0xff] %v4634_v8  ;;  %v4100_v13 = vmax.f32 %v4096_v44, %v3684_v54 }
 0x355   : > { %v3686_v9 = vpop.f32.mrf.mxu1 }
 0x356   : > { %v4101_v22 = vmax.f32 %v4097_v29, %v3686_v9  ;;  %v4636_v15 = vpack.c.bf16 %v3686_v9, %v3684_v54 }
 0x358   : > { %v3690_v7 = vpop.f32.mrf.mxu1  ;;  %4060 = vst [vmem:[%s7501_s30 + $0x30] sm:$0xff] %v4636_v15 }
 0x359   : > { %v4104_v33 = vmax.f32 %v4100_v13, %v3690_v7 }
 0x35a   : > { %3822 = vmatmul.mubr.bf16.gmra.mxu0 %v7194_v53  ;;  %v3692_v17 = vpop.f32.mrf.mxu1 }
 0x35b   : > { %3831 = vmatprep.mubr.bf16.mxu0 %v7223_v25  ;;  %v4105_v61 = vmax.f32 %v4101_v22, %v3692_v17  ;;  %v4638_v4 = vpack.c.bf16 %v3692_v17, %v3690_v7 }
 0x35c   : > { %v3694_v24 = vpop.f32.mrf.mxu1 }
 0x35d   : > { %v4108_v27 = vmax.f32 %v4104_v33, %v3694_v24  ;;  %4062 = vst [vmem:[%s7501_s30 + $0x40] sm:$0xff] %v4638_v4 }
 0x35e   : > { %v3696_v5 = vpop.f32.mrf.mxu1 }
 0x35f   : > { %v4109_v37 = vmax.f32 %v4105_v61, %v3696_v5  ;;  %v4640_v51 = vpack.c.bf16 %v3696_v5, %v3694_v24 }
 0x361   : > { %v3700_v40 = vpop.f32.mrf.mxu1  ;;  %4064 = vst [vmem:[%s7501_s30 + $0x50] sm:$0xff] %v4640_v51 }
 0x362   : > { %3832 = vmatmul.mubr.bf16.gmra.mxu0 %v7794_v28  ;;  %v4112_v59 = vmax.f32 %v4108_v27, %v3700_v40 }
 0x363   : > { %3841 = vmatprep.mubr.bf16.mxu0 %v7795_v42  ;;  %v3702_v57 = vpop.f32.mrf.mxu1 }
 0x364   : > { %v4113_v6 = vmax.f32 %v4109_v37, %v3702_v57  ;;  %v4642_v10 = vpack.c.bf16 %v3702_v57, %v3700_v40 }
 0x365   : > { %v3704_v35 = vpop.f32.mrf.mxu1 }
 0x366   : > { %v4116_v12 = vmax.f32 %v4112_v59, %v3704_v35  ;;  %4066 = vst [vmem:[%s7501_s30 + $0x60] sm:$0xff] %v4642_v10 }
 0x367   : > { %v3706_v53 = vpop.f32.mrf.mxu1 }
 0x368   : > { %v4117_v1 = vmax.f32 %v4113_v6, %v3706_v53  ;;  %v4644_v55 = vpack.c.bf16 %v3706_v53, %v3704_v35 }
 0x369   : > { %v3710_v36 = vpop.f32.mrf.mxu1 }
 0x36a   : > { %3842 = vmatmul.mubr.bf16.gmra.mxu0 %v7796_v46  ;;  %v4120_v23 = vmax.f32 %v4116_v12, %v3710_v36  ;;  %4068 = vst [vmem:[%s7501_s30 + $0x70] sm:$0xff] %v4644_v55 }
 0x36b   : > { %v3712_v50 = vpop.f32.mrf.mxu1 }
 0x36c   : > { %v4121_v16 = vmax.f32 %v4117_v1, %v3712_v50  ;;  %v4646_v48 = vpack.c.bf16 %v3712_v50, %v3710_v36 }
 0x36d   : > { %v3714_v63 = vpop.f32.mrf.mxu1 }
 0x36e   : > { %v4124_v18 = vmax.f32 %v4120_v23, %v3714_v63  ;;  %4070 = vst [vmem:[%s7501_s30 + $0x80] sm:$0xff] %v4646_v48 }
 0x36f   : > { %v3716_v25 = vpop.f32.mrf.mxu1 }
 0x370   : > { %v4125_v3 = vmax.f32 %v4121_v16, %v3716_v25  ;;  %v4648_v8 = vpack.c.bf16 %v3716_v25, %v3714_v63 }
 0x372   : > { %v3720_v58 = vpop.f32.mrf.mxu1  ;;  %4072 = vst [vmem:[%s7501_s30 + $0x90] sm:$0xff] %v4648_v8 }
 0x373   : > { %v4128_v26 = vmax.f32 %v4124_v18, %v3720_v58 }
 0x374   : > { %v3722_v56 = vpop.f32.mrf.mxu1 }
 0x375   : > { %v4129_v11 = vmax.f32 %v4125_v3, %v3722_v56  ;;  %v4650_v29 = vpack.c.bf16 %v3722_v56, %v3720_v58 }
 0x376   : > { %v3724_v20 = vpop.f32.mrf.mxu1 }
 0x377   : > { %v4132_v31 = vmax.f32 %v4128_v26, %v3724_v20  ;;  %4074 = vst [vmem:[%s7501_s30 + $0xa0] sm:$0xff] %v4650_v29 }
 0x378   : > { %v3726_v45 = vpop.f32.mrf.mxu1 }
 0x379   : > { %v4133_v38 = vmax.f32 %v4129_v11, %v3726_v45  ;;  %v4652_v54 = vpack.c.bf16 %v3726_v45, %v3724_v20 }
 0x37a   : > { %v3730_v52 = vpop.f32.mrf.mxu1 }
 0x37b   : > { %v4136_v21 = vmax.f32 %v4132_v31, %v3730_v52  ;;  %4076 = vst [vmem:[%s7501_s30 + $0xb0] sm:$0xff] %v4652_v54 }
 0x37c   : > { %v3732_v41 = vpop.f32.mrf.mxu1 }
 0x37d   : > { %v4137_v47 = vmax.f32 %v4133_v38, %v3732_v41  ;;  %v4654_v13 = vpack.c.bf16 %v3732_v41, %v3730_v52 }
 0x37e   : > { %v3734_v14 = vpop.f32.mrf.mxu1 }
 0x37f   : > { %v4140_v34 = vmax.f32 %v4136_v21, %v3734_v14  ;;  %4078 = vst [vmem:[%s7501_s30 + $0xc0] sm:$0xff] %v4654_v13 }
 0x380   : > { %v3736_v30 = vpop.f32.mrf.mxu1 }
 0x381   : > { %v4141_v19 = vmax.f32 %v4137_v47, %v3736_v30  ;;  %v4656_v9 = vpack.c.bf16 %v3736_v30, %v3734_v14 }
 0x382   : > { %v3740_v32 = vpop.f32.mrf.mxu1 }
 0x383   : > { %v4144_v49 = vmax.f32 %v4140_v34, %v3740_v32  ;;  %4080 = vst [vmem:[%s7501_s30 + $0xd0] sm:$0xff] %v4656_v9 }
 0x384   : > { %v3742_v60 = vpop.f32.mrf.mxu1 }
 0x385   : > { %v4145_v2 = vmax.f32 %v4141_v19, %v3742_v60  ;;  %v4658_v7 = vpack.c.bf16 %v3742_v60, %v3740_v32 }
 0x386   : > { %v3744_v62 = vpop.f32.mrf.mxu1 }
 0x387   : > { %v4148_v0 = vmax.f32 %v4144_v49, %v3744_v62  ;;  %4082 = vst [vmem:[%s7501_s30 + $0xe0] sm:$0xff] %v4658_v7 }
 0x388   : > { %v3746_v43 = vpop.f32.mrf.mxu1 }
 0x389   : > { %v4149_v39 = vmax.f32 %v4145_v2, %v3746_v43  ;;  %v4660_v17 = vpack.c.bf16 %v3746_v43, %v3744_v62 }
 0x38b   : > { %v7557_v44 = vmax.f32 %v4148_v0, %v4149_v39  ;;  %4084 = vst [vmem:[%s7501_s30 + $0xf0] sm:$0xff] %v4660_v17 }
 0x3fa   : > { %v3783_v24 = vpop.f32.mrf.mxu0  ;;  %v7567_v28 = vpop.f32.mrf.mxu1 }
 0x3fc   : > { %v3785_v42 = vpop.f32.mrf.mxu0  ;;  %v7569_v5 = vpop.f32.mrf.mxu1 }
 0x3fd   : > { %v4631_v40 = vpack.c.bf16 %v3785_v42, %v3783_v24  ;;  %v4659_v57 = vpack.c.bf16 %v7569_v5, %v7567_v28 }
 0x3fe   : > { %v3787_v35 = vpop.f32.mrf.mxu0  ;;  %v7573_v46 = vpop.f32.mrf.mxu1 }
 0x3ff   : > { %4055 = vst [vmem:[%s7501_s30 + $0x8] sm:$0xff] %v4631_v40  ;;  %4083 = vst [vmem:[%s7501_s30 + $0xe8] sm:$0xff] %v4659_v57  ;;  %v4094_v23 = vmax.f32 %v3783_v24, %v3787_v35 }
 0x400   : > { %v3789_v53 = vpop.f32.mrf.mxu0  ;;  %v7577_v36 = vpop.f32.mrf.mxu1 }
 0x401   : > { %v4633_v50 = vpack.c.bf16 %v3789_v53, %v3787_v35  ;;  %v4661_v63 = vpack.c.bf16 %v7577_v36, %v7573_v46  ;;  %v4095_v4 = vmax.f32 %v3785_v42, %v3789_v53 }
 0x402   : > { %v3793_v25 = vpop.f32.mrf.mxu0 }
 0x403   : > { %4057 = vst [vmem:[%s7501_s30 + $0x18] sm:$0xff] %v4633_v50  ;;  %4085 = vst [vmem:[%s7501_s30 + $0xf8] sm:$0xff] %v4661_v63  ;;  %v4098_v41 = vmax.f32 %v4094_v23, %v3793_v25 }
 0x404   : > { %v3795_v22 = vpop.f32.mrf.mxu0 }
 0x405   : > { %v4635_v58 = vpack.c.bf16 %v3795_v22, %v3793_v25  ;;  %v4099_v3 = vmax.f32 %v4095_v4, %v3795_v22 }
 0x406   : > { %v3797_v33 = vpop.f32.mrf.mxu0 }
 0x407   : > { %4059 = vst [vmem:[%s7501_s30 + $0x28] sm:$0xff] %v4635_v58  ;;  %v4102_v14 = vmax.f32 %v4098_v41, %v3797_v33 }
 0x408   : > { %v3799_v61 = vpop.f32.mrf.mxu0 }
 0x409   : > { %v4637_v56 = vpack.c.bf16 %v3799_v61, %v3797_v33  ;;  %v4103_v11 = vmax.f32 %v4099_v3, %v3799_v61 }
 0x40a   : > { %v3803_v15 = vpop.f32.mrf.mxu0 }
 0x40b   : > { %4061 = vst [vmem:[%s7501_s30 + $0x38] sm:$0xff] %v4637_v56  ;;  %v4106_v30 = vmax.f32 %v4102_v14, %v3803_v15 }
 0x40c   : > { %v3805_v27 = vpop.f32.mrf.mxu0 }
 0x40d   : > { %v4639_v37 = vpack.c.bf16 %v3805_v27, %v3803_v15  ;;  %v4107_v32 = vmax.f32 %v4103_v11, %v3805_v27 }
 0x40e   : > { %v3807_v20 = vpop.f32.mrf.mxu0 }
 0x40f   : > { %4063 = vst [vmem:[%s7501_s30 + $0x48] sm:$0xff] %v4639_v37  ;;  %v4110_v21 = vmax.f32 %v4106_v30, %v3807_v20 }
 0x410   : > { %v3809_v59 = vpop.f32.mrf.mxu0 }
 0x411   : > { %v4641_v6 = vpack.c.bf16 %v3809_v59, %v3807_v20  ;;  %v4111_v10 = vmax.f32 %v4107_v32, %v3809_v59  ;;  %v5223_v20 = vmov 0.0  }
 0x412   : > { %v3813_v45 = vpop.f32.mrf.mxu0  ;;  %4090 = vst [vmem:[%s245_s13] sm:$0x1] %v5223_v20 }
 0x413   : > { %4065 = vst [vmem:[%s7501_s30 + $0x58] sm:$0xff] %v4641_v6  ;;  %v4114_v60 = vmax.f32 %v4110_v21, %v3813_v45 }
 0x414   : > { %v3815_v12 = vpop.f32.mrf.mxu0 }
 0x415   : > { %v4643_v1 = vpack.c.bf16 %v3815_v12, %v3813_v45  ;;  %v4115_v19 = vmax.f32 %v4111_v10, %v3815_v12 }
 0x416   : > { %v3817_v52 = vpop.f32.mrf.mxu0 }
 0x417   : > { %4067 = vst [vmem:[%s7501_s30 + $0x68] sm:$0xff] %v4643_v1  ;;  %v4118_v62 = vmax.f32 %v4114_v60, %v3817_v52 }
 0x418   : > { %v3819_v16 = vpop.f32.mrf.mxu0 }
 0x419   : > { %v4645_v51 = vpack.c.bf16 %v3819_v16, %v3817_v52  ;;  %v4119_v2 = vmax.f32 %v4115_v19, %v3819_v16 }
 0x41a   : > { %v3823_v18 = vpop.f32.mrf.mxu0 }
 0x41b   : > { %4069 = vst [vmem:[%s7501_s30 + $0x78] sm:$0xff] %v4645_v51  ;;  %v4122_v43 = vmax.f32 %v4118_v62, %v3823_v18 }
 0x41c   : > { %v3825_v26 = vpop.f32.mrf.mxu0 }
 0x41d   : > { %v4647_v31 = vpack.c.bf16 %v3825_v26, %v3823_v18  ;;  %v4123_v48 = vmax.f32 %v4119_v2, %v3825_v26 }
 0x41e   : > { %v3827_v38 = vpop.f32.mrf.mxu0 }
 0x41f   : > { %4071 = vst [vmem:[%s7501_s30 + $0x88] sm:$0xff] %v4647_v31  ;;  %v4126_v8 = vmax.f32 %v4122_v43, %v3827_v38 }
 0x420   : > { %v3829_v47 = vpop.f32.mrf.mxu0 }
 0x421   : > { %v4649_v55 = vpack.c.bf16 %v3829_v47, %v3827_v38  ;;  %v4127_v54 = vmax.f32 %v4123_v48, %v3829_v47 }
 0x422   : > { %v3833_v34 = vpop.f32.mrf.mxu0 }
 0x423   : > { %4073 = vst [vmem:[%s7501_s30 + $0x98] sm:$0xff] %v4649_v55  ;;  %v4130_v13 = vmax.f32 %v4126_v8, %v3833_v34 }
 0x424   : > { %v3835_v49 = vpop.f32.mrf.mxu0 }
 0x425   : > { %v4651_v0 = vpack.c.bf16 %v3835_v49, %v3833_v34  ;;  %v4131_v17 = vmax.f32 %v4127_v54, %v3835_v49 }
 0x426   : > { %v3837_v39 = vpop.f32.mrf.mxu0 }
 0x427   : > { %4075 = vst [vmem:[%s7501_s30 + $0xa8] sm:$0xff] %v4651_v0  ;;  %v4134_v24 = vmax.f32 %v4130_v13, %v3837_v39 }
 0x428   : > { %v3839_v29 = vpop.f32.mrf.mxu0 }
 0x429   : > { %v4653_v9 = vpack.c.bf16 %v3839_v29, %v3837_v39  ;;  %v4135_v40 = vmax.f32 %v4131_v17, %v3839_v29 }
 0x42a   : > { %v3843_v7 = vpop.f32.mrf.mxu0 }
 0x42b   : > { %4077 = vst [vmem:[%s7501_s30 + $0xb8] sm:$0xff] %v4653_v9  ;;  %v4138_v57 = vmax.f32 %v4134_v24, %v3843_v7 }
 0x42c   : > { %v3845_v42 = vpop.f32.mrf.mxu0 }
 0x42d   : > { %v4655_v35 = vpack.c.bf16 %v3845_v42, %v3843_v7  ;;  %v4139_v50 = vmax.f32 %v4135_v40, %v3845_v42 }
 0x42e   : > { %v3847_v53 = vpop.f32.mrf.mxu0 }
 0x42f   : > { %4079 = vst [vmem:[%s7501_s30 + $0xc8] sm:$0xff] %v4655_v35  ;;  %v4142_v63 = vmax.f32 %v4138_v57, %v3847_v53 }
 0x430   : > { %v3849_v25 = vpop.f32.mrf.mxu0 }
 0x431   : > { %v4146_v22 = vmax.f32 %v4142_v63, %v7567_v28  ;;  %v4657_v58 = vpack.c.bf16 %v3849_v25, %v3847_v53  ;;  %v4143_v33 = vmax.f32 %v4139_v50, %v3849_v25 }
 0x433   : > { %4081 = vst [vmem:[%s7501_s30 + $0xd8] sm:$0xff] %v4657_v58  ;;  %v4147_v61 = vmax.f32 %v4143_v33, %v7569_v5  ;;  %v4150_v56 = vmax.f32 %v4146_v22, %v7573_v46  ;;  %v4091_v46 = vld [vmem:[%s245_s13] sm:$0x1] }
 0x435   : > { %v4151_v15 = vmax.f32 %v4147_v61, %v7577_v36 }
 0x437   : > { %v4153_v27 = vmax.f32 %v4150_v56, %v4151_v15 }
 0x439   : > { %v4154_v37 = vmax.f32 %v7557_v44, %v4153_v27 }
 0x43b   : > { %4155 = vmax.xlane.f32.xlu0 %v4154_v37 }
 0x4c4   : > { %v4156_v28 = vpop.xlane.xlu0 %4155 }
 0x4c5   : > { %v4157_v59 = vrot.slane %v4156_v28, 4 }
 0x4c7   : > { %v4158_v6 = vmax.f32 %v4156_v28, %v4157_v59 }
 0x4c9   : > { %v4159_v45 = vrot.slane %v4158_v6, 2 }
 0x4cb   : > { %v4160_v12 = vmax.f32 %v4158_v6, %v4159_v45 }
 0x4cd   : > { %v4161_v5 = vrot.slane %v4160_v12, 1 }
 0x4cf   : > { %v4162_v1 = vmax.f32 %v4160_v12, %v4161_v5 }
 0x4d1   : > { %4695 = vpush %v4162_v1 }
 0x502   : > { %s4696_s14 = spop %4695 }
 0x503   : > { %v4164_v36 = vstv %s4696_s14 }
 0x504   : > { %v4165_v52 = vmax.f32 %v4091_v46, %v4164_v36 }
 0x506   : > { %4166 = vst [vmem:[%s245_s13] sm:$0x1] %v4165_v52 }
 0x507 PF: > { %s15_s17 = sadd.s32 1, %s5221_s17   ;;  %s7797_s15 = smov %s5217_s16 }
 0x508   : > { %p12_p5 = scmp.ge.s32.totalorder %s15_s17, 4   ;;  %s7798_s16 = smov %s7800_s18 }
 0x50a   :  { %14 = sbr.rel (!%p12_p5) target bundleno = 2 (0x2), region = 78 }

// kernel: tdnn_mfcc_forward.10
= control target key start
LH: loop header
LB: loop body
LE: loop exit
PB: predicated region body
PF: predicated region fallthrough
CT: control target
= control target key end

     0   :  { %s2006_s18 = smov 0   ;;  %s2008_s19 = smov 0   ;;  %s2353_s0 = inlined_call_operand.vmem [shape: bf16[2,1,40,514], index: 0, kind: input, shape index: {}]   ;;  %s2354_s1 = inlined_call_operand.vmem [shape: bf16[2,1,1,40,2], index: 1, kind: input, shape index: {}]   ;;  %s2355_s2 = inlined_call_operand.vmem [shape: bf16[32,120], index: 2, kind: input, shape index: {}]   ;;  %s2356_s3 = inlined_call_operand.vmem [shape: f32[32,1], index: 3, kind: input, shape index: {}]   ;;  %s2357_s4 = inlined_call_operand.vmem [shape: f32[32,1], index: 4, kind: input, shape index: {}]   ;;  %s2358_s5 = inlined_call_operand.vmem [shape: bf16[2,32,512], index: 5, kind: output, shape index: {}]  }
   0x1   :  { %s2010_s20 = smov 0   ;;  %s2012_s21 = smov 0  }
   0x2   :  { %s2014_s22 = smov 0  }
   0x3 LB: > { %s27_s23 = sadd.s32 1, %s1951_s21  ;;  %p43_p1 = scmp.ne.s32.totalorder %s1943_s19, %s1939_s18  ;;  %s1955_s22 = sphi %s2014_s22, %s15_s22   ;;  %s1951_s21 = sphi %s2012_s21, %s2369_s21   ;;  %s1947_s20 = sphi %s2010_s20, %s2368_s20   ;;  %s1943_s19 = sphi %s2008_s19, %s2367_s19   ;;  %s1939_s18 = sphi %s2006_s18, %s2366_s18  }
   0x4   : > { %p29_p0 = scmp.ge.s32.totalorder %s27_s23, 2  ;;  %p44_p2 = scmp.eq.s32.totalorder %s1955_s22, 0 }
   0x5   : > { %s36_s25 = sadd.s32 1, %s1943_s19  ;;  %p1726_p5 = scmp.ge.s32.totalorder %s1955_s22, 2 }
   0x6   : > { %s2371_s23 = smov (%p29_p0, %s27_s23), 0  ;;  %p45_p3 = por %p44_p2, %p43_p1 }
   0x7   : > { %s31_s24 = ssub.s32 %s1951_s21, %s2371_s23  ;;  %197 = sbr.rel (%p1726_p5) target bundleno = 26 (0x1a), region = 28 }
   0x8   : > { %p34_p4 = scmp.eq.s32.totalorder %s31_s24, 0 }
   0xa   : > { %s2041_s26 = scalar_select %p34_p4, %s1943_s19, %s36_s25  }
   0xc   : > { %200 = sbr.rel (!%p45_p3) target bundleno = 26 (0x1a), region = 32  ;;  %s202_s27 = sand.u32 (%p45_p3), 1, %s1943_s19  }
   0xd   : > { %s1805_s28 = smul.u32 (%p45_p3), 100, %s1951_s21  ;;  %s2061_s11 = smov (%p45_p3), 0  }
   0xe   : > { %s2046_s29 = smul.u32 (%p45_p3), 80, %s202_s27  ;;  %s2063_s12 = smov (%p45_p3), 0  }
   0xf   : > { %s2051_s7 = scalar_lea.vmem (%p45_p3), %s2353_s0, %s1805_s28  }
  0x10   : > { %s204_s8 = scalar_lea.vmem (%p45_p3), [#allocation3], %s2046_s29   ;;  %s2360_s10 = smov (%p45_p3), %s2051_s7 }
  0x11   : > { %s2359_s9 = smov %s204_s8 }
  0x12 LB: >> { %v451_v0 = vld [vmem:[%s1963_s10] sm:$0xff]  ;;  %v453_v1 = vld [vmem:[%s1963_s10 + $0x14] sm:$0xff]  ;;  %v455_v2 = vld [vmem:[%s1963_s10 + $0x28] sm:$0xff]  ;;  %s461_s13 = sadd.s32 1, %s1967_s11  ;;  %s445_s12 = sadd.s32 1, %s1971_s12   ;;  %s1971_s12 = sphi %s2063_s12, %s445_s12   ;;  %s1967_s11 = sphi %s2061_s11, %s2361_s11   ;;  %s1963_s10 = sphi %s2360_s10, %s466_s10   ;;  %s1959_s9 = sphi %s2359_s9, %s467_s9  }
  0x13   : >> { %452 = vst [vmem:[%s1959_s9] sm:$0xff] %v451_v0  ;;  %454 = vst [vmem:[%s1959_s9 + $0x10] sm:$0xff] %v453_v1  ;;  %v457_v3 = vld [vmem:[%s1963_s10 + $0x3c] sm:$0xff]  ;;  %v459_v4 = vld [vmem:[%s1963_s10 + $0x50] sm:$0xff]  ;;  %p462_p6 = scmp.ge.s32.totalorder %s461_s13, 2  ;;  %p444_p7 = scmp.ge.s32.totalorder %s445_s12, 2 }
  0x14   : >> { %456 = vst [vmem:[%s1959_s9 + $0x20] sm:$0xff] %v455_v2  ;;  %458 = vst [vmem:[%s1959_s9 + $0x30] sm:$0xff] %v457_v3 }
  0x15   : >> { %460 = vst [vmem:[%s1959_s9 + $0x40] sm:$0xff] %v459_v4  ;;  %s2373_s13 = smov (%p462_p6, %s461_s13), 0  ;;  %447 = sbr.rel (!%p444_p7) target bundleno = 18 (0x12), region = 173 }
  0x16   : >> { %s1730_s14 = sshll.u32 %s2373_s13, 3  ;;  %s2361_s11 = smov %s2373_s13 }
  0x17   : >> { %s466_s10 = scalar_lea.vmem %s2051_s7, %s1730_s14   ;;  %s467_s9 = scalar_lea.vmem %s204_s8, %s1730_s14 [#allocation3]  }
  0x1a PF: > { %p1741_p8 = scmp.ge.s32.totalorder %s1955_s22, 1  ;;  %p727_p9 = scmp.lt.s32.totalorder %s1955_s22, 3 }
  0x1c   : > { %p728_p10 = pnand %p1741_p8, %p727_p9 }
  0x1d   : > { %s734_s15 = sand.u32 (!%p728_p10), 1, %s1939_s18   ;;  %p779_p11 = scmp.lt.s32.totalorder (!%p728_p10), %s1947_s20, 1 }
  0x1e   : > { %731 = sbr.rel (%p728_p10) target bundleno = 447 (0x1bf), region = 102  ;;  %s1973_s24 = smov (!%p728_p10), 126  }
  0x1f   : > { %s1806_s16 = smul.u32 (!%p728_p10), 80, %s734_s15  ;;  %s1974_s29 = smov (!%p728_p10), 127  }
  0x21   : > { %s736_s17 = scalar_lea.vmem (!%p728_p10), [#allocation3], %s1806_s16 }
  0x23   : > { %v2084_v5 = vld [vmem:[%s736_s17 + $0x40] sm:$0xff]  ;;  %v2088_v7 = vld [vmem:[%s736_s17 + $0x48] sm:$0xff]  ;;  %s2375_s20 = smov (!%p779_p11, %s1947_s20), 1  ;;  %v2099_v9 = vld [vmem:[%s736_s17 + $0x30] sm:$0xff]  ;;  %v1975_v30 = vmov 0   ;;  %vm869_vm0 = vcmask 1043456  }
  0x24   : > { %v2086_v6 = vld [vmem:[%s736_s17 + $0x20] sm:$0xff]  ;;  %976 = vrot.lane.b32.xlu0 %v2084_v5, %s1973_s24  ;;  %v2097_v8 = vld [vmem:[%s736_s17 + $0x28] sm:$0xff]  ;;  %v2101_v10 = vld [vmem:[%s736_s17 + $0x38] sm:$0xff]  ;;  %s1807_s18 = smul.u32 20, %s2375_s20  ;;  %1304 = vmatprep.mubr.bf16.mxu0 %v1975_v30  ;;  %vm1017_vm1 = vcmask 1031172   ;;  %vm991_vm2 = vcmask 1031168  }
  0x25   : > { %968 = vrot.lane.b32.xlu1 %v2086_v6, %s1973_s24  ;;  %v2103_v11 = vld [vmem:[%s736_s17] sm:$0xff]  ;;  %v2105_v12 = vld [vmem:[%s736_s17 + $0x8] sm:$0xff]  ;;  %v2108_v13 = vld [vmem:[%s736_s17 + $0x10] sm:$0xff]  ;;  %v1752_v22 = vcombine.high %v2086_v6, %v2099_v9  ;;  %v1751_v24 = vcombine.low %v2086_v6, %v2099_v9  ;;  %v1754_v29 = vcombine.high %v2097_v8, %v2101_v10  ;;  %1357 = vmatprep.mubr.bf16.mxu1 %v1975_v30  ;;  %vm1053_vm4 = vcmask 1044464   ;;  %s1795_s6 = sshll.u32 %s2375_s20, 6 }
  0x26   : > { %v2110_v14 = vld [vmem:[%s736_s17 + $0x18] sm:$0xff]  ;;  %s2119_s28 = scalar_lea.vmem %s2354_s1, %s1807_s18  ;;  %v1748_v25 = vcombine.high %v2103_v11, %v2108_v13  ;;  %v1747_v28 = vcombine.low %v2103_v11, %v2108_v13  ;;  %v1753_v31 = vcombine.low %v2097_v8, %v2101_v10  ;;  %1884 = vset.pattern.permute.xlu1 %v1975_v30  ;;  %1883 = vset.pattern.permute.xlu0 %v1975_v30  ;;  %v1378_v34 = vld [vmem:[%s2356_s3] sm:$0xff]  ;;  %v1380_v37 = vld [vmem:[%s2356_s3 + $0x10] sm:$0xff]  ;;  %vm898_vm5 = vcmask 1039364   ;;  %s2320_s9 = scalar_lea.vmem %s2358_s5, %s1795_s6 }
  0x27   : > { %v1032_v15 = vld [vmem:[%s2119_s28 + $0x10] sm:$0xf]  ;;  %v1030_v16 = vld [vmem:[%s2119_s28 + $0x8] sm:$0xf]  ;;  %v1031_v17 = vld [vmem:[%s2119_s28 + $0xc] sm:$0xf]  ;;  %v1750_v32 = vcombine.high %v2105_v12, %v2110_v14  ;;  %v1749_v33 = vcombine.low %v2105_v12, %v2110_v14 }
  0x28   : > { %978 = vrot.lane.b32.xlu0 %v2088_v7, %s1973_s24  ;;  %v1028_v18 = vld [vmem:[%s2119_s28] sm:$0xf]  ;;  %v1029_v19 = vld [vmem:[%s2119_s28 + $0x4] sm:$0xf]  ;;  %v912_v20 = vld [vmem:[%s2119_s28 + $0xc] sm:$0xf] }
  0x29   : > { %970 = vrot.lane.b32.xlu1 %v2097_v8, %s1973_s24  ;;  %v913_v21 = vld [vmem:[%s2119_s28 + $0x10] sm:$0xf]  ;;  %v910_v23 = vld [vmem:[%s2119_s28 + $0x4] sm:$0xf]  ;;  %v911_v26 = vld [vmem:[%s2119_s28 + $0x8] sm:$0xf] }
  0x2a   : > { %v909_v27 = vld [vmem:[%s2119_s28] sm:$0xf]  ;;  %v1379_v35 = vld [vmem:[%s2356_s3 + $0x8] sm:$0xff]  ;;  %v1381_v36 = vld [vmem:[%s2356_s3 + $0x18] sm:$0xff]  ;;  %vm871_vm6 = vcmask 1039360   ;;  %vm934_vm8 = vcmask 1044472  }
  0x2b   : > { %v1419_v38 = vld [vmem:[%s2357_s4 + $0x8] sm:$0xff]  ;;  %v1418_v39 = vld [vmem:[%s2357_s4] sm:$0xff]  ;;  %v1421_v40 = vld [vmem:[%s2357_s4 + $0x18] sm:$0xff]  ;;  %vm1253_vm9 = vcmask 982016  }
  0x2c   : > { %972 = vrot.lane.b32.xlu0 %v2099_v9, %s1973_s24  ;;  %v1420_v41 = vld [vmem:[%s2357_s4 + $0x10] sm:$0xff]  ;;  %vm2203_vm3 = vmor %vm1017_vm1, %vm869_vm0 }
  0x2d   : > { %974 = vrot.lane.b32.xlu1 %v2101_v10, %s1973_s24  ;;  %vm2240_vm7 = vmor %vm898_vm5, %vm869_vm0 }
  0x30   : > { %1046 = vrot.lane.b32.xlu0 %v1032_v15, %s1973_s24 }
  0x31   : > { %960 = vrot.lane.b32.xlu1 %v2103_v11, %s1973_s24 }
  0x34   : > { %962 = vrot.lane.b32.xlu0 %v2105_v12, %s1973_s24 }
  0x35   : > { %964 = vrot.lane.b32.xlu1 %v2108_v13, %s1973_s24 }
  0x38   : > { %966 = vrot.lane.b32.xlu0 %v2110_v14, %s1973_s24 }
  0x39   : > { %1042 = vrot.lane.b32.xlu1 %v1030_v16, %s1973_s24 }
  0x3c   : > { %1044 = vrot.lane.b32.xlu0 %v1031_v17, %s1973_s24 }
  0x3d   : > { %851 = vrot.lane.b32.xlu1 %v2099_v9, %s1974_s29  ;;  %v1900_v9 = vld [vmem:[%s2355_s2 + $0x8] sm:$0xff]  }
  0x40   : > { %853 = vrot.lane.b32.xlu0 %v2101_v10, %s1974_s29 }
  0x41   : > { %855 = vrot.lane.b32.xlu1 %v2084_v5, %s1974_s29 }
  0x44   : > { %857 = vrot.lane.b32.xlu0 %v2088_v7, %s1974_s29 }
  0x45   : > { %1038 = vrot.lane.b32.xlu1 %v1028_v18, %s1973_s24 }
  0x48   : > { %1040 = vrot.lane.b32.xlu0 %v1029_v19, %s1973_s24 }
  0x49   : > { %843 = vrot.lane.b32.xlu1 %v2108_v13, %s1974_s29 }
  0x4c   : > { %845 = vrot.lane.b32.xlu0 %v2110_v14, %s1974_s29 }
  0x4d   : > { %847 = vrot.lane.b32.xlu1 %v2086_v6, %s1974_s29 }
  0x50   : > { %849 = vrot.lane.b32.xlu0 %v2097_v8, %s1974_s29 }
  0x51   : > { %925 = vrot.lane.b32.xlu1 %v912_v20, %s1974_s29 }
  0x54   : > { %927 = vrot.lane.b32.xlu0 %v913_v21, %s1974_s29 }
  0x55   : > { %839 = vrot.lane.b32.xlu1 %v2103_v11, %s1974_s29 }
  0x58   : > { %841 = vrot.lane.b32.xlu0 %v2105_v12, %s1974_s29 }
  0x59   : > { %921 = vrot.lane.b32.xlu1 %v910_v23, %s1974_s29 }
  0x5c   : > { %923 = vrot.lane.b32.xlu0 %v911_v26, %s1974_s29 }
  0x5d   : > { %919 = vrot.lane.b32.xlu1 %v909_v27, %s1974_s29 }
  0x60   : > { %1384 = vperm.xlu0 %1883, %v1378_v34  }
  0x61   : > { %1389 = vperm.xlu1 %1884, %v1379_v35  }
  0x64   : > { %1399 = vperm.xlu0 %1883, %v1381_v36  }
  0x65   : > { %1394 = vperm.xlu1 %1884, %v1380_v37  }
  0x68   : > { %1429 = vperm.xlu0 %1883, %v1419_v38  }
  0x69   : > { %1424 = vperm.xlu1 %1884, %v1418_v39  }
  0x6c   : > { %1439 = vperm.xlu0 %1883, %v1421_v40  }
  0x6d   : > { %1434 = vperm.xlu1 %1884, %v1420_v41  }
  0x96   : > { %v977_v42 = vpop.permute.xlu0 %976 }
  0x97   : > { %v969_v43 = vpop.permute.xlu1 %968  ;;  %v988_v47 = vrot.slane %v977_v42, 4 }
  0x98   : > { %v984_v44 = vrot.slane %v969_v43, 4 }
  0x9a   : > { %v979_v45 = vpop.permute.xlu0 %978 }
  0x9b   : > { %v971_v46 = vpop.permute.xlu1 %970  ;;  %v989_v49 = vrot.slane %v979_v45, 4 }
  0x9c   : > { %v985_v50 = vrot.slane %v971_v46, 4 }
  0x9d   : > { %v1003_v51 = vsel %vm869_vm0, %v988_v47, %v989_v49  ;;  %v1005_v52 = vsel %vm991_vm2, %v979_v45, %v989_v49 }
  0x9e   : > { %v997_v53 = vsel %vm869_vm0, %v984_v44, %v985_v50  ;;  %v999_v54 = vsel %vm991_vm2, %v971_v46, %v985_v50  ;;  %v1004_v55 = vsel %vm991_vm2, %v977_v42, %v1003_v51  ;;  %1027 = vst.msk [vmem:[#allocation2 + $0xe8] sm:$0xff] %vm2203_vm3, %v1005_v52  ;;  %v973_v57 = vpop.permute.xlu0 %972 }
  0x9f   : > { %v998_v56 = vsel %vm991_vm2, %v969_v43, %v997_v53  ;;  %1023 = vst.msk [vmem:[#allocation2 + $0xc8] sm:$0xff] %vm2203_vm3, %v999_v54  ;;  %v975_v58 = vpop.permute.xlu1 %974  ;;  %v986_v59 = vrot.slane %v973_v57, 4  ;;  %v1776_v61 = vcombine.high %v1004_v55, %v1004_v55  ;;  %v1775_v62 = vcombine.low %v1004_v55, %v1004_v55 }
  0xa0   : > { %v987_v60 = vrot.slane %v975_v58, 4 }
  0xa1   : > { %1779 = vmatprep.subr.msk.bf16.mxu0 %vm869_vm0, %v1776_v61  ;;  %v1261_v1 = vsel %vm869_vm0, %v1775_v62, 0 }
  0xa2   : > { %v1000_v63 = vsel %vm869_vm0, %v986_v59, %v987_v60  ;;  %v1002_v0 = vsel %vm991_vm2, %v975_v58, %v987_v60  ;;  %v1047_v3 = vpop.permute.xlu0 %1046  ;;  %1273 = vmatpush1.bf16.msra.mxu0 %v1261_v1 }
  0xa3   : > { %v1001_v2 = vsel %vm991_vm2, %v973_v57, %v1000_v63  ;;  %1025 = vst.msk [vmem:[#allocation2 + $0xd8] sm:$0xff] %vm2203_vm3, %v1002_v0  ;;  %v961_v4 = vpop.permute.xlu1 %960 }
  0xa4   : > { %1058 = vst.msk [vmem:[#allocation2 + $0xec] sm:$0xf] %vm1053_vm4, %v1047_v3  ;;  %v1772_v15 = vcombine.high %v998_v56, %v1001_v2  ;;  %v1771_v16 = vcombine.low %v998_v56, %v1001_v2  ;;  %v980_v17 = vrot.slane %v961_v4, 4 }
  0xa6   : > { %1274 = vmatprep.subr.bf16.mxu0 %v1772_v15  ;;  %v963_v18 = vpop.permute.xlu0 %962 }
  0xa7   : > { %v965_v19 = vpop.permute.xlu1 %964  ;;  %1275 = vmatpush1.bf16.msra.mxu0 %v1771_v16  ;;  %v981_v20 = vrot.slane %v963_v18, 4 }
  0xa8   : > { %v982_v26 = vrot.slane %v965_v19, 4 }
  0xa9   : > { %v990_v21 = vsel %vm869_vm0, %v980_v17, %v981_v20  ;;  %v993_v23 = vsel %vm991_vm2, %v963_v18, %v981_v20 }
  0xaa   : > { %v992_v27 = vsel %vm991_vm2, %v961_v4, %v990_v21  ;;  %1019 = vst.msk [vmem:[#allocation2 + $0xa8] sm:$0xff] %vm2203_vm3, %v993_v23  ;;  %v967_v34 = vpop.permute.xlu0 %966  ;;  %v1889_v60 = vld [vmem:[#allocation2 + $0xc8] ss:$16 sps:$4 sm:$0xff]  }
  0xab   : > { %v1043_v35 = vpop.permute.xlu1 %1042  ;;  %v1092_v36 = vld [vmem:[#allocation2 + $0xe8] sm:$0xff]  ;;  %v983_v37 = vrot.slane %v967_v34, 4 }
  0xac   : > { %1056 = vst.msk [vmem:[#allocation2 + $0xcc] sm:$0xf] %vm1053_vm4, %v1043_v35  ;;  %v1778_v38 = vcombine.high %v1092_v36, %v1092_v36  ;;  %v1777_v39 = vcombine.low %v1092_v36, %v1092_v36 }
  0xad   : > { %v994_v40 = vsel %vm869_vm0, %v982_v26, %v983_v37  ;;  %v996_v41 = vsel %vm991_vm2, %v967_v34, %v983_v37 }
  0xae   : > { %1782 = vmatprep.subr.msk.bf16.mxu1 %vm869_vm0, %v1778_v38  ;;  %v1267_v42 = vsel %vm869_vm0, %v1777_v39, 0  ;;  %v995_v43 = vsel %vm991_vm2, %v965_v19, %v994_v40  ;;  %1021 = vst.msk [vmem:[#allocation2 + $0xb8] sm:$0xff] %vm2203_vm3, %v996_v41  ;;  %v1045_v44 = vpop.permute.xlu0 %1044 }
  0xaf   : > { %1326 = vmatpush1.bf16.msra.mxu1 %v1267_v42  ;;  %v852_v45 = vpop.permute.xlu1 %851  ;;  %1057 = vst.msk [vmem:[#allocation2 + $0xdc] sm:$0xf] %vm1053_vm4, %v1045_v44  ;;  %v1768_v46 = vcombine.high %v992_v27, %v995_v43  ;;  %v1767_v47 = vcombine.low %v992_v27, %v995_v43 }
  0xb0   : > { %v865_v49 = vrot.slane %v852_v45, 4 }
  0xb1   : > { %1276 = vmatprep.subr.bf16.mxu0 %v1768_v46 }
  0xb2   : > { %v854_v50 = vpop.permute.xlu0 %853  ;;  %1277 = vmatpush1.bf16.msra.mxu0 %v1767_v47 }
  0xb3   : > { %v856_v51 = vpop.permute.xlu1 %855  ;;  %v866_v48 = vrot.slane %v854_v50, 4 }
  0xb4   : > { %v867_v55 = vrot.slane %v856_v51, 4 }
  0xb5   : > { %v880_v53 = vsel %vm869_vm0, %v865_v49, %v866_v48  ;;  %v882_v54 = vsel %vm871_vm6, %v854_v50, %v866_v48  ;;  %v1892_v35 = vld [vmem:[#allocation2 + $0xa8] ss:$16 sps:$4 sm:$0xff]  }
  0xb6   : > { %v881_v56 = vsel %vm871_vm6, %v852_v45, %v880_v53  ;;  %906 = vst.msk [vmem:[#allocation2 + $0x88] sm:$0xff] %vm2240_vm7, %v882_v54  ;;  %v858_v57 = vpop.permute.xlu0 %857  ;;  %v1887_v59 = vld [vmem:[#allocation2 + $0xcc] ss:$16 sps:$4 sm:$0xff]  }
  0xb7   : > { %v1039_v58 = vpop.permute.xlu1 %1038  ;;  %v868_v61 = vrot.slane %v858_v57, 4  ;;  %1327 = vmatprep.subr.bf16.mxu1 %v1887_v59 }
  0xb8   : > { %1054 = vst.msk [vmem:[#allocation2 + $0xac] sm:$0xf] %vm1053_vm4, %v1039_v58  ;;  %1328 = vmatpush1.bf16.msra.mxu1 %v1889_v60  ;;  %v1899_v60 = vld [vmem:[%s2355_s2] sm:$0xff]  }
  0xb9   : > { %v883_v62 = vsel %vm869_vm0, %v867_v55, %v868_v61  ;;  %v885_v63 = vsel %vm871_vm6, %v858_v57, %v868_v61 }
  0xba   : > { %v884_v0 = vsel %vm871_vm6, %v856_v51, %v883_v62  ;;  %908 = vst.msk [vmem:[#allocation2 + $0x98] sm:$0xff] %vm2240_vm7, %v885_v63  ;;  %v1041_v1 = vpop.permute.xlu0 %1040 }
  0xbb   : > { %v844_v2 = vpop.permute.xlu1 %843  ;;  %1055 = vst.msk [vmem:[#allocation2 + $0xbc] sm:$0xf] %vm1053_vm4, %v1041_v1  ;;  %v1764_v3 = vcombine.high %v881_v56, %v884_v0  ;;  %v1763_v4 = vcombine.low %v881_v56, %v884_v0 }
  0xbc   : > { %v861_v15 = vrot.slane %v844_v2, 4 }
  0xbd   : > { %1278 = vmatprep.subr.bf16.mxu0 %v1764_v3 }
  0xbe   : > { %v846_v16 = vpop.permute.xlu0 %845  ;;  %1279 = vmatpush1.bf16.msra.mxu0 %v1763_v4 }
  0xbf   : > { %v848_v17 = vpop.permute.xlu1 %847  ;;  %v862_v18 = vrot.slane %v846_v16, 4 }
  0xc0   : > { %v863_v21 = vrot.slane %v848_v17, 4 }
  0xc1   : > { %v874_v19 = vsel %vm869_vm0, %v861_v15, %v862_v18  ;;  %v876_v20 = vsel %vm871_vm6, %v846_v16, %v862_v18  ;;  %v1895_v55 = vld [vmem:[#allocation2 + $0x88] ss:$16 sps:$4 sm:$0xff]  }
  0xc2   : > { %v875_v23 = vsel %vm871_vm6, %v844_v2, %v874_v19  ;;  %902 = vst.msk [vmem:[#allocation2 + $0x68] sm:$0xff] %vm2240_vm7, %v876_v20  ;;  %v850_v26 = vpop.permute.xlu0 %849  ;;  %v1890_v34 = vld [vmem:[#allocation2 + $0xac] ss:$16 sps:$4 sm:$0xff]  }
  0xc3   : > { %v926_v27 = vpop.permute.xlu1 %925  ;;  %v864_v36 = vrot.slane %v850_v26, 4  ;;  %1329 = vmatprep.subr.bf16.mxu1 %v1890_v34 }
  0xc4   : > { %938 = vst.msk [vmem:[#allocation2 + $0x8c] sm:$0xf] %vm934_vm8, %v926_v27  ;;  %1330 = vmatpush1.bf16.msra.mxu1 %v1892_v35 }
  0xc5   : > { %v877_v37 = vsel %vm869_vm0, %v863_v21, %v864_v36  ;;  %v879_v38 = vsel %vm871_vm6, %v850_v26, %v864_v36 }
  0xc6   : > { %v878_v39 = vsel %vm871_vm6, %v848_v17, %v877_v37  ;;  %904 = vst.msk [vmem:[#allocation2 + $0x78] sm:$0xff] %vm2240_vm7, %v879_v38  ;;  %v928_v40 = vpop.permute.xlu0 %927 }
  0xc7   : > { %v840_v41 = vpop.permute.xlu1 %839  ;;  %939 = vst.msk [vmem:[#allocation2 + $0x9c] sm:$0xf] %vm934_vm8, %v928_v40  ;;  %v1760_v42 = vcombine.high %v875_v23, %v878_v39  ;;  %v1759_v43 = vcombine.low %v875_v23, %v878_v39 }
  0xc8   : > { %v859_v44 = vrot.slane %v840_v41, 4 }
  0xc9   : > { %1280 = vmatprep.subr.bf16.mxu0 %v1760_v42 }
  0xca   : > { %v842_v45 = vpop.permute.xlu0 %841  ;;  %1281 = vmatpush1.bf16.msra.mxu0 %v1759_v43 }
  0xcb   : > { %v922_v46 = vpop.permute.xlu1 %921  ;;  %v860_v47 = vrot.slane %v842_v45, 4 }
  0xcc   : > { %936 = vst.msk [vmem:[#allocation2 + $0x6c] sm:$0xf] %vm934_vm8, %v922_v46 }
  0xcd   : > { %v870_v49 = vsel %vm869_vm0, %v859_v44, %v860_v47  ;;  %v873_v50 = vsel %vm871_vm6, %v842_v45, %v860_v47  ;;  %v1898_v58 = vld [vmem:[#allocation2 + $0x68] ss:$16 sps:$4 sm:$0xff]  }
  0xce   : > { %v872_v51 = vsel %vm871_vm6, %v840_v41, %v870_v49  ;;  %900 = vst.msk [vmem:[#allocation2 + $0x58] sm:$0xff] %vm2240_vm7, %v873_v50  ;;  %v924_v48 = vpop.permute.xlu0 %923  ;;  %v1893_v54 = vld [vmem:[#allocation2 + $0x8c] ss:$16 sps:$4 sm:$0xff]  }
  0xcf   : > { %v920_v53 = vpop.permute.xlu1 %919  ;;  %937 = vst.msk [vmem:[#allocation2 + $0x7c] sm:$0xf] %vm934_vm8, %v924_v48  ;;  %v1756_v56 = vcombine.high %v2084_v5, %v872_v51  ;;  %v1755_v57 = vcombine.low %v2084_v5, %v872_v51  ;;  %1331 = vmatprep.subr.bf16.mxu1 %v1893_v54 }
  0xd0   : > { %935 = vst.msk [vmem:[#allocation2 + $0x5c] sm:$0xf] %vm934_vm8, %v920_v53  ;;  %1332 = vmatpush1.bf16.msra.mxu1 %v1895_v55 }
  0xd1   : > { %1282 = vmatprep.subr.bf16.mxu0 %v1756_v56 }
  0xd2   : > { %1283 = vmatpush1.bf16.msra.mxu0 %v1755_v57 }
  0xd3   : > { %1284 = vmatprep.subr.bf16.mxu0 %v1752_v22 }
  0xd6   : > { %v1896_v52 = vld [vmem:[#allocation2 + $0x6c] ss:$16 sps:$4 sm:$0xff]   ;;  %1285 = vmatpush1.bf16.msra.mxu0 %v1751_v24 }
  0xd7   : > { %v1074_v59 = vld [vmem:[#allocation2 + $0x58] sm:$0xff]  ;;  %1286 = vmatprep.subr.bf16.mxu0 %v1748_v25  ;;  %1333 = vmatprep.subr.bf16.mxu1 %v1896_v52 }
  0xd8   : > { %v1758_v5 = vcombine.high %v2088_v7, %v1074_v59  ;;  %1334 = vmatpush1.bf16.msra.mxu1 %v1898_v58  ;;  %v1757_v6 = vcombine.low %v2088_v7, %v1074_v59 }
  0xda   : > { %1335 = vmatprep.subr.bf16.mxu1 %v1758_v5  ;;  %1287 = vmatpush1.bf16.msra.mxu0 %v1747_v28 }
  0xdb   : > { %v1385_v8 = vpop.permute.xlu0 %1384 }
  0xdc   : > { %1336 = vmatpush1.bf16.msra.mxu1 %v1757_v6  ;;  %v1390_v7 = vpop.permute.xlu1 %1389 }
  0xdd   : > { %1780 = vmatmul.mubr.msk.bf16.vlgmr.msra.gmra.mxu0 %vm1253_vm9, %v1899_v60  ;;  %1337 = vmatprep.subr.bf16.mxu1 %v1754_v29 }
  0xde   : > { %1314 = vmatprep.mubr.bf16.mxu0 %v1975_v30 }
  0xdf   : > { %v2314_v11 = vpop.permute.xlu0 %1399 }
  0xe0   : > { %1338 = vmatpush1.bf16.msra.mxu1 %v1753_v31  ;;  %v2312_v10 = vpop.permute.xlu1 %1394 }
  0xe1   : > { %1339 = vmatprep.subr.bf16.mxu1 %v1750_v32 }
  0xe4   : > { %1340 = vmatpush1.bf16.msra.mxu1 %v1749_v33  ;;  %v1425_v25 = vpop.permute.xlu1 %1424  ;;  %v1430_v33 = vpop.permute.xlu0 %1429 }
  0xe5   : > { %1781 = vmatmul.mubr.msk.bf16.gmra.mxu0 %vm1253_vm9, %v1900_v9 }
  0xe7   : > { %1783 = vmatmul.mubr.msk.bf16.vlgmr.msra.gmra.mxu1 %vm1253_vm9, %v1899_v60 }
  0xe8   : > { %1367 = vmatprep.mubr.bf16.mxu1 %v1975_v30  ;;  %v1435_v0 = vpop.permute.xlu1 %1434  ;;  %v1440_v23 = vpop.permute.xlu0 %1439 }
  0xef   : > { %1784 = vmatmul.mubr.msk.bf16.gmra.mxu1 %vm1253_vm9, %v1900_v9 }
 0x19d   : > { %v1306_v13 = vpop.f32.mrf.mxu0 }
 0x19e   : > { %v1402_v22 = vmul.f32 %v1385_v8, %v1306_v13 }
 0x19f   : > { %v1308_v24 = vpop.f32.mrf.mxu0 }
 0x1a0   : > { %v1403_v28 = vmul.f32 %v1385_v8, %v1308_v24  ;;  %v1442_v29 = vadd.f32 %v1425_v25, %v1402_v22 }
 0x1a1   : > { %v1310_v12 = vpop.f32.mrf.mxu0 }
 0x1a2   : > { %v1443_v14 = vadd.f32 %v1425_v25, %v1403_v28  ;;  %v1458_v31 = vmax.f32 %v1442_v29, 0.0  ;;  %v1406_v32 = vmul.f32 %v1390_v7, %v1310_v12 }
 0x1a3   : > { %v1312_v30 = vpop.f32.mrf.mxu0 }
 0x1a4   : > { %v1459_v61 = vmax.f32 %v1443_v14, 0.0  ;;  %v1446_v62 = vadd.f32 %v1430_v33, %v1406_v32  ;;  %v1407_v63 = vmul.f32 %v1390_v7, %v1312_v30 }
 0x1a5   : > { %v1316_v1 = vpop.f32.mrf.mxu0 }
 0x1a6   : > { %v1796_v2 = vpack.c.bf16 %v1459_v61, %v1458_v31  ;;  %v1462_v3 = vmax.f32 %v1446_v62, 0.0  ;;  %v1447_v4 = vadd.f32 %v1430_v33, %v1407_v63  ;;  %v1410_v15 = vmul.f32 %v2312_v10, %v1316_v1 }
 0x1a7   : > { %v1318_v16 = vpop.f32.mrf.mxu0  ;;  %v1359_v17 = vpop.f32.mrf.mxu1 }
 0x1a8   : > { %1522 = vst [vmem:[%s2320_s9] sm:$0xff] %v1796_v2  ;;  %v1463_v18 = vmax.f32 %v1447_v4, 0.0  ;;  %v1450_v19 = vadd.f32 %v1435_v0, %v1410_v15  ;;  %v1411_v20 = vmul.f32 %v2312_v10, %v1318_v16  ;;  %v1404_v21 = vmul.f32 %v1385_v8, %v1359_v17 }
 0x1a9   : > { %v1320_v26 = vpop.f32.mrf.mxu0  ;;  %v1361_v34 = vpop.f32.mrf.mxu1 }
 0x1aa   : > { %v1798_v27 = vpack.c.bf16 %v1463_v18, %v1462_v3  ;;  %v1466_v35 = vmax.f32 %v1450_v19, 0.0  ;;  %v1451_v36 = vadd.f32 %v1435_v0, %v1411_v20  ;;  %v1414_v37 = vmul.f32 %v2314_v11, %v1320_v26 }
 0x1ab   : > { %v1444_v38 = vadd.f32 %v1425_v25, %v1404_v21  ;;  %v1405_v39 = vmul.f32 %v1385_v8, %v1361_v34  ;;  %v1322_v40 = vpop.f32.mrf.mxu0  ;;  %v1363_v41 = vpop.f32.mrf.mxu1 }
 0x1ac   : > { %1524 = vst [vmem:[%s2320_s9 + $0x10] sm:$0xff] %v1798_v27  ;;  %v1467_v42 = vmax.f32 %v1451_v36, 0.0  ;;  %v1454_v43 = vadd.f32 %v1440_v23, %v1414_v37  ;;  %v1415_v44 = vmul.f32 %v2314_v11, %v1322_v40  ;;  %v1408_v46 = vmul.f32 %v1390_v7, %v1363_v41 }
 0x1ad   : > { %v1445_v45 = vadd.f32 %v1425_v25, %v1405_v39  ;;  %v1365_v49 = vpop.f32.mrf.mxu1  ;;  %v1460_v48 = vmax.f32 %v1444_v38, 0.0 }
 0x1ae   : > { %v1800_v47 = vpack.c.bf16 %v1467_v42, %v1466_v35  ;;  %v1470_v50 = vmax.f32 %v1454_v43, 0.0  ;;  %v1455_v51 = vadd.f32 %v1440_v23, %v1415_v44  ;;  %v1448_v54 = vadd.f32 %v1430_v33, %v1408_v46 }
 0x1af   : > { %v1461_v53 = vmax.f32 %v1445_v45, 0.0  ;;  %v1409_v55 = vmul.f32 %v1390_v7, %v1365_v49  ;;  %v1369_v56 = vpop.f32.mrf.mxu1 }
 0x1b0   : > { %1526 = vst [vmem:[%s2320_s9 + $0x20] sm:$0xff] %v1800_v47  ;;  %v1471_v57 = vmax.f32 %v1455_v51, 0.0  ;;  %v1412_v59 = vmul.f32 %v2312_v10, %v1369_v56  ;;  %v1464_v6 = vmax.f32 %v1448_v54, 0.0 }
 0x1b1   : > { %v1797_v52 = vpack.c.bf16 %v1461_v53, %v1460_v48  ;;  %v1449_v58 = vadd.f32 %v1430_v33, %v1409_v55  ;;  %v1371_v60 = vpop.f32.mrf.mxu1 }
 0x1b2   : > { %v1802_v5 = vpack.c.bf16 %v1471_v57, %v1470_v50  ;;  %v1452_v8 = vadd.f32 %v1435_v0, %v1412_v59  ;;  %v1413_v13 = vmul.f32 %v2312_v10, %v1371_v60 }
 0x1b3   : > { %1523 = vst [vmem:[%s2320_s9 + $0x8] sm:$0xff] %v1797_v52  ;;  %v1465_v9 = vmax.f32 %v1449_v58, 0.0  ;;  %v1373_v22 = vpop.f32.mrf.mxu1 }
 0x1b4   : > { %1528 = vst [vmem:[%s2320_s9 + $0x30] sm:$0xff] %v1802_v5  ;;  %v1453_v24 = vadd.f32 %v1435_v0, %v1413_v13  ;;  %v1416_v25 = vmul.f32 %v2314_v11, %v1373_v22  ;;  %v1468_v29 = vmax.f32 %v1452_v8, 0.0 }
 0x1b5   : > { %v1799_v7 = vpack.c.bf16 %v1465_v9, %v1464_v6  ;;  %v1375_v28 = vpop.f32.mrf.mxu1 }
 0x1b6   : > { %v1469_v12 = vmax.f32 %v1453_v24, 0.0  ;;  %v1456_v14 = vadd.f32 %v1440_v23, %v1416_v25  ;;  %v1417_v31 = vmul.f32 %v2314_v11, %v1375_v28 }
 0x1b7   : > { %1525 = vst [vmem:[%s2320_s9 + $0x18] sm:$0xff] %v1799_v7 }
 0x1b8   : > { %v1801_v32 = vpack.c.bf16 %v1469_v12, %v1468_v29  ;;  %v1457_v33 = vadd.f32 %v1440_v23, %v1417_v31  ;;  %v1472_v30 = vmax.f32 %v1456_v14, 0.0 }
 0x1ba   : > { %1527 = vst [vmem:[%s2320_s9 + $0x28] sm:$0xff] %v1801_v32  ;;  %v1473_v61 = vmax.f32 %v1457_v33, 0.0 }
 0x1bc   : > { %v1803_v10 = vpack.c.bf16 %v1473_v61, %v1472_v30 }
 0x1be   : > { %1529 = vst [vmem:[%s2320_s9 + $0x38] sm:$0xff] %v1803_v10 }
 0x1bf PF: > { %s15_s22 = sadd.s32 1, %s1955_s22   ;;  %s2366_s18 = smov %s1943_s19 }
 0x1c0   : > { %p12_p12 = scmp.ge.s32.totalorder %s15_s22, 4   ;;  %s2367_s19 = smov %s2041_s26 }
 0x1c1   : > { %s2368_s20 = smov %s1951_s21  ;;  %s2369_s21 = smov %s2371_s23 }
 0x1c2   :  { %14 = sbr.rel (!%p12_p12) target bundleno = 3 (0x3), region = 206 }

// kernel: tdnn_mfcc_forward.9
= control target key start
LH: loop header
LB: loop body
LE: loop exit
PB: predicated region body
PF: predicated region fallthrough
CT: control target
= control target key end

     0   :  { %s2014_s15 = smov 0   ;;  %s2016_s16 = smov 0   ;;  %s2352_s0 = inlined_call_operand.vmem [shape: bf16[2,1,40,514], index: 0, kind: input, shape index: {}]   ;;  %s2353_s1 = inlined_call_operand.vmem [shape: bf16[2,1,1,40,2], index: 1, kind: input, shape index: {}]   ;;  %s2354_s2 = inlined_call_operand.vmem [shape: bf16[32,120], index: 2, kind: input, shape index: {}]   ;;  %s2355_s3 = inlined_call_operand.vmem [shape: f32[2,32,512], index: 3, kind: output, shape index: {0}]   ;;  %s2356_s4 = inlined_call_operand.vmem [shape: f32[2,32,512], index: 4, kind: output, shape index: {1}]  }
   0x1   :  { %s2018_s17 = smov 0   ;;  %s2020_s18 = smov 0  }
   0x2   :  { %s2022_s19 = smov 0  }
   0x3 LB: > { %s27_s20 = sadd.s32 1, %s1963_s18  ;;  %p43_p1 = scmp.ne.s32.totalorder %s1955_s16, %s1951_s15  ;;  %s1967_s19 = sphi %s2022_s19, %s15_s19   ;;  %s1963_s18 = sphi %s2020_s18, %s2367_s18   ;;  %s1959_s17 = sphi %s2018_s17, %s2366_s17   ;;  %s1955_s16 = sphi %s2016_s16, %s2365_s16   ;;  %s1951_s15 = sphi %s2014_s15, %s2364_s15  }
   0x4   : > { %p29_p0 = scmp.ge.s32.totalorder %s27_s20, 2  ;;  %p44_p2 = scmp.eq.s32.totalorder %s1967_s19, 0 }
   0x5   : > { %s36_s22 = sadd.s32 1, %s1955_s16  ;;  %p1751_p5 = scmp.ge.s32.totalorder %s1967_s19, 2 }
   0x6   : > { %s2369_s20 = smov (%p29_p0, %s27_s20), 0  ;;  %p45_p3 = por %p44_p2, %p43_p1 }
   0x7   : > { %s31_s21 = ssub.s32 %s1963_s18, %s2369_s20  ;;  %173 = sbr.rel (%p1751_p5) target bundleno = 26 (0x1a), region = 20 }
   0x8   : > { %p34_p4 = scmp.eq.s32.totalorder %s31_s21, 0 }
   0xa   : > { %s2049_s23 = scalar_select %p34_p4, %s1955_s16, %s36_s22  }
   0xc   : > { %176 = sbr.rel (!%p45_p3) target bundleno = 26 (0x1a), region = 24  ;;  %s178_s24 = sand.u32 (%p45_p3), 1, %s1955_s16  }
   0xd   : > { %s1818_s25 = smul.u32 (%p45_p3), 100, %s1963_s18  ;;  %s2069_s7 = smov (%p45_p3), 0  }
   0xe   : > { %s2054_s26 = smul.u32 (%p45_p3), 80, %s178_s24  ;;  %s2071_s8 = smov (%p45_p3), 0  }
   0xf   : > { %s2059_s29 = scalar_lea.vmem (%p45_p3), %s2352_s0, %s1818_s25  }
  0x10   : > { %s180_s30 = scalar_lea.vmem (%p45_p3), [#allocation3], %s2054_s26   ;;  %s2358_s6 = smov (%p45_p3), %s2059_s29 }
  0x11   : > { %s2357_s5 = smov %s180_s30 }
  0x12 LB: >> { %v427_v0 = vld [vmem:[%s1975_s6] sm:$0xff]  ;;  %v429_v1 = vld [vmem:[%s1975_s6 + $0x14] sm:$0xff]  ;;  %v431_v2 = vld [vmem:[%s1975_s6 + $0x28] sm:$0xff]  ;;  %s437_s9 = sadd.s32 1, %s1979_s7  ;;  %s421_s8 = sadd.s32 1, %s1983_s8   ;;  %s1983_s8 = sphi %s2071_s8, %s421_s8   ;;  %s1979_s7 = sphi %s2069_s7, %s2359_s7   ;;  %s1975_s6 = sphi %s2358_s6, %s442_s6   ;;  %s1971_s5 = sphi %s2357_s5, %s443_s5  }
  0x13   : >> { %428 = vst [vmem:[%s1971_s5] sm:$0xff] %v427_v0  ;;  %430 = vst [vmem:[%s1971_s5 + $0x10] sm:$0xff] %v429_v1  ;;  %v433_v3 = vld [vmem:[%s1975_s6 + $0x3c] sm:$0xff]  ;;  %v435_v4 = vld [vmem:[%s1975_s6 + $0x50] sm:$0xff]  ;;  %p438_p6 = scmp.ge.s32.totalorder %s437_s9, 2  ;;  %p420_p7 = scmp.ge.s32.totalorder %s421_s8, 2 }
  0x14   : >> { %432 = vst [vmem:[%s1971_s5 + $0x20] sm:$0xff] %v431_v2  ;;  %434 = vst [vmem:[%s1971_s5 + $0x30] sm:$0xff] %v433_v3 }
  0x15   : >> { %436 = vst [vmem:[%s1971_s5 + $0x40] sm:$0xff] %v435_v4  ;;  %s2371_s9 = smov (%p438_p6, %s437_s9), 0  ;;  %423 = sbr.rel (!%p420_p7) target bundleno = 18 (0x12), region = 181 }
  0x16   : >> { %s1755_s10 = sshll.u32 %s2371_s9, 3  ;;  %s2359_s7 = smov %s2371_s9 }
  0x17   : >> { %s442_s6 = scalar_lea.vmem %s2059_s29, %s1755_s10   ;;  %s443_s5 = scalar_lea.vmem %s180_s30, %s1755_s10 [#allocation3]  }
  0x1a PF: > { %p1766_p8 = scmp.ge.s32.totalorder %s1967_s19, 1  ;;  %p703_p9 = scmp.lt.s32.totalorder %s1967_s19, 3 }
  0x1c   : > { %p704_p10 = pnand %p1766_p8, %p703_p9 }
  0x1d   : > { %s710_s11 = sand.u32 (!%p704_p10), 1, %s1951_s15   ;;  %p754_p11 = scmp.lt.s32.totalorder (!%p704_p10), %s1959_s17, 1 }
  0x1e   : > { %707 = sbr.rel (%p704_p10) target bundleno = 443 (0x1bb), region = 94  ;;  %s1985_s14 = smov (!%p704_p10), 126  }
  0x1f   : > { %s1819_s12 = smul.u32 (!%p704_p10), 80, %s710_s11  ;;  %s1986_s25 = smov (!%p704_p10), 127  }
  0x21   : > { %s712_s13 = scalar_lea.vmem (!%p704_p10), [#allocation3], %s1819_s12 }
  0x23   : > { %v2092_v5 = vld [vmem:[%s712_s13 + $0x40] sm:$0xff]  ;;  %v2096_v7 = vld [vmem:[%s712_s13 + $0x48] sm:$0xff]  ;;  %s2373_s17 = smov (!%p754_p11, %s1959_s17), 1  ;;  %v2107_v9 = vld [vmem:[%s712_s13 + $0x30] sm:$0xff]  ;;  %v1987_v32 = vmov 0   ;;  %vm844_vm0 = vcmask 1043456  }
  0x24   : > { %v2094_v6 = vld [vmem:[%s712_s13 + $0x20] sm:$0xff]  ;;  %951 = vrot.lane.b32.xlu0 %v2092_v5, %s1985_s14  ;;  %v2105_v8 = vld [vmem:[%s712_s13 + $0x28] sm:$0xff]  ;;  %v2109_v10 = vld [vmem:[%s712_s13 + $0x38] sm:$0xff]  ;;  %s1820_s15 = smul.u32 20, %s2373_s17  ;;  %1279 = vmatprep.mubr.bf16.mxu0 %v1987_v32  ;;  %vm992_vm1 = vcmask 1031172   ;;  %vm966_vm2 = vcmask 1031168  }
  0x25   : > { %943 = vrot.lane.b32.xlu1 %v2094_v6, %s1985_s14  ;;  %v2111_v11 = vld [vmem:[%s712_s13] sm:$0xff]  ;;  %v2113_v12 = vld [vmem:[%s712_s13 + $0x8] sm:$0xff]  ;;  %v2116_v13 = vld [vmem:[%s712_s13 + $0x10] sm:$0xff]  ;;  %v1779_v25 = vcombine.high %v2094_v6, %v2107_v9  ;;  %v1778_v26 = vcombine.low %v2094_v6, %v2107_v9  ;;  %v1781_v28 = vcombine.high %v2105_v8, %v2109_v10  ;;  %v1780_v30 = vcombine.low %v2105_v8, %v2109_v10  ;;  %s1815_s30 = sshll.u32 %s2373_s17, 7 }
  0x26   : > { %v2118_v14 = vld [vmem:[%s712_s13 + $0x18] sm:$0xff]  ;;  %s2127_s24 = scalar_lea.vmem %s2353_s1, %s1820_s15  ;;  %v1775_v27 = vcombine.high %v2111_v11, %v2116_v13  ;;  %v1774_v29 = vcombine.low %v2111_v11, %v2116_v13  ;;  %1332 = vmatprep.mubr.bf16.mxu1 %v1987_v32  ;;  %vm2185_vm3 = vmor %vm992_vm1, %vm844_vm0  ;;  %vm1028_vm4 = vcmask 1044464   ;;  %vm873_vm5 = vcmask 1039364   ;;  %s2298_s7 = scalar_lea.vmem %s2355_s3, %s1815_s30 }
  0x27   : > { %v1007_v15 = vld [vmem:[%s2127_s24 + $0x10] sm:$0xf]  ;;  %v1005_v16 = vld [vmem:[%s2127_s24 + $0x8] sm:$0xf]  ;;  %v1006_v17 = vld [vmem:[%s2127_s24 + $0xc] sm:$0xf]  ;;  %v1777_v31 = vcombine.high %v2113_v12, %v2118_v14  ;;  %v1776_v33 = vcombine.low %v2113_v12, %v2118_v14  ;;  %s2303_s10 = scalar_lea.vmem %s2356_s4, %s1815_s30 }
  0x28   : > { %953 = vrot.lane.b32.xlu0 %v2096_v7, %s1985_s14  ;;  %v1003_v18 = vld [vmem:[%s2127_s24] sm:$0xf]  ;;  %v1004_v19 = vld [vmem:[%s2127_s24 + $0x4] sm:$0xf]  ;;  %v887_v20 = vld [vmem:[%s2127_s24 + $0xc] sm:$0xf] }
  0x29   : > { %945 = vrot.lane.b32.xlu1 %v2105_v8, %s1985_s14  ;;  %v888_v21 = vld [vmem:[%s2127_s24 + $0x10] sm:$0xf]  ;;  %v885_v22 = vld [vmem:[%s2127_s24 + $0x4] sm:$0xf]  ;;  %v886_v23 = vld [vmem:[%s2127_s24 + $0x8] sm:$0xf] }
  0x2a   : > { %v884_v24 = vld [vmem:[%s2127_s24] sm:$0xf]  ;;  %vm846_vm6 = vcmask 1039360   ;;  %vm2222_vm7 = vmor %vm873_vm5, %vm844_vm0  ;;  %vm909_vm8 = vcmask 1044472   ;;  %vm1228_vm9 = vcmask 982016  }
  0x2c   : > { %947 = vrot.lane.b32.xlu0 %v2107_v9, %s1985_s14 }
  0x2d   : > { %949 = vrot.lane.b32.xlu1 %v2109_v10, %s1985_s14 }
  0x30   : > { %1021 = vrot.lane.b32.xlu0 %v1007_v15, %s1985_s14 }
  0x31   : > { %935 = vrot.lane.b32.xlu1 %v2111_v11, %s1985_s14 }
  0x34   : > { %937 = vrot.lane.b32.xlu0 %v2113_v12, %s1985_s14 }
  0x35   : > { %939 = vrot.lane.b32.xlu1 %v2116_v13, %s1985_s14 }
  0x38   : > { %941 = vrot.lane.b32.xlu0 %v2118_v14, %s1985_s14 }
  0x39   : > { %1017 = vrot.lane.b32.xlu1 %v1005_v16, %s1985_s14 }
  0x3c   : > { %1019 = vrot.lane.b32.xlu0 %v1006_v17, %s1985_s14 }
  0x3d   : > { %826 = vrot.lane.b32.xlu1 %v2107_v9, %s1986_s25  ;;  %v1912_v9 = vld [vmem:[%s2354_s2 + $0x8] sm:$0xff]  }
  0x40   : > { %828 = vrot.lane.b32.xlu0 %v2109_v10, %s1986_s25  ;;  %v1988_v10 = vmov 0.0  }
  0x41   : > { %830 = vrot.lane.b32.xlu1 %v2092_v5, %s1986_s25 }
  0x44   : > { %832 = vrot.lane.b32.xlu0 %v2096_v7, %s1986_s25 }
  0x45   : > { %1013 = vrot.lane.b32.xlu1 %v1003_v18, %s1985_s14 }
  0x48   : > { %1015 = vrot.lane.b32.xlu0 %v1004_v19, %s1985_s14 }
  0x49   : > { %818 = vrot.lane.b32.xlu1 %v2116_v13, %s1986_s25 }
  0x4c   : > { %820 = vrot.lane.b32.xlu0 %v2118_v14, %s1986_s25 }
  0x4d   : > { %822 = vrot.lane.b32.xlu1 %v2094_v6, %s1986_s25 }
  0x50   : > { %824 = vrot.lane.b32.xlu0 %v2105_v8, %s1986_s25 }
  0x51   : > { %900 = vrot.lane.b32.xlu1 %v887_v20, %s1986_s25 }
  0x54   : > { %902 = vrot.lane.b32.xlu0 %v888_v21, %s1986_s25 }
  0x55   : > { %814 = vrot.lane.b32.xlu1 %v2111_v11, %s1986_s25 }
  0x58   : > { %816 = vrot.lane.b32.xlu0 %v2113_v12, %s1986_s25 }
  0x59   : > { %896 = vrot.lane.b32.xlu1 %v885_v22, %s1986_s25 }
  0x5c   : > { %898 = vrot.lane.b32.xlu0 %v886_v23, %s1986_s25 }
  0x5d   : > { %894 = vrot.lane.b32.xlu1 %v884_v24, %s1986_s25 }
  0x96   : > { %v952_v34 = vpop.permute.xlu0 %951 }
  0x97   : > { %v944_v35 = vpop.permute.xlu1 %943  ;;  %v963_v39 = vrot.slane %v952_v34, 4 }
  0x98   : > { %v959_v36 = vrot.slane %v944_v35, 4 }
  0x9a   : > { %v954_v37 = vpop.permute.xlu0 %953 }
  0x9b   : > { %v946_v38 = vpop.permute.xlu1 %945  ;;  %v964_v41 = vrot.slane %v954_v37, 4 }
  0x9c   : > { %v960_v42 = vrot.slane %v946_v38, 4 }
  0x9d   : > { %v978_v43 = vsel %vm844_vm0, %v963_v39, %v964_v41  ;;  %v980_v44 = vsel %vm966_vm2, %v954_v37, %v964_v41 }
  0x9e   : > { %v972_v45 = vsel %vm844_vm0, %v959_v36, %v960_v42  ;;  %v974_v46 = vsel %vm966_vm2, %v946_v38, %v960_v42  ;;  %v979_v47 = vsel %vm966_vm2, %v952_v34, %v978_v43  ;;  %1002 = vst.msk [vmem:[#allocation2 + $0xe8] sm:$0xff] %vm2185_vm3, %v980_v44  ;;  %v948_v49 = vpop.permute.xlu0 %947 }
  0x9f   : > { %v973_v48 = vsel %vm966_vm2, %v944_v35, %v972_v45  ;;  %998 = vst.msk [vmem:[#allocation2 + $0xc8] sm:$0xff] %vm2185_vm3, %v974_v46  ;;  %v950_v50 = vpop.permute.xlu1 %949  ;;  %v961_v51 = vrot.slane %v948_v49, 4  ;;  %v1803_v53 = vcombine.high %v979_v47, %v979_v47  ;;  %v1802_v54 = vcombine.low %v979_v47, %v979_v47 }
  0xa0   : > { %v962_v52 = vrot.slane %v950_v50, 4 }
  0xa1   : > { %1806 = vmatprep.subr.msk.bf16.mxu0 %vm844_vm0, %v1803_v53  ;;  %v1236_v57 = vsel %vm844_vm0, %v1802_v54, 0 }
  0xa2   : > { %v975_v55 = vsel %vm844_vm0, %v961_v51, %v962_v52  ;;  %v977_v56 = vsel %vm966_vm2, %v950_v50, %v962_v52  ;;  %v1022_v59 = vpop.permute.xlu0 %1021  ;;  %1248 = vmatpush1.bf16.msra.mxu0 %v1236_v57 }
  0xa3   : > { %v976_v58 = vsel %vm966_vm2, %v948_v49, %v975_v55  ;;  %1000 = vst.msk [vmem:[#allocation2 + $0xd8] sm:$0xff] %vm2185_vm3, %v977_v56  ;;  %v936_v60 = vpop.permute.xlu1 %935 }
  0xa4   : > { %1033 = vst.msk [vmem:[#allocation2 + $0xec] sm:$0xf] %vm1028_vm4, %v1022_v59  ;;  %v1799_v61 = vcombine.high %v973_v48, %v976_v58  ;;  %v1798_v62 = vcombine.low %v973_v48, %v976_v58  ;;  %v955_v63 = vrot.slane %v936_v60, 4 }
  0xa6   : > { %1249 = vmatprep.subr.bf16.mxu0 %v1799_v61  ;;  %v938_v0 = vpop.permute.xlu0 %937 }
  0xa7   : > { %v940_v1 = vpop.permute.xlu1 %939  ;;  %1250 = vmatpush1.bf16.msra.mxu0 %v1798_v62  ;;  %v956_v2 = vrot.slane %v938_v0, 4 }
  0xa8   : > { %v957_v15 = vrot.slane %v940_v1, 4 }
  0xa9   : > { %v965_v3 = vsel %vm844_vm0, %v955_v63, %v956_v2  ;;  %v968_v4 = vsel %vm966_vm2, %v938_v0, %v956_v2 }
  0xaa   : > { %v967_v16 = vsel %vm966_vm2, %v936_v60, %v965_v3  ;;  %994 = vst.msk [vmem:[#allocation2 + $0xa8] sm:$0xff] %vm2185_vm3, %v968_v4  ;;  %v942_v17 = vpop.permute.xlu0 %941  ;;  %v1901_v52 = vld [vmem:[#allocation2 + $0xc8] ss:$16 sps:$4 sm:$0xff]  }
  0xab   : > { %v1018_v18 = vpop.permute.xlu1 %1017  ;;  %v1067_v19 = vld [vmem:[#allocation2 + $0xe8] sm:$0xff]  ;;  %v958_v20 = vrot.slane %v942_v17, 4 }
  0xac   : > { %1031 = vst.msk [vmem:[#allocation2 + $0xcc] sm:$0xf] %vm1028_vm4, %v1018_v18  ;;  %v1805_v21 = vcombine.high %v1067_v19, %v1067_v19  ;;  %v1804_v22 = vcombine.low %v1067_v19, %v1067_v19 }
  0xad   : > { %v969_v23 = vsel %vm844_vm0, %v957_v15, %v958_v20  ;;  %v971_v24 = vsel %vm966_vm2, %v942_v17, %v958_v20 }
  0xae   : > { %1809 = vmatprep.subr.msk.bf16.mxu1 %vm844_vm0, %v1805_v21  ;;  %v1242_v34 = vsel %vm844_vm0, %v1804_v22, 0  ;;  %v970_v35 = vsel %vm966_vm2, %v940_v1, %v969_v23  ;;  %996 = vst.msk [vmem:[#allocation2 + $0xb8] sm:$0xff] %vm2185_vm3, %v971_v24  ;;  %v1020_v36 = vpop.permute.xlu0 %1019 }
  0xaf   : > { %1301 = vmatpush1.bf16.msra.mxu1 %v1242_v34  ;;  %v827_v37 = vpop.permute.xlu1 %826  ;;  %1032 = vst.msk [vmem:[#allocation2 + $0xdc] sm:$0xf] %vm1028_vm4, %v1020_v36  ;;  %v1795_v38 = vcombine.high %v967_v16, %v970_v35  ;;  %v1794_v39 = vcombine.low %v967_v16, %v970_v35 }
  0xb0   : > { %v840_v41 = vrot.slane %v827_v37, 4 }
  0xb1   : > { %1251 = vmatprep.subr.bf16.mxu0 %v1795_v38 }
  0xb2   : > { %v829_v42 = vpop.permute.xlu0 %828  ;;  %1252 = vmatpush1.bf16.msra.mxu0 %v1794_v39 }
  0xb3   : > { %v831_v43 = vpop.permute.xlu1 %830  ;;  %v841_v40 = vrot.slane %v829_v42, 4 }
  0xb4   : > { %v842_v47 = vrot.slane %v831_v43, 4 }
  0xb5   : > { %v855_v45 = vsel %vm844_vm0, %v840_v41, %v841_v40  ;;  %v857_v46 = vsel %vm846_vm6, %v829_v42, %v841_v40  ;;  %v1904_v18 = vld [vmem:[#allocation2 + $0xa8] ss:$16 sps:$4 sm:$0xff]  }
  0xb6   : > { %v856_v48 = vsel %vm846_vm6, %v827_v37, %v855_v45  ;;  %881 = vst.msk [vmem:[#allocation2 + $0x88] sm:$0xff] %vm2222_vm7, %v857_v46  ;;  %v833_v49 = vpop.permute.xlu0 %832  ;;  %v1899_v51 = vld [vmem:[#allocation2 + $0xcc] ss:$16 sps:$4 sm:$0xff]  }
  0xb7   : > { %v1014_v50 = vpop.permute.xlu1 %1013  ;;  %v843_v53 = vrot.slane %v833_v49, 4  ;;  %1302 = vmatprep.subr.bf16.mxu1 %v1899_v51 }
  0xb8   : > { %1029 = vst.msk [vmem:[#allocation2 + $0xac] sm:$0xf] %vm1028_vm4, %v1014_v50  ;;  %1303 = vmatpush1.bf16.msra.mxu1 %v1901_v52  ;;  %v1911_v52 = vld [vmem:[%s2354_s2] sm:$0xff]  }
  0xb9   : > { %v858_v54 = vsel %vm844_vm0, %v842_v47, %v843_v53  ;;  %v860_v55 = vsel %vm846_vm6, %v833_v49, %v843_v53 }
  0xba   : > { %v859_v56 = vsel %vm846_vm6, %v831_v43, %v858_v54  ;;  %883 = vst.msk [vmem:[#allocation2 + $0x98] sm:$0xff] %vm2222_vm7, %v860_v55  ;;  %v1016_v57 = vpop.permute.xlu0 %1015 }
  0xbb   : > { %v819_v58 = vpop.permute.xlu1 %818  ;;  %1030 = vst.msk [vmem:[#allocation2 + $0xbc] sm:$0xf] %vm1028_vm4, %v1016_v57  ;;  %v1791_v59 = vcombine.high %v856_v48, %v859_v56  ;;  %v1790_v60 = vcombine.low %v856_v48, %v859_v56 }
  0xbc   : > { %v836_v61 = vrot.slane %v819_v58, 4 }
  0xbd   : > { %1253 = vmatprep.subr.bf16.mxu0 %v1791_v59 }
  0xbe   : > { %v821_v62 = vpop.permute.xlu0 %820  ;;  %1254 = vmatpush1.bf16.msra.mxu0 %v1790_v60 }
  0xbf   : > { %v823_v63 = vpop.permute.xlu1 %822  ;;  %v837_v0 = vrot.slane %v821_v62, 4 }
  0xc0   : > { %v838_v3 = vrot.slane %v823_v63, 4 }
  0xc1   : > { %v849_v1 = vsel %vm844_vm0, %v836_v61, %v837_v0  ;;  %v851_v2 = vsel %vm846_vm6, %v821_v62, %v837_v0  ;;  %v1907_v47 = vld [vmem:[#allocation2 + $0x88] ss:$16 sps:$4 sm:$0xff]  }
  0xc2   : > { %v850_v4 = vsel %vm846_vm6, %v819_v58, %v849_v1  ;;  %877 = vst.msk [vmem:[#allocation2 + $0x68] sm:$0xff] %vm2222_vm7, %v851_v2  ;;  %v825_v15 = vpop.permute.xlu0 %824  ;;  %v1902_v17 = vld [vmem:[#allocation2 + $0xac] ss:$16 sps:$4 sm:$0xff]  }
  0xc3   : > { %v901_v16 = vpop.permute.xlu1 %900  ;;  %v839_v19 = vrot.slane %v825_v15, 4  ;;  %1304 = vmatprep.subr.bf16.mxu1 %v1902_v17 }
  0xc4   : > { %913 = vst.msk [vmem:[#allocation2 + $0x8c] sm:$0xf] %vm909_vm8, %v901_v16  ;;  %1305 = vmatpush1.bf16.msra.mxu1 %v1904_v18 }
  0xc5   : > { %v852_v20 = vsel %vm844_vm0, %v838_v3, %v839_v19  ;;  %v854_v21 = vsel %vm846_vm6, %v825_v15, %v839_v19 }
  0xc6   : > { %v853_v22 = vsel %vm846_vm6, %v823_v63, %v852_v20  ;;  %879 = vst.msk [vmem:[#allocation2 + $0x78] sm:$0xff] %vm2222_vm7, %v854_v21  ;;  %v903_v23 = vpop.permute.xlu0 %902 }
  0xc7   : > { %v815_v24 = vpop.permute.xlu1 %814  ;;  %914 = vst.msk [vmem:[#allocation2 + $0x9c] sm:$0xf] %vm909_vm8, %v903_v23  ;;  %v1787_v34 = vcombine.high %v850_v4, %v853_v22  ;;  %v1786_v35 = vcombine.low %v850_v4, %v853_v22 }
  0xc8   : > { %v834_v36 = vrot.slane %v815_v24, 4 }
  0xc9   : > { %1255 = vmatprep.subr.bf16.mxu0 %v1787_v34 }
  0xca   : > { %v817_v37 = vpop.permute.xlu0 %816  ;;  %1256 = vmatpush1.bf16.msra.mxu0 %v1786_v35 }
  0xcb   : > { %v897_v38 = vpop.permute.xlu1 %896  ;;  %v835_v39 = vrot.slane %v817_v37, 4 }
  0xcc   : > { %911 = vst.msk [vmem:[#allocation2 + $0x6c] sm:$0xf] %vm909_vm8, %v897_v38 }
  0xcd   : > { %v845_v41 = vsel %vm844_vm0, %v834_v36, %v835_v39  ;;  %v848_v42 = vsel %vm846_vm6, %v817_v37, %v835_v39  ;;  %v1910_v50 = vld [vmem:[#allocation2 + $0x68] ss:$16 sps:$4 sm:$0xff]  }
  0xce   : > { %v847_v43 = vsel %vm846_vm6, %v815_v24, %v845_v41  ;;  %875 = vst.msk [vmem:[#allocation2 + $0x58] sm:$0xff] %vm2222_vm7, %v848_v42  ;;  %v899_v40 = vpop.permute.xlu0 %898  ;;  %v1905_v46 = vld [vmem:[#allocation2 + $0x8c] ss:$16 sps:$4 sm:$0xff]  }
  0xcf   : > { %v895_v45 = vpop.permute.xlu1 %894  ;;  %912 = vst.msk [vmem:[#allocation2 + $0x7c] sm:$0xf] %vm909_vm8, %v899_v40  ;;  %v1783_v48 = vcombine.high %v2092_v5, %v847_v43  ;;  %v1782_v49 = vcombine.low %v2092_v5, %v847_v43  ;;  %1306 = vmatprep.subr.bf16.mxu1 %v1905_v46 }
  0xd0   : > { %910 = vst.msk [vmem:[#allocation2 + $0x5c] sm:$0xf] %vm909_vm8, %v895_v45  ;;  %1307 = vmatpush1.bf16.msra.mxu1 %v1907_v47 }
  0xd1   : > { %1257 = vmatprep.subr.bf16.mxu0 %v1783_v48 }
  0xd2   : > { %1258 = vmatpush1.bf16.msra.mxu0 %v1782_v49 }
  0xd3   : > { %1259 = vmatprep.subr.bf16.mxu0 %v1779_v25 }
  0xd6   : > { %v1908_v44 = vld [vmem:[#allocation2 + $0x6c] ss:$16 sps:$4 sm:$0xff]   ;;  %1260 = vmatpush1.bf16.msra.mxu0 %v1778_v26 }
  0xd7   : > { %v1049_v51 = vld [vmem:[#allocation2 + $0x58] sm:$0xff]  ;;  %1261 = vmatprep.subr.bf16.mxu0 %v1775_v27  ;;  %1308 = vmatprep.subr.bf16.mxu1 %v1908_v44 }
  0xd8   : > { %v1785_v5 = vcombine.high %v2096_v7, %v1049_v51  ;;  %1309 = vmatpush1.bf16.msra.mxu1 %v1910_v50  ;;  %v1784_v6 = vcombine.low %v2096_v7, %v1049_v51  ;;  %v1353_v7 = vlaneseq }
  0xda   : > { %1310 = vmatprep.subr.bf16.mxu1 %v1785_v5  ;;  %1262 = vmatpush1.bf16.msra.mxu0 %v1774_v29  ;;  %v1354_v8 = vand.u32 127, %v1353_v7 }
  0xdc   : > { %1311 = vmatpush1.bf16.msra.mxu1 %v1784_v6  ;;  %vm1364_vm10 = vcmp.lt.s32.totalorder %v1354_v8, 5 }
  0xdd   : > { %1807 = vmatmul.mubr.msk.bf16.vlgmr.msra.gmra.mxu0 %vm1228_vm9, %v1911_v52  ;;  %1312 = vmatprep.subr.bf16.mxu1 %v1781_v28  ;;  %v1812_v11 = vsel %vm1364_vm10, 1.0, %v1988_v10 }
  0xde   : > { %1289 = vmatprep.mubr.bf16.mxu0 %v1987_v32 }
  0xe0   : > { %1313 = vmatpush1.bf16.msra.mxu1 %v1780_v30 }
  0xe1   : > { %1314 = vmatprep.subr.bf16.mxu1 %v1777_v31 }
  0xe4   : > { %1315 = vmatpush1.bf16.msra.mxu1 %v1776_v33 }
  0xe5   : > { %1808 = vmatmul.mubr.msk.bf16.gmra.mxu0 %vm1228_vm9, %v1912_v9 }
  0xe7   : > { %1810 = vmatmul.mubr.msk.bf16.vlgmr.msra.gmra.mxu1 %vm1228_vm9, %v1911_v52 }
  0xe8   : > { %1342 = vmatprep.mubr.bf16.mxu1 %v1987_v32 }
  0xef   : > { %1811 = vmatmul.mubr.msk.bf16.gmra.mxu1 %vm1228_vm9, %v1912_v9 }
 0x19d   : > { %v1281_v13 = vpop.f32.mrf.mxu0 }
 0x19e   : > { %v1376_v25 = vmul.f32 %v1812_v11, %v1281_v13 }
 0x19f   : > { %v1283_v12 = vpop.f32.mrf.mxu0 }
 0x1a0   : > { %v1492_v14 = vmul.f32 %v1376_v25, %v1376_v25  ;;  %v1377_v26 = vmul.f32 0.0, %v1283_v12  ;;  %1460 = vst [vmem:[%s2298_s7] sm:$0xff] %v1376_v25 }
 0x1a1   : > { %v1285_v27 = vpop.f32.mrf.mxu0 }
 0x1a2   : > { %v1493_v28 = vmul.f32 %v1377_v26, %v1377_v26  ;;  %v1380_v29 = vmul.f32 %v1812_v11, %v1285_v27  ;;  %1524 = vst [vmem:[%s2303_s10] sm:$0xff] %v1492_v14  ;;  %1461 = vst [vmem:[%s2298_s7 + $0x8] sm:$0xff] %v1377_v26 }
 0x1a3   : > { %v1287_v30 = vpop.f32.mrf.mxu0 }
 0x1a4   : > { %v1496_v31 = vmul.f32 %v1380_v29, %v1380_v29  ;;  %v1381_v32 = vmul.f32 0.0, %v1287_v30  ;;  %1525 = vst [vmem:[%s2303_s10 + $0x8] sm:$0xff] %v1493_v28  ;;  %1464 = vst [vmem:[%s2298_s7 + $0x20] sm:$0xff] %v1380_v29 }
 0x1a5   : > { %v1291_v33 = vpop.f32.mrf.mxu0 }
 0x1a6   : > { %v1497_v53 = vmul.f32 %v1381_v32, %v1381_v32  ;;  %v1384_v54 = vmul.f32 %v1812_v11, %v1291_v33  ;;  %1528 = vst [vmem:[%s2303_s10 + $0x20] sm:$0xff] %v1496_v31  ;;  %1465 = vst [vmem:[%s2298_s7 + $0x28] sm:$0xff] %v1381_v32 }
 0x1a7   : > { %v1293_v55 = vpop.f32.mrf.mxu0  ;;  %v1334_v56 = vpop.f32.mrf.mxu1 }
 0x1a8   : > { %v1500_v57 = vmul.f32 %v1384_v54, %v1384_v54  ;;  %v1385_v58 = vmul.f32 0.0, %v1293_v55  ;;  %v1378_v59 = vmul.f32 0.0, %v1334_v56  ;;  %1529 = vst [vmem:[%s2303_s10 + $0x28] sm:$0xff] %v1497_v53  ;;  %1468 = vst [vmem:[%s2298_s7 + $0x40] sm:$0xff] %v1384_v54 }
 0x1a9   : > { %v1295_v60 = vpop.f32.mrf.mxu0  ;;  %v1336_v61 = vpop.f32.mrf.mxu1 }
 0x1aa   : > { %v1501_v62 = vmul.f32 %v1385_v58, %v1385_v58  ;;  %v1388_v63 = vmul.f32 %v1812_v11, %v1295_v60  ;;  %v1494_v0 = vmul.f32 %v1378_v59, %v1378_v59  ;;  %v1379_v1 = vmul.f32 0.0, %v1336_v61  ;;  %1532 = vst [vmem:[%s2303_s10 + $0x40] sm:$0xff] %v1500_v57  ;;  %1469 = vst [vmem:[%s2298_s7 + $0x48] sm:$0xff] %v1385_v58 }
 0x1ab   : > { %v1297_v2 = vpop.f32.mrf.mxu0  ;;  %v1338_v3 = vpop.f32.mrf.mxu1  ;;  %1462 = vst [vmem:[%s2298_s7 + $0x10] sm:$0xff] %v1378_v59 }
 0x1ac   : > { %v1504_v4 = vmul.f32 %v1388_v63, %v1388_v63  ;;  %v1389_v15 = vmul.f32 0.0, %v1297_v2  ;;  %v1495_v16 = vmul.f32 %v1379_v1, %v1379_v1  ;;  %v1382_v17 = vmul.f32 0.0, %v1338_v3  ;;  %1533 = vst [vmem:[%s2303_s10 + $0x48] sm:$0xff] %v1501_v62  ;;  %1472 = vst [vmem:[%s2298_s7 + $0x60] sm:$0xff] %v1388_v63 }
 0x1ad   : > { %v1340_v18 = vpop.f32.mrf.mxu1  ;;  %1526 = vst [vmem:[%s2303_s10 + $0x10] sm:$0xff] %v1494_v0  ;;  %1463 = vst [vmem:[%s2298_s7 + $0x18] sm:$0xff] %v1379_v1 }
 0x1ae   : > { %v1505_v19 = vmul.f32 %v1389_v15, %v1389_v15  ;;  %v1498_v20 = vmul.f32 %v1382_v17, %v1382_v17  ;;  %v1383_v21 = vmul.f32 0.0, %v1340_v18  ;;  %1536 = vst [vmem:[%s2303_s10 + $0x60] sm:$0xff] %v1504_v4  ;;  %1473 = vst [vmem:[%s2298_s7 + $0x68] sm:$0xff] %v1389_v15 }
 0x1af   : > { %v1344_v22 = vpop.f32.mrf.mxu1  ;;  %1527 = vst [vmem:[%s2303_s10 + $0x18] sm:$0xff] %v1495_v16  ;;  %1466 = vst [vmem:[%s2298_s7 + $0x30] sm:$0xff] %v1382_v17 }
 0x1b0   : > { %v1499_v23 = vmul.f32 %v1383_v21, %v1383_v21  ;;  %v1386_v24 = vmul.f32 0.0, %v1344_v22  ;;  %1537 = vst [vmem:[%s2303_s10 + $0x68] sm:$0xff] %v1505_v19  ;;  %1530 = vst [vmem:[%s2303_s10 + $0x30] sm:$0xff] %v1498_v20 }
 0x1b1   : > { %v1346_v34 = vpop.f32.mrf.mxu1  ;;  %1467 = vst [vmem:[%s2298_s7 + $0x38] sm:$0xff] %v1383_v21 }
 0x1b2   : > { %v1502_v35 = vmul.f32 %v1386_v24, %v1386_v24  ;;  %v1387_v36 = vmul.f32 0.0, %v1346_v34  ;;  %1531 = vst [vmem:[%s2303_s10 + $0x38] sm:$0xff] %v1499_v23  ;;  %1470 = vst [vmem:[%s2298_s7 + $0x50] sm:$0xff] %v1386_v24 }
 0x1b3   : > { %v1348_v37 = vpop.f32.mrf.mxu1 }
 0x1b4   : > { %v1503_v38 = vmul.f32 %v1387_v36, %v1387_v36  ;;  %v1390_v39 = vmul.f32 0.0, %v1348_v37  ;;  %1534 = vst [vmem:[%s2303_s10 + $0x50] sm:$0xff] %v1502_v35  ;;  %1471 = vst [vmem:[%s2298_s7 + $0x58] sm:$0xff] %v1387_v36 }
 0x1b5   : > { %v1350_v41 = vpop.f32.mrf.mxu1 }
 0x1b6   : > { %v1506_v42 = vmul.f32 %v1390_v39, %v1390_v39  ;;  %v1391_v43 = vmul.f32 0.0, %v1350_v41  ;;  %1535 = vst [vmem:[%s2303_s10 + $0x58] sm:$0xff] %v1503_v38  ;;  %1474 = vst [vmem:[%s2298_s7 + $0x70] sm:$0xff] %v1390_v39 }
 0x1b8   : > { %v1507_v40 = vmul.f32 %v1391_v43, %v1391_v43  ;;  %1538 = vst [vmem:[%s2303_s10 + $0x70] sm:$0xff] %v1506_v42  ;;  %1475 = vst [vmem:[%s2298_s7 + $0x78] sm:$0xff] %v1391_v43 }
 0x1ba   : > { %1539 = vst [vmem:[%s2303_s10 + $0x78] sm:$0xff] %v1507_v40 }
 0x1bb PF: > { %s15_s19 = sadd.s32 1, %s1967_s19   ;;  %s2364_s15 = smov %s1955_s16 }
 0x1bc   : > { %p12_p12 = scmp.ge.s32.totalorder %s15_s19, 4   ;;  %s2365_s16 = smov %s2049_s23 }
 0x1bd   : > { %s2366_s17 = smov %s1963_s18  ;;  %s2367_s18 = smov %s2369_s20 }
 0x1be   :  { %14 = sbr.rel (!%p12_p12) target bundleno = 3 (0x3), region = 214 }

// kernel: tdnn_mfcc_forward.13
= control target key start
LH: loop header
LB: loop body
LE: loop exit
PB: predicated region body
PF: predicated region fallthrough
CT: control target
= control target key end

     0   :  { %s571_s12 = smov 0   ;;  %s573_s13 = smov 0   ;;  %s616_s0 = inlined_call_operand.vmem [shape: bf16[2,32,512], index: 0, kind: input, shape index: {}]   ;;  %s617_s1 = inlined_call_operand.vmem [shape: bf16[10,32], index: 1, kind: input, shape index: {}]   ;;  %s618_s2 = inlined_call_operand.vmem [shape: f32[10,1], index: 2, kind: input, shape index: {}]   ;;  %s619_s3 = inlined_call_operand.vmem [shape: f32[2,10,512], index: 3, kind: output, shape index: {}]  }
   0x1   :  { %s575_s14 = smov 0  }
   0x2 LB: > { %s25_s15 = sadd.s32 1, %s544_s13  ;;  %p467_p0 = scmp.ge.s32.totalorder %s548_s14, 1  ;;  %s548_s14 = sphi %s575_s14, %s13_s14   ;;  %s544_s13 = sphi %s573_s13, %s621_s13   ;;  %s540_s12 = sphi %s571_s12, %s620_s12  }
   0x3   : > { %p27_p1 = scmp.ge.s32.totalorder %s25_s15, 2  ;;  %p158_p2 = scmp.lt.s32.totalorder %s548_s14, 3 }
   0x5   : > { %s623_s15 = smov (%p27_p1, %s25_s15), 0  ;;  %p159_p3 = pnand %p467_p0, %p158_p2 }
   0x6   : > { %p191_p4 = scmp.lt.s32.totalorder (!%p159_p3), %s540_s12, 1 }
   0x7   : > { %162 = sbr.rel (%p159_p3) target bundleno = 226 (0xe2), region = 32 }
   0xc   : > { %v550_v0 = vmov 0   ;;  %v221_v1 = vld [vmem:[%s618_s2] sm:$0xff]  ;;  %s625_s12 = smov (!%p191_p4, %s540_s12), 1  ;;  %v222_v2 = vld [vmem:[%s618_s2 + $0x8] sm:$0x3]  ;;  %vm278_vm0 = vcmask 261120  }
   0xd   : > { %314 = vmatprep.mubr.bf16.mxu0 %v550_v0  ;;  %357 = vmatprep.mubr.bf16.mxu1 %v550_v0  ;;  %s485_s18 = sshll.u32 %s625_s12, 6  ;;  %v525_v11 = vld [vmem:[%s617_s1] sm:$0x1f]  }
   0xe   : > { %512 = vset.pattern.permute.xlu0 %v550_v0  ;;  %s198_s23 = scalar_lea.vmem %s616_s0, %s485_s18  ;;  %s208_s28 = scalar_lea.vmem %s619_s3, %s485_s18 }
   0xf   : > { %225 = vperm.xlu0 %512, %v221_v1   ;;  %v513_v3 = vld [vmem:[%s198_s23 + $0x24] ss:$16 sps:$4 sm:$0xff]   ;;  %v515_v4 = vld [vmem:[%s198_s23 + $0x2c] ss:$16 sps:$4 sm:$0xff]   ;;  %v517_v5 = vld [vmem:[%s198_s23 + $0x20] ss:$16 sps:$4 sm:$0xff]  }
  0x10   : > { %294 = vmatprep.subr.bf16.mxu0 %v513_v3  ;;  %v518_v6 = vld [vmem:[%s198_s23 + $0x28] ss:$16 sps:$4 sm:$0xff]   ;;  %337 = vmatprep.subr.bf16.mxu1 %v515_v4  ;;  %v519_v7 = vld [vmem:[%s198_s23 + $0x4] ss:$16 sps:$4 sm:$0xff]   ;;  %v521_v8 = vld [vmem:[%s198_s23 + $0xc] ss:$16 sps:$4 sm:$0xff]  }
  0x11   : > { %295 = vmatpush1.bf16.msra.mxu0 %v517_v5  ;;  %338 = vmatpush1.bf16.msra.mxu1 %v518_v6  ;;  %v523_v9 = vld [vmem:[%s198_s23] ss:$16 sps:$4 sm:$0xff]   ;;  %v524_v10 = vld [vmem:[%s198_s23 + $0x8] ss:$16 sps:$4 sm:$0xff]  }
  0x12   : > { %296 = vmatprep.subr.bf16.mxu0 %v519_v7  ;;  %339 = vmatprep.subr.bf16.mxu1 %v521_v8 }
  0x13   : > { %230 = vperm.xlu0 %512, %v222_v2  }
  0x15   : > { %297 = vmatpush1.bf16.msra.mxu0 %v523_v9  ;;  %340 = vmatpush1.bf16.msra.mxu1 %v524_v10 }
  0x18   : > { %481 = vmatmul.mubr.msk.bf16.vlgmr.msra.gmra.mxu0 %vm278_vm0, %v525_v11  ;;  %482 = vmatmul.mubr.msk.bf16.vlgmr.msra.gmra.mxu1 %vm278_vm0, %v525_v11 }
  0x8a   : > { %v226_v12 = vpop.permute.xlu0 %225 }
  0x8e   : > { %v231_v19 = vpop.permute.xlu0 %230 }
  0xd8   : > { %v316_v13 = vpop.f32.mrf.mxu0  ;;  %v359_v14 = vpop.f32.mrf.mxu1 }
  0xd9   : > { %v317_v15 = vadd.f32 %v316_v13, %v226_v12  ;;  %v360_v16 = vadd.f32 %v359_v14, %v226_v12 }
  0xda   : > { %v318_v17 = vpop.f32.mrf.mxu0  ;;  %v361_v18 = vpop.f32.mrf.mxu1 }
  0xdb   : > { %368 = vst [vmem:[%s208_s28] sm:$0xff] %v317_v15  ;;  %370 = vst [vmem:[%s208_s28 + $0x10] sm:$0xff] %v360_v16  ;;  %v319_v20 = vadd.f32 %v318_v17, %v226_v12  ;;  %v362_v21 = vadd.f32 %v361_v18, %v226_v12 }
  0xdc   : > { %v320_v22 = vpop.f32.mrf.mxu0  ;;  %v363_v23 = vpop.f32.mrf.mxu1 }
  0xdd   : > { %369 = vst [vmem:[%s208_s28 + $0x8] sm:$0xff] %v319_v20  ;;  %371 = vst [vmem:[%s208_s28 + $0x18] sm:$0xff] %v362_v21  ;;  %v321_v24 = vadd.f32 %v320_v22, %v231_v19  ;;  %v364_v25 = vadd.f32 %v363_v23, %v231_v19 }
  0xde   : > { %v322_v26 = vpop.f32.mrf.mxu0  ;;  %v365_v27 = vpop.f32.mrf.mxu1 }
  0xdf   : > { %372 = vst [vmem:[%s208_s28 + $0x20] sm:$0x3] %v321_v24  ;;  %374 = vst [vmem:[%s208_s28 + $0x30] sm:$0x3] %v364_v25  ;;  %v323_v28 = vadd.f32 %v322_v26, %v231_v19  ;;  %v366_v29 = vadd.f32 %v365_v27, %v231_v19 }
  0xe1   : > { %373 = vst [vmem:[%s208_s28 + $0x28] sm:$0x3] %v323_v28  ;;  %375 = vst [vmem:[%s208_s28 + $0x38] sm:$0x3] %v366_v29 }
  0xe2 PF: > { %s13_s14 = sadd.s32 1, %s548_s14   ;;  %s620_s12 = smov %s544_s13 }
  0xe3   : > { %p10_p5 = scmp.ge.s32.totalorder %s13_s14, 4   ;;  %s621_s13 = smov %s623_s15 }
  0xe5   :  { %12 = sbr.rel (!%p10_p5) target bundleno = 2 (0x2), region = 62 }

// kernel: tdnn_mfcc_forward.11
= control target key start
LH: loop header
LB: loop body
LE: loop exit
PB: predicated region body
PF: predicated region fallthrough
CT: control target
= control target key end

     0   :  { %s1868_s15 = smov 0   ;;  %s1870_s16 = smov 0   ;;  %s2151_s0 = inlined_call_operand.vmem [shape: bf16[2,2,32,514], index: 0, kind: input, shape index: {}]   ;;  %s2152_s1 = inlined_call_operand.vmem [shape: bf16[2,1,2,32,2], index: 1, kind: input, shape index: {}]   ;;  %s2153_s2 = inlined_call_operand.vmem [shape: bf16[32,96], index: 2, kind: input, shape index: {}]   ;;  %s2154_s3 = inlined_call_operand.vmem [shape: f32[2,32,512], index: 3, kind: output, shape index: {0}]   ;;  %s2155_s4 = inlined_call_operand.vmem [shape: f32[2,32,512], index: 4, kind: output, shape index: {1}]  }
   0x1   :  { %s1872_s17 = smov 0   ;;  %s1874_s18 = smov 0  }
   0x2   :  { %s1876_s19 = smov 0  }
   0x3 LB: > { %s27_s20 = sadd.s32 1, %s1817_s18  ;;  %p43_p1 = scmp.ne.s32.totalorder %s1809_s16, %s1805_s15  ;;  %s1821_s19 = sphi %s1876_s19, %s15_s19   ;;  %s1817_s18 = sphi %s1874_s18, %s2166_s18   ;;  %s1813_s17 = sphi %s1872_s17, %s2165_s17   ;;  %s1809_s16 = sphi %s1870_s16, %s2164_s16   ;;  %s1805_s15 = sphi %s1868_s15, %s2163_s15  }
   0x4   : > { %p29_p0 = scmp.ge.s32.totalorder %s27_s20, 2  ;;  %p44_p2 = scmp.eq.s32.totalorder %s1821_s19, 0 }
   0x5   : > { %s36_s22 = sadd.s32 1, %s1809_s16  ;;  %p1613_p5 = scmp.ge.s32.totalorder %s1821_s19, 2 }
   0x6   : > { %s2168_s20 = smov (%p29_p0, %s27_s20), 0  ;;  %p45_p3 = por %p44_p2, %p43_p1 }
   0x7   : > { %s31_s21 = ssub.s32 %s1817_s18, %s2168_s20  ;;  %173 = sbr.rel (%p1613_p5) target bundleno = 25 (0x19), region = 20 }
   0x8   : > { %p34_p4 = scmp.eq.s32.totalorder %s31_s21, 0 }
   0xa   : > { %s1903_s23 = scalar_select %p34_p4, %s1809_s16, %s36_s22  }
   0xc   : > { %176 = sbr.rel (!%p45_p3) target bundleno = 25 (0x19), region = 24  ;;  %s178_s24 = sand.u32 (%p45_p3), 1, %s1809_s16  }
   0xd   : > { %s1676_s25 = smul.u32 (%p45_p3), 160, %s1817_s18  ;;  %s1908_s26 = sshll.u32 (%p45_p3), %s178_s24, 7 }
   0xe   : > { %s180_s30 = scalar_lea.vmem (%p45_p3), [#allocation3], %s1908_s26   ;;  %s1923_s7 = smov (%p45_p3), 0  }
   0xf   : > { %s1913_s29 = scalar_lea.vmem (%p45_p3), %s2151_s0, %s1676_s25   ;;  %s2156_s5 = smov (%p45_p3), %s180_s30 }
  0x10   : > { %s2157_s6 = smov (%p45_p3), %s1913_s29  ;;  %s1925_s8 = smov (%p45_p3), 0  }
  0x11 LB: >> { %v401_v0 = vld [vmem:[%s1829_s6] sm:$0xff]  ;;  %v403_v1 = vld [vmem:[%s1829_s6 + $0x14] sm:$0xff]  ;;  %v405_v2 = vld [vmem:[%s1829_s6 + $0x28] sm:$0xff]  ;;  %s417_s9 = sadd.s32 1, %s1833_s7  ;;  %s395_s8 = sadd.s32 1, %s1837_s8   ;;  %s1837_s8 = sphi %s1925_s8, %s395_s8   ;;  %s1833_s7 = sphi %s1923_s7, %s2158_s7   ;;  %s1829_s6 = sphi %s2157_s6, %s422_s6   ;;  %s1825_s5 = sphi %s2156_s5, %s423_s5  }
  0x12   : >> { %402 = vst [vmem:[%s1825_s5] sm:$0xff] %v401_v0  ;;  %404 = vst [vmem:[%s1825_s5 + $0x10] sm:$0xff] %v403_v1  ;;  %v407_v3 = vld [vmem:[%s1829_s6 + $0x3c] sm:$0xff]  ;;  %v409_v4 = vld [vmem:[%s1829_s6 + $0x50] sm:$0xff]  ;;  %p418_p6 = scmp.ge.s32.totalorder %s417_s9, 2  ;;  %p394_p7 = scmp.ge.s32.totalorder %s395_s8, 2 }
  0x13   : >> { %406 = vst [vmem:[%s1825_s5 + $0x20] sm:$0xff] %v405_v2  ;;  %v411_v5 = vld [vmem:[%s1829_s6 + $0x64] sm:$0xff]  ;;  %408 = vst [vmem:[%s1825_s5 + $0x30] sm:$0xff] %v407_v3  ;;  %v413_v6 = vld [vmem:[%s1829_s6 + $0x78] sm:$0xff] }
  0x14   : >> { %410 = vst [vmem:[%s1825_s5 + $0x40] sm:$0xff] %v409_v4  ;;  %412 = vst [vmem:[%s1825_s5 + $0x50] sm:$0xff] %v411_v5  ;;  %v415_v7 = vld [vmem:[%s1829_s6 + $0x8c] sm:$0xff]  ;;  %s2170_s9 = smov (%p418_p6, %s417_s9), 0  ;;  %397 = sbr.rel (!%p394_p7) target bundleno = 17 (0x11), region = 181 }
  0x15   : >> { %414 = vst [vmem:[%s1825_s5 + $0x60] sm:$0xff] %v413_v6  ;;  %416 = vst [vmem:[%s1825_s5 + $0x70] sm:$0xff] %v415_v7  ;;  %s1618_s10 = sshll.u32 %s2170_s9, 3  ;;  %s2158_s7 = smov %s2170_s9 }
  0x16   : >> { %s422_s6 = scalar_lea.vmem %s1913_s29, %s1618_s10   ;;  %s423_s5 = scalar_lea.vmem %s180_s30, %s1618_s10 [#allocation3]  }
  0x19 PF: > { %p1632_p8 = scmp.ge.s32.totalorder %s1821_s19, 1  ;;  %p663_p9 = scmp.lt.s32.totalorder %s1821_s19, 3 }
  0x1b   : > { %p664_p10 = pnand %p1632_p8, %p663_p9 }
  0x1c   : > { %s670_s11 = sand.u32 (!%p664_p10), 1, %s1805_s15   ;;  %p714_p11 = scmp.lt.s32.totalorder (!%p664_p10), %s1813_s17, 1 }
  0x1d   : > { %667 = sbr.rel (%p664_p10) target bundleno = 426 (0x1aa), region = 94  ;;  %s1633_s12 = sshll.u32 (!%p664_p10), %s670_s11, 7 }
  0x1e   : > { %s672_s13 = scalar_lea.vmem (!%p664_p10), [#allocation3], %s1633_s12  ;;  %s1839_s14 = smov (!%p664_p10), 126  }
  0x1f   : > { %s1840_s25 = smov (!%p664_p10), 127  }
  0x22   : > { %v1945_v8 = vld [vmem:[%s672_s13 + $0x30] sm:$0xff]  ;;  %v1947_v9 = vld [vmem:[%s672_s13 + $0x20] sm:$0xff]  ;;  %v1949_v10 = vld [vmem:[%s672_s13 + $0x38] sm:$0xff]  ;;  %s2172_s17 = smov (!%p714_p11, %s1813_s17), 1  ;;  %v1841_v31 = vmov 0   ;;  %vm790_vm0 = vcmask 1043456  }
  0x23   : > { %876 = vrot.lane.b32.xlu1 %v1945_v8, %s1839_s14  ;;  %872 = vrot.lane.b32.xlu0 %v1947_v9, %s1839_s14  ;;  %v1954_v11 = vld [vmem:[%s672_s13 + $0x28] sm:$0xff]  ;;  %v1958_v13 = vld [vmem:[%s672_s13] sm:$0xff]  ;;  %s1673_s15 = sshll.u32 %s2172_s17, 5  ;;  %v1647_v22 = vcombine.high %v1947_v9, %v1945_v8  ;;  %v1646_v23 = vcombine.low %v1947_v9, %v1945_v8  ;;  %vm910_vm1 = vcmask 1031172   ;;  %vm889_vm2 = vcmask 1031168   ;;  %s1674_s30 = sshll.u32 %s2172_s17, 7 }
  0x24   : > { %v1956_v12 = vld [vmem:[%s672_s13 + $0x8] sm:$0xff]  ;;  %v1960_v14 = vld [vmem:[%s672_s13 + $0x18] sm:$0xff]  ;;  %v1962_v15 = vld [vmem:[%s672_s13 + $0x10] sm:$0xff]  ;;  %s722_s24 = scalar_lea.vmem %s2152_s1, %s1673_s15  ;;  %v1649_v27 = vcombine.high %v1954_v11, %v1949_v10  ;;  %v1648_v29 = vcombine.low %v1954_v11, %v1949_v10  ;;  %1141 = vmatprep.mubr.bf16.mxu0 %v1841_v31  ;;  %1194 = vmatprep.mubr.bf16.mxu1 %v1841_v31  ;;  %vm939_vm4 = vcmask 1044464   ;;  %vm814_vm5 = vcmask 1039364   ;;  %s2097_s7 = scalar_lea.vmem %s2154_s3, %s1674_s30 }
  0x25   : > { %v922_v16 = vld [vmem:[%s722_s24 + $0xc] sm:$0xf]  ;;  %v921_v17 = vld [vmem:[%s722_s24 + $0x8] sm:$0xf]  ;;  %v920_v18 = vld [vmem:[%s722_s24 + $0x4] sm:$0xf]  ;;  %v1643_v26 = vcombine.high %v1958_v13, %v1962_v15  ;;  %v1642_v28 = vcombine.low %v1958_v13, %v1962_v15  ;;  %v1645_v30 = vcombine.high %v1956_v12, %v1960_v14  ;;  %v1644_v32 = vcombine.low %v1956_v12, %v1960_v14  ;;  %s2102_s10 = scalar_lea.vmem %s2155_s4, %s1674_s30 }
  0x26   : > { %v919_v19 = vld [vmem:[%s722_s24] sm:$0xf]  ;;  %v826_v20 = vld [vmem:[%s722_s24 + $0xc] sm:$0xf]  ;;  %v825_v21 = vld [vmem:[%s722_s24 + $0x8] sm:$0xf] }
  0x27   : > { %878 = vrot.lane.b32.xlu1 %v1949_v10, %s1839_s14  ;;  %874 = vrot.lane.b32.xlu0 %v1954_v11, %s1839_s14  ;;  %v824_v24 = vld [vmem:[%s722_s24 + $0x4] sm:$0xf]  ;;  %v823_v25 = vld [vmem:[%s722_s24] sm:$0xf]  ;;  %vm2004_vm3 = vmor %vm910_vm1, %vm790_vm0  ;;  %vm792_vm6 = vcmask 1039360   ;;  %vm843_vm8 = vcmask 1044472  }
  0x28   : > { %vm2031_vm7 = vmor %vm814_vm5, %vm790_vm0  ;;  %vm1102_vm9 = vcmask 785408  }
  0x2b   : > { %866 = vrot.lane.b32.xlu1 %v1956_v12, %s1839_s14  ;;  %864 = vrot.lane.b32.xlu0 %v1958_v13, %s1839_s14 }
  0x2f   : > { %870 = vrot.lane.b32.xlu1 %v1960_v14, %s1839_s14  ;;  %868 = vrot.lane.b32.xlu0 %v1962_v15, %s1839_s14 }
  0x33   : > { %933 = vrot.lane.b32.xlu1 %v922_v16, %s1839_s14  ;;  %931 = vrot.lane.b32.xlu0 %v921_v17, %s1839_s14 }
  0x37   : > { %776 = vrot.lane.b32.xlu1 %v1954_v11, %s1840_s25  ;;  %774 = vrot.lane.b32.xlu0 %v1947_v9, %s1840_s25  ;;  %v1215_v9 = vlaneseq  ;;  %v1842_v11 = vmov 0.0  }
  0x3b   : > { %780 = vrot.lane.b32.xlu1 %v1949_v10, %s1840_s25  ;;  %778 = vrot.lane.b32.xlu0 %v1945_v8, %s1840_s25  ;;  %v1766_v8 = vld [vmem:[%s2153_s2 + $0x8] sm:$0xff]   ;;  %v1216_v10 = vand.u32 127, %v1215_v9 }
  0x3d   : > { %vm1226_vm10 = vcmp.lt.s32.totalorder %v1216_v10, 3 }
  0x3f   : > { %929 = vrot.lane.b32.xlu1 %v920_v18, %s1839_s14  ;;  %927 = vrot.lane.b32.xlu0 %v919_v19, %s1839_s14 }
  0x43   : > { %768 = vrot.lane.b32.xlu1 %v1956_v12, %s1840_s25  ;;  %766 = vrot.lane.b32.xlu0 %v1958_v13, %s1840_s25  ;;  %v1670_v13 = vsel %vm1226_vm10, 1.0, %v1842_v11 }
  0x47   : > { %772 = vrot.lane.b32.xlu1 %v1960_v14, %s1840_s25  ;;  %770 = vrot.lane.b32.xlu0 %v1962_v15, %s1840_s25 }
  0x4b   : > { %837 = vrot.lane.b32.xlu1 %v826_v20, %s1840_s25  ;;  %835 = vrot.lane.b32.xlu0 %v825_v21, %s1840_s25 }
  0x4f   : > { %833 = vrot.lane.b32.xlu1 %v824_v24, %s1840_s25  ;;  %831 = vrot.lane.b32.xlu0 %v823_v25, %s1840_s25 }
  0x95   : > { %v877_v33 = vpop.permute.xlu1 %876  ;;  %v873_v34 = vpop.permute.xlu0 %872 }
  0x96   : > { %v886_v37 = vrot.slane %v877_v33, 4  ;;  %v884_v38 = vrot.slane %v873_v34, 4 }
  0x99   : > { %v879_v35 = vpop.permute.xlu1 %878  ;;  %v875_v36 = vpop.permute.xlu0 %874 }
  0x9a   : > { %v887_v40 = vrot.slane %v879_v35, 4  ;;  %v885_v41 = vrot.slane %v875_v36, 4 }
  0x9c   : > { %v898_v42 = vsel %vm790_vm0, %v886_v37, %v887_v40  ;;  %v900_v43 = vsel %vm889_vm2, %v879_v35, %v887_v40  ;;  %v895_v44 = vsel %vm790_vm0, %v884_v38, %v885_v41  ;;  %v897_v45 = vsel %vm889_vm2, %v875_v36, %v885_v41 }
  0x9d   : > { %v899_v46 = vsel %vm889_vm2, %v877_v33, %v898_v42  ;;  %918 = vst.msk [vmem:[#allocation2 + $0xb8] sm:$0xff] %vm2004_vm3, %v900_v43  ;;  %v896_v47 = vsel %vm889_vm2, %v873_v34, %v895_v44  ;;  %916 = vst.msk [vmem:[#allocation2 + $0xa8] sm:$0xff] %vm2004_vm3, %v897_v45  ;;  %v867_v48 = vpop.permute.xlu1 %866  ;;  %v865_v49 = vpop.permute.xlu0 %864 }
  0x9e   : > { %v881_v50 = vrot.slane %v867_v48, 4  ;;  %v880_v51 = vrot.slane %v865_v49, 4  ;;  %v1663_v52 = vcombine.high %v896_v47, %v899_v46  ;;  %v1662_v53 = vcombine.low %v896_v47, %v899_v46 }
  0xa0   : > { %v891_v54 = vsel %vm889_vm2, %v867_v48, %v881_v50  ;;  %v888_v55 = vsel %vm790_vm0, %v880_v51, %v881_v50  ;;  %1113 = vmatprep.subr.bf16.mxu0 %v1663_v52 }
  0xa1   : > { %912 = vst.msk [vmem:[#allocation2 + $0x88] sm:$0xff] %vm2004_vm3, %v891_v54  ;;  %v890_v56 = vsel %vm889_vm2, %v865_v49, %v888_v55  ;;  %v871_v57 = vpop.permute.xlu1 %870  ;;  %v869_v58 = vpop.permute.xlu0 %868  ;;  %1114 = vmatpush1.bf16.msra.mxu0 %v1662_v53 }
  0xa2   : > { %v883_v59 = vrot.slane %v871_v57, 4  ;;  %v882_v60 = vrot.slane %v869_v58, 4 }
  0xa4   : > { %v894_v61 = vsel %vm889_vm2, %v871_v57, %v883_v59  ;;  %v892_v62 = vsel %vm790_vm0, %v882_v60, %v883_v59  ;;  %v1755_v34 = vld [vmem:[#allocation2 + $0xa8] ss:$16 sps:$4 sm:$0xff]  }
  0xa5   : > { %914 = vst.msk [vmem:[#allocation2 + $0x98] sm:$0xff] %vm2004_vm3, %v894_v61  ;;  %v893_v63 = vsel %vm889_vm2, %v869_v58, %v892_v62  ;;  %v934_v0 = vpop.permute.xlu1 %933  ;;  %v932_v1 = vpop.permute.xlu0 %931 }
  0xa6   : > { %943 = vst.msk [vmem:[#allocation2 + $0xbc] sm:$0xf] %vm939_vm4, %v934_v0  ;;  %942 = vst.msk [vmem:[#allocation2 + $0xac] sm:$0xf] %vm939_vm4, %v932_v1  ;;  %v1659_v2 = vcombine.high %v890_v56, %v893_v63  ;;  %v1658_v3 = vcombine.low %v890_v56, %v893_v63 }
  0xa8   : > { %1115 = vmatprep.subr.bf16.mxu0 %v1659_v2  ;;  %v1765_v2 = vld [vmem:[%s2153_s2] sm:$0xff]  }
  0xa9   : > { %v777_v4 = vpop.permute.xlu1 %776  ;;  %v775_v5 = vpop.permute.xlu0 %774  ;;  %1116 = vmatpush1.bf16.msra.mxu0 %v1658_v3 }
  0xaa   : > { %v787_v7 = vrot.slane %v777_v4, 4  ;;  %v786_v16 = vrot.slane %v775_v5, 4 }
  0xac   : > { %v800_v17 = vsel %vm792_vm6, %v777_v4, %v787_v7  ;;  %v798_v18 = vsel %vm790_vm0, %v786_v16, %v787_v7  ;;  %v1758_v54 = vld [vmem:[#allocation2 + $0x88] ss:$16 sps:$4 sm:$0xff]  }
  0xad   : > { %820 = vst.msk [vmem:[#allocation2 + $0x68] sm:$0xff] %vm2031_vm7, %v800_v17  ;;  %v799_v19 = vsel %vm792_vm6, %v775_v5, %v798_v18  ;;  %v781_v20 = vpop.permute.xlu1 %780  ;;  %v779_v21 = vpop.permute.xlu0 %778  ;;  %v1753_v24 = vld [vmem:[#allocation2 + $0xac] ss:$16 sps:$4 sm:$0xff]  }
  0xae   : > { %v789_v25 = vrot.slane %v781_v20, 4  ;;  %v788_v33 = vrot.slane %v779_v21, 4  ;;  %1166 = vmatprep.subr.bf16.mxu1 %v1753_v24 }
  0xaf   : > { %1167 = vmatpush1.bf16.msra.mxu1 %v1755_v34 }
  0xb0   : > { %v803_v35 = vsel %vm792_vm6, %v781_v20, %v789_v25  ;;  %v801_v36 = vsel %vm790_vm0, %v788_v33, %v789_v25 }
  0xb1   : > { %822 = vst.msk [vmem:[#allocation2 + $0x78] sm:$0xff] %vm2031_vm7, %v803_v35  ;;  %v802_v37 = vsel %vm792_vm6, %v779_v21, %v801_v36  ;;  %v930_v38 = vpop.permute.xlu1 %929  ;;  %v928_v39 = vpop.permute.xlu0 %927 }
  0xb2   : > { %941 = vst.msk [vmem:[#allocation2 + $0x9c] sm:$0xf] %vm939_vm4, %v930_v38  ;;  %940 = vst.msk [vmem:[#allocation2 + $0x8c] sm:$0xf] %vm939_vm4, %v928_v39  ;;  %v1655_v40 = vcombine.high %v799_v19, %v802_v37  ;;  %v1654_v41 = vcombine.low %v799_v19, %v802_v37 }
  0xb4   : > { %1117 = vmatprep.subr.bf16.mxu0 %v1655_v40 }
  0xb5   : > { %v769_v42 = vpop.permute.xlu1 %768  ;;  %v767_v43 = vpop.permute.xlu0 %766  ;;  %1118 = vmatpush1.bf16.msra.mxu0 %v1654_v41 }
  0xb6   : > { %v783_v44 = vrot.slane %v769_v42, 4  ;;  %v782_v45 = vrot.slane %v767_v43, 4 }
  0xb8   : > { %v794_v46 = vsel %vm792_vm6, %v769_v42, %v783_v44  ;;  %v791_v47 = vsel %vm790_vm0, %v782_v45, %v783_v44  ;;  %v1761_v1 = vld [vmem:[#allocation2 + $0x68] ss:$16 sps:$4 sm:$0xff]  }
  0xb9   : > { %816 = vst.msk [vmem:[#allocation2 + $0x48] sm:$0xff] %vm2031_vm7, %v794_v46  ;;  %v793_v48 = vsel %vm792_vm6, %v767_v43, %v791_v47  ;;  %v773_v49 = vpop.permute.xlu1 %772  ;;  %v771_v50 = vpop.permute.xlu0 %770  ;;  %v1756_v51 = vld [vmem:[#allocation2 + $0x8c] ss:$16 sps:$4 sm:$0xff]  }
  0xba   : > { %v785_v52 = vrot.slane %v773_v49, 4  ;;  %v784_v53 = vrot.slane %v771_v50, 4  ;;  %1168 = vmatprep.subr.bf16.mxu1 %v1756_v51 }
  0xbb   : > { %1169 = vmatpush1.bf16.msra.mxu1 %v1758_v54 }
  0xbc   : > { %v797_v55 = vsel %vm792_vm6, %v773_v49, %v785_v52  ;;  %v795_v56 = vsel %vm790_vm0, %v784_v53, %v785_v52 }
  0xbd   : > { %818 = vst.msk [vmem:[#allocation2 + $0x58] sm:$0xff] %vm2031_vm7, %v797_v55  ;;  %v796_v57 = vsel %vm792_vm6, %v771_v50, %v795_v56  ;;  %v838_v58 = vpop.permute.xlu1 %837  ;;  %v836_v59 = vpop.permute.xlu0 %835 }
  0xbe   : > { %847 = vst.msk [vmem:[#allocation2 + $0x7c] sm:$0xf] %vm843_vm8, %v838_v58  ;;  %846 = vst.msk [vmem:[#allocation2 + $0x6c] sm:$0xf] %vm843_vm8, %v836_v59  ;;  %v1651_v60 = vcombine.high %v793_v48, %v796_v57  ;;  %v1650_v61 = vcombine.low %v793_v48, %v796_v57 }
  0xc0   : > { %1119 = vmatprep.subr.bf16.mxu0 %v1651_v60 }
  0xc1   : > { %v834_v62 = vpop.permute.xlu1 %833  ;;  %v832_v63 = vpop.permute.xlu0 %831  ;;  %1120 = vmatpush1.bf16.msra.mxu0 %v1650_v61 }
  0xc2   : > { %845 = vst.msk [vmem:[#allocation2 + $0x5c] sm:$0xf] %vm843_vm8, %v834_v62  ;;  %844 = vst.msk [vmem:[#allocation2 + $0x4c] sm:$0xf] %vm843_vm8, %v832_v63  ;;  %1121 = vmatprep.subr.bf16.mxu0 %v1647_v22 }
  0xc4   : > { %v1764_v22 = vld [vmem:[#allocation2 + $0x48] ss:$16 sps:$4 sm:$0xff]  }
  0xc5   : > { %v1759_v0 = vld [vmem:[#allocation2 + $0x6c] ss:$16 sps:$4 sm:$0xff]   ;;  %1122 = vmatpush1.bf16.msra.mxu0 %v1646_v23 }
  0xc6   : > { %1123 = vmatprep.subr.bf16.mxu0 %v1643_v26  ;;  %1170 = vmatprep.subr.bf16.mxu1 %v1759_v0 }
  0xc7   : > { %1171 = vmatpush1.bf16.msra.mxu1 %v1761_v1 }
  0xc9   : > { %v1762_v3 = vld [vmem:[#allocation2 + $0x4c] ss:$16 sps:$4 sm:$0xff]   ;;  %1124 = vmatpush1.bf16.msra.mxu0 %v1642_v28 }
  0xca   : > { %1172 = vmatprep.subr.bf16.mxu1 %v1762_v3 }
  0xcb   : > { %1173 = vmatpush1.bf16.msra.mxu1 %v1764_v22 }
  0xcc   : > { %1666 = vmatmul.mubr.msk.bf16.vlgmr.msra.gmra.mxu0 %vm1102_vm9, %v1765_v2  ;;  %1174 = vmatprep.subr.bf16.mxu1 %v1649_v27 }
  0xcd   : > { %1151 = vmatprep.mubr.bf16.mxu0 %v1841_v31 }
  0xcf   : > { %1175 = vmatpush1.bf16.msra.mxu1 %v1648_v29 }
  0xd0   : > { %1176 = vmatprep.subr.bf16.mxu1 %v1645_v30 }
  0xd3   : > { %1177 = vmatpush1.bf16.msra.mxu1 %v1644_v32 }
  0xd4   : > { %1667 = vmatmul.mubr.msk.bf16.gmra.mxu0 %vm1102_vm9, %v1766_v8 }
  0xd6   : > { %1668 = vmatmul.mubr.msk.bf16.vlgmr.msra.gmra.mxu1 %vm1102_vm9, %v1765_v2 }
  0xd7   : > { %1204 = vmatprep.mubr.bf16.mxu1 %v1841_v31 }
  0xde   : > { %1669 = vmatmul.mubr.msk.bf16.gmra.mxu1 %vm1102_vm9, %v1766_v8 }
 0x18c   : > { %v1143_v15 = vpop.f32.mrf.mxu0 }
 0x18d   : > { %v1238_v23 = vmul.f32 %v1670_v13, %v1143_v15 }
 0x18e   : > { %v1145_v12 = vpop.f32.mrf.mxu0 }
 0x18f   : > { %v1354_v14 = vmul.f32 %v1238_v23, %v1238_v23  ;;  %v1239_v26 = vmul.f32 0.0, %v1145_v12  ;;  %1322 = vst [vmem:[%s2097_s7] sm:$0xff] %v1238_v23 }
 0x190   : > { %v1147_v27 = vpop.f32.mrf.mxu0 }
 0x191   : > { %v1355_v28 = vmul.f32 %v1239_v26, %v1239_v26  ;;  %v1242_v29 = vmul.f32 %v1670_v13, %v1147_v27  ;;  %1386 = vst [vmem:[%s2102_s10] sm:$0xff] %v1354_v14  ;;  %1323 = vst [vmem:[%s2097_s7 + $0x8] sm:$0xff] %v1239_v26 }
 0x192   : > { %v1149_v30 = vpop.f32.mrf.mxu0 }
 0x193   : > { %v1358_v31 = vmul.f32 %v1242_v29, %v1242_v29  ;;  %v1243_v32 = vmul.f32 0.0, %v1149_v30  ;;  %1387 = vst [vmem:[%s2102_s10 + $0x8] sm:$0xff] %v1355_v28  ;;  %1326 = vst [vmem:[%s2097_s7 + $0x20] sm:$0xff] %v1242_v29 }
 0x194   : > { %v1153_v4 = vpop.f32.mrf.mxu0 }
 0x195   : > { %v1359_v5 = vmul.f32 %v1243_v32, %v1243_v32  ;;  %v1246_v6 = vmul.f32 %v1670_v13, %v1153_v4  ;;  %1390 = vst [vmem:[%s2102_s10 + $0x20] sm:$0xff] %v1358_v31  ;;  %1327 = vst [vmem:[%s2097_s7 + $0x28] sm:$0xff] %v1243_v32 }
 0x196   : > { %v1155_v7 = vpop.f32.mrf.mxu0  ;;  %v1196_v16 = vpop.f32.mrf.mxu1 }
 0x197   : > { %v1362_v17 = vmul.f32 %v1246_v6, %v1246_v6  ;;  %v1247_v18 = vmul.f32 0.0, %v1155_v7  ;;  %v1240_v19 = vmul.f32 0.0, %v1196_v16  ;;  %1391 = vst [vmem:[%s2102_s10 + $0x28] sm:$0xff] %v1359_v5  ;;  %1330 = vst [vmem:[%s2097_s7 + $0x40] sm:$0xff] %v1246_v6 }
 0x198   : > { %v1157_v20 = vpop.f32.mrf.mxu0  ;;  %v1198_v21 = vpop.f32.mrf.mxu1 }
 0x199   : > { %v1363_v24 = vmul.f32 %v1247_v18, %v1247_v18  ;;  %v1250_v25 = vmul.f32 %v1670_v13, %v1157_v20  ;;  %v1356_v33 = vmul.f32 %v1240_v19, %v1240_v19  ;;  %v1241_v34 = vmul.f32 0.0, %v1198_v21  ;;  %1394 = vst [vmem:[%s2102_s10 + $0x40] sm:$0xff] %v1362_v17  ;;  %1331 = vst [vmem:[%s2097_s7 + $0x48] sm:$0xff] %v1247_v18 }
 0x19a   : > { %v1159_v35 = vpop.f32.mrf.mxu0  ;;  %v1200_v36 = vpop.f32.mrf.mxu1  ;;  %1324 = vst [vmem:[%s2097_s7 + $0x10] sm:$0xff] %v1240_v19 }
 0x19b   : > { %v1366_v37 = vmul.f32 %v1250_v25, %v1250_v25  ;;  %v1251_v38 = vmul.f32 0.0, %v1159_v35  ;;  %v1357_v39 = vmul.f32 %v1241_v34, %v1241_v34  ;;  %v1244_v40 = vmul.f32 0.0, %v1200_v36  ;;  %1395 = vst [vmem:[%s2102_s10 + $0x48] sm:$0xff] %v1363_v24  ;;  %1334 = vst [vmem:[%s2097_s7 + $0x60] sm:$0xff] %v1250_v25 }
 0x19c   : > { %v1202_v41 = vpop.f32.mrf.mxu1  ;;  %1388 = vst [vmem:[%s2102_s10 + $0x10] sm:$0xff] %v1356_v33  ;;  %1325 = vst [vmem:[%s2097_s7 + $0x18] sm:$0xff] %v1241_v34 }
 0x19d   : > { %v1367_v42 = vmul.f32 %v1251_v38, %v1251_v38  ;;  %v1360_v43 = vmul.f32 %v1244_v40, %v1244_v40  ;;  %v1245_v44 = vmul.f32 0.0, %v1202_v41  ;;  %1398 = vst [vmem:[%s2102_s10 + $0x60] sm:$0xff] %v1366_v37  ;;  %1335 = vst [vmem:[%s2097_s7 + $0x68] sm:$0xff] %v1251_v38 }
 0x19e   : > { %v1206_v45 = vpop.f32.mrf.mxu1  ;;  %1389 = vst [vmem:[%s2102_s10 + $0x18] sm:$0xff] %v1357_v39  ;;  %1328 = vst [vmem:[%s2097_s7 + $0x30] sm:$0xff] %v1244_v40 }
 0x19f   : > { %v1361_v46 = vmul.f32 %v1245_v44, %v1245_v44  ;;  %v1248_v47 = vmul.f32 0.0, %v1206_v45  ;;  %1399 = vst [vmem:[%s2102_s10 + $0x68] sm:$0xff] %v1367_v42  ;;  %1392 = vst [vmem:[%s2102_s10 + $0x30] sm:$0xff] %v1360_v43 }
 0x1a0   : > { %v1208_v48 = vpop.f32.mrf.mxu1  ;;  %1329 = vst [vmem:[%s2097_s7 + $0x38] sm:$0xff] %v1245_v44 }
 0x1a1   : > { %v1364_v49 = vmul.f32 %v1248_v47, %v1248_v47  ;;  %v1249_v50 = vmul.f32 0.0, %v1208_v48  ;;  %1393 = vst [vmem:[%s2102_s10 + $0x38] sm:$0xff] %v1361_v46  ;;  %1332 = vst [vmem:[%s2097_s7 + $0x50] sm:$0xff] %v1248_v47 }
 0x1a2   : > { %v1210_v51 = vpop.f32.mrf.mxu1 }
 0x1a3   : > { %v1365_v52 = vmul.f32 %v1249_v50, %v1249_v50  ;;  %v1252_v53 = vmul.f32 0.0, %v1210_v51  ;;  %1396 = vst [vmem:[%s2102_s10 + $0x50] sm:$0xff] %v1364_v49  ;;  %1333 = vst [vmem:[%s2097_s7 + $0x58] sm:$0xff] %v1249_v50 }
 0x1a4   : > { %v1212_v54 = vpop.f32.mrf.mxu1 }
 0x1a5   : > { %v1368_v55 = vmul.f32 %v1252_v53, %v1252_v53  ;;  %v1253_v56 = vmul.f32 0.0, %v1212_v54  ;;  %1397 = vst [vmem:[%s2102_s10 + $0x58] sm:$0xff] %v1365_v52  ;;  %1336 = vst [vmem:[%s2097_s7 + $0x70] sm:$0xff] %v1252_v53 }
 0x1a7   : > { %v1369_v57 = vmul.f32 %v1253_v56, %v1253_v56  ;;  %1400 = vst [vmem:[%s2102_s10 + $0x70] sm:$0xff] %v1368_v55  ;;  %1337 = vst [vmem:[%s2097_s7 + $0x78] sm:$0xff] %v1253_v56 }
 0x1a9   : > { %1401 = vst [vmem:[%s2102_s10 + $0x78] sm:$0xff] %v1369_v57 }
 0x1aa PF: > { %s15_s19 = sadd.s32 1, %s1821_s19   ;;  %s2163_s15 = smov %s1809_s16 }
 0x1ab   : > { %p12_p12 = scmp.ge.s32.totalorder %s15_s19, 4   ;;  %s2164_s16 = smov %s1903_s23 }
 0x1ac   : > { %s2165_s17 = smov %s1817_s18  ;;  %s2166_s18 = smov %s2168_s20 }
 0x1ad   :  { %14 = sbr.rel (!%p12_p12) target bundleno = 3 (0x3), region = 214 }

// kernel: tdnn_mfcc_forward.12
= control target key start
LH: loop header
LB: loop body
LE: loop exit
PB: predicated region body
PF: predicated region fallthrough
CT: control target
= control target key end

     0   :  { %s1860_s18 = smov 0   ;;  %s1862_s19 = smov 0   ;;  %s2164_s0 = inlined_call_operand.vmem [shape: bf16[2,2,32,514], index: 0, kind: input, shape index: {}]   ;;  %s2165_s1 = inlined_call_operand.vmem [shape: bf16[2,1,2,32,2], index: 1, kind: input, shape index: {}]   ;;  %s2166_s2 = inlined_call_operand.vmem [shape: bf16[32,96], index: 2, kind: input, shape index: {}]   ;;  %s2167_s3 = inlined_call_operand.vmem [shape: f32[32,1], index: 3, kind: input, shape index: {}]   ;;  %s2168_s4 = inlined_call_operand.vmem [shape: f32[32,1], index: 4, kind: input, shape index: {}]   ;;  %s2169_s5 = inlined_call_operand.vmem [shape: bf16[2,32,512], index: 5, kind: output, shape index: {}]  }
   0x1   :  { %s1864_s20 = smov 0   ;;  %s1866_s21 = smov 0  }
   0x2   :  { %s1868_s22 = smov 0  }
   0x3 LB: > { %s27_s23 = sadd.s32 1, %s1805_s21  ;;  %p43_p1 = scmp.ne.s32.totalorder %s1797_s19, %s1793_s18  ;;  %s1809_s22 = sphi %s1868_s22, %s15_s22   ;;  %s1805_s21 = sphi %s1866_s21, %s2180_s21   ;;  %s1801_s20 = sphi %s1864_s20, %s2179_s20   ;;  %s1797_s19 = sphi %s1862_s19, %s2178_s19   ;;  %s1793_s18 = sphi %s1860_s18, %s2177_s18  }
   0x4   : > { %p29_p0 = scmp.ge.s32.totalorder %s27_s23, 2  ;;  %p44_p2 = scmp.eq.s32.totalorder %s1809_s22, 0 }
   0x5   : > { %s36_s25 = sadd.s32 1, %s1797_s19  ;;  %p1588_p5 = scmp.ge.s32.totalorder %s1809_s22, 2 }
   0x6   : > { %s2182_s23 = smov (%p29_p0, %s27_s23), 0  ;;  %p45_p3 = por %p44_p2, %p43_p1 }
   0x7   : > { %s31_s24 = ssub.s32 %s1805_s21, %s2182_s23  ;;  %197 = sbr.rel (%p1588_p5) target bundleno = 25 (0x19), region = 28 }
   0x8   : > { %p34_p4 = scmp.eq.s32.totalorder %s31_s24, 0 }
   0xa   : > { %s1895_s26 = scalar_select %p34_p4, %s1797_s19, %s36_s25  }
   0xc   : > { %200 = sbr.rel (!%p45_p3) target bundleno = 25 (0x19), region = 32  ;;  %s202_s27 = sand.u32 (%p45_p3), 1, %s1797_s19  }
   0xd   : > { %s1663_s28 = smul.u32 (%p45_p3), 160, %s1805_s21  ;;  %s1900_s29 = sshll.u32 (%p45_p3), %s202_s27, 7 }
   0xe   : > { %s204_s8 = scalar_lea.vmem (%p45_p3), [#allocation3], %s1900_s29   ;;  %s1915_s11 = smov (%p45_p3), 0  }
   0xf   : > { %s1905_s7 = scalar_lea.vmem (%p45_p3), %s2164_s0, %s1663_s28   ;;  %s2170_s9 = smov (%p45_p3), %s204_s8 }
  0x10   : > { %s2171_s10 = smov (%p45_p3), %s1905_s7  ;;  %s1917_s12 = smov (%p45_p3), 0  }
  0x11 LB: >> { %v425_v0 = vld [vmem:[%s1817_s10] sm:$0xff]  ;;  %v427_v1 = vld [vmem:[%s1817_s10 + $0x14] sm:$0xff]  ;;  %v429_v2 = vld [vmem:[%s1817_s10 + $0x28] sm:$0xff]  ;;  %s441_s13 = sadd.s32 1, %s1821_s11  ;;  %s419_s12 = sadd.s32 1, %s1825_s12   ;;  %s1825_s12 = sphi %s1917_s12, %s419_s12   ;;  %s1821_s11 = sphi %s1915_s11, %s2172_s11   ;;  %s1817_s10 = sphi %s2171_s10, %s446_s10   ;;  %s1813_s9 = sphi %s2170_s9, %s447_s9  }
  0x12   : >> { %426 = vst [vmem:[%s1813_s9] sm:$0xff] %v425_v0  ;;  %428 = vst [vmem:[%s1813_s9 + $0x10] sm:$0xff] %v427_v1  ;;  %v431_v3 = vld [vmem:[%s1817_s10 + $0x3c] sm:$0xff]  ;;  %v433_v4 = vld [vmem:[%s1817_s10 + $0x50] sm:$0xff]  ;;  %p442_p6 = scmp.ge.s32.totalorder %s441_s13, 2  ;;  %p418_p7 = scmp.ge.s32.totalorder %s419_s12, 2 }
  0x13   : >> { %430 = vst [vmem:[%s1813_s9 + $0x20] sm:$0xff] %v429_v2  ;;  %v435_v5 = vld [vmem:[%s1817_s10 + $0x64] sm:$0xff]  ;;  %432 = vst [vmem:[%s1813_s9 + $0x30] sm:$0xff] %v431_v3  ;;  %v437_v6 = vld [vmem:[%s1817_s10 + $0x78] sm:$0xff] }
  0x14   : >> { %434 = vst [vmem:[%s1813_s9 + $0x40] sm:$0xff] %v433_v4  ;;  %436 = vst [vmem:[%s1813_s9 + $0x50] sm:$0xff] %v435_v5  ;;  %v439_v7 = vld [vmem:[%s1817_s10 + $0x8c] sm:$0xff]  ;;  %s2184_s13 = smov (%p442_p6, %s441_s13), 0  ;;  %421 = sbr.rel (!%p418_p7) target bundleno = 17 (0x11), region = 173 }
  0x15   : >> { %438 = vst [vmem:[%s1813_s9 + $0x60] sm:$0xff] %v437_v6  ;;  %440 = vst [vmem:[%s1813_s9 + $0x70] sm:$0xff] %v439_v7  ;;  %s1593_s14 = sshll.u32 %s2184_s13, 3  ;;  %s2172_s11 = smov %s2184_s13 }
  0x16   : >> { %s446_s10 = scalar_lea.vmem %s1905_s7, %s1593_s14   ;;  %s447_s9 = scalar_lea.vmem %s204_s8, %s1593_s14 [#allocation3]  }
  0x19 PF: > { %p1607_p8 = scmp.ge.s32.totalorder %s1809_s22, 1  ;;  %p687_p9 = scmp.lt.s32.totalorder %s1809_s22, 3 }
  0x1b   : > { %p688_p10 = pnand %p1607_p8, %p687_p9 }
  0x1c   : > { %s694_s15 = sand.u32 (!%p688_p10), 1, %s1793_s18   ;;  %p739_p11 = scmp.lt.s32.totalorder (!%p688_p10), %s1801_s20, 1 }
  0x1d   : > { %691 = sbr.rel (%p688_p10) target bundleno = 430 (0x1ae), region = 102  ;;  %s1608_s16 = sshll.u32 (!%p688_p10), %s694_s15, 7 }
  0x1e   : > { %s696_s17 = scalar_lea.vmem (!%p688_p10), [#allocation3], %s1608_s16  ;;  %s1827_s24 = smov (!%p688_p10), 126  }
  0x1f   : > { %s1828_s29 = smov (!%p688_p10), 127  }
  0x22   : > { %v1937_v8 = vld [vmem:[%s696_s17 + $0x30] sm:$0xff]  ;;  %v1939_v9 = vld [vmem:[%s696_s17 + $0x20] sm:$0xff]  ;;  %v1941_v10 = vld [vmem:[%s696_s17 + $0x38] sm:$0xff]  ;;  %s2186_s20 = smov (!%p739_p11, %s1801_s20), 1  ;;  %v1829_v29 = vmov 0   ;;  %vm815_vm0 = vcmask 1043456  }
  0x23   : > { %901 = vrot.lane.b32.xlu1 %v1937_v8, %s1827_s24  ;;  %897 = vrot.lane.b32.xlu0 %v1939_v9, %s1827_s24  ;;  %v1946_v11 = vld [vmem:[%s696_s17 + $0x28] sm:$0xff]  ;;  %v1950_v13 = vld [vmem:[%s696_s17] sm:$0xff]  ;;  %s1653_s18 = sshll.u32 %s2186_s20, 5  ;;  %v1620_v20 = vcombine.high %v1939_v9, %v1937_v8  ;;  %v1619_v21 = vcombine.low %v1939_v9, %v1937_v8  ;;  %vm935_vm1 = vcmask 1031172   ;;  %vm914_vm2 = vcmask 1031168   ;;  %s1654_s6 = sshll.u32 %s2186_s20, 6 }
  0x24   : > { %v1948_v12 = vld [vmem:[%s696_s17 + $0x8] sm:$0xff]  ;;  %v1952_v14 = vld [vmem:[%s696_s17 + $0x18] sm:$0xff]  ;;  %v1954_v15 = vld [vmem:[%s696_s17 + $0x10] sm:$0xff]  ;;  %s747_s28 = scalar_lea.vmem %s2165_s1, %s1653_s18  ;;  %v1622_v28 = vcombine.high %v1946_v11, %v1941_v10  ;;  %1166 = vmatprep.mubr.bf16.mxu0 %v1829_v29  ;;  %1219 = vmatprep.mubr.bf16.mxu1 %v1829_v29  ;;  %v1621_v30 = vcombine.low %v1946_v11, %v1941_v10  ;;  %vm964_vm4 = vcmask 1044464   ;;  %vm839_vm5 = vcmask 1039364   ;;  %s2131_s9 = scalar_lea.vmem %s2169_s5, %s1654_s6 }
  0x25   : > { %v947_v16 = vld [vmem:[%s747_s28 + $0xc] sm:$0xf]  ;;  %v946_v17 = vld [vmem:[%s747_s28 + $0x8] sm:$0xf]  ;;  %v945_v18 = vld [vmem:[%s747_s28 + $0x4] sm:$0xf]  ;;  %v1616_v22 = vcombine.high %v1950_v13, %v1954_v15  ;;  %v1615_v25 = vcombine.low %v1950_v13, %v1954_v15  ;;  %1740 = vset.pattern.permute.xlu1 %v1829_v29  ;;  %1739 = vset.pattern.permute.xlu0 %v1829_v29  ;;  %v1618_v31 = vcombine.high %v1948_v12, %v1952_v14 }
  0x26   : > { %v944_v19 = vld [vmem:[%s747_s28] sm:$0xf]  ;;  %v851_v23 = vld [vmem:[%s747_s28 + $0xc] sm:$0xf]  ;;  %v850_v24 = vld [vmem:[%s747_s28 + $0x8] sm:$0xf]  ;;  %v1617_v32 = vcombine.low %v1948_v12, %v1952_v14 }
  0x27   : > { %903 = vrot.lane.b32.xlu1 %v1941_v10, %s1827_s24  ;;  %899 = vrot.lane.b32.xlu0 %v1946_v11, %s1827_s24  ;;  %v849_v26 = vld [vmem:[%s747_s28 + $0x4] sm:$0xf]  ;;  %v848_v27 = vld [vmem:[%s747_s28] sm:$0xf]  ;;  %vm2034_vm3 = vmor %vm935_vm1, %vm815_vm0  ;;  %vm817_vm6 = vcmask 1039360   ;;  %vm868_vm8 = vcmask 1044472  }
  0x28   : > { %v1241_v33 = vld [vmem:[%s2167_s3 + $0x8] sm:$0xff]  ;;  %v1240_v34 = vld [vmem:[%s2167_s3] sm:$0xff]  ;;  %v1242_v35 = vld [vmem:[%s2167_s3 + $0x10] sm:$0xff]  ;;  %vm1127_vm9 = vcmask 785408  }
  0x29   : > { %v1243_v36 = vld [vmem:[%s2167_s3 + $0x18] sm:$0xff]  ;;  %v1280_v37 = vld [vmem:[%s2168_s4] sm:$0xff]  ;;  %v1281_v38 = vld [vmem:[%s2168_s4 + $0x8] sm:$0xff] }
  0x2a   : > { %v1282_v39 = vld [vmem:[%s2168_s4 + $0x10] sm:$0xff]  ;;  %v1283_v40 = vld [vmem:[%s2168_s4 + $0x18] sm:$0xff]  ;;  %vm2061_vm7 = vmor %vm839_vm5, %vm815_vm0 }
  0x2b   : > { %891 = vrot.lane.b32.xlu1 %v1948_v12, %s1827_s24  ;;  %889 = vrot.lane.b32.xlu0 %v1950_v13, %s1827_s24 }
  0x2f   : > { %895 = vrot.lane.b32.xlu1 %v1952_v14, %s1827_s24  ;;  %893 = vrot.lane.b32.xlu0 %v1954_v15, %s1827_s24 }
  0x33   : > { %958 = vrot.lane.b32.xlu1 %v947_v16, %s1827_s24  ;;  %956 = vrot.lane.b32.xlu0 %v946_v17, %s1827_s24 }
  0x37   : > { %801 = vrot.lane.b32.xlu1 %v1946_v11, %s1828_s29  ;;  %799 = vrot.lane.b32.xlu0 %v1939_v9, %s1828_s29 }
  0x3b   : > { %805 = vrot.lane.b32.xlu1 %v1941_v10, %s1828_s29  ;;  %803 = vrot.lane.b32.xlu0 %v1937_v8, %s1828_s29  ;;  %v1754_v8 = vld [vmem:[%s2166_s2 + $0x8] sm:$0xff]  }
  0x3f   : > { %954 = vrot.lane.b32.xlu1 %v945_v18, %s1827_s24  ;;  %952 = vrot.lane.b32.xlu0 %v944_v19, %s1827_s24 }
  0x43   : > { %793 = vrot.lane.b32.xlu1 %v1948_v12, %s1828_s29  ;;  %791 = vrot.lane.b32.xlu0 %v1950_v13, %s1828_s29 }
  0x47   : > { %797 = vrot.lane.b32.xlu1 %v1952_v14, %s1828_s29  ;;  %795 = vrot.lane.b32.xlu0 %v1954_v15, %s1828_s29 }
  0x4b   : > { %862 = vrot.lane.b32.xlu1 %v851_v23, %s1828_s29  ;;  %860 = vrot.lane.b32.xlu0 %v850_v24, %s1828_s29 }
  0x4f   : > { %858 = vrot.lane.b32.xlu1 %v849_v26, %s1828_s29  ;;  %856 = vrot.lane.b32.xlu0 %v848_v27, %s1828_s29 }
  0x53   : > { %1251 = vperm.xlu1 %1740, %v1241_v33   ;;  %1246 = vperm.xlu0 %1739, %v1240_v34  }
  0x57   : > { %1256 = vperm.xlu1 %1740, %v1242_v35   ;;  %1261 = vperm.xlu0 %1739, %v1243_v36  }
  0x5b   : > { %1286 = vperm.xlu1 %1740, %v1280_v37   ;;  %1291 = vperm.xlu0 %1739, %v1281_v38  }
  0x5f   : > { %1296 = vperm.xlu1 %1740, %v1282_v39   ;;  %1301 = vperm.xlu0 %1739, %v1283_v40  }
  0x95   : > { %v902_v41 = vpop.permute.xlu1 %901  ;;  %v898_v42 = vpop.permute.xlu0 %897 }
  0x96   : > { %v911_v45 = vrot.slane %v902_v41, 4  ;;  %v909_v46 = vrot.slane %v898_v42, 4 }
  0x99   : > { %v904_v43 = vpop.permute.xlu1 %903  ;;  %v900_v44 = vpop.permute.xlu0 %899 }
  0x9a   : > { %v912_v48 = vrot.slane %v904_v43, 4  ;;  %v910_v49 = vrot.slane %v900_v44, 4 }
  0x9c   : > { %v923_v50 = vsel %vm815_vm0, %v911_v45, %v912_v48  ;;  %v925_v51 = vsel %vm914_vm2, %v904_v43, %v912_v48  ;;  %v920_v52 = vsel %vm815_vm0, %v909_v46, %v910_v49  ;;  %v922_v53 = vsel %vm914_vm2, %v900_v44, %v910_v49 }
  0x9d   : > { %v924_v54 = vsel %vm914_vm2, %v902_v41, %v923_v50  ;;  %943 = vst.msk [vmem:[#allocation2 + $0xb8] sm:$0xff] %vm2034_vm3, %v925_v51  ;;  %v921_v55 = vsel %vm914_vm2, %v898_v42, %v920_v52  ;;  %941 = vst.msk [vmem:[#allocation2 + $0xa8] sm:$0xff] %vm2034_vm3, %v922_v53  ;;  %v892_v56 = vpop.permute.xlu1 %891  ;;  %v890_v57 = vpop.permute.xlu0 %889 }
  0x9e   : > { %v906_v58 = vrot.slane %v892_v56, 4  ;;  %v905_v59 = vrot.slane %v890_v57, 4  ;;  %v1636_v60 = vcombine.high %v921_v55, %v924_v54  ;;  %v1635_v61 = vcombine.low %v921_v55, %v924_v54 }
  0xa0   : > { %v916_v62 = vsel %vm914_vm2, %v892_v56, %v906_v58  ;;  %v913_v63 = vsel %vm815_vm0, %v905_v59, %v906_v58  ;;  %1138 = vmatprep.subr.bf16.mxu0 %v1636_v60 }
  0xa1   : > { %937 = vst.msk [vmem:[#allocation2 + $0x88] sm:$0xff] %vm2034_vm3, %v916_v62  ;;  %v915_v0 = vsel %vm914_vm2, %v890_v57, %v913_v63  ;;  %v896_v1 = vpop.permute.xlu1 %895  ;;  %v894_v2 = vpop.permute.xlu0 %893  ;;  %1139 = vmatpush1.bf16.msra.mxu0 %v1635_v61 }
  0xa2   : > { %v908_v3 = vrot.slane %v896_v1, 4  ;;  %v907_v4 = vrot.slane %v894_v2, 4 }
  0xa4   : > { %v919_v5 = vsel %vm914_vm2, %v896_v1, %v908_v3  ;;  %v917_v6 = vsel %vm815_vm0, %v907_v4, %v908_v3  ;;  %v1743_v42 = vld [vmem:[#allocation2 + $0xa8] ss:$16 sps:$4 sm:$0xff]  }
  0xa5   : > { %939 = vst.msk [vmem:[#allocation2 + $0x98] sm:$0xff] %vm2034_vm3, %v919_v5  ;;  %v918_v7 = vsel %vm914_vm2, %v894_v2, %v917_v6  ;;  %v959_v16 = vpop.permute.xlu1 %958  ;;  %v957_v17 = vpop.permute.xlu0 %956 }
  0xa6   : > { %968 = vst.msk [vmem:[#allocation2 + $0xbc] sm:$0xf] %vm964_vm4, %v959_v16  ;;  %967 = vst.msk [vmem:[#allocation2 + $0xac] sm:$0xf] %vm964_vm4, %v957_v17  ;;  %v1632_v18 = vcombine.high %v915_v0, %v918_v7  ;;  %v1631_v19 = vcombine.low %v915_v0, %v918_v7 }
  0xa8   : > { %1140 = vmatprep.subr.bf16.mxu0 %v1632_v18  ;;  %v1753_v18 = vld [vmem:[%s2166_s2] sm:$0xff]  }
  0xa9   : > { %v802_v23 = vpop.permute.xlu1 %801  ;;  %v800_v24 = vpop.permute.xlu0 %799  ;;  %1141 = vmatpush1.bf16.msra.mxu0 %v1631_v19 }
  0xaa   : > { %v812_v27 = vrot.slane %v802_v23, 4  ;;  %v811_v33 = vrot.slane %v800_v24, 4 }
  0xac   : > { %v825_v34 = vsel %vm817_vm6, %v802_v23, %v812_v27  ;;  %v823_v35 = vsel %vm815_vm0, %v811_v33, %v812_v27  ;;  %v1746_v62 = vld [vmem:[#allocation2 + $0x88] ss:$16 sps:$4 sm:$0xff]  }
  0xad   : > { %845 = vst.msk [vmem:[#allocation2 + $0x68] sm:$0xff] %vm2061_vm7, %v825_v34  ;;  %v824_v36 = vsel %vm817_vm6, %v800_v24, %v823_v35  ;;  %v806_v37 = vpop.permute.xlu1 %805  ;;  %v804_v38 = vpop.permute.xlu0 %803  ;;  %v1741_v39 = vld [vmem:[#allocation2 + $0xac] ss:$16 sps:$4 sm:$0xff]  }
  0xae   : > { %v814_v40 = vrot.slane %v806_v37, 4  ;;  %v813_v41 = vrot.slane %v804_v38, 4  ;;  %1191 = vmatprep.subr.bf16.mxu1 %v1741_v39 }
  0xaf   : > { %1192 = vmatpush1.bf16.msra.mxu1 %v1743_v42 }
  0xb0   : > { %v828_v43 = vsel %vm817_vm6, %v806_v37, %v814_v40  ;;  %v826_v44 = vsel %vm815_vm0, %v813_v41, %v814_v40 }
  0xb1   : > { %847 = vst.msk [vmem:[#allocation2 + $0x78] sm:$0xff] %vm2061_vm7, %v828_v43  ;;  %v827_v45 = vsel %vm817_vm6, %v804_v38, %v826_v44  ;;  %v955_v46 = vpop.permute.xlu1 %954  ;;  %v953_v47 = vpop.permute.xlu0 %952 }
  0xb2   : > { %966 = vst.msk [vmem:[#allocation2 + $0x9c] sm:$0xf] %vm964_vm4, %v955_v46  ;;  %965 = vst.msk [vmem:[#allocation2 + $0x8c] sm:$0xf] %vm964_vm4, %v953_v47  ;;  %v1628_v48 = vcombine.high %v824_v36, %v827_v45  ;;  %v1627_v49 = vcombine.low %v824_v36, %v827_v45 }
  0xb4   : > { %1142 = vmatprep.subr.bf16.mxu0 %v1628_v48 }
  0xb5   : > { %v794_v50 = vpop.permute.xlu1 %793  ;;  %v792_v51 = vpop.permute.xlu0 %791  ;;  %1143 = vmatpush1.bf16.msra.mxu0 %v1627_v49 }
  0xb6   : > { %v808_v52 = vrot.slane %v794_v50, 4  ;;  %v807_v53 = vrot.slane %v792_v51, 4 }
  0xb8   : > { %v819_v54 = vsel %vm817_vm6, %v794_v50, %v808_v52  ;;  %v816_v55 = vsel %vm815_vm0, %v807_v53, %v808_v52  ;;  %v1749_v17 = vld [vmem:[#allocation2 + $0x68] ss:$16 sps:$4 sm:$0xff]  }
  0xb9   : > { %841 = vst.msk [vmem:[#allocation2 + $0x48] sm:$0xff] %vm2061_vm7, %v819_v54  ;;  %v818_v56 = vsel %vm817_vm6, %v792_v51, %v816_v55  ;;  %v798_v57 = vpop.permute.xlu1 %797  ;;  %v796_v58 = vpop.permute.xlu0 %795  ;;  %v1744_v59 = vld [vmem:[#allocation2 + $0x8c] ss:$16 sps:$4 sm:$0xff]  }
  0xba   : > { %v810_v60 = vrot.slane %v798_v57, 4  ;;  %v809_v61 = vrot.slane %v796_v58, 4  ;;  %1193 = vmatprep.subr.bf16.mxu1 %v1744_v59 }
  0xbb   : > { %1194 = vmatpush1.bf16.msra.mxu1 %v1746_v62 }
  0xbc   : > { %v822_v63 = vsel %vm817_vm6, %v798_v57, %v810_v60  ;;  %v820_v0 = vsel %vm815_vm0, %v809_v61, %v810_v60 }
  0xbd   : > { %843 = vst.msk [vmem:[#allocation2 + $0x58] sm:$0xff] %vm2061_vm7, %v822_v63  ;;  %v821_v1 = vsel %vm817_vm6, %v796_v58, %v820_v0  ;;  %v863_v2 = vpop.permute.xlu1 %862  ;;  %v861_v3 = vpop.permute.xlu0 %860 }
  0xbe   : > { %872 = vst.msk [vmem:[#allocation2 + $0x7c] sm:$0xf] %vm868_vm8, %v863_v2  ;;  %871 = vst.msk [vmem:[#allocation2 + $0x6c] sm:$0xf] %vm868_vm8, %v861_v3  ;;  %v1624_v4 = vcombine.high %v818_v56, %v821_v1  ;;  %v1623_v5 = vcombine.low %v818_v56, %v821_v1 }
  0xc0   : > { %1144 = vmatprep.subr.bf16.mxu0 %v1624_v4 }
  0xc1   : > { %v859_v6 = vpop.permute.xlu1 %858  ;;  %v857_v7 = vpop.permute.xlu0 %856  ;;  %1145 = vmatpush1.bf16.msra.mxu0 %v1623_v5 }
  0xc2   : > { %870 = vst.msk [vmem:[#allocation2 + $0x5c] sm:$0xf] %vm868_vm8, %v859_v6  ;;  %869 = vst.msk [vmem:[#allocation2 + $0x4c] sm:$0xf] %vm868_vm8, %v857_v7  ;;  %1146 = vmatprep.subr.bf16.mxu0 %v1620_v20 }
  0xc4   : > { %v1752_v20 = vld [vmem:[#allocation2 + $0x48] ss:$16 sps:$4 sm:$0xff]  }
  0xc5   : > { %v1747_v16 = vld [vmem:[#allocation2 + $0x6c] ss:$16 sps:$4 sm:$0xff]   ;;  %1147 = vmatpush1.bf16.msra.mxu0 %v1619_v21 }
  0xc6   : > { %1148 = vmatprep.subr.bf16.mxu0 %v1616_v22  ;;  %1195 = vmatprep.subr.bf16.mxu1 %v1747_v16 }
  0xc7   : > { %1196 = vmatpush1.bf16.msra.mxu1 %v1749_v17 }
  0xc9   : > { %v1750_v19 = vld [vmem:[#allocation2 + $0x4c] ss:$16 sps:$4 sm:$0xff]   ;;  %1149 = vmatpush1.bf16.msra.mxu0 %v1615_v25 }
  0xca   : > { %1197 = vmatprep.subr.bf16.mxu1 %v1750_v19 }
  0xcb   : > { %1198 = vmatpush1.bf16.msra.mxu1 %v1752_v20 }
  0xcc   : > { %1639 = vmatmul.mubr.msk.bf16.vlgmr.msra.gmra.mxu0 %vm1127_vm9, %v1753_v18  ;;  %1199 = vmatprep.subr.bf16.mxu1 %v1622_v28 }
  0xcd   : > { %1176 = vmatprep.mubr.bf16.mxu0 %v1829_v29 }
  0xce   : > { %v1252_v9 = vpop.permute.xlu1 %1251  ;;  %v1247_v10 = vpop.permute.xlu0 %1246 }
  0xcf   : > { %1200 = vmatpush1.bf16.msra.mxu1 %v1621_v30 }
  0xd0   : > { %1201 = vmatprep.subr.bf16.mxu1 %v1618_v31 }
  0xd2   : > { %v2123_v11 = vpop.permute.xlu1 %1256  ;;  %v2125_v13 = vpop.permute.xlu0 %1261 }
  0xd3   : > { %1202 = vmatpush1.bf16.msra.mxu1 %v1617_v32 }
  0xd4   : > { %1640 = vmatmul.mubr.msk.bf16.gmra.mxu0 %vm1127_vm9, %v1754_v8 }
  0xd6   : > { %1641 = vmatmul.mubr.msk.bf16.vlgmr.msra.gmra.mxu1 %vm1127_vm9, %v1753_v18  ;;  %v1287_v25 = vpop.permute.xlu1 %1286  ;;  %v1292_v23 = vpop.permute.xlu0 %1291 }
  0xd7   : > { %1229 = vmatprep.mubr.bf16.mxu1 %v1829_v29 }
  0xda   : > { %v1297_v33 = vpop.permute.xlu1 %1296  ;;  %v1302_v45 = vpop.permute.xlu0 %1301 }
  0xde   : > { %1642 = vmatmul.mubr.msk.bf16.gmra.mxu1 %vm1127_vm9, %v1754_v8 }
 0x18c   : > { %v1168_v15 = vpop.f32.mrf.mxu0 }
 0x18d   : > { %v1264_v21 = vmul.f32 %v1247_v10, %v1168_v15 }
 0x18e   : > { %v1170_v22 = vpop.f32.mrf.mxu0 }
 0x18f   : > { %v1265_v28 = vmul.f32 %v1247_v10, %v1170_v22  ;;  %v1304_v30 = vadd.f32 %v1287_v25, %v1264_v21 }
 0x190   : > { %v1172_v12 = vpop.f32.mrf.mxu0 }
 0x191   : > { %v1305_v14 = vadd.f32 %v1287_v25, %v1265_v28  ;;  %v1320_v31 = vmax.f32 %v1304_v30, 0.0  ;;  %v1268_v32 = vmul.f32 %v1252_v9, %v1172_v12 }
 0x192   : > { %v1174_v29 = vpop.f32.mrf.mxu0 }
 0x193   : > { %v1321_v24 = vmax.f32 %v1305_v14, 0.0  ;;  %v1308_v26 = vadd.f32 %v1292_v23, %v1268_v32  ;;  %v1269_v27 = vmul.f32 %v1252_v9, %v1174_v29 }
 0x194   : > { %v1178_v34 = vpop.f32.mrf.mxu0 }
 0x195   : > { %v1655_v35 = vpack.c.bf16 %v1321_v24, %v1320_v31  ;;  %v1324_v36 = vmax.f32 %v1308_v26, 0.0  ;;  %v1309_v37 = vadd.f32 %v1292_v23, %v1269_v27  ;;  %v1272_v38 = vmul.f32 %v2123_v11, %v1178_v34 }
 0x196   : > { %v1180_v39 = vpop.f32.mrf.mxu0  ;;  %v1221_v40 = vpop.f32.mrf.mxu1 }
 0x197   : > { %1384 = vst [vmem:[%s2131_s9] sm:$0xff] %v1655_v35  ;;  %v1325_v41 = vmax.f32 %v1309_v37, 0.0  ;;  %v1312_v42 = vadd.f32 %v1297_v33, %v1272_v38  ;;  %v1273_v43 = vmul.f32 %v2123_v11, %v1180_v39  ;;  %v1266_v44 = vmul.f32 %v1247_v10, %v1221_v40 }
 0x198   : > { %v1182_v46 = vpop.f32.mrf.mxu0  ;;  %v1223_v48 = vpop.f32.mrf.mxu1 }
 0x199   : > { %v1657_v47 = vpack.c.bf16 %v1325_v41, %v1324_v36  ;;  %v1328_v49 = vmax.f32 %v1312_v42, 0.0  ;;  %v1313_v50 = vadd.f32 %v1297_v33, %v1273_v43  ;;  %v1276_v51 = vmul.f32 %v2125_v13, %v1182_v46 }
 0x19a   : > { %v1306_v52 = vadd.f32 %v1287_v25, %v1266_v44  ;;  %v1267_v53 = vmul.f32 %v1247_v10, %v1223_v48  ;;  %v1184_v54 = vpop.f32.mrf.mxu0  ;;  %v1225_v55 = vpop.f32.mrf.mxu1 }
 0x19b   : > { %1386 = vst [vmem:[%s2131_s9 + $0x10] sm:$0xff] %v1657_v47  ;;  %v1329_v56 = vmax.f32 %v1313_v50, 0.0  ;;  %v1316_v57 = vadd.f32 %v1302_v45, %v1276_v51  ;;  %v1277_v58 = vmul.f32 %v2125_v13, %v1184_v54  ;;  %v1270_v60 = vmul.f32 %v1252_v9, %v1225_v55 }
 0x19c   : > { %v1307_v59 = vadd.f32 %v1287_v25, %v1267_v53  ;;  %v1227_v62 = vpop.f32.mrf.mxu1  ;;  %v1322_v1 = vmax.f32 %v1306_v52, 0.0 }
 0x19d   : > { %v1659_v61 = vpack.c.bf16 %v1329_v56, %v1328_v49  ;;  %v1332_v63 = vmax.f32 %v1316_v57, 0.0  ;;  %v1317_v0 = vadd.f32 %v1302_v45, %v1277_v58  ;;  %v1310_v3 = vadd.f32 %v1292_v23, %v1270_v60 }
 0x19e   : > { %v1323_v2 = vmax.f32 %v1307_v59, 0.0  ;;  %v1271_v4 = vmul.f32 %v1252_v9, %v1227_v62  ;;  %v1231_v5 = vpop.f32.mrf.mxu1 }
 0x19f   : > { %1388 = vst [vmem:[%s2131_s9 + $0x20] sm:$0xff] %v1659_v61  ;;  %v1333_v6 = vmax.f32 %v1317_v0, 0.0  ;;  %v1274_v17 = vmul.f32 %v2123_v11, %v1231_v5  ;;  %v1326_v20 = vmax.f32 %v1310_v3, 0.0 }
 0x1a0   : > { %v1656_v7 = vpack.c.bf16 %v1323_v2, %v1322_v1  ;;  %v1311_v16 = vadd.f32 %v1292_v23, %v1271_v4  ;;  %v1233_v19 = vpop.f32.mrf.mxu1 }
 0x1a1   : > { %v1661_v18 = vpack.c.bf16 %v1333_v6, %v1332_v63  ;;  %v1314_v10 = vadd.f32 %v1297_v33, %v1274_v17  ;;  %v1275_v15 = vmul.f32 %v2123_v11, %v1233_v19 }
 0x1a2   : > { %1385 = vst [vmem:[%s2131_s9 + $0x8] sm:$0xff] %v1656_v7  ;;  %v1327_v8 = vmax.f32 %v1311_v16, 0.0  ;;  %v1235_v21 = vpop.f32.mrf.mxu1 }
 0x1a3   : > { %1390 = vst [vmem:[%s2131_s9 + $0x30] sm:$0xff] %v1661_v18  ;;  %v1315_v22 = vadd.f32 %v1297_v33, %v1275_v15  ;;  %v1278_v25 = vmul.f32 %v2125_v13, %v1235_v21  ;;  %v1330_v30 = vmax.f32 %v1314_v10, 0.0 }
 0x1a4   : > { %v1658_v9 = vpack.c.bf16 %v1327_v8, %v1326_v20  ;;  %v1237_v28 = vpop.f32.mrf.mxu1 }
 0x1a5   : > { %v1331_v12 = vmax.f32 %v1315_v22, 0.0  ;;  %v1318_v14 = vadd.f32 %v1302_v45, %v1278_v25  ;;  %v1279_v31 = vmul.f32 %v2125_v13, %v1237_v28 }
 0x1a6   : > { %1387 = vst [vmem:[%s2131_s9 + $0x18] sm:$0xff] %v1658_v9 }
 0x1a7   : > { %v1660_v32 = vpack.c.bf16 %v1331_v12, %v1330_v30  ;;  %v1319_v23 = vadd.f32 %v1302_v45, %v1279_v31  ;;  %v1334_v29 = vmax.f32 %v1318_v14, 0.0 }
 0x1a9   : > { %1389 = vst [vmem:[%s2131_s9 + $0x28] sm:$0xff] %v1660_v32  ;;  %v1335_v24 = vmax.f32 %v1319_v23, 0.0 }
 0x1ab   : > { %v1662_v11 = vpack.c.bf16 %v1335_v24, %v1334_v29 }
 0x1ad   : > { %1391 = vst [vmem:[%s2131_s9 + $0x38] sm:$0xff] %v1662_v11 }
 0x1ae PF: > { %s15_s22 = sadd.s32 1, %s1809_s22   ;;  %s2177_s18 = smov %s1797_s19 }
 0x1af   : > { %p12_p12 = scmp.ge.s32.totalorder %s15_s22, 4   ;;  %s2178_s19 = smov %s1895_s26 }
 0x1b0   : > { %s2179_s20 = smov %s1805_s21  ;;  %s2180_s21 = smov %s2182_s23 }
 0x1b1   :  { %14 = sbr.rel (!%p12_p12) target bundleno = 3 (0x3), region = 206 }

</bundles_post_ra>
